<compile_context>
chip_gen: v6e
topology: v6e:2x2x1
jax: 0.10.0
libtpu: 0.0.40
codegen_flags: <defaults>
</compile_context>

<pallas_src>
import math
from functools import partial

import jax
import jax.numpy as jnp
from jax.experimental import pallas as pl
from jax.experimental.pallas import tpu as pltpu

POOL = 4  # nn.AvgPool2d(4)


def _round_up(x, m):
    return (x + m - 1) // m * m


# ----------------------------- Pallas kernel -------------------------------

def pose_head_kernel(x_ref, w_ref, b_ref, o_ref):
    """Fused avgpool(4)+flatten+3xLinear, with the pool pre-folded into w_ref.

    x_ref: [TN, Dx]  bf16 (or f32; cast on load) -- raw NCHW-flattened activations
    w_ref: [Dx, Np]  bf16  -- pool-folded, head-concatenated, lane-padded weights
    b_ref: [1,  Np]  f32   -- concatenated biases, lane-padded
    o_ref: [TN, Np]  f32
    """
    o_ref[...] = jnp.dot(x_ref[...].astype(jnp.bfloat16), w_ref[...],
                         preferred_element_type=jnp.float32) + b_ref[...]


# ----------------------------- wrapper --------------------------------------

def pose_forward(params, x_nchw, *, tn=256):
    """x_nchw: [N, C, H, W] with C*(H//POOL)*(W//POOL) == 512*expansion.

    tn: batch tile.  256 bf16 rows (~21 MiB total with double-buffered weight) fits the scoped
    VMEM default on v6e/v7x; on v5e/v6e tn=512 with a larger vmem_limit_bytes is also fine.
    """
    N, C, H, W = x_nchw.shape
    w_all, b_all = params['w_all'], params['b_all']
    Dx, Np = w_all.shape
    assert (C, H, W) == params['in_shape'], "params were folded for a different input shape"
    assert C * H * W == Dx and Dx % 128 == 0 and Np % 128 == 0

    # Raw NCHW flatten: metadata-only reshape, no transpose, no pooled intermediate in HBM.
    x = x_nchw.reshape(N, Dx)
    # Activations are consumed in bf16 (kernel casts on load); ideally the producer already
    # stores them in bf16 so no extra cast op is needed here.

    # Batch tiling: multiple of tn -> pipelined grid; small batch -> single full-extent block.
    if N % tn == 0:
        TN, Ntot = tn, N
    elif N < tn:
        TN, Ntot = N, N                      # block == full dims, always legal, one grid step
    else:
        Ntot = _round_up(N, tn)
        x = jnp.pad(x, ((0, Ntot - N), (0, 0)))
        TN = tn

    out = pl.pallas_call(
        pose_head_kernel,
        out_shape=jax.ShapeDtypeStruct((Ntot, Np), jnp.float32),
        grid=(Ntot // TN,),
        in_specs=[
            pl.BlockSpec((TN, Dx), lambda i: (i, 0)),   # batch-tiled activations
            pl.BlockSpec((Dx, Np), lambda i: (0, 0)),   # weight: VMEM-resident across steps
            pl.BlockSpec((1, Np), lambda i: (0, 0)),    # bias:   VMEM-resident across steps
        ],
        out_specs=pl.BlockSpec((TN, Np), lambda i: (i, 0)),
        compiler_params=pltpu.CompilerParams(
            dimension_semantics=("parallel",),          # 2 TCs on v7x; no-op on v5e/v6e
            vmem_limit_bytes=32 * 1024 * 1024,
        ),
    )(x, w_all, b_all)

    out = out[:N]
    nb, hp = params['num_bins'], params['head_pad']
    pre_yaw = out[:, 0 * hp:0 * hp + nb]
    pre_pitch = out[:, 1 * hp:1 * hp + nb]
    pre_roll = out[:, 2 * hp:2 * hp + nb]
    return pre_yaw, pre_pitch, pre_roll


# ----------------------------- parameters -----------------------------------

def init_linear(key, cin, cout):
    # Matches PyTorch nn.Linear default init: U(-1/sqrt(in), 1/sqrt(in)) for weight and bias.
    k1, k2 = jax.random.split(key)
    bound = 1.0 / math.sqrt(cin)
    w = jax.random.uniform(k1, (cin, cout), jnp.float32, minval=-bound, maxval=bound)
    b = jax.random.uniform(k2, (cout,), jnp.float32, minval=-bound, maxval=bound)
    return w, b


def init_pose_estimation(key, num_bins, expansion=1):
    d = 512 * expansion
    ky, kpi, kr = jax.random.split(key, 3)
    wy, by = init_linear(ky, d, num_bins)
    wp, bp = init_linear(kpi, d, num_bins)
    wr, br = init_linear(kr, d, num_bins)
    # NOTE: if loading real PyTorch weights, nn.Linear stores (out, in); transpose to (in, out).
    # TODO(synk): fc_angles exists in the PyTorch module but is never used in forward(); skipped.
    return {'yaw': (wy, by), 'pitch': (wp, bp), 'roll': (wr, br),
            'num_bins': num_bins, 'in_features': d}


def fold_params(raw, input_chw):
    """Fold AvgPool2d(4) + head concat + lane padding into a single bf16 weight, once."""
    C, H, W = input_chw
    assert H % POOL == 0 and W % POOL == 0
    OH, OW = H // POOL, W // POOL
    D = C * OH * OW
    assert D == raw['in_features'], "flatten(avgpool4(x)) must match the FC input size"
    nb = raw['num_bins']
    head = _round_up(max(nb, 128), 128)                      # per-head lane stride (66 -> 128)
    Np = 3 * head

    def pad_w(w):  # [D, nb] -> [D, head]
        return jnp.pad(w, ((0, 0), (0, head - nb)))

    def pad_b(b):  # [nb] -> [head]
        return jnp.pad(b, (0, head - nb))

    w_cat = jnp.concatenate([pad_w(raw[k][0]) for k in ('yaw', 'pitch', 'roll')], axis=1)
    b_cat = jnp.concatenate([pad_b(raw[k][1]) for k in ('yaw', 'pitch', 'roll')], axis=0)

    # Pooling is linear: expand each (c, oh, ow) weight row to its 16 window taps, scaled 1/16,
    # laid out exactly in raw NCHW-flatten order (c, oh*4+ph, ow*4+pw).
    w4 = w_cat.reshape(C, OH, OW, Np)
    w_exp = jnp.broadcast_to(w4[:, :, None, :, None, :], (C, OH, POOL, OW, POOL, Np))
    w_exp = (w_exp / float(POOL * POOL)).reshape(C * H * W, Np)

    return {
        'w_all': w_exp.astype(jnp.bfloat16),                 # [C*H*W, Np] bf16 (MXU operand)
        'b_all': b_cat.reshape(1, Np).astype(jnp.float32),   # [1, Np] f32 (f32 epilogue add)
        'num_bins': nb,
        'head_pad': head,
        'in_shape': (C, H, W),
    }


# ----------------------------- pure-JAX reference ----------------------------

def reference_forward(raw, x_nchw):
    N, C, H, W = x_nchw.shape
    pooled = jnp.mean(x_nchw.reshape(N, C, H // POOL, POOL, W // POOL, POOL), axis=(3, 5))
    flat = pooled.reshape(N, -1)                             # PyTorch .view(N, -1) order
    return tuple(flat @ w + b for (w, b) in (raw['yaw'], raw['pitch'], raw['roll']))


# ----------------------------- main ------------------------------------------

if __name__ == "__main__":
    key = jax.random.PRNGKey(0)
    kparam, kx = jax.random.split(key)

    num_bins = 66
    expansion = 1  # BasicBlock.expansion

    # forward() requires flatten(avgpool4(x)) to have 512*expansion features -> x is (N, 512, 4, 4)
    batch = 2
    C, H, W = 512 * expansion, POOL, POOL

    raw = init_pose_estimation(kparam, num_bins, expansion)
    params = fold_params(raw, (C, H, W))

    x_f32 = jax.random.normal(kx, (batch, C, H, W), jnp.float32)
    x_bf16 = x_f32.astype(jnp.bfloat16)   # activations stored in bf16: halves the input DMA

    fwd = jax.jit(lambda x: pose_forward(params, x))
    yaw, pitch, roll = fwd(x_bf16)
    jax.block_until_ready((yaw, pitch, roll))

    assert yaw.shape == (batch, num_bins)
    assert pitch.shape == (batch, num_bins)
    assert roll.shape == (batch, num_bins)

    # correctness vs. float32 reference on the same (bf16-rounded) input
    ry, rp, rr = reference_forward(raw, x_bf16.astype(jnp.float32))
    assert bool(jnp.allclose(yaw, ry, atol=2e-2, rtol=2e-2))
    assert bool(jnp.allclose(pitch, rp, atol=2e-2, rtol=2e-2))
    assert bool(jnp.allclose(roll, rr, atol=2e-2, rtol=2e-2))
    assert bool(jnp.all(jnp.isfinite(yaw)))
    assert bool(jnp.all(jnp.isfinite(pitch)))
    assert bool(jnp.all(jnp.isfinite(roll)))

    print("KERNEL_OK")
</pallas_src>

<mosaic_0001>
module attributes {stable_mosaic.version = 11 : i64} {
  func.func @pose_head_kernel(%arg0: i32, %arg1: memref<2x8192xbf16, #tpu.memory_space<vmem>>, %arg2: memref<8192x384xbf16, #tpu.memory_space<vmem>>, %arg3: memref<1x384xf32, #tpu.memory_space<vmem>>, %arg4: memref<2x384xf32, #tpu.memory_space<vmem>>) attributes {dimension_semantics = [#tpu.dimension_semantics<parallel>], iteration_bounds = array<i64: 1>, scalar_prefetch = 0 : i64, scratch_operands = 0 : i64, tpu.core_type = #tpu.core_type<tc>, window_params = [{transform_indices = @transform_0, window_bounds = array<i64: 2, 8192>}, {pipeline_mode = #tpu.pipeline_mode<synchronous>, transform_indices = @transform_1, window_bounds = array<i64: 8192, 384>}, {pipeline_mode = #tpu.pipeline_mode<synchronous>, transform_indices = @transform_2, window_bounds = array<i64: 1, 384>}, {transform_indices = @transform_3, window_bounds = array<i64: 2, 384>}]} {
    %c0 = arith.constant 0 : index
    %c0_0 = arith.constant 0 : index
    %0 = vector.load %arg1[%c0, %c0_0] : memref<2x8192xbf16, #tpu.memory_space<vmem>>, vector<2x8192xbf16>
    %c0_1 = arith.constant 0 : index
    %c0_2 = arith.constant 0 : index
    %1 = vector.load %arg2[%c0_1, %c0_2] : memref<8192x384xbf16, #tpu.memory_space<vmem>>, vector<8192x384xbf16>
    %cst = arith.constant dense<0.000000e+00> : vector<2x384xf32>
    %2 = tpu.matmul %0, %1, %cst {dimension_numbers = #tpu.dot_dimension_numbers<[1], [0], [0], [1], [0, 0, 1, 1], [], []>} : vector<2x8192xbf16>, vector<8192x384xbf16>, vector<2x384xf32> -> vector<2x384xf32>
    %c0_3 = arith.constant 0 : index
    %c0_4 = arith.constant 0 : index
    %3 = vector.load %arg3[%c0_3, %c0_4] : memref<1x384xf32, #tpu.memory_space<vmem>>, vector<1x384xf32>
    %4 = vector.broadcast %3 : vector<1x384xf32> to vector<2x384xf32>
    %5 = arith.addf %2, %4 : vector<2x384xf32>
    %c0_5 = arith.constant 0 : index
    %c0_6 = arith.constant 0 : index
    %6 = vector.load %arg4[%c0_5, %c0_6] : memref<2x384xf32, #tpu.memory_space<vmem>>, vector<2x384xf32>
    tpu.vector_store %arg4[%c0_5, %c0_6], %5 {strides = array<i32>} : memref<2x384xf32, #tpu.memory_space<vmem>>, vector<2x384xf32>,
    return
  }
  func.func @transform_0(%arg0: i32) -> (i32, i32) {
    %c0_i32 = arith.constant 0 : i32
    %c0_i32_0 = arith.constant 0 : i32
    return %arg0, %c0_i32 : i32, i32
  }
  func.func @transform_1(%arg0: i32) -> (i32, i32) {
    %c0_i32 = arith.constant 0 : i32
    %c0_i32_0 = arith.constant 0 : i32
    %c0_i32_1 = arith.constant 0 : i32
    return %c0_i32, %c0_i32_0 : i32, i32
  }
  func.func @transform_2(%arg0: i32) -> (i32, i32) {
    %c0_i32 = arith.constant 0 : i32
    %c0_i32_0 = arith.constant 0 : i32
    %c0_i32_1 = arith.constant 0 : i32
    return %c0_i32, %c0_i32_0 : i32, i32
  }
  func.func @transform_3(%arg0: i32) -> (i32, i32) {
    %c0_i32 = arith.constant 0 : i32
    %c0_i32_0 = arith.constant 0 : i32
    return %arg0, %c0_i32 : i32, i32
  }
}

</mosaic_0001>

<bundles_post_ra>
// kernel: _lambda_.1
= control target key start
LH: loop header
LB: loop body
LE: loop exit
PB: predicated region body
PF: predicated region fallthrough
CT: control target
= control target key end

     0   :  { %8 = vsyncpa [#allocation3], 0  ;;  %s18405_s0 = inlined_call_operand.vmem [shape: bf16[2,8192], index: 0, kind: input, shape index: {}]   ;;  %s18406_s1 = inlined_call_operand.hbm [shape: bf16[8192,384], index: 1, kind: input, shape index: {}]   ;;  %s18407_s2 = inlined_call_operand.hbm [shape: f32[1,384], index: 2, kind: input, shape index: {}]   ;;  %s18408_s3 = inlined_call_operand.vmem [shape: f32[2,384], index: 3, kind: output, shape index: {}]  }
   0x1   :  { %9 = vsyncpa [#allocation5], 0  ;;  %s17736_s12 = smov [#allocation2]  }
   0x2   :  { %s17_s13 = sshll.u32 %s17736_s12, 4  ;;  %s18_s13 = int_to_ptr.vmem [resolvable:$true] %s17_s13 }
   0x3   :  { %s17700_s14 = scalar_lea.vmem %s18_s13, 196608  ;;  %p17705_p1 = scmp.lt.s32.totalorder %s18_s13, %s18_s13 }
   0x4   :  { %p17701_p0 = scmp.ne.s32.totalorder %s18_s13, %s17700_s14  ;;  %p17706_p2 = scmp.lt.s32.totalorder %s17700_s14, %s17700_s14 }
   0x6   :  { %p17707_p3 = por %p17706_p2, %p17705_p1 }
   0x8   :  { %p17708_p4 = pnand %p17707_p3, %p17701_p0 }
   0xa   :  { %17711 = shalt.err (!%p17708_p4)
}
   0xb   :  { %s17737_s15 = smov 192   ;;  %s17738_s16 = smov 12  }
   0xc   :  { %23 = dma.hbm_to_vmem [thread:$0]  %s18406_s1, 196608, %s18_s13, [#allocation3], %s17737_s15, %s17737_s15, %s17738_s16  }
   0xd   :  { %s17739_s19 = smov [#allocation4]  }
   0xe   :  { %s30_s20 = sshll.u32 %s17739_s19, 4  ;;  %s31_s20 = int_to_ptr.vmem [resolvable:$true] %s30_s20 }
   0xf   :  { %s17720_s21 = scalar_lea.vmem %s31_s20, 48  ;;  %s17724_s22 = scalar_lea.vmem %s31_s20, 64 }
  0x10   :  { %p17721_p5 = scmp.ne.s32.totalorder %s31_s20, %s17720_s21  ;;  %p17725_p6 = scmp.lt.s32.totalorder %s31_s20, %s31_s20 }
  0x11   :  { %p17726_p7 = scmp.lt.s32.totalorder %s17724_s22, %s17720_s21 }
  0x13   :  { %p17727_p8 = por %p17726_p7, %p17725_p6 }
  0x15   :  { %p17728_p9 = pnand %p17727_p8, %p17721_p5 }
  0x17   :  { %17731 = shalt.err (!%p17728_p9)
}
  0x18   :  { %33 = dma.hbm_to_vmem [thread:$0]  %s18407_s2, 48, %s31_s20, [#allocation5]  }
  0x19   :  { %17732 = dma.done.wait [#allocation3], 196608  }
  0x1a   :  { %17733 = vsyncadd [#allocation3], 4294770688 }
  0x1b   :  { %17734 = dma.done.wait [#allocation5], 48  }
  0x1c   :  { %17735 = vsyncadd [#allocation5], 4294967248  ;;  %v15635_v0 = vld [vmem:[#allocation2 + $0xac] ss:$12 sps:$4 sm:$0xff]   ;;  %v15639_v2 = vld [vmem:[#allocation2 + $0xa8] ss:$12 sps:$4 sm:$0xff]   ;;  %v2099_v36 = vlaneseq }
  0x1d   :  { %v15637_v1 = vld [vmem:[#allocation2 + $0x22c] ss:$12 sps:$4 sm:$0xff]   ;;  %10770 = vmatprep.subr.bf16.mxu0 %v15635_v0  ;;  %v15640_v3 = vld [vmem:[#allocation2 + $0x228] ss:$12 sps:$4 sm:$0xff]   ;;  %v15645_v6 = vld [vmem:[#allocation2 + $0x90] ss:$12 sps:$4 sm:$0xff]  }
  0x1e   :  { %10811 = vmatprep.subr.bf16.mxu1 %v15637_v1  ;;  %v15641_v4 = vld [vmem:[#allocation2 + $0x94] ss:$12 sps:$4 sm:$0xff]   ;;  %10771 = vmatpush1.bf16.msra.mxu0 %v15639_v2  ;;  %v15646_v7 = vld [vmem:[#allocation2 + $0x210] ss:$12 sps:$4 sm:$0xff]   ;;  %v15651_v10 = vld [vmem:[#allocation2 + $0x78] ss:$12 sps:$4 sm:$0xff]  }
  0x1f   :  { %10812 = vmatpush1.bf16.msra.mxu1 %v15640_v3  ;;  %v15643_v5 = vld [vmem:[#allocation2 + $0x214] ss:$12 sps:$4 sm:$0xff]   ;;  %10772 = vmatprep.subr.bf16.mxu0 %v15641_v4  ;;  %v15647_v8 = vld [vmem:[#allocation2 + $0x7c] ss:$12 sps:$4 sm:$0xff]   ;;  %v15652_v11 = vld [vmem:[#allocation2 + $0x1f8] ss:$12 sps:$4 sm:$0xff]  }
  0x20   :  { %10813 = vmatprep.subr.bf16.mxu1 %v15643_v5  ;;  %v15649_v9 = vld [vmem:[#allocation2 + $0x1fc] ss:$12 sps:$4 sm:$0xff]   ;;  %v15653_v12 = vld [vmem:[#allocation2 + $0x64] ss:$12 sps:$4 sm:$0xff]   ;;  %v15657_v14 = vld [vmem:[#allocation2 + $0x60] ss:$12 sps:$4 sm:$0xff]  }
  0x21   :  { %v15655_v13 = vld [vmem:[#allocation2 + $0x1e4] ss:$12 sps:$4 sm:$0xff]   ;;  %v15658_v15 = vld [vmem:[#allocation2 + $0x1e0] ss:$12 sps:$4 sm:$0xff]   ;;  %v15663_v18 = vld [vmem:[#allocation2 + $0x48] ss:$12 sps:$4 sm:$0xff]  }
  0x22   :  { %10773 = vmatpush1.bf16.msra.mxu0 %v15645_v6  ;;  %v15659_v16 = vld [vmem:[#allocation2 + $0x4c] ss:$12 sps:$4 sm:$0xff]   ;;  %v15664_v19 = vld [vmem:[#allocation2 + $0x1c8] ss:$12 sps:$4 sm:$0xff]   ;;  %v15669_v22 = vld [vmem:[#allocation2 + $0x30] ss:$12 sps:$4 sm:$0xff]  }
  0x23   :  { %10814 = vmatpush1.bf16.msra.mxu1 %v15646_v7  ;;  %10774 = vmatprep.subr.bf16.mxu0 %v15647_v8  ;;  %v15661_v17 = vld [vmem:[#allocation2 + $0x1cc] ss:$12 sps:$4 sm:$0xff]   ;;  %v15665_v20 = vld [vmem:[#allocation2 + $0x34] ss:$12 sps:$4 sm:$0xff]   ;;  %v15670_v23 = vld [vmem:[#allocation2 + $0x1b0] ss:$12 sps:$4 sm:$0xff]  }
  0x24   :  { %10815 = vmatprep.subr.bf16.mxu1 %v15649_v9  ;;  %v15667_v21 = vld [vmem:[#allocation2 + $0x1b4] ss:$12 sps:$4 sm:$0xff]   ;;  %v15671_v24 = vld [vmem:[#allocation2 + $0x1c] ss:$12 sps:$4 sm:$0xff]   ;;  %v15675_v26 = vld [vmem:[#allocation2 + $0x18] ss:$12 sps:$4 sm:$0xff]  }
  0x25   :  { %v15673_v25 = vld [vmem:[#allocation2 + $0x19c] ss:$12 sps:$4 sm:$0xff]   ;;  %v15676_v27 = vld [vmem:[#allocation2 + $0x198] ss:$12 sps:$4 sm:$0xff]   ;;  %v15681_v30 = vld [vmem:[#allocation2] ss:$12 sps:$4 sm:$0xff]  }
  0x26   :  { %10775 = vmatpush1.bf16.msra.mxu0 %v15651_v10  ;;  %v15677_v28 = vld [vmem:[#allocation2 + $0x4] ss:$12 sps:$4 sm:$0xff]   ;;  %v15682_v31 = vld [vmem:[#allocation2 + $0x180] ss:$12 sps:$4 sm:$0xff]   ;;  %v15687_v34 = vld [vmem:[#allocation2 + $0x168] ss:$12 sps:$4 sm:$0xff]  }
  0x27   :  { %10816 = vmatpush1.bf16.msra.mxu1 %v15652_v11  ;;  %10776 = vmatprep.subr.bf16.mxu0 %v15653_v12  ;;  %v15679_v29 = vld [vmem:[#allocation2 + $0x184] ss:$12 sps:$4 sm:$0xff]   ;;  %v15683_v32 = vld [vmem:[#allocation2 + $0x16c] ss:$12 sps:$4 sm:$0xff]   ;;  %v15688_v35 = vld [vmem:[#allocation2 + $0x2e8] ss:$12 sps:$4 sm:$0xff]  }
  0x28   :  { %10817 = vmatprep.subr.bf16.mxu1 %v15655_v13  ;;  %v15685_v33 = vld [vmem:[#allocation2 + $0x2ec] ss:$12 sps:$4 sm:$0xff]   ;;  %v17740_v37 = vmov 1966171168   ;;  %v15689_v39 = vld [vmem:[#allocation2 + $0x154] ss:$12 sps:$4 sm:$0xff]  }
  0x29   :  { %v2124_v38 = vunpack.c.l.s4 %v17740_v37  ;;  %v15691_v40 = vld [vmem:[#allocation2 + $0x2d4] ss:$12 sps:$4 sm:$0xff]   ;;  %v15693_v41 = vld [vmem:[#allocation2 + $0x150] ss:$12 sps:$4 sm:$0xff]   ;;  %v17768_v42 = vshrl.u32 %v2099_v36, 7 }
  0x2a   :  { %10777 = vmatpush1.bf16.msra.mxu0 %v15657_v14  ;;  %v15694_v44 = vld [vmem:[#allocation2 + $0x2d0] ss:$12 sps:$4 sm:$0xff]   ;;  %v15699_v47 = vld [vmem:[#allocation2 + $0x138] ss:$12 sps:$4 sm:$0xff]   ;;  %v15705_v53 = vld [vmem:[#allocation2 + $0x120] ss:$12 sps:$4 sm:$0xff]  }
  0x2b   :  { %10818 = vmatpush1.bf16.msra.mxu1 %v15658_v15  ;;  %10778 = vmatprep.subr.bf16.mxu0 %v15659_v16  ;;  %v2125_v43 = vunpack.c.0.s8 %v2124_v38  ;;  %v15695_v45 = vld [vmem:[#allocation2 + $0x13c] ss:$12 sps:$4 sm:$0xff]   ;;  %v15700_v48 = vld [vmem:[#allocation2 + $0x2b8] ss:$12 sps:$4 sm:$0xff]   ;;  %v15706_v55 = vld [vmem:[#allocation2 + $0x2a0] ss:$12 sps:$4 sm:$0xff]  }
  0x2c   :  { %10819 = vmatprep.subr.bf16.mxu1 %v15661_v17  ;;  %v15697_v46 = vld [vmem:[#allocation2 + $0x2bc] ss:$12 sps:$4 sm:$0xff]   ;;  %v15701_v50 = vld [vmem:[#allocation2 + $0x124] ss:$12 sps:$4 sm:$0xff]   ;;  %v15707_v56 = vld [vmem:[#allocation2 + $0x10c] ss:$12 sps:$4 sm:$0xff]  }
  0x2d   :  { %v17771_v49 = vsub.s32 %v2125_v43, %v17768_v42  ;;  %v15703_v51 = vld [vmem:[#allocation2 + $0x2a4] ss:$12 sps:$4 sm:$0xff]   ;;  %v15709_v57 = vld [vmem:[#allocation2 + $0x28c] ss:$12 sps:$4 sm:$0xff]   ;;  %v15711_v59 = vld [vmem:[#allocation2 + $0x108] ss:$12 sps:$4 sm:$0xff]  }
  0x2e   :  { %10779 = vmatpush1.bf16.msra.mxu0 %v15663_v18  ;;  %v41_v52 = vld [vmem:[%s18405_s0] sm:$0xff]  ;;  %v15712_v61 = vld [vmem:[#allocation2 + $0x288] ss:$12 sps:$4 sm:$0xff]   ;;  %v15717_v2 = vld [vmem:[#allocation2 + $0xf0] ss:$12 sps:$4 sm:$0xff]  }
  0x2f   :  { %10820 = vmatpush1.bf16.msra.mxu1 %v15664_v19  ;;  %10780 = vmatprep.subr.bf16.mxu0 %v15665_v20  ;;  %v2129_v54 = vrot.slane %v41_v52, %v17771_v49  ;;  %v15713_v62 = vld [vmem:[#allocation2 + $0xf4] ss:$12 sps:$4 sm:$0xff]   ;;  %v2122_v1 = vcombine.high %v41_v52, %v41_v52  ;;  %v15718_v3 = vld [vmem:[#allocation2 + $0x270] ss:$12 sps:$4 sm:$0xff]   ;;  %v15723_v7 = vld [vmem:[#allocation2 + $0xd8] ss:$12 sps:$4 sm:$0xff]  }
  0x30   :  { %10821 = vmatprep.subr.bf16.mxu1 %v15667_v21  ;;  %v15715_v63 = vld [vmem:[#allocation2 + $0x274] ss:$12 sps:$4 sm:$0xff]   ;;  %v15719_v4 = vld [vmem:[#allocation2 + $0xdc] ss:$12 sps:$4 sm:$0xff]   ;;  %v15724_v8 = vld [vmem:[#allocation2 + $0x258] ss:$12 sps:$4 sm:$0xff]  }
  0x31   :  { %v2137_v58 = vcombine.high %v2129_v54, %v2129_v54  ;;  %v15721_v5 = vld [vmem:[#allocation2 + $0x25c] ss:$12 sps:$4 sm:$0xff]   ;;  %v17787_v6 = vrot.slane %v2122_v1, %v17771_v49  ;;  %v15725_v9 = vld [vmem:[#allocation2 + $0xc4] ss:$12 sps:$4 sm:$0xff]   ;;  %v15729_v12 = vld [vmem:[#allocation2 + $0xc0] ss:$12 sps:$4 sm:$0xff]   ;;  %v17792_v13 = vrot.slane %v2129_v54, %v17771_v49 }
  0x32   :  { %10781 = vmatpush1.bf16.msra.mxu0 %v15669_v22  ;;  %v15727_v10 = vld [vmem:[#allocation2 + $0x244] ss:$12 sps:$4 sm:$0xff]   ;;  %v15730_v14 = vld [vmem:[#allocation2 + $0x240] ss:$12 sps:$4 sm:$0xff]   ;;  %v15731_v19 = vld [vmem:[#allocation2 + $0x3a8] ss:$12 sps:$4 sm:$0xff]  }
  0x33   :  { %10822 = vmatpush1.bf16.msra.mxu1 %v15670_v23  ;;  %10782 = vmatprep.subr.bf16.mxu0 %v15671_v24  ;;  %v17778_v60 = vrot.slane %v2137_v58, %v17771_v49  ;;  %v2138_v11 = vcombine.high %v17787_v6, %v17787_v6  ;;  %v15733_v15 = vld [vmem:[#allocation2 + $0x3ac] ss:$12 sps:$4 sm:$0xff]   ;;  %v17799_v18 = vcombine.high %v17792_v13, %v17792_v13  ;;  %v15734_v20 = vld [vmem:[#allocation2 + $0x528] ss:$12 sps:$4 sm:$0xff]   ;;  %v15737_v24 = vld [vmem:[#allocation2 + $0x390] ss:$12 sps:$4 sm:$0xff]  }
  0x34   :  { %10823 = vmatprep.subr.bf16.mxu1 %v15673_v25  ;;  %v15736_v16 = vld [vmem:[#allocation2 + $0x52c] ss:$12 sps:$4 sm:$0xff]   ;;  %v15739_v21 = vld [vmem:[#allocation2 + $0x394] ss:$12 sps:$4 sm:$0xff]   ;;  %v15740_v25 = vld [vmem:[#allocation2 + $0x510] ss:$12 sps:$4 sm:$0xff]  }
  0x35   :  { %v17782_v0 = vcombine.high %v17778_v60, %v17778_v60  ;;  %10802 = vmatprep.mubr.bf16.mxu0 %v17778_v60  ;;  %v17795_v17 = vrot.slane %v2138_v11, %v17771_v49  ;;  %v15742_v22 = vld [vmem:[#allocation2 + $0x514] ss:$12 sps:$4 sm:$0xff]   ;;  %v15769_v43 = vld [vmem:[#allocation2 + $0x31c] ss:$12 sps:$4 sm:$0xff]   ;;  %v15781_v52 = vld [vmem:[#allocation2 + $0x46c] ss:$12 sps:$4 sm:$0xff]  }
  0x36   :  { %10783 = vmatpush1.bf16.msra.mxu0 %v15675_v26  ;;  %v15745_v26 = vld [vmem:[#allocation2 + $0x37c] ss:$12 sps:$4 sm:$0xff]   ;;  %v15763_v38 = vld [vmem:[#allocation2 + $0x334] ss:$12 sps:$4 sm:$0xff]   ;;  %v15794_v1 = vld [vmem:[#allocation2 + $0x5b8] ss:$12 sps:$4 sm:$0xff]  }
  0x37   :  { %10824 = vmatpush1.bf16.msra.mxu1 %v15676_v27  ;;  %10784 = vmatprep.subr.bf16.mxu0 %v15677_v28  ;;  %v17803_v23 = vcombine.high %v17795_v17, %v17795_v17  ;;  %v15748_v27 = vld [vmem:[#allocation2 + $0x4fc] ss:$12 sps:$4 sm:$0xff]   ;;  %v15743_v28 = vld [vmem:[#allocation2 + $0x378] ss:$12 sps:$4 sm:$0xff]   ;;  %v15811_v11 = vld [vmem:[#allocation2 + $0x3f4] ss:$12 sps:$4 sm:$0xff]  }
  0x38   :  { %10825 = vmatprep.subr.bf16.mxu1 %v15679_v29  ;;  %10843 = vmatprep.mubr.bf16.mxu1 %v17782_v0  ;;  %v15746_v29 = vld [vmem:[#allocation2 + $0x4f8] ss:$12 sps:$4 sm:$0xff]   ;;  %v15755_v36 = vld [vmem:[#allocation2 + $0x348] ss:$12 sps:$4 sm:$0xff]   ;;  %v15785_v58 = vld [vmem:[#allocation2 + $0x450] ss:$12 sps:$4 sm:$0xff]  }
  0x39   :  { %v15758_v37 = vld [vmem:[#allocation2 + $0x4c8] ss:$12 sps:$4 sm:$0xff]  }
  0x3a   :  { %10785 = vmatpush1.bf16.msra.mxu0 %v15681_v30  ;;  %v15751_v30 = vld [vmem:[#allocation2 + $0x364] ss:$12 sps:$4 sm:$0xff]   ;;  %v15779_v54 = vld [vmem:[#allocation2 + $0x468] ss:$12 sps:$4 sm:$0xff]  }
  0x3b   :  { %10826 = vmatpush1.bf16.msra.mxu1 %v15682_v31  ;;  %10786 = vmatprep.subr.bf16.mxu0 %v15683_v32  ;;  %v15754_v31 = vld [vmem:[#allocation2 + $0x4e4] ss:$12 sps:$4 sm:$0xff]   ;;  %v15749_v32 = vld [vmem:[#allocation2 + $0x360] ss:$12 sps:$4 sm:$0xff]  }
  0x3c   :  { %10827 = vmatprep.subr.bf16.mxu1 %v15685_v33  ;;  %v15752_v33 = vld [vmem:[#allocation2 + $0x4e0] ss:$12 sps:$4 sm:$0xff]  }
  0x3e   :  { %10787 = vmatpush2.bf16.msra.mxu0 %v15687_v34  ;;  %v15757_v34 = vld [vmem:[#allocation2 + $0x34c] ss:$12 sps:$4 sm:$0xff]  }
  0x3f   :  { %10828 = vmatpush2.bf16.msra.mxu1 %v15688_v35  ;;  %10788 = vmatprep.subr.bf16.mxu0 %v15689_v39  ;;  %v15760_v35 = vld [vmem:[#allocation2 + $0x4cc] ss:$12 sps:$4 sm:$0xff]   ;;  %v15766_v39 = vld [vmem:[#allocation2 + $0x4b4] ss:$12 sps:$4 sm:$0xff]  }
  0x40   :  { %10829 = vmatprep.subr.bf16.mxu1 %v15691_v40  ;;  %v15761_v40 = vld [vmem:[#allocation2 + $0x330] ss:$12 sps:$4 sm:$0xff]  }
  0x42   :  { %10789 = vmatpush2.bf16.msra.mxu0 %v15693_v41  ;;  %v15764_v41 = vld [vmem:[#allocation2 + $0x4b0] ss:$12 sps:$4 sm:$0xff]  }
  0x43   :  { %10830 = vmatpush2.bf16.msra.mxu1 %v15694_v44  ;;  %10790 = vmatprep.subr.bf16.mxu0 %v15695_v45  ;;  %v15772_v44 = vld [vmem:[#allocation2 + $0x49c] ss:$12 sps:$4 sm:$0xff]   ;;  %v15767_v45 = vld [vmem:[#allocation2 + $0x318] ss:$12 sps:$4 sm:$0xff]  }
  0x44   :  { %10831 = vmatprep.subr.bf16.mxu1 %v15697_v46  ;;  %v15770_v46 = vld [vmem:[#allocation2 + $0x498] ss:$12 sps:$4 sm:$0xff]  }
  0x46   :  { %10791 = vmatpush2.bf16.msra.mxu0 %v15699_v47  ;;  %v15775_v47 = vld [vmem:[#allocation2 + $0x304] ss:$12 sps:$4 sm:$0xff]  }
  0x47   :  { %10832 = vmatpush2.bf16.msra.mxu1 %v15700_v48  ;;  %10792 = vmatprep.subr.bf16.mxu0 %v15701_v50  ;;  %v15778_v48 = vld [vmem:[#allocation2 + $0x484] ss:$12 sps:$4 sm:$0xff]   ;;  %v15773_v50 = vld [vmem:[#allocation2 + $0x300] ss:$12 sps:$4 sm:$0xff]  }
  0x48   :  { %10833 = vmatprep.subr.bf16.mxu1 %v15703_v51  ;;  %v15776_v51 = vld [vmem:[#allocation2 + $0x480] ss:$12 sps:$4 sm:$0xff]  }
  0x4a   :  { %10793 = vmatpush2.bf16.msra.mxu0 %v15705_v53  ;;  %v15784_v53 = vld [vmem:[#allocation2 + $0x5ec] ss:$12 sps:$4 sm:$0xff]  }
  0x4b   :  { %10834 = vmatpush2.bf16.msra.mxu1 %v15706_v55  ;;  %10794 = vmatprep.subr.bf16.mxu0 %v15707_v56  ;;  %v15782_v55 = vld [vmem:[#allocation2 + $0x5e8] ss:$12 sps:$4 sm:$0xff]  }
  0x4c   :  { %10835 = vmatprep.subr.bf16.mxu1 %v15709_v57  ;;  %v15787_v56 = vld [vmem:[#allocation2 + $0x454] ss:$12 sps:$4 sm:$0xff]  }
  0x4d   :  { %v15790_v57 = vld [vmem:[#allocation2 + $0x5d4] ss:$12 sps:$4 sm:$0xff]  }
  0x4e   :  { %10795 = vmatpush2.bf16.msra.mxu0 %v15711_v59  ;;  %v15788_v59 = vld [vmem:[#allocation2 + $0x5d0] ss:$12 sps:$4 sm:$0xff]  }
  0x4f   :  { %10836 = vmatpush2.bf16.msra.mxu1 %v15712_v61  ;;  %10796 = vmatprep.subr.bf16.mxu0 %v15713_v62  ;;  %v15793_v61 = vld [vmem:[#allocation2 + $0x43c] ss:$12 sps:$4 sm:$0xff]  }
  0x50   :  { %10837 = vmatprep.subr.bf16.mxu1 %v15715_v63  ;;  %v15796_v62 = vld [vmem:[#allocation2 + $0x5bc] ss:$12 sps:$4 sm:$0xff]   ;;  %v15791_v63 = vld [vmem:[#allocation2 + $0x438] ss:$12 sps:$4 sm:$0xff]  }
  0x52   :  { %10797 = vmatpush2.bf16.msra.mxu0 %v15717_v2  ;;  %v15799_v2 = vld [vmem:[#allocation2 + $0x424] ss:$12 sps:$4 sm:$0xff]  }
  0x53   :  { %10838 = vmatpush2.bf16.msra.mxu1 %v15718_v3  ;;  %10798 = vmatprep.subr.bf16.mxu0 %v15719_v4  ;;  %v15802_v3 = vld [vmem:[#allocation2 + $0x5a4] ss:$12 sps:$4 sm:$0xff]   ;;  %v15797_v4 = vld [vmem:[#allocation2 + $0x420] ss:$12 sps:$4 sm:$0xff]  }
  0x54   :  { %10839 = vmatprep.subr.bf16.mxu1 %v15721_v5  ;;  %v15800_v5 = vld [vmem:[#allocation2 + $0x5a0] ss:$12 sps:$4 sm:$0xff]  }
  0x56   :  { %10799 = vmatpush2.bf16.msra.mxu0 %v15723_v7  ;;  %v15805_v7 = vld [vmem:[#allocation2 + $0x40c] ss:$12 sps:$4 sm:$0xff]  }
  0x57   :  { %10840 = vmatpush2.bf16.msra.mxu1 %v15724_v8  ;;  %10800 = vmatprep.subr.bf16.mxu0 %v15725_v9  ;;  %v15808_v8 = vld [vmem:[#allocation2 + $0x58c] ss:$12 sps:$4 sm:$0xff]   ;;  %v15803_v9 = vld [vmem:[#allocation2 + $0x408] ss:$12 sps:$4 sm:$0xff]  }
  0x58   :  { %10841 = vmatprep.subr.bf16.mxu1 %v15727_v10  ;;  %v15806_v10 = vld [vmem:[#allocation2 + $0x588] ss:$12 sps:$4 sm:$0xff]  }
  0x5a   :  { %10801 = vmatpush2.bf16.msra.mxu0 %v15729_v12  ;;  %v15814_v12 = vld [vmem:[#allocation2 + $0x574] ss:$12 sps:$4 sm:$0xff]  }
  0x5b   :  { %10842 = vmatpush2.bf16.msra.mxu1 %v15730_v14  ;;  %10852 = vmatprep.subr.bf16.mxu0 %v15733_v15  ;;  %v15809_v14 = vld [vmem:[#allocation2 + $0x3f0] ss:$12 sps:$4 sm:$0xff]  }
  0x5c   :  { %10893 = vmatprep.subr.bf16.mxu1 %v15736_v16  ;;  %v15812_v15 = vld [vmem:[#allocation2 + $0x570] ss:$12 sps:$4 sm:$0xff]  }
  0x5d   :  { %10803 = vmatmul.mubr.bf16.vlgmr.msra.gmra.mxu0 %v17792_v13  ;;  %v15817_v16 = vld [vmem:[#allocation2 + $0x3dc] ss:$12 sps:$4 sm:$0xff]  }
  0x5e   :  { %10844 = vmatmul.mubr.bf16.vlgmr.msra.gmra.mxu1 %v17799_v18  ;;  %10853 = vmatpush1.bf16.msra.mxu0 %v15731_v19  ;;  %v15820_v19 = vld [vmem:[#allocation2 + $0x55c] ss:$12 sps:$4 sm:$0xff]  }
  0x5f   :  { %10894 = vmatpush1.bf16.msra.mxu1 %v15734_v20  ;;  %10854 = vmatprep.subr.bf16.mxu0 %v15739_v21  ;;  %v15815_v20 = vld [vmem:[#allocation2 + $0x3d8] ss:$12 sps:$4 sm:$0xff]  }
  0x60   :  { %10895 = vmatprep.subr.bf16.mxu1 %v15742_v22  ;;  %10884 = vmatprep.mubr.bf16.mxu0 %v17795_v17  ;;  %v15818_v21 = vld [vmem:[#allocation2 + $0x558] ss:$12 sps:$4 sm:$0xff]  }
  0x61   :  { %10925 = vmatprep.mubr.bf16.mxu1 %v17803_v23  ;;  %v15823_v22 = vld [vmem:[#allocation2 + $0x3c4] ss:$12 sps:$4 sm:$0xff]  }
  0x62   :  { %10855 = vmatpush1.bf16.msra.mxu0 %v15737_v24  ;;  %v15826_v24 = vld [vmem:[#allocation2 + $0x544] ss:$12 sps:$4 sm:$0xff]  }
  0x63   :  { %10896 = vmatpush1.bf16.msra.mxu1 %v15740_v25  ;;  %10856 = vmatprep.subr.bf16.mxu0 %v15745_v26  ;;  %v15821_v25 = vld [vmem:[#allocation2 + $0x3c0] ss:$12 sps:$4 sm:$0xff]   ;;  %v17811_v26 = vrot.slane %v17787_v6, %v17771_v49 }
  0x64   :  { %10897 = vmatprep.subr.bf16.mxu1 %v15748_v27  ;;  %v15824_v27 = vld [vmem:[#allocation2 + $0x540] ss:$12 sps:$4 sm:$0xff]  }
  0x65   :  { %v17820_v6 = vld [vmem:[%s18405_s0 + $0x8] sm:$0xff] }
  0x66   :  { %10857 = vmatpush1.bf16.msra.mxu0 %v15743_v28  ;;  %v15830_v28 = vld [vmem:[#allocation2 + $0x6ac] ss:$12 sps:$4 sm:$0xff]  }
  0x67   :  { %10898 = vmatpush1.bf16.msra.mxu1 %v15746_v29  ;;  %10858 = vmatprep.subr.bf16.mxu0 %v15751_v30  ;;  %v15833_v29 = vld [vmem:[#allocation2 + $0x82c] ss:$12 sps:$4 sm:$0xff]   ;;  %v17815_v30 = vcombine.high %v17811_v26, %v17811_v26 }
  0x68   :  { %10899 = vmatprep.subr.bf16.mxu1 %v15754_v31  ;;  %v15828_v31 = vld [vmem:[#allocation2 + $0x6a8] ss:$12 sps:$4 sm:$0xff]  }
  0x6a   :  { %10859 = vmatpush1.bf16.msra.mxu0 %v15749_v32  ;;  %v15831_v32 = vld [vmem:[#allocation2 + $0x828] ss:$12 sps:$4 sm:$0xff]  }
  0x6b   :  { %10900 = vmatpush1.bf16.msra.mxu1 %v15752_v33  ;;  %10860 = vmatprep.subr.bf16.mxu0 %v15757_v34  ;;  %v15836_v33 = vld [vmem:[#allocation2 + $0x694] ss:$12 sps:$4 sm:$0xff]  }
  0x6c   :  { %10901 = vmatprep.subr.bf16.mxu1 %v15760_v35  ;;  %v15839_v34 = vld [vmem:[#allocation2 + $0x814] ss:$12 sps:$4 sm:$0xff]   ;;  %v17824_v35 = vrot.slane %v17820_v6, %v17771_v49 }
  0x6e   :  { %10861 = vmatpush1.bf16.msra.mxu0 %v15755_v36  ;;  %v2186_v36 = vcombine.high %v17824_v35, %v17824_v35 }
  0x6f   :  { %10902 = vmatpush1.bf16.msra.mxu1 %v15758_v37  ;;  %10862 = vmatprep.subr.bf16.mxu0 %v15763_v38  ;;  %v15834_v37 = vld [vmem:[#allocation2 + $0x690] ss:$12 sps:$4 sm:$0xff]  }
  0x70   :  { %10903 = vmatprep.subr.bf16.mxu1 %v15766_v39  ;;  %v15837_v38 = vld [vmem:[#allocation2 + $0x810] ss:$12 sps:$4 sm:$0xff]  }
  0x71   :  { %v15842_v39 = vld [vmem:[#allocation2 + $0x67c] ss:$12 sps:$4 sm:$0xff]  }
  0x72   :  { %10863 = vmatpush1.bf16.msra.mxu0 %v15761_v40  ;;  %v15845_v40 = vld [vmem:[#allocation2 + $0x7fc] ss:$12 sps:$4 sm:$0xff]  }
  0x73   :  { %10904 = vmatpush1.bf16.msra.mxu1 %v15764_v41  ;;  %10864 = vmatprep.subr.bf16.mxu0 %v15769_v43  ;;  %v17831_v41 = vrot.slane %v2186_v36, %v17771_v49  ;;  %v15906_v36 = vld [vmem:[#allocation2 + $0x6f0] ss:$12 sps:$4 sm:$0xff]  }
  0x74   :  { %10905 = vmatprep.subr.bf16.mxu1 %v15772_v44  ;;  %v15840_v44 = vld [vmem:[#allocation2 + $0x678] ss:$12 sps:$4 sm:$0xff]  }
  0x75   :  { %v17836_v43 = vcombine.high %v17831_v41, %v17831_v41 }
  0x76   :  { %10865 = vmatpush1.bf16.msra.mxu0 %v15767_v45  ;;  %v15843_v45 = vld [vmem:[#allocation2 + $0x7f8] ss:$12 sps:$4 sm:$0xff]  }
  0x77   :  { %10906 = vmatpush1.bf16.msra.mxu1 %v15770_v46  ;;  %10866 = vmatprep.subr.bf16.mxu0 %v15775_v47  ;;  %v15848_v46 = vld [vmem:[#allocation2 + $0x664] ss:$12 sps:$4 sm:$0xff]  }
  0x78   :  { %10907 = vmatprep.subr.bf16.mxu1 %v15778_v48  ;;  %v15851_v47 = vld [vmem:[#allocation2 + $0x7e4] ss:$12 sps:$4 sm:$0xff]   ;;  %v15846_v48 = vld [vmem:[#allocation2 + $0x660] ss:$12 sps:$4 sm:$0xff]  }
  0x7a   :  { %10867 = vmatpush1.bf16.msra.mxu0 %v15773_v50  ;;  %v15849_v50 = vld [vmem:[#allocation2 + $0x7e0] ss:$12 sps:$4 sm:$0xff]  }
  0x7b   :  { %10908 = vmatpush1.bf16.msra.mxu1 %v15776_v51  ;;  %10868 = vmatprep.subr.bf16.mxu0 %v15781_v52  ;;  %v15854_v51 = vld [vmem:[#allocation2 + $0x64c] ss:$12 sps:$4 sm:$0xff]  }
  0x7c   :  { %10909 = vmatprep.subr.bf16.mxu1 %v15784_v53  ;;  %v15857_v52 = vld [vmem:[#allocation2 + $0x7cc] ss:$12 sps:$4 sm:$0xff]   ;;  %v15852_v53 = vld [vmem:[#allocation2 + $0x648] ss:$12 sps:$4 sm:$0xff]  }
  0x7e   :  { %10869 = vmatpush2.bf16.msra.mxu0 %v15779_v54  ;;  %v15855_v54 = vld [vmem:[#allocation2 + $0x7c8] ss:$12 sps:$4 sm:$0xff]  }
  0x7f   :  { %10910 = vmatpush2.bf16.msra.mxu1 %v15782_v55  ;;  %10870 = vmatprep.subr.bf16.mxu0 %v15787_v56  ;;  %v15860_v55 = vld [vmem:[#allocation2 + $0x634] ss:$12 sps:$4 sm:$0xff]  }
  0x80   :  { %10911 = vmatprep.subr.bf16.mxu1 %v15790_v57  ;;  %v15863_v56 = vld [vmem:[#allocation2 + $0x7b4] ss:$12 sps:$4 sm:$0xff]   ;;  %v15858_v57 = vld [vmem:[#allocation2 + $0x630] ss:$12 sps:$4 sm:$0xff]  }
  0x82   :  { %10871 = vmatpush2.bf16.msra.mxu0 %v15785_v58  ;;  %v15861_v58 = vld [vmem:[#allocation2 + $0x7b0] ss:$12 sps:$4 sm:$0xff]  }
  0x83   :  { %10912 = vmatpush2.bf16.msra.mxu1 %v15788_v59  ;;  %10872 = vmatprep.subr.bf16.mxu0 %v15793_v61  ;;  %v15866_v59 = vld [vmem:[#allocation2 + $0x61c] ss:$12 sps:$4 sm:$0xff]  }
  0x84   :  { %10913 = vmatprep.subr.bf16.mxu1 %v15796_v62  ;;  %v15869_v61 = vld [vmem:[#allocation2 + $0x79c] ss:$12 sps:$4 sm:$0xff]   ;;  %v15864_v62 = vld [vmem:[#allocation2 + $0x618] ss:$12 sps:$4 sm:$0xff]  }
  0x86   :  { %10873 = vmatpush2.bf16.msra.mxu0 %v15791_v63  ;;  %v15867_v63 = vld [vmem:[#allocation2 + $0x798] ss:$12 sps:$4 sm:$0xff]  }
  0x87   :  { %10914 = vmatpush2.bf16.msra.mxu1 %v15794_v1  ;;  %10874 = vmatprep.subr.bf16.mxu0 %v15799_v2  ;;  %v15872_v1 = vld [vmem:[#allocation2 + $0x604] ss:$12 sps:$4 sm:$0xff]  }
  0x88   :  { %10915 = vmatprep.subr.bf16.mxu1 %v15802_v3  ;;  %v15875_v2 = vld [vmem:[#allocation2 + $0x784] ss:$12 sps:$4 sm:$0xff]   ;;  %v15870_v3 = vld [vmem:[#allocation2 + $0x600] ss:$12 sps:$4 sm:$0xff]  }
  0x8a   :  { %10875 = vmatpush2.bf16.msra.mxu0 %v15797_v4  ;;  %v15873_v4 = vld [vmem:[#allocation2 + $0x780] ss:$12 sps:$4 sm:$0xff]  }
  0x8b   :  { %10916 = vmatpush2.bf16.msra.mxu1 %v15800_v5  ;;  %10876 = vmatprep.subr.bf16.mxu0 %v15805_v7  ;;  %v15878_v5 = vld [vmem:[#allocation2 + $0x76c] ss:$12 sps:$4 sm:$0xff]  }
  0x8c   :  { %10917 = vmatprep.subr.bf16.mxu1 %v15808_v8  ;;  %v15881_v7 = vld [vmem:[#allocation2 + $0x8ec] ss:$12 sps:$4 sm:$0xff]   ;;  %v15876_v8 = vld [vmem:[#allocation2 + $0x768] ss:$12 sps:$4 sm:$0xff]  }
  0x8e   :  { %10877 = vmatpush2.bf16.msra.mxu0 %v15803_v9  ;;  %v15879_v9 = vld [vmem:[#allocation2 + $0x8e8] ss:$12 sps:$4 sm:$0xff]  }
  0x8f   :  { %10918 = vmatpush2.bf16.msra.mxu1 %v15806_v10  ;;  %10878 = vmatprep.subr.bf16.mxu0 %v15811_v11  ;;  %v15884_v10 = vld [vmem:[#allocation2 + $0x754] ss:$12 sps:$4 sm:$0xff]  }
  0x90   :  { %10919 = vmatprep.subr.bf16.mxu1 %v15814_v12  ;;  %v15887_v11 = vld [vmem:[#allocation2 + $0x8d4] ss:$12 sps:$4 sm:$0xff]   ;;  %v15882_v12 = vld [vmem:[#allocation2 + $0x750] ss:$12 sps:$4 sm:$0xff]  }
  0x92   :  { %10879 = vmatpush2.bf16.msra.mxu0 %v15809_v14  ;;  %v15885_v14 = vld [vmem:[#allocation2 + $0x8d0] ss:$12 sps:$4 sm:$0xff]  }
  0x93   :  { %10920 = vmatpush2.bf16.msra.mxu1 %v15812_v15  ;;  %10880 = vmatprep.subr.bf16.mxu0 %v15817_v16  ;;  %v15890_v15 = vld [vmem:[#allocation2 + $0x73c] ss:$12 sps:$4 sm:$0xff]  }
  0x94   :  { %10921 = vmatprep.subr.bf16.mxu1 %v15820_v19  ;;  %v15893_v16 = vld [vmem:[#allocation2 + $0x8bc] ss:$12 sps:$4 sm:$0xff]   ;;  %v15888_v19 = vld [vmem:[#allocation2 + $0x738] ss:$12 sps:$4 sm:$0xff]  }
  0x96   :  { %10881 = vmatpush2.bf16.msra.mxu0 %v15815_v20  ;;  %v15891_v20 = vld [vmem:[#allocation2 + $0x8b8] ss:$12 sps:$4 sm:$0xff]  }
  0x97   :  { %10922 = vmatpush2.bf16.msra.mxu1 %v15818_v21  ;;  %10882 = vmatprep.subr.bf16.mxu0 %v15823_v22  ;;  %v15896_v21 = vld [vmem:[#allocation2 + $0x724] ss:$12 sps:$4 sm:$0xff]  }
  0x98   :  { %10923 = vmatprep.subr.bf16.mxu1 %v15826_v24  ;;  %v15899_v22 = vld [vmem:[#allocation2 + $0x8a4] ss:$12 sps:$4 sm:$0xff]   ;;  %v15894_v24 = vld [vmem:[#allocation2 + $0x720] ss:$12 sps:$4 sm:$0xff]  }
  0x9a   :  { %10883 = vmatpush2.bf16.msra.mxu0 %v15821_v25  ;;  %v15897_v25 = vld [vmem:[#allocation2 + $0x8a0] ss:$12 sps:$4 sm:$0xff]  }
  0x9b   :  { %10924 = vmatpush2.bf16.msra.mxu1 %v15824_v27  ;;  %10934 = vmatprep.subr.bf16.mxu0 %v15830_v28  ;;  %v15902_v27 = vld [vmem:[#allocation2 + $0x70c] ss:$12 sps:$4 sm:$0xff]  }
  0x9c   :  { %10975 = vmatprep.subr.bf16.mxu1 %v15833_v29  ;;  %v15905_v28 = vld [vmem:[#allocation2 + $0x88c] ss:$12 sps:$4 sm:$0xff]   ;;  %v15900_v29 = vld [vmem:[#allocation2 + $0x708] ss:$12 sps:$4 sm:$0xff]  }
  0x9d   :  { %10885 = vmatmul.mubr.bf16.vlgmr.msra.gmra.mxu0 %v17811_v26 }
  0x9e   :  { %10926 = vmatmul.mubr.bf16.vlgmr.msra.gmra.mxu1 %v17815_v30  ;;  %10935 = vmatpush1.bf16.msra.mxu0 %v15828_v31  ;;  %v15903_v31 = vld [vmem:[#allocation2 + $0x888] ss:$12 sps:$4 sm:$0xff]  }
  0x9f   :  { %10976 = vmatpush1.bf16.msra.mxu1 %v15831_v32  ;;  %10936 = vmatprep.subr.bf16.mxu0 %v15836_v33  ;;  %v15908_v32 = vld [vmem:[#allocation2 + $0x6f4] ss:$12 sps:$4 sm:$0xff]  }
  0xa0   :  { %10977 = vmatprep.subr.bf16.mxu1 %v15839_v34  ;;  %10966 = vmatprep.mubr.bf16.mxu0 %v17831_v41  ;;  %v15911_v33 = vld [vmem:[#allocation2 + $0x874] ss:$12 sps:$4 sm:$0xff]   ;;  %v2171_v34 = vcombine.high %v17820_v6, %v17820_v6 }
  0xa1   :  { %11007 = vmatprep.mubr.bf16.mxu1 %v17836_v43 }
  0xa2   :  { %10937 = vmatpush1.bf16.msra.mxu0 %v15834_v37  ;;  %v15909_v37 = vld [vmem:[#allocation2 + $0x870] ss:$12 sps:$4 sm:$0xff]  }
  0xa3   :  { %10978 = vmatpush1.bf16.msra.mxu1 %v15837_v38  ;;  %10938 = vmatprep.subr.bf16.mxu0 %v15842_v39  ;;  %v15914_v38 = vld [vmem:[#allocation2 + $0x6dc] ss:$12 sps:$4 sm:$0xff]  }
  0xa4   :  { %10979 = vmatprep.subr.bf16.mxu1 %v15845_v40  ;;  %v15917_v39 = vld [vmem:[#allocation2 + $0x85c] ss:$12 sps:$4 sm:$0xff]   ;;  %v17842_v40 = vrot.slane %v2171_v34, %v17771_v49 }
  0xa5   :  { %v15975_v34 = vld [vmem:[#allocation2 + $0xbe8] ss:$12 sps:$4 sm:$0xff]  }
  0xa6   :  { %10939 = vmatpush1.bf16.msra.mxu0 %v15840_v44  ;;  %v15912_v44 = vld [vmem:[#allocation2 + $0x6d8] ss:$12 sps:$4 sm:$0xff]   ;;  %v2187_v6 = vcombine.high %v17842_v40, %v17842_v40 }
  0xa7   :  { %10980 = vmatpush1.bf16.msra.mxu1 %v15843_v45  ;;  %10940 = vmatprep.subr.bf16.mxu0 %v15848_v46  ;;  %v15915_v45 = vld [vmem:[#allocation2 + $0x858] ss:$12 sps:$4 sm:$0xff]  }
  0xa8   :  { %10981 = vmatprep.subr.bf16.mxu1 %v15851_v47  ;;  %v15920_v46 = vld [vmem:[#allocation2 + $0x6c4] ss:$12 sps:$4 sm:$0xff]  }
  0xa9   :  { %v15923_v47 = vld [vmem:[#allocation2 + $0x844] ss:$12 sps:$4 sm:$0xff]  }
  0xaa   :  { %10941 = vmatpush1.bf16.msra.mxu0 %v15846_v48  ;;  %v15918_v48 = vld [vmem:[#allocation2 + $0x6c0] ss:$12 sps:$4 sm:$0xff]  }
  0xab   :  { %10982 = vmatpush1.bf16.msra.mxu1 %v15849_v50  ;;  %10942 = vmatprep.subr.bf16.mxu0 %v15854_v51  ;;  %v17848_v50 = vrot.slane %v17824_v35, %v17771_v49  ;;  %v15921_v51 = vld [vmem:[#allocation2 + $0x840] ss:$12 sps:$4 sm:$0xff]  }
  0xac   :  { %10983 = vmatprep.subr.bf16.mxu1 %v15857_v52  ;;  %v15926_v52 = vld [vmem:[#allocation2 + $0x9ac] ss:$12 sps:$4 sm:$0xff]   ;;  %v15932_v35 = vld [vmem:[#allocation2 + $0x994] ss:$12 sps:$4 sm:$0xff]  }
  0xae   :  { %10943 = vmatpush1.bf16.msra.mxu0 %v15852_v53  ;;  %v15929_v53 = vld [vmem:[#allocation2 + $0xb2c] ss:$12 sps:$4 sm:$0xff]  }
  0xaf   :  { %10984 = vmatpush1.bf16.msra.mxu1 %v15855_v54  ;;  %10944 = vmatprep.subr.bf16.mxu0 %v15860_v55  ;;  %v17851_v54 = vrot.slane %v2187_v6, %v17771_v49  ;;  %v17855_v55 = vcombine.high %v17848_v50, %v17848_v50  ;;  %v15992_v6 = vld [vmem:[#allocation2 + $0xa24] ss:$12 sps:$4 sm:$0xff]  }
  0xb0   :  { %10985 = vmatprep.subr.bf16.mxu1 %v15863_v56  ;;  %v15924_v56 = vld [vmem:[#allocation2 + $0x9a8] ss:$12 sps:$4 sm:$0xff]  }
  0xb2   :  { %10945 = vmatpush1.bf16.msra.mxu0 %v15858_v57  ;;  %v15927_v57 = vld [vmem:[#allocation2 + $0xb28] ss:$12 sps:$4 sm:$0xff]  }
  0xb3   :  { %10986 = vmatpush1.bf16.msra.mxu1 %v15861_v58  ;;  %10946 = vmatprep.subr.bf16.mxu0 %v15866_v59  ;;  %v15935_v58 = vld [vmem:[#allocation2 + $0xb14] ss:$12 sps:$4 sm:$0xff]   ;;  %v17859_v59 = vcombine.high %v17851_v54, %v17851_v54 }
  0xb4   :  { %10987 = vmatprep.subr.bf16.mxu1 %v15869_v61  ;;  %v15930_v61 = vld [vmem:[#allocation2 + $0x990] ss:$12 sps:$4 sm:$0xff]  }
  0xb6   :  { %10947 = vmatpush1.bf16.msra.mxu0 %v15864_v62  ;;  %v15933_v62 = vld [vmem:[#allocation2 + $0xb10] ss:$12 sps:$4 sm:$0xff]  }
  0xb7   :  { %10988 = vmatpush1.bf16.msra.mxu1 %v15867_v63  ;;  %10948 = vmatprep.subr.bf16.mxu0 %v15872_v1  ;;  %v15938_v63 = vld [vmem:[#allocation2 + $0x97c] ss:$12 sps:$4 sm:$0xff]  }
  0xb8   :  { %10989 = vmatprep.subr.bf16.mxu1 %v15875_v2  ;;  %v15941_v1 = vld [vmem:[#allocation2 + $0xafc] ss:$12 sps:$4 sm:$0xff]   ;;  %v15936_v2 = vld [vmem:[#allocation2 + $0x978] ss:$12 sps:$4 sm:$0xff]  }
  0xba   :  { %10949 = vmatpush1.bf16.msra.mxu0 %v15870_v3  ;;  %v15939_v3 = vld [vmem:[#allocation2 + $0xaf8] ss:$12 sps:$4 sm:$0xff]  }
  0xbb   :  { %10990 = vmatpush1.bf16.msra.mxu1 %v15873_v4  ;;  %10950 = vmatprep.subr.bf16.mxu0 %v15878_v5  ;;  %v15944_v4 = vld [vmem:[#allocation2 + $0x964] ss:$12 sps:$4 sm:$0xff]  }
  0xbc   :  { %10991 = vmatprep.subr.bf16.mxu1 %v15881_v7  ;;  %v15947_v5 = vld [vmem:[#allocation2 + $0xae4] ss:$12 sps:$4 sm:$0xff]   ;;  %v15942_v7 = vld [vmem:[#allocation2 + $0x960] ss:$12 sps:$4 sm:$0xff]  }
  0xbe   :  { %10951 = vmatpush2.bf16.msra.mxu0 %v15876_v8  ;;  %v15945_v8 = vld [vmem:[#allocation2 + $0xae0] ss:$12 sps:$4 sm:$0xff]  }
  0xbf   :  { %10992 = vmatpush2.bf16.msra.mxu1 %v15879_v9  ;;  %10952 = vmatprep.subr.bf16.mxu0 %v15884_v10  ;;  %v15950_v9 = vld [vmem:[#allocation2 + $0x94c] ss:$12 sps:$4 sm:$0xff]  }
  0xc0   :  { %10993 = vmatprep.subr.bf16.mxu1 %v15887_v11  ;;  %v15953_v10 = vld [vmem:[#allocation2 + $0xacc] ss:$12 sps:$4 sm:$0xff]   ;;  %v15948_v11 = vld [vmem:[#allocation2 + $0x948] ss:$12 sps:$4 sm:$0xff]  }
  0xc2   :  { %10953 = vmatpush2.bf16.msra.mxu0 %v15882_v12  ;;  %v15951_v12 = vld [vmem:[#allocation2 + $0xac8] ss:$12 sps:$4 sm:$0xff]  }
  0xc3   :  { %10994 = vmatpush2.bf16.msra.mxu1 %v15885_v14  ;;  %10954 = vmatprep.subr.bf16.mxu0 %v15890_v15  ;;  %v15956_v14 = vld [vmem:[#allocation2 + $0x934] ss:$12 sps:$4 sm:$0xff]  }
  0xc4   :  { %10995 = vmatprep.subr.bf16.mxu1 %v15893_v16  ;;  %v15959_v15 = vld [vmem:[#allocation2 + $0xab4] ss:$12 sps:$4 sm:$0xff]   ;;  %v15954_v16 = vld [vmem:[#allocation2 + $0x930] ss:$12 sps:$4 sm:$0xff]  }
  0xc6   :  { %10955 = vmatpush2.bf16.msra.mxu0 %v15888_v19  ;;  %v15957_v19 = vld [vmem:[#allocation2 + $0xab0] ss:$12 sps:$4 sm:$0xff]  }
  0xc7   :  { %10996 = vmatpush2.bf16.msra.mxu1 %v15891_v20  ;;  %10956 = vmatprep.subr.bf16.mxu0 %v15896_v21  ;;  %v15962_v20 = vld [vmem:[#allocation2 + $0x91c] ss:$12 sps:$4 sm:$0xff]  }
  0xc8   :  { %10997 = vmatprep.subr.bf16.mxu1 %v15899_v22  ;;  %v15965_v21 = vld [vmem:[#allocation2 + $0xa9c] ss:$12 sps:$4 sm:$0xff]   ;;  %v15960_v22 = vld [vmem:[#allocation2 + $0x918] ss:$12 sps:$4 sm:$0xff]  }
  0xca   :  { %10957 = vmatpush2.bf16.msra.mxu0 %v15894_v24  ;;  %v15963_v24 = vld [vmem:[#allocation2 + $0xa98] ss:$12 sps:$4 sm:$0xff]  }
  0xcb   :  { %10998 = vmatpush2.bf16.msra.mxu1 %v15897_v25  ;;  %10958 = vmatprep.subr.bf16.mxu0 %v15902_v27  ;;  %v15968_v25 = vld [vmem:[#allocation2 + $0x904] ss:$12 sps:$4 sm:$0xff]  }
  0xcc   :  { %10999 = vmatprep.subr.bf16.mxu1 %v15905_v28  ;;  %v15971_v27 = vld [vmem:[#allocation2 + $0xa84] ss:$12 sps:$4 sm:$0xff]   ;;  %v15966_v28 = vld [vmem:[#allocation2 + $0x900] ss:$12 sps:$4 sm:$0xff]  }
  0xce   :  { %10959 = vmatpush2.bf16.msra.mxu0 %v15900_v29  ;;  %v15969_v29 = vld [vmem:[#allocation2 + $0xa80] ss:$12 sps:$4 sm:$0xff]  }
  0xcf   :  { %11000 = vmatpush2.bf16.msra.mxu1 %v15903_v31  ;;  %10960 = vmatprep.subr.bf16.mxu0 %v15908_v32  ;;  %v15974_v31 = vld [vmem:[#allocation2 + $0xa6c] ss:$12 sps:$4 sm:$0xff]  }
  0xd0   :  { %11001 = vmatprep.subr.bf16.mxu1 %v15911_v33  ;;  %v15977_v32 = vld [vmem:[#allocation2 + $0xbec] ss:$12 sps:$4 sm:$0xff]   ;;  %v15972_v33 = vld [vmem:[#allocation2 + $0xa68] ss:$12 sps:$4 sm:$0xff]  }
  0xd2   :  { %10961 = vmatpush2.bf16.msra.mxu0 %v15906_v36  ;;  %v15980_v36 = vld [vmem:[#allocation2 + $0xa54] ss:$12 sps:$4 sm:$0xff]  }
  0xd3   :  { %11002 = vmatpush2.bf16.msra.mxu1 %v15909_v37  ;;  %10962 = vmatprep.subr.bf16.mxu0 %v15914_v38  ;;  %v15983_v37 = vld [vmem:[#allocation2 + $0xbd4] ss:$12 sps:$4 sm:$0xff]   ;;  %v15978_v38 = vld [vmem:[#allocation2 + $0xa50] ss:$12 sps:$4 sm:$0xff]  }
  0xd4   :  { %11003 = vmatprep.subr.bf16.mxu1 %v15917_v39  ;;  %v15981_v39 = vld [vmem:[#allocation2 + $0xbd0] ss:$12 sps:$4 sm:$0xff]  }
  0xd6   :  { %10963 = vmatpush2.bf16.msra.mxu0 %v15912_v44  ;;  %v15986_v44 = vld [vmem:[#allocation2 + $0xa3c] ss:$12 sps:$4 sm:$0xff]  }
  0xd7   :  { %11004 = vmatpush2.bf16.msra.mxu1 %v15915_v45  ;;  %10964 = vmatprep.subr.bf16.mxu0 %v15920_v46  ;;  %v15989_v45 = vld [vmem:[#allocation2 + $0xbbc] ss:$12 sps:$4 sm:$0xff]   ;;  %v15984_v46 = vld [vmem:[#allocation2 + $0xa38] ss:$12 sps:$4 sm:$0xff]  }
  0xd8   :  { %11005 = vmatprep.subr.bf16.mxu1 %v15923_v47  ;;  %v15987_v47 = vld [vmem:[#allocation2 + $0xbb8] ss:$12 sps:$4 sm:$0xff]  }
  0xda   :  { %10965 = vmatpush2.bf16.msra.mxu0 %v15918_v48  ;;  %v15995_v48 = vld [vmem:[#allocation2 + $0xba4] ss:$12 sps:$4 sm:$0xff]  }
  0xdb   :  { %11006 = vmatpush2.bf16.msra.mxu1 %v15921_v51  ;;  %11016 = vmatprep.subr.bf16.mxu0 %v15926_v52  ;;  %v15990_v51 = vld [vmem:[#allocation2 + $0xa20] ss:$12 sps:$4 sm:$0xff]  }
  0xdc   :  { %11057 = vmatprep.subr.bf16.mxu1 %v15929_v53  ;;  %v15993_v52 = vld [vmem:[#allocation2 + $0xba0] ss:$12 sps:$4 sm:$0xff]  }
  0xdd   :  { %10967 = vmatmul.mubr.bf16.vlgmr.msra.gmra.mxu0 %v17848_v50  ;;  %v15998_v53 = vld [vmem:[#allocation2 + $0xa0c] ss:$12 sps:$4 sm:$0xff]  }
  0xde   :  { %11008 = vmatmul.mubr.bf16.vlgmr.msra.gmra.mxu1 %v17855_v55  ;;  %11017 = vmatpush1.bf16.msra.mxu0 %v15924_v56  ;;  %v16001_v56 = vld [vmem:[#allocation2 + $0xb8c] ss:$12 sps:$4 sm:$0xff]  }
  0xdf   :  { %11058 = vmatpush1.bf16.msra.mxu1 %v15927_v57  ;;  %11018 = vmatprep.subr.bf16.mxu0 %v15932_v35  ;;  %v15996_v57 = vld [vmem:[#allocation2 + $0xa08] ss:$12 sps:$4 sm:$0xff]  }
  0xe0   :  { %11059 = vmatprep.subr.bf16.mxu1 %v15935_v58  ;;  %11048 = vmatprep.mubr.bf16.mxu0 %v17851_v54  ;;  %v15999_v35 = vld [vmem:[#allocation2 + $0xb88] ss:$12 sps:$4 sm:$0xff]  }
  0xe1   :  { %11089 = vmatprep.mubr.bf16.mxu1 %v17859_v59  ;;  %v16004_v58 = vld [vmem:[#allocation2 + $0x9f4] ss:$12 sps:$4 sm:$0xff]  }
  0xe2   :  { %11019 = vmatpush1.bf16.msra.mxu0 %v15930_v61  ;;  %v16007_v61 = vld [vmem:[#allocation2 + $0xb74] ss:$12 sps:$4 sm:$0xff]  }
  0xe3   :  { %11060 = vmatpush1.bf16.msra.mxu1 %v15933_v62  ;;  %11020 = vmatprep.subr.bf16.mxu0 %v15938_v63  ;;  %v16002_v62 = vld [vmem:[#allocation2 + $0x9f0] ss:$12 sps:$4 sm:$0xff]  }
  0xe4   :  { %11061 = vmatprep.subr.bf16.mxu1 %v15941_v1  ;;  %v16005_v63 = vld [vmem:[#allocation2 + $0xb70] ss:$12 sps:$4 sm:$0xff]  }
  0xe5   :  { %v17868_v1 = vld [vmem:[%s18405_s0 + $0x10] sm:$0xff] }
  0xe6   :  { %11021 = vmatpush1.bf16.msra.mxu0 %v15936_v2  ;;  %v16010_v2 = vld [vmem:[#allocation2 + $0x9dc] ss:$12 sps:$4 sm:$0xff]  }
  0xe7   :  { %11062 = vmatpush1.bf16.msra.mxu1 %v15939_v3  ;;  %11022 = vmatprep.subr.bf16.mxu0 %v15944_v4  ;;  %v16013_v3 = vld [vmem:[#allocation2 + $0xb5c] ss:$12 sps:$4 sm:$0xff]   ;;  %v17872_v4 = vrot.slane %v17868_v1, %v17771_v49 }
  0xe8   :  { %11063 = vmatprep.subr.bf16.mxu1 %v15947_v5  ;;  %v16008_v5 = vld [vmem:[#allocation2 + $0x9d8] ss:$12 sps:$4 sm:$0xff]  }
  0xea   :  { %11023 = vmatpush1.bf16.msra.mxu0 %v15942_v7  ;;  %v16011_v7 = vld [vmem:[#allocation2 + $0xb58] ss:$12 sps:$4 sm:$0xff]  }
  0xeb   :  { %11064 = vmatpush1.bf16.msra.mxu1 %v15945_v8  ;;  %11024 = vmatprep.subr.bf16.mxu0 %v15950_v9  ;;  %v16016_v8 = vld [vmem:[#allocation2 + $0x9c4] ss:$12 sps:$4 sm:$0xff]  }
  0xec   :  { %11065 = vmatprep.subr.bf16.mxu1 %v15953_v10  ;;  %v16019_v9 = vld [vmem:[#allocation2 + $0xb44] ss:$12 sps:$4 sm:$0xff]   ;;  %v16014_v10 = vld [vmem:[#allocation2 + $0x9c0] ss:$12 sps:$4 sm:$0xff]  }
  0xee   :  { %11025 = vmatpush1.bf16.msra.mxu0 %v15948_v11  ;;  %v2235_v11 = vcombine.high %v17872_v4, %v17872_v4 }
  0xef   :  { %11066 = vmatpush1.bf16.msra.mxu1 %v15951_v12  ;;  %11026 = vmatprep.subr.bf16.mxu0 %v15956_v14  ;;  %v16017_v12 = vld [vmem:[#allocation2 + $0xb40] ss:$12 sps:$4 sm:$0xff]  }
  0xf0   :  { %11067 = vmatprep.subr.bf16.mxu1 %v15959_v15  ;;  %v2097_v14 = vld [vmem:[#allocation4] sm:$0x7]  ;;  %v17878_v15 = vrot.slane %v17842_v40, %v17771_v49  ;;  %v16024_v40 = vld [vmem:[#allocation2 + $0xe28] ss:$12 sps:$4 sm:$0xff]  }
  0xf2   :  { %11027 = vmatpush1.bf16.msra.mxu0 %v15954_v16  ;;  %v2101_v16 = vsub.s32 0, %v17768_v42 }
  0xf3   :  { %11068 = vmatpush1.bf16.msra.mxu1 %v15957_v19  ;;  %11028 = vmatprep.subr.bf16.mxu0 %v15962_v20  ;;  %v16023_v19 = vld [vmem:[#allocation2 + $0xcac] ss:$12 sps:$4 sm:$0xff]  }
  0xf4   :  { %11069 = vmatprep.subr.bf16.mxu1 %v15965_v21  ;;  %v16026_v20 = vld [vmem:[#allocation2 + $0xe2c] ss:$12 sps:$4 sm:$0xff]   ;;  %v2105_v21 = vsub.s32 1, %v17768_v42 }
  0xf6   :  { %11029 = vmatpush1.bf16.msra.mxu0 %v15960_v22  ;;  %v17883_v22 = vrot.slane %v2235_v11, %v17771_v49  ;;  %v16054_v11 = vld [vmem:[#allocation2 + $0xdb0] ss:$12 sps:$4 sm:$0xff]  }
  0xf7   :  { %11070 = vmatpush1.bf16.msra.mxu1 %v15963_v24  ;;  %11030 = vmatprep.subr.bf16.mxu0 %v15968_v25  ;;  %v17887_v24 = vcombine.high %v17878_v15, %v17878_v15  ;;  %v16021_v25 = vld [vmem:[#allocation2 + $0xca8] ss:$12 sps:$4 sm:$0xff]  }
  0xf8   :  { %11071 = vmatprep.subr.bf16.mxu1 %v15971_v27  ;;  %v2102_v27 = vrot.slane %v2097_v14, %v2101_v16  ;;  %v16057_v16 = vld [vmem:[#allocation2 + $0xc18] ss:$12 sps:$4 sm:$0xff]  }
  0xfa   :  { %11031 = vmatpush1.bf16.msra.mxu0 %v15966_v28  ;;  %v16029_v28 = vld [vmem:[#allocation2 + $0xc94] ss:$12 sps:$4 sm:$0xff]  }
  0xfb   :  { %11072 = vmatpush1.bf16.msra.mxu1 %v15969_v29  ;;  %11032 = vmatprep.subr.bf16.mxu0 %v15974_v31  ;;  %v16032_v29 = vld [vmem:[#allocation2 + $0xe14] ss:$12 sps:$4 sm:$0xff]   ;;  %v2106_v31 = vrot.slane %v2097_v14, %v2105_v21  ;;  %v16062_v14 = vld [vmem:[#allocation2 + $0xd9c] ss:$12 sps:$4 sm:$0xff]   ;;  %v16068_v21 = vld [vmem:[#allocation2 + $0xd84] ss:$12 sps:$4 sm:$0xff]  }
  0xfc   :  { %11073 = vmatprep.subr.bf16.mxu1 %v15977_v32  ;;  %v17891_v32 = vcombine.high %v17883_v22, %v17883_v22 }
  0xfe   :  { %11033 = vmatpush2.bf16.msra.mxu0 %v15972_v33 }
  0xff   :  { %11074 = vmatpush2.bf16.msra.mxu1 %v15975_v34  ;;  %11034 = vmatprep.subr.bf16.mxu0 %v15980_v36  ;;  %v16027_v36 = vld [vmem:[#allocation2 + $0xc90] ss:$12 sps:$4 sm:$0xff]  }
 0x100   :  { %11075 = vmatprep.subr.bf16.mxu1 %v15983_v37  ;;  %v16030_v37 = vld [vmem:[#allocation2 + $0xe10] ss:$12 sps:$4 sm:$0xff]  }
 0x102   :  { %11035 = vmatpush2.bf16.msra.mxu0 %v15978_v38 }
 0x103   :  { %11076 = vmatpush2.bf16.msra.mxu1 %v15981_v39  ;;  %11036 = vmatprep.subr.bf16.mxu0 %v15986_v44 }
 0x104   :  { %11077 = vmatprep.subr.bf16.mxu1 %v15989_v45  ;;  %v16035_v45 = vld [vmem:[#allocation2 + $0xc7c] ss:$12 sps:$4 sm:$0xff]  }
 0x106   :  { %11037 = vmatpush2.bf16.msra.mxu0 %v15984_v46  ;;  %v16038_v46 = vld [vmem:[#allocation2 + $0xdfc] ss:$12 sps:$4 sm:$0xff]  }
 0x107   :  { %11078 = vmatpush2.bf16.msra.mxu1 %v15987_v47  ;;  %11038 = vmatprep.subr.bf16.mxu0 %v15992_v6 }
 0x108   :  { %11079 = vmatprep.subr.bf16.mxu1 %v15995_v48  ;;  %v16033_v48 = vld [vmem:[#allocation2 + $0xc78] ss:$12 sps:$4 sm:$0xff]  }
 0x10a   :  { %11039 = vmatpush2.bf16.msra.mxu0 %v15990_v51  ;;  %v16036_v51 = vld [vmem:[#allocation2 + $0xdf8] ss:$12 sps:$4 sm:$0xff]  }
 0x10b   :  { %11080 = vmatpush2.bf16.msra.mxu1 %v15993_v52  ;;  %11040 = vmatprep.subr.bf16.mxu0 %v15998_v53 }
 0x10c   :  { %11081 = vmatprep.subr.bf16.mxu1 %v16001_v56 }
 0x10e   :  { %11041 = vmatpush2.bf16.msra.mxu0 %v15996_v57 }
 0x10f   :  { %11082 = vmatpush2.bf16.msra.mxu1 %v15999_v35  ;;  %11042 = vmatprep.subr.bf16.mxu0 %v16004_v58  ;;  %v16041_v58 = vld [vmem:[#allocation2 + $0xc64] ss:$12 sps:$4 sm:$0xff]  }
 0x110   :  { %11083 = vmatprep.subr.bf16.mxu1 %v16007_v61  ;;  %v16044_v61 = vld [vmem:[#allocation2 + $0xde4] ss:$12 sps:$4 sm:$0xff]  }
 0x112   :  { %11043 = vmatpush2.bf16.msra.mxu0 %v16002_v62  ;;  %v16039_v62 = vld [vmem:[#allocation2 + $0xc60] ss:$12 sps:$4 sm:$0xff]  }
 0x113   :  { %11084 = vmatpush2.bf16.msra.mxu1 %v16005_v63  ;;  %11044 = vmatprep.subr.bf16.mxu0 %v16010_v2  ;;  %v16042_v63 = vld [vmem:[#allocation2 + $0xde0] ss:$12 sps:$4 sm:$0xff]  }
 0x114   :  { %11085 = vmatprep.subr.bf16.mxu1 %v16013_v3  ;;  %v16047_v2 = vld [vmem:[#allocation2 + $0xc4c] ss:$12 sps:$4 sm:$0xff]  }
 0x115   :  { %v16050_v3 = vld [vmem:[#allocation2 + $0xdcc] ss:$12 sps:$4 sm:$0xff]  }
 0x116   :  { %11045 = vmatpush2.bf16.msra.mxu0 %v16008_v5  ;;  %v16045_v5 = vld [vmem:[#allocation2 + $0xc48] ss:$12 sps:$4 sm:$0xff]  }
 0x117   :  { %11086 = vmatpush2.bf16.msra.mxu1 %v16011_v7  ;;  %11046 = vmatprep.subr.bf16.mxu0 %v16016_v8  ;;  %v16048_v7 = vld [vmem:[#allocation2 + $0xdc8] ss:$12 sps:$4 sm:$0xff]  }
 0x118   :  { %11087 = vmatprep.subr.bf16.mxu1 %v16019_v9  ;;  %v16053_v8 = vld [vmem:[#allocation2 + $0xc34] ss:$12 sps:$4 sm:$0xff]  }
 0x119   :  { %v16056_v9 = vld [vmem:[#allocation2 + $0xdb4] ss:$12 sps:$4 sm:$0xff]  }
 0x11a   :  { %11047 = vmatpush2.bf16.msra.mxu0 %v16014_v10  ;;  %v16051_v10 = vld [vmem:[#allocation2 + $0xc30] ss:$12 sps:$4 sm:$0xff]  }
 0x11b   :  { %11088 = vmatpush2.bf16.msra.mxu1 %v16017_v12  ;;  %11098 = vmatprep.subr.bf16.mxu0 %v16023_v19  ;;  %v16059_v12 = vld [vmem:[#allocation2 + $0xc1c] ss:$12 sps:$4 sm:$0xff]   ;;  %v16060_v19 = vld [vmem:[#allocation2 + $0xd98] ss:$12 sps:$4 sm:$0xff]  }
 0x11c   :  { %11139 = vmatprep.subr.bf16.mxu1 %v16026_v20  ;;  %v16065_v20 = vld [vmem:[#allocation2 + $0xc04] ss:$12 sps:$4 sm:$0xff]  }
 0x11d   :  { %v10804_v33 = vpop.f32.mrf.mxu0  ;;  %11049 = vmatmul.mubr.bf16.vlgmr.msra.gmra.mxu0 %v17878_v15 }
 0x11e   :  { %v10845_v34 = vpop.f32.mrf.mxu1  ;;  %11090 = vmatmul.mubr.bf16.vlgmr.msra.gmra.mxu1 %v17887_v24  ;;  %v10805_v38 = vadd.f32 %v10804_v33, %v2102_v27  ;;  %11099 = vmatpush1.bf16.msra.mxu0 %v16021_v25  ;;  %v16063_v25 = vld [vmem:[#allocation2 + $0xc00] ss:$12 sps:$4 sm:$0xff]  }
 0x11f   :  { %11140 = vmatpush1.bf16.msra.mxu1 %v16024_v40  ;;  %v10806_v39 = vpop.f32.mrf.mxu0  ;;  %11100 = vmatprep.subr.bf16.mxu0 %v16029_v28  ;;  %v16066_v40 = vld [vmem:[#allocation2 + $0xd80] ss:$12 sps:$4 sm:$0xff]  }
 0x120   :  { %v10847_v44 = vpop.f32.mrf.mxu1  ;;  %11141 = vmatprep.subr.bf16.mxu1 %v16032_v29  ;;  %v17895_v47 = vadd.f32 %v10845_v34, %v10805_v38  ;;  %v10807_v6 = vadd.f32 %v10806_v39, %v2106_v31  ;;  %11130 = vmatprep.mubr.bf16.mxu0 %v17883_v22  ;;  %v16071_v27 = vld [vmem:[#allocation2 + $0xd6c] ss:$12 sps:$4 sm:$0xff]   ;;  %v16069_v29 = vld [vmem:[#allocation2 + $0xd68] ss:$12 sps:$4 sm:$0xff]  }
 0x121   :  { %11171 = vmatprep.mubr.bf16.mxu1 %v17891_v32  ;;  %v10808_v52 = vpop.f32.mrf.mxu0  ;;  %v16074_v28 = vld [vmem:[#allocation2 + $0xeec] ss:$12 sps:$4 sm:$0xff]   ;;  %v16072_v31 = vld [vmem:[#allocation2 + $0xee8] ss:$12 sps:$4 sm:$0xff]  }
 0x122   :  { %v10849_v53 = vpop.f32.mrf.mxu1  ;;  %v17899_v56 = vadd.f32 %v10847_v44, %v10807_v6  ;;  %11101 = vmatpush1.bf16.msra.mxu0 %v16027_v36  ;;  %v16077_v33 = vld [vmem:[#allocation2 + $0xd54] ss:$12 sps:$4 sm:$0xff]   ;;  %v16075_v36 = vld [vmem:[#allocation2 + $0xd50] ss:$12 sps:$4 sm:$0xff]   ;;  %v16081_v44 = vld [vmem:[#allocation2 + $0xd38] ss:$12 sps:$4 sm:$0xff]  }
 0x123   :  { %11142 = vmatpush1.bf16.msra.mxu1 %v16030_v37  ;;  %v10809_v57 = vpop.f32.mrf.mxu0  ;;  %11102 = vmatprep.subr.bf16.mxu0 %v16035_v45  ;;  %v16080_v34 = vld [vmem:[#allocation2 + $0xed4] ss:$12 sps:$4 sm:$0xff]   ;;  %v16078_v37 = vld [vmem:[#allocation2 + $0xed0] ss:$12 sps:$4 sm:$0xff]   ;;  %v16084_v45 = vld [vmem:[#allocation2 + $0xeb8] ss:$12 sps:$4 sm:$0xff]  }
 0x124   :  { %v10850_v35 = vpop.f32.mrf.mxu1  ;;  %11143 = vmatprep.subr.bf16.mxu1 %v16038_v46  ;;  %v16083_v38 = vld [vmem:[#allocation2 + $0xd3c] ss:$12 sps:$4 sm:$0xff]   ;;  %v16089_v46 = vld [vmem:[#allocation2 + $0xd24] ss:$12 sps:$4 sm:$0xff]   ;;  %v16095_v52 = vld [vmem:[#allocation2 + $0xd0c] ss:$12 sps:$4 sm:$0xff]  }
 0x125   :  { %v16086_v39 = vld [vmem:[#allocation2 + $0xebc] ss:$12 sps:$4 sm:$0xff]   ;;  %v16092_v6 = vld [vmem:[#allocation2 + $0xea4] ss:$12 sps:$4 sm:$0xff]   ;;  %v16098_v53 = vld [vmem:[#allocation2 + $0xe8c] ss:$12 sps:$4 sm:$0xff]  }
 0x126   :  { %11103 = vmatpush1.bf16.msra.mxu0 %v16033_v48  ;;  %v16087_v48 = vld [vmem:[#allocation2 + $0xd20] ss:$12 sps:$4 sm:$0xff]   ;;  %v16093_v57 = vld [vmem:[#allocation2 + $0xd08] ss:$12 sps:$4 sm:$0xff]  }
 0x127   :  { %11144 = vmatpush1.bf16.msra.mxu1 %v16036_v51  ;;  %11104 = vmatprep.subr.bf16.mxu0 %v16041_v58  ;;  %v16090_v51 = vld [vmem:[#allocation2 + $0xea0] ss:$12 sps:$4 sm:$0xff]   ;;  %v16096_v35 = vld [vmem:[#allocation2 + $0xe88] ss:$12 sps:$4 sm:$0xff]  }
 0x128   :  { %11145 = vmatprep.subr.bf16.mxu1 %v16044_v61  ;;  %v16101_v58 = vld [vmem:[#allocation2 + $0xcf4] ss:$12 sps:$4 sm:$0xff]  }
 0x129   :  { %v16104_v61 = vld [vmem:[#allocation2 + $0xe74] ss:$12 sps:$4 sm:$0xff]  }
 0x12a   :  { %11105 = vmatpush1.bf16.msra.mxu0 %v16039_v62  ;;  %v2220_v62 = vcombine.high %v17868_v1, %v17868_v1 }
 0x12b   :  { %11146 = vmatpush1.bf16.msra.mxu1 %v16042_v63  ;;  %11106 = vmatprep.subr.bf16.mxu0 %v16047_v2  ;;  %v16099_v63 = vld [vmem:[#allocation2 + $0xcf0] ss:$12 sps:$4 sm:$0xff]  }
 0x12c   :  { %11147 = vmatprep.subr.bf16.mxu1 %v16050_v3  ;;  %v16102_v2 = vld [vmem:[#allocation2 + $0xe70] ss:$12 sps:$4 sm:$0xff]  }
 0x12d   :  { %v16107_v3 = vld [vmem:[#allocation2 + $0xcdc] ss:$12 sps:$4 sm:$0xff]  }
 0x12e   :  { %11107 = vmatpush1.bf16.msra.mxu0 %v16045_v5  ;;  %v16110_v5 = vld [vmem:[#allocation2 + $0xe5c] ss:$12 sps:$4 sm:$0xff]  }
 0x12f   :  { %11148 = vmatpush1.bf16.msra.mxu1 %v16048_v7  ;;  %11108 = vmatprep.subr.bf16.mxu0 %v16053_v8  ;;  %v17904_v7 = vrot.slane %v2220_v62, %v17771_v49  ;;  %v16105_v8 = vld [vmem:[#allocation2 + $0xcd8] ss:$12 sps:$4 sm:$0xff]   ;;  %v16138_v62 = vld [vmem:[#allocation2 + $0x10e0] ss:$12 sps:$4 sm:$0xff]  }
 0x130   :  { %11149 = vmatprep.subr.bf16.mxu1 %v16056_v9  ;;  %v16108_v9 = vld [vmem:[#allocation2 + $0xe58] ss:$12 sps:$4 sm:$0xff]  }
 0x131   :  { %v2236_v1 = vcombine.high %v17904_v7, %v17904_v7 }
 0x132   :  { %11109 = vmatpush1.bf16.msra.mxu0 %v16051_v10  ;;  %v16113_v10 = vld [vmem:[#allocation2 + $0xcc4] ss:$12 sps:$4 sm:$0xff]  }
 0x133   :  { %11150 = vmatpush1.bf16.msra.mxu1 %v16054_v11  ;;  %11110 = vmatprep.subr.bf16.mxu0 %v16059_v12  ;;  %v16116_v11 = vld [vmem:[#allocation2 + $0xe44] ss:$12 sps:$4 sm:$0xff]   ;;  %v17910_v12 = vrot.slane %v17872_v4, %v17771_v49  ;;  %v16125_v4 = vld [vmem:[#allocation2 + $0xf94] ss:$12 sps:$4 sm:$0xff]  }
 0x134   :  { %11151 = vmatprep.subr.bf16.mxu1 %v16062_v14  ;;  %v16111_v14 = vld [vmem:[#allocation2 + $0xcc0] ss:$12 sps:$4 sm:$0xff]  }
 0x136   :  { %11111 = vmatpush1.bf16.msra.mxu0 %v16057_v16  ;;  %v16114_v16 = vld [vmem:[#allocation2 + $0xe40] ss:$12 sps:$4 sm:$0xff]  }
 0x137   :  { %11152 = vmatpush1.bf16.msra.mxu1 %v16060_v19  ;;  %11112 = vmatprep.subr.bf16.mxu0 %v16065_v20  ;;  %v16119_v19 = vld [vmem:[#allocation2 + $0xfac] ss:$12 sps:$4 sm:$0xff]  }
 0x138   :  { %11153 = vmatprep.subr.bf16.mxu1 %v16068_v21  ;;  %v16122_v20 = vld [vmem:[#allocation2 + $0x112c] ss:$12 sps:$4 sm:$0xff]   ;;  %v16117_v21 = vld [vmem:[#allocation2 + $0xfa8] ss:$12 sps:$4 sm:$0xff]  }
 0x13a   :  { %11113 = vmatpush1.bf16.msra.mxu0 %v16063_v25  ;;  %v16120_v25 = vld [vmem:[#allocation2 + $0x1128] ss:$12 sps:$4 sm:$0xff]  }
 0x13b   :  { %11154 = vmatpush1.bf16.msra.mxu1 %v16066_v40  ;;  %11114 = vmatprep.subr.bf16.mxu0 %v16071_v27  ;;  %v17913_v40 = vrot.slane %v2236_v1, %v17771_v49  ;;  %v17917_v27 = vcombine.high %v17910_v12, %v17910_v12  ;;  %v16155_v1 = vld [vmem:[#allocation2 + $0xf1c] ss:$12 sps:$4 sm:$0xff]  }
 0x13c   :  { %11155 = vmatprep.subr.bf16.mxu1 %v16074_v28  ;;  %v16128_v28 = vld [vmem:[#allocation2 + $0x1114] ss:$12 sps:$4 sm:$0xff]  }
 0x13e   :  { %11115 = vmatpush2.bf16.msra.mxu0 %v16069_v29  ;;  %v16123_v29 = vld [vmem:[#allocation2 + $0xf90] ss:$12 sps:$4 sm:$0xff]  }
 0x13f   :  { %11156 = vmatpush2.bf16.msra.mxu1 %v16072_v31  ;;  %11116 = vmatprep.subr.bf16.mxu0 %v16077_v33  ;;  %v16126_v31 = vld [vmem:[#allocation2 + $0x1110] ss:$12 sps:$4 sm:$0xff]   ;;  %v17921_v33 = vcombine.high %v17913_v40, %v17913_v40 }
 0x140   :  { %11157 = vmatprep.subr.bf16.mxu1 %v16080_v34 }
 0x142   :  { %11117 = vmatpush2.bf16.msra.mxu0 %v16075_v36 }
 0x143   :  { %11158 = vmatpush2.bf16.msra.mxu1 %v16078_v37  ;;  %11118 = vmatprep.subr.bf16.mxu0 %v16083_v38 }
 0x144   :  { %11159 = vmatprep.subr.bf16.mxu1 %v16086_v39 }
 0x146   :  { %11119 = vmatpush2.bf16.msra.mxu0 %v16081_v44  ;;  %v16131_v44 = vld [vmem:[#allocation2 + $0xf7c] ss:$12 sps:$4 sm:$0xff]  }
 0x147   :  { %11160 = vmatpush2.bf16.msra.mxu1 %v16084_v45  ;;  %11120 = vmatprep.subr.bf16.mxu0 %v16089_v46  ;;  %v16134_v45 = vld [vmem:[#allocation2 + $0x10fc] ss:$12 sps:$4 sm:$0xff]  }
 0x148   :  { %11161 = vmatprep.subr.bf16.mxu1 %v16092_v6 }
 0x14a   :  { %11121 = vmatpush2.bf16.msra.mxu0 %v16087_v48  ;;  %v16129_v48 = vld [vmem:[#allocation2 + $0xf78] ss:$12 sps:$4 sm:$0xff]  }
 0x14b   :  { %11162 = vmatpush2.bf16.msra.mxu1 %v16090_v51  ;;  %11122 = vmatprep.subr.bf16.mxu0 %v16095_v52  ;;  %v16132_v51 = vld [vmem:[#allocation2 + $0x10f8] ss:$12 sps:$4 sm:$0xff]  }
 0x14c   :  { %11163 = vmatprep.subr.bf16.mxu1 %v16098_v53 }
 0x14e   :  { %11123 = vmatpush2.bf16.msra.mxu0 %v16093_v57 }
 0x14f   :  { %11164 = vmatpush2.bf16.msra.mxu1 %v16096_v35  ;;  %11124 = vmatprep.subr.bf16.mxu0 %v16101_v58  ;;  %v16137_v58 = vld [vmem:[#allocation2 + $0xf64] ss:$12 sps:$4 sm:$0xff]  }
 0x150   :  { %11165 = vmatprep.subr.bf16.mxu1 %v16104_v61  ;;  %v16140_v61 = vld [vmem:[#allocation2 + $0x10e4] ss:$12 sps:$4 sm:$0xff]  }
 0x152   :  { %11125 = vmatpush2.bf16.msra.mxu0 %v16099_v63  ;;  %v16143_v63 = vld [vmem:[#allocation2 + $0xf4c] ss:$12 sps:$4 sm:$0xff]  }
 0x153   :  { %11166 = vmatpush2.bf16.msra.mxu1 %v16102_v2  ;;  %11126 = vmatprep.subr.bf16.mxu0 %v16107_v3  ;;  %v16146_v2 = vld [vmem:[#allocation2 + $0x10cc] ss:$12 sps:$4 sm:$0xff]   ;;  %v16141_v3 = vld [vmem:[#allocation2 + $0xf48] ss:$12 sps:$4 sm:$0xff]  }
 0x154   :  { %11167 = vmatprep.subr.bf16.mxu1 %v16110_v5  ;;  %v16144_v5 = vld [vmem:[#allocation2 + $0x10c8] ss:$12 sps:$4 sm:$0xff]  }
 0x156   :  { %11127 = vmatpush2.bf16.msra.mxu0 %v16105_v8  ;;  %v16149_v8 = vld [vmem:[#allocation2 + $0xf34] ss:$12 sps:$4 sm:$0xff]  }
 0x157   :  { %11168 = vmatpush2.bf16.msra.mxu1 %v16108_v9  ;;  %11128 = vmatprep.subr.bf16.mxu0 %v16113_v10  ;;  %v16152_v9 = vld [vmem:[#allocation2 + $0x10b4] ss:$12 sps:$4 sm:$0xff]   ;;  %v16147_v10 = vld [vmem:[#allocation2 + $0xf30] ss:$12 sps:$4 sm:$0xff]  }
 0x158   :  { %11169 = vmatprep.subr.bf16.mxu1 %v16116_v11  ;;  %v16150_v11 = vld [vmem:[#allocation2 + $0x10b0] ss:$12 sps:$4 sm:$0xff]  }
 0x15a   :  { %11129 = vmatpush2.bf16.msra.mxu0 %v16111_v14  ;;  %v16158_v14 = vld [vmem:[#allocation2 + $0x109c] ss:$12 sps:$4 sm:$0xff]  }
 0x15b   :  { %11170 = vmatpush2.bf16.msra.mxu1 %v16114_v16  ;;  %11180 = vmatprep.subr.bf16.mxu0 %v16119_v19  ;;  %v16153_v16 = vld [vmem:[#allocation2 + $0xf18] ss:$12 sps:$4 sm:$0xff]  }
 0x15c   :  { %11221 = vmatprep.subr.bf16.mxu1 %v16122_v20  ;;  %v16156_v19 = vld [vmem:[#allocation2 + $0x1098] ss:$12 sps:$4 sm:$0xff]  }
 0x15d   :  { %v10886_v34 = vpop.f32.mrf.mxu0  ;;  %11131 = vmatmul.mubr.bf16.vlgmr.msra.gmra.mxu0 %v17910_v12  ;;  %v16161_v20 = vld [vmem:[#allocation2 + $0xf04] ss:$12 sps:$4 sm:$0xff]  }
 0x15e   :  { %v10927_v36 = vpop.f32.mrf.mxu1  ;;  %11172 = vmatmul.mubr.bf16.vlgmr.msra.gmra.mxu1 %v17917_v27  ;;  %v10887_v37 = vadd.f32 %v10886_v34, %v17895_v47  ;;  %11181 = vmatpush1.bf16.msra.mxu0 %v16117_v21  ;;  %v16164_v21 = vld [vmem:[#allocation2 + $0x1084] ss:$12 sps:$4 sm:$0xff]   ;;  %v16168_v34 = vld [vmem:[#allocation2 + $0x11e8] ss:$12 sps:$4 sm:$0xff]  }
 0x15f   :  { %11222 = vmatpush1.bf16.msra.mxu1 %v16120_v25  ;;  %v10888_v38 = vpop.f32.mrf.mxu0  ;;  %11182 = vmatprep.subr.bf16.mxu0 %v16125_v4  ;;  %v16159_v25 = vld [vmem:[#allocation2 + $0xf00] ss:$12 sps:$4 sm:$0xff]  }
 0x160   :  { %v10929_v39 = vpop.f32.mrf.mxu1  ;;  %11223 = vmatprep.subr.bf16.mxu1 %v16128_v28  ;;  %v17926_v46 = vadd.f32 %v10927_v36, %v10887_v37  ;;  %v10889_v6 = vadd.f32 %v10888_v38, %v17899_v56  ;;  %11212 = vmatprep.mubr.bf16.mxu0 %v17913_v40  ;;  %v16135_v56 = vld [vmem:[#allocation2 + $0xf60] ss:$12 sps:$4 sm:$0xff]   ;;  %v16171_v38 = vld [vmem:[#allocation2 + $0x1050] ss:$12 sps:$4 sm:$0xff]  }
 0x161   :  { %11253 = vmatprep.mubr.bf16.mxu1 %v17921_v33  ;;  %v10890_v52 = vpop.f32.mrf.mxu0  ;;  %v16162_v4 = vld [vmem:[#allocation2 + $0x1080] ss:$12 sps:$4 sm:$0xff]  }
 0x162   :  { %v10931_v47 = vpop.f32.mrf.mxu1  ;;  %v17931_v53 = vadd.f32 %v10929_v39, %v10889_v6  ;;  %11183 = vmatpush1.bf16.msra.mxu0 %v16123_v29  ;;  %v16167_v28 = vld [vmem:[#allocation2 + $0x106c] ss:$12 sps:$4 sm:$0xff]   ;;  %v16173_v36 = vld [vmem:[#allocation2 + $0x1054] ss:$12 sps:$4 sm:$0xff]   ;;  %v16174_v39 = vld [vmem:[#allocation2 + $0x11d0] ss:$12 sps:$4 sm:$0xff]  }
 0x163   :  { %11224 = vmatpush1.bf16.msra.mxu1 %v16126_v31  ;;  %v10891_v57 = vpop.f32.mrf.mxu0  ;;  %11184 = vmatprep.subr.bf16.mxu0 %v16131_v44  ;;  %v16170_v29 = vld [vmem:[#allocation2 + $0x11ec] ss:$12 sps:$4 sm:$0xff]   ;;  %v16165_v31 = vld [vmem:[#allocation2 + $0x1068] ss:$12 sps:$4 sm:$0xff]   ;;  %v16188_v52 = vld [vmem:[#allocation2 + $0x11a4] ss:$12 sps:$4 sm:$0xff]  }
 0x164   :  { %v10932_v35 = vpop.f32.mrf.mxu1  ;;  %11225 = vmatprep.subr.bf16.mxu1 %v16134_v45  ;;  %v16176_v37 = vld [vmem:[#allocation2 + $0x11d4] ss:$12 sps:$4 sm:$0xff]   ;;  %v16179_v44 = vld [vmem:[#allocation2 + $0x103c] ss:$12 sps:$4 sm:$0xff]   ;;  %v16177_v6 = vld [vmem:[#allocation2 + $0x1038] ss:$12 sps:$4 sm:$0xff]  }
 0x165   :  { %v16182_v45 = vld [vmem:[#allocation2 + $0x11bc] ss:$12 sps:$4 sm:$0xff]   ;;  %v16183_v47 = vld [vmem:[#allocation2 + $0x1020] ss:$12 sps:$4 sm:$0xff]  }
 0x166   :  { %11185 = vmatpush1.bf16.msra.mxu0 %v16129_v48  ;;  %v16180_v48 = vld [vmem:[#allocation2 + $0x11b8] ss:$12 sps:$4 sm:$0xff]   ;;  %v16186_v57 = vld [vmem:[#allocation2 + $0x11a0] ss:$12 sps:$4 sm:$0xff]  }
 0x167   :  { %11226 = vmatpush1.bf16.msra.mxu1 %v16132_v51  ;;  %11186 = vmatprep.subr.bf16.mxu0 %v16137_v58  ;;  %v16185_v51 = vld [vmem:[#allocation2 + $0x1024] ss:$12 sps:$4 sm:$0xff]   ;;  %v16191_v35 = vld [vmem:[#allocation2 + $0x100c] ss:$12 sps:$4 sm:$0xff]  }
 0x168   :  { %11227 = vmatprep.subr.bf16.mxu1 %v16140_v61  ;;  %v16194_v58 = vld [vmem:[#allocation2 + $0x118c] ss:$12 sps:$4 sm:$0xff]   ;;  %v16189_v61 = vld [vmem:[#allocation2 + $0x1008] ss:$12 sps:$4 sm:$0xff]  }
 0x16a   :  { %11187 = vmatpush1.bf16.msra.mxu0 %v16135_v56  ;;  %v16192_v56 = vld [vmem:[#allocation2 + $0x1188] ss:$12 sps:$4 sm:$0xff]  }
 0x16b   :  { %11228 = vmatpush1.bf16.msra.mxu1 %v16138_v62  ;;  %11188 = vmatprep.subr.bf16.mxu0 %v16143_v63  ;;  %v16197_v62 = vld [vmem:[#allocation2 + $0xff4] ss:$12 sps:$4 sm:$0xff]  }
 0x16c   :  { %11229 = vmatprep.subr.bf16.mxu1 %v16146_v2  ;;  %v16200_v63 = vld [vmem:[#allocation2 + $0x1174] ss:$12 sps:$4 sm:$0xff]   ;;  %v17936_v2 = vld [vmem:[%s18405_s0 + $0x18] sm:$0xff] }
 0x16e   :  { %11189 = vmatpush1.bf16.msra.mxu0 %v16141_v3  ;;  %v16195_v3 = vld [vmem:[#allocation2 + $0xff0] ss:$12 sps:$4 sm:$0xff]  }
 0x16f   :  { %11230 = vmatpush1.bf16.msra.mxu1 %v16144_v5  ;;  %11190 = vmatprep.subr.bf16.mxu0 %v16149_v8  ;;  %v16198_v5 = vld [vmem:[#allocation2 + $0x1170] ss:$12 sps:$4 sm:$0xff]  }
 0x170   :  { %11231 = vmatprep.subr.bf16.mxu1 %v16152_v9  ;;  %v16203_v8 = vld [vmem:[#allocation2 + $0xfdc] ss:$12 sps:$4 sm:$0xff]  }
 0x171   :  { %v16206_v9 = vld [vmem:[#allocation2 + $0x115c] ss:$12 sps:$4 sm:$0xff]  }
 0x172   :  { %11191 = vmatpush1.bf16.msra.mxu0 %v16147_v10  ;;  %v17940_v10 = vrot.slane %v17936_v2, %v17771_v49 }
 0x173   :  { %11232 = vmatpush1.bf16.msra.mxu1 %v16150_v11  ;;  %11192 = vmatprep.subr.bf16.mxu0 %v16155_v1  ;;  %v16201_v11 = vld [vmem:[#allocation2 + $0xfd8] ss:$12 sps:$4 sm:$0xff]  }
 0x174   :  { %11233 = vmatprep.subr.bf16.mxu1 %v16158_v14  ;;  %v16204_v1 = vld [vmem:[#allocation2 + $0x1158] ss:$12 sps:$4 sm:$0xff]  }
 0x175   :  { %v16209_v14 = vld [vmem:[#allocation2 + $0xfc4] ss:$12 sps:$4 sm:$0xff]  }
 0x176   :  { %11193 = vmatpush1.bf16.msra.mxu0 %v16153_v16  ;;  %v16212_v16 = vld [vmem:[#allocation2 + $0x1144] ss:$12 sps:$4 sm:$0xff]  }
 0x177   :  { %11234 = vmatpush1.bf16.msra.mxu1 %v16156_v19  ;;  %11194 = vmatprep.subr.bf16.mxu0 %v16161_v20  ;;  %v2284_v19 = vcombine.high %v17940_v10, %v17940_v10  ;;  %v17946_v20 = vrot.slane %v17904_v7, %v17771_v49  ;;  %v16222_v7 = vld [vmem:[#allocation2 + $0x1294] ss:$12 sps:$4 sm:$0xff]  }
 0x178   :  { %11235 = vmatprep.subr.bf16.mxu1 %v16164_v21  ;;  %v16207_v21 = vld [vmem:[#allocation2 + $0xfc0] ss:$12 sps:$4 sm:$0xff]  }
 0x17a   :  { %11195 = vmatpush1.bf16.msra.mxu0 %v16159_v25  ;;  %v16210_v25 = vld [vmem:[#allocation2 + $0x1140] ss:$12 sps:$4 sm:$0xff]  }
 0x17b   :  { %11236 = vmatpush1.bf16.msra.mxu1 %v16162_v4  ;;  %11196 = vmatprep.subr.bf16.mxu0 %v16167_v28  ;;  %v16216_v4 = vld [vmem:[#allocation2 + $0x12ac] ss:$12 sps:$4 sm:$0xff]  }
 0x17c   :  { %11237 = vmatprep.subr.bf16.mxu1 %v16170_v29  ;;  %v16219_v28 = vld [vmem:[#allocation2 + $0x142c] ss:$12 sps:$4 sm:$0xff]   ;;  %v16214_v29 = vld [vmem:[#allocation2 + $0x12a8] ss:$12 sps:$4 sm:$0xff]  }
 0x17e   :  { %11197 = vmatpush2.bf16.msra.mxu0 %v16165_v31  ;;  %v16217_v31 = vld [vmem:[#allocation2 + $0x1428] ss:$12 sps:$4 sm:$0xff]  }
 0x17f   :  { %11238 = vmatpush2.bf16.msra.mxu1 %v16168_v34  ;;  %11198 = vmatprep.subr.bf16.mxu0 %v16173_v36  ;;  %v17949_v34 = vrot.slane %v2284_v19, %v17771_v49  ;;  %v17953_v36 = vcombine.high %v17946_v20, %v17946_v20  ;;  %v16241_v19 = vld [vmem:[#allocation2 + $0x13c8] ss:$12 sps:$4 sm:$0xff]  }
 0x180   :  { %11239 = vmatprep.subr.bf16.mxu1 %v16176_v37  ;;  %v16225_v37 = vld [vmem:[#allocation2 + $0x1414] ss:$12 sps:$4 sm:$0xff]  }
 0x182   :  { %11199 = vmatpush2.bf16.msra.mxu0 %v16171_v38  ;;  %v16220_v38 = vld [vmem:[#allocation2 + $0x1290] ss:$12 sps:$4 sm:$0xff]  }
 0x183   :  { %11240 = vmatpush2.bf16.msra.mxu1 %v16174_v39  ;;  %11200 = vmatprep.subr.bf16.mxu0 %v16179_v44  ;;  %v16223_v39 = vld [vmem:[#allocation2 + $0x1410] ss:$12 sps:$4 sm:$0xff]   ;;  %v17957_v44 = vcombine.high %v17949_v34, %v17949_v34 }
 0x184   :  { %11241 = vmatprep.subr.bf16.mxu1 %v16182_v45 }
 0x186   :  { %11201 = vmatpush2.bf16.msra.mxu0 %v16177_v6 }
 0x187   :  { %11242 = vmatpush2.bf16.msra.mxu1 %v16180_v48  ;;  %11202 = vmatprep.subr.bf16.mxu0 %v16185_v51 }
 0x188   :  { %11243 = vmatprep.subr.bf16.mxu1 %v16188_v52 }
 0x18a   :  { %11203 = vmatpush2.bf16.msra.mxu0 %v16183_v47  ;;  %v16228_v47 = vld [vmem:[#allocation2 + $0x127c] ss:$12 sps:$4 sm:$0xff]  }
 0x18b   :  { %11244 = vmatpush2.bf16.msra.mxu1 %v16186_v57  ;;  %11204 = vmatprep.subr.bf16.mxu0 %v16191_v35  ;;  %v16231_v57 = vld [vmem:[#allocation2 + $0x13fc] ss:$12 sps:$4 sm:$0xff]  }
 0x18c   :  { %11245 = vmatprep.subr.bf16.mxu1 %v16194_v58 }
 0x18e   :  { %11205 = vmatpush2.bf16.msra.mxu0 %v16189_v61  ;;  %v16226_v61 = vld [vmem:[#allocation2 + $0x1278] ss:$12 sps:$4 sm:$0xff]  }
 0x18f   :  { %11246 = vmatpush2.bf16.msra.mxu1 %v16192_v56  ;;  %11206 = vmatprep.subr.bf16.mxu0 %v16197_v62  ;;  %v16229_v56 = vld [vmem:[#allocation2 + $0x13f8] ss:$12 sps:$4 sm:$0xff]  }
 0x190   :  { %11247 = vmatprep.subr.bf16.mxu1 %v16200_v63 }
 0x192   :  { %11207 = vmatpush2.bf16.msra.mxu0 %v16195_v3 }
 0x193   :  { %11248 = vmatpush2.bf16.msra.mxu1 %v16198_v5  ;;  %11208 = vmatprep.subr.bf16.mxu0 %v16203_v8  ;;  %v16234_v8 = vld [vmem:[#allocation2 + $0x1264] ss:$12 sps:$4 sm:$0xff]  }
 0x194   :  { %11249 = vmatprep.subr.bf16.mxu1 %v16206_v9  ;;  %v16237_v9 = vld [vmem:[#allocation2 + $0x13e4] ss:$12 sps:$4 sm:$0xff]  }
 0x196   :  { %11209 = vmatpush2.bf16.msra.mxu0 %v16201_v11  ;;  %v16235_v11 = vld [vmem:[#allocation2 + $0x13e0] ss:$12 sps:$4 sm:$0xff]  }
 0x197   :  { %11250 = vmatpush2.bf16.msra.mxu1 %v16204_v1  ;;  %11210 = vmatprep.subr.bf16.mxu0 %v16209_v14  ;;  %v16240_v1 = vld [vmem:[#allocation2 + $0x124c] ss:$12 sps:$4 sm:$0xff]  }
 0x198   :  { %11251 = vmatprep.subr.bf16.mxu1 %v16212_v16  ;;  %v16243_v14 = vld [vmem:[#allocation2 + $0x13cc] ss:$12 sps:$4 sm:$0xff]   ;;  %v16238_v16 = vld [vmem:[#allocation2 + $0x1248] ss:$12 sps:$4 sm:$0xff]  }
 0x19a   :  { %11211 = vmatpush2.bf16.msra.mxu0 %v16207_v21  ;;  %v16246_v21 = vld [vmem:[#allocation2 + $0x1234] ss:$12 sps:$4 sm:$0xff]  }
 0x19b   :  { %11252 = vmatpush2.bf16.msra.mxu1 %v16210_v25  ;;  %11262 = vmatprep.subr.bf16.mxu0 %v16216_v4  ;;  %v16249_v25 = vld [vmem:[#allocation2 + $0x13b4] ss:$12 sps:$4 sm:$0xff]   ;;  %v16244_v4 = vld [vmem:[#allocation2 + $0x1230] ss:$12 sps:$4 sm:$0xff]  }
 0x19c   :  { %11303 = vmatprep.subr.bf16.mxu1 %v16219_v28  ;;  %v16247_v28 = vld [vmem:[#allocation2 + $0x13b0] ss:$12 sps:$4 sm:$0xff]  }
 0x19d   :  { %v10968_v45 = vpop.f32.mrf.mxu0  ;;  %11213 = vmatmul.mubr.bf16.vlgmr.msra.gmra.mxu0 %v17946_v20 }
 0x19e   :  { %v11009_v6 = vpop.f32.mrf.mxu1  ;;  %11254 = vmatmul.mubr.bf16.vlgmr.msra.gmra.mxu1 %v17953_v36  ;;  %v10969_v48 = vadd.f32 %v10968_v45, %v17926_v46  ;;  %11263 = vmatpush1.bf16.msra.mxu0 %v16214_v29  ;;  %v16252_v29 = vld [vmem:[#allocation2 + $0x121c] ss:$12 sps:$4 sm:$0xff]   ;;  %v16256_v45 = vld [vmem:[#allocation2 + $0x1200] ss:$12 sps:$4 sm:$0xff]  }
 0x19f   :  { %11304 = vmatpush1.bf16.msra.mxu1 %v16217_v31  ;;  %v10970_v51 = vpop.f32.mrf.mxu0  ;;  %11264 = vmatprep.subr.bf16.mxu0 %v16222_v7  ;;  %v16255_v31 = vld [vmem:[#allocation2 + $0x139c] ss:$12 sps:$4 sm:$0xff]   ;;  %v16250_v7 = vld [vmem:[#allocation2 + $0x1218] ss:$12 sps:$4 sm:$0xff]  }
 0x1a0   :  { %v11011_v52 = vpop.f32.mrf.mxu1  ;;  %11305 = vmatprep.subr.bf16.mxu1 %v16225_v37  ;;  %v17962_v35 = vadd.f32 %v11009_v6, %v10969_v48  ;;  %v10971_v58 = vadd.f32 %v10970_v51, %v17931_v53  ;;  %11294 = vmatprep.mubr.bf16.mxu0 %v17949_v34  ;;  %v16232_v53 = vld [vmem:[#allocation2 + $0x1260] ss:$12 sps:$4 sm:$0xff]   ;;  %v16253_v37 = vld [vmem:[#allocation2 + $0x1398] ss:$12 sps:$4 sm:$0xff]  }
 0x1a1   :  { %11335 = vmatprep.mubr.bf16.mxu1 %v17957_v44  ;;  %v10972_v62 = vpop.f32.mrf.mxu0  ;;  %v16259_v6 = vld [vmem:[#allocation2 + $0x1380] ss:$12 sps:$4 sm:$0xff]  }
 0x1a2   :  { %v11013_v46 = vpop.f32.mrf.mxu1  ;;  %v17967_v63 = vadd.f32 %v11011_v52, %v10971_v58  ;;  %11265 = vmatpush1.bf16.msra.mxu0 %v16220_v38  ;;  %v16258_v38 = vld [vmem:[#allocation2 + $0x1204] ss:$12 sps:$4 sm:$0xff]   ;;  %v16264_v48 = vld [vmem:[#allocation2 + $0x136c] ss:$12 sps:$4 sm:$0xff]   ;;  %v16262_v52 = vld [vmem:[#allocation2 + $0x1368] ss:$12 sps:$4 sm:$0xff]  }
 0x1a3   :  { %11306 = vmatpush1.bf16.msra.mxu1 %v16223_v39  ;;  %v10973_v3 = vpop.f32.mrf.mxu0  ;;  %11266 = vmatprep.subr.bf16.mxu0 %v16228_v47  ;;  %v16261_v39 = vld [vmem:[#allocation2 + $0x1384] ss:$12 sps:$4 sm:$0xff]   ;;  %v16267_v51 = vld [vmem:[#allocation2 + $0x14ec] ss:$12 sps:$4 sm:$0xff]   ;;  %v16265_v47 = vld [vmem:[#allocation2 + $0x14e8] ss:$12 sps:$4 sm:$0xff]  }
 0x1a4   :  { %v11014_v5 = vpop.f32.mrf.mxu1  ;;  %11307 = vmatprep.subr.bf16.mxu1 %v16231_v57  ;;  %v16270_v57 = vld [vmem:[#allocation2 + $0x1354] ss:$12 sps:$4 sm:$0xff]   ;;  %v16276_v62 = vld [vmem:[#allocation2 + $0x133c] ss:$12 sps:$4 sm:$0xff]   ;;  %v16274_v3 = vld [vmem:[#allocation2 + $0x1338] ss:$12 sps:$4 sm:$0xff]  }
 0x1a5   :  { %v16273_v58 = vld [vmem:[#allocation2 + $0x14d4] ss:$12 sps:$4 sm:$0xff]   ;;  %v16279_v46 = vld [vmem:[#allocation2 + $0x14bc] ss:$12 sps:$4 sm:$0xff]   ;;  %v16277_v5 = vld [vmem:[#allocation2 + $0x14b8] ss:$12 sps:$4 sm:$0xff]  }
 0x1a6   :  { %11267 = vmatpush1.bf16.msra.mxu0 %v16226_v61  ;;  %v16268_v61 = vld [vmem:[#allocation2 + $0x1350] ss:$12 sps:$4 sm:$0xff]  }
 0x1a7   :  { %11308 = vmatpush1.bf16.msra.mxu1 %v16229_v56  ;;  %11268 = vmatprep.subr.bf16.mxu0 %v16234_v8  ;;  %v16271_v56 = vld [vmem:[#allocation2 + $0x14d0] ss:$12 sps:$4 sm:$0xff]  }
 0x1a8   :  { %11309 = vmatprep.subr.bf16.mxu1 %v16237_v9  ;;  %v16282_v8 = vld [vmem:[#allocation2 + $0x1324] ss:$12 sps:$4 sm:$0xff]  }
 0x1a9   :  { %v16285_v9 = vld [vmem:[#allocation2 + $0x14a4] ss:$12 sps:$4 sm:$0xff]  }
 0x1aa   :  { %11269 = vmatpush1.bf16.msra.mxu0 %v16232_v53  ;;  %v16280_v53 = vld [vmem:[#allocation2 + $0x1320] ss:$12 sps:$4 sm:$0xff]  }
 0x1ab   :  { %11310 = vmatpush1.bf16.msra.mxu1 %v16235_v11  ;;  %11270 = vmatprep.subr.bf16.mxu0 %v16240_v1  ;;  %v16283_v11 = vld [vmem:[#allocation2 + $0x14a0] ss:$12 sps:$4 sm:$0xff]  }
 0x1ac   :  { %11311 = vmatprep.subr.bf16.mxu1 %v16243_v14  ;;  %v16288_v1 = vld [vmem:[#allocation2 + $0x130c] ss:$12 sps:$4 sm:$0xff]  }
 0x1ad   :  { %v16291_v14 = vld [vmem:[#allocation2 + $0x148c] ss:$12 sps:$4 sm:$0xff]  }
 0x1ae   :  { %11271 = vmatpush1.bf16.msra.mxu0 %v16238_v16  ;;  %v16286_v16 = vld [vmem:[#allocation2 + $0x1308] ss:$12 sps:$4 sm:$0xff]  }
 0x1af   :  { %11312 = vmatpush1.bf16.msra.mxu1 %v16241_v19  ;;  %11272 = vmatprep.subr.bf16.mxu0 %v16246_v21  ;;  %v16289_v19 = vld [vmem:[#allocation2 + $0x1488] ss:$12 sps:$4 sm:$0xff]  }
 0x1b0   :  { %11313 = vmatprep.subr.bf16.mxu1 %v16249_v25  ;;  %v16294_v21 = vld [vmem:[#allocation2 + $0x12f4] ss:$12 sps:$4 sm:$0xff]  }
 0x1b1   :  { %v16297_v25 = vld [vmem:[#allocation2 + $0x1474] ss:$12 sps:$4 sm:$0xff]  }
 0x1b2   :  { %11273 = vmatpush1.bf16.msra.mxu0 %v16244_v4  ;;  %v2269_v4 = vcombine.high %v17936_v2, %v17936_v2 }
 0x1b3   :  { %11314 = vmatpush1.bf16.msra.mxu1 %v16247_v28  ;;  %11274 = vmatprep.subr.bf16.mxu0 %v16252_v29  ;;  %v16292_v28 = vld [vmem:[#allocation2 + $0x12f0] ss:$12 sps:$4 sm:$0xff]  }
 0x1b4   :  { %11315 = vmatprep.subr.bf16.mxu1 %v16255_v31  ;;  %v16295_v29 = vld [vmem:[#allocation2 + $0x1470] ss:$12 sps:$4 sm:$0xff]  }
 0x1b5   :  { %v16300_v31 = vld [vmem:[#allocation2 + $0x12dc] ss:$12 sps:$4 sm:$0xff]  }
 0x1b6   :  { %11275 = vmatpush1.bf16.msra.mxu0 %v16250_v7  ;;  %v16303_v7 = vld [vmem:[#allocation2 + $0x145c] ss:$12 sps:$4 sm:$0xff]  }
 0x1b7   :  { %11316 = vmatpush1.bf16.msra.mxu1 %v16253_v37  ;;  %11276 = vmatprep.subr.bf16.mxu0 %v16258_v38  ;;  %v17972_v37 = vrot.slane %v2269_v4, %v17771_v49  ;;  %v16298_v38 = vld [vmem:[#allocation2 + $0x12d8] ss:$12 sps:$4 sm:$0xff]  }
 0x1b8   :  { %11317 = vmatprep.subr.bf16.mxu1 %v16261_v39  ;;  %v16301_v39 = vld [vmem:[#allocation2 + $0x1458] ss:$12 sps:$4 sm:$0xff]  }
 0x1b9   :  { %v2285_v2 = vcombine.high %v17972_v37, %v17972_v37  ;;  %v16322_v4 = vld [vmem:[#allocation2 + $0x1578] ss:$12 sps:$4 sm:$0xff]  }
 0x1ba   :  { %11277 = vmatpush1.bf16.msra.mxu0 %v16256_v45  ;;  %v16306_v45 = vld [vmem:[#allocation2 + $0x12c4] ss:$12 sps:$4 sm:$0xff]  }
 0x1bb   :  { %11318 = vmatpush1.bf16.msra.mxu1 %v16259_v6  ;;  %11278 = vmatprep.subr.bf16.mxu0 %v16264_v48  ;;  %v16309_v6 = vld [vmem:[#allocation2 + $0x1444] ss:$12 sps:$4 sm:$0xff]   ;;  %v17978_v48 = vrot.slane %v17940_v10, %v17771_v49  ;;  %v16318_v10 = vld [vmem:[#allocation2 + $0x1594] ss:$12 sps:$4 sm:$0xff]  }
 0x1bc   :  { %11319 = vmatprep.subr.bf16.mxu1 %v16267_v51  ;;  %v16304_v51 = vld [vmem:[#allocation2 + $0x12c0] ss:$12 sps:$4 sm:$0xff]  }
 0x1be   :  { %11279 = vmatpush2.bf16.msra.mxu0 %v16262_v52  ;;  %v16307_v52 = vld [vmem:[#allocation2 + $0x1440] ss:$12 sps:$4 sm:$0xff]  }
 0x1bf   :  { %11320 = vmatpush2.bf16.msra.mxu1 %v16265_v47  ;;  %11280 = vmatprep.subr.bf16.mxu0 %v16270_v57  ;;  %v16312_v47 = vld [vmem:[#allocation2 + $0x15ac] ss:$12 sps:$4 sm:$0xff]  }
 0x1c0   :  { %11321 = vmatprep.subr.bf16.mxu1 %v16273_v58  ;;  %v16315_v57 = vld [vmem:[#allocation2 + $0x172c] ss:$12 sps:$4 sm:$0xff]   ;;  %v16310_v58 = vld [vmem:[#allocation2 + $0x15a8] ss:$12 sps:$4 sm:$0xff]  }
 0x1c2   :  { %11281 = vmatpush2.bf16.msra.mxu0 %v16268_v61  ;;  %v16313_v61 = vld [vmem:[#allocation2 + $0x1728] ss:$12 sps:$4 sm:$0xff]  }
 0x1c3   :  { %11322 = vmatpush2.bf16.msra.mxu1 %v16271_v56  ;;  %11282 = vmatprep.subr.bf16.mxu0 %v16276_v62  ;;  %v17981_v56 = vrot.slane %v2285_v2, %v17771_v49  ;;  %v17985_v62 = vcombine.high %v17978_v48, %v17978_v48  ;;  %v16336_v2 = vld [vmem:[#allocation2 + $0x154c] ss:$12 sps:$4 sm:$0xff]  }
 0x1c4   :  { %11323 = vmatprep.subr.bf16.mxu1 %v16279_v46  ;;  %v16321_v46 = vld [vmem:[#allocation2 + $0x1714] ss:$12 sps:$4 sm:$0xff]  }
 0x1c6   :  { %11283 = vmatpush2.bf16.msra.mxu0 %v16274_v3  ;;  %v16316_v3 = vld [vmem:[#allocation2 + $0x1590] ss:$12 sps:$4 sm:$0xff]  }
 0x1c7   :  { %11324 = vmatpush2.bf16.msra.mxu1 %v16277_v5  ;;  %11284 = vmatprep.subr.bf16.mxu0 %v16282_v8  ;;  %v16319_v5 = vld [vmem:[#allocation2 + $0x1710] ss:$12 sps:$4 sm:$0xff]   ;;  %v17989_v8 = vcombine.high %v17981_v56, %v17981_v56 }
 0x1c8   :  { %11325 = vmatprep.subr.bf16.mxu1 %v16285_v9 }
 0x1ca   :  { %11285 = vmatpush2.bf16.msra.mxu0 %v16280_v53 }
 0x1cb   :  { %11326 = vmatpush2.bf16.msra.mxu1 %v16283_v11  ;;  %11286 = vmatprep.subr.bf16.mxu0 %v16288_v1 }
 0x1cc   :  { %11327 = vmatprep.subr.bf16.mxu1 %v16291_v14 }
 0x1ce   :  { %11287 = vmatpush2.bf16.msra.mxu0 %v16286_v16  ;;  %v16324_v16 = vld [vmem:[#allocation2 + $0x157c] ss:$12 sps:$4 sm:$0xff]  }
 0x1cf   :  { %11328 = vmatpush2.bf16.msra.mxu1 %v16289_v19  ;;  %11288 = vmatprep.subr.bf16.mxu0 %v16294_v21  ;;  %v16327_v19 = vld [vmem:[#allocation2 + $0x16fc] ss:$12 sps:$4 sm:$0xff]  }
 0x1d0   :  { %11329 = vmatprep.subr.bf16.mxu1 %v16297_v25 }
 0x1d2   :  { %11289 = vmatpush2.bf16.msra.mxu0 %v16292_v28  ;;  %v16325_v28 = vld [vmem:[#allocation2 + $0x16f8] ss:$12 sps:$4 sm:$0xff]  }
 0x1d3   :  { %11330 = vmatpush2.bf16.msra.mxu1 %v16295_v29  ;;  %11290 = vmatprep.subr.bf16.mxu0 %v16300_v31 }
 0x1d4   :  { %11331 = vmatprep.subr.bf16.mxu1 %v16303_v7 }
 0x1d6   :  { %11291 = vmatpush2.bf16.msra.mxu0 %v16298_v38 }
 0x1d7   :  { %11332 = vmatpush2.bf16.msra.mxu1 %v16301_v39  ;;  %11292 = vmatprep.subr.bf16.mxu0 %v16306_v45  ;;  %v16330_v39 = vld [vmem:[#allocation2 + $0x1564] ss:$12 sps:$4 sm:$0xff]  }
 0x1d8   :  { %11333 = vmatprep.subr.bf16.mxu1 %v16309_v6  ;;  %v16333_v45 = vld [vmem:[#allocation2 + $0x16e4] ss:$12 sps:$4 sm:$0xff]   ;;  %v16331_v6 = vld [vmem:[#allocation2 + $0x16e0] ss:$12 sps:$4 sm:$0xff]  }
 0x1da   :  { %11293 = vmatpush2.bf16.msra.mxu0 %v16304_v51  ;;  %v16339_v51 = vld [vmem:[#allocation2 + $0x16cc] ss:$12 sps:$4 sm:$0xff]  }
 0x1db   :  { %11334 = vmatpush2.bf16.msra.mxu1 %v16307_v52  ;;  %11344 = vmatprep.subr.bf16.mxu0 %v16312_v47  ;;  %v16334_v52 = vld [vmem:[#allocation2 + $0x1548] ss:$12 sps:$4 sm:$0xff]  }
 0x1dc   :  { %11385 = vmatprep.subr.bf16.mxu1 %v16315_v57  ;;  %v16337_v47 = vld [vmem:[#allocation2 + $0x16c8] ss:$12 sps:$4 sm:$0xff]  }
 0x1dd   :  { %v11050_v9 = vpop.f32.mrf.mxu0  ;;  %11295 = vmatmul.mubr.bf16.vlgmr.msra.gmra.mxu0 %v17978_v48  ;;  %v16342_v57 = vld [vmem:[#allocation2 + $0x1534] ss:$12 sps:$4 sm:$0xff]  }
 0x1de   :  { %v11091_v53 = vpop.f32.mrf.mxu1  ;;  %11336 = vmatmul.mubr.bf16.vlgmr.msra.gmra.mxu1 %v17985_v62  ;;  %v11051_v11 = vadd.f32 %v11050_v9, %v17962_v35  ;;  %11345 = vmatpush1.bf16.msra.mxu0 %v16310_v58  ;;  %v16345_v58 = vld [vmem:[#allocation2 + $0x16b4] ss:$12 sps:$4 sm:$0xff]   ;;  %v16349_v9 = vld [vmem:[#allocation2 + $0x1698] ss:$12 sps:$4 sm:$0xff]  }
 0x1df   :  { %11386 = vmatpush1.bf16.msra.mxu1 %v16313_v61  ;;  %v11052_v1 = vpop.f32.mrf.mxu0  ;;  %11346 = vmatprep.subr.bf16.mxu0 %v16318_v10  ;;  %v16340_v61 = vld [vmem:[#allocation2 + $0x1530] ss:$12 sps:$4 sm:$0xff]  }
 0x1e0   :  { %v11093_v14 = vpop.f32.mrf.mxu1  ;;  %11387 = vmatprep.subr.bf16.mxu1 %v16321_v46  ;;  %v17994_v21 = vadd.f32 %v11091_v53, %v11051_v11  ;;  %v11053_v25 = vadd.f32 %v11052_v1, %v17967_v63  ;;  %11376 = vmatprep.mubr.bf16.mxu0 %v17981_v56  ;;  %v16328_v63 = vld [vmem:[#allocation2 + $0x1560] ss:$12 sps:$4 sm:$0xff]   ;;  %v16343_v10 = vld [vmem:[#allocation2 + $0x16b0] ss:$12 sps:$4 sm:$0xff]  }
 0x1e1   :  { %11417 = vmatprep.mubr.bf16.mxu1 %v17989_v8  ;;  %v11054_v29 = vpop.f32.mrf.mxu0  ;;  %v16348_v46 = vld [vmem:[#allocation2 + $0x151c] ss:$12 sps:$4 sm:$0xff]   ;;  %v16354_v53 = vld [vmem:[#allocation2 + $0x1504] ss:$12 sps:$4 sm:$0xff]   ;;  %v16352_v1 = vld [vmem:[#allocation2 + $0x1500] ss:$12 sps:$4 sm:$0xff]  }
 0x1e2   :  { %v11095_v35 = vpop.f32.mrf.mxu1  ;;  %v17999_v31 = vadd.f32 %v11093_v14, %v11053_v25  ;;  %11347 = vmatpush1.bf16.msra.mxu0 %v16316_v3  ;;  %v16351_v3 = vld [vmem:[#allocation2 + $0x169c] ss:$12 sps:$4 sm:$0xff]   ;;  %v16357_v11 = vld [vmem:[#allocation2 + $0x1684] ss:$12 sps:$4 sm:$0xff]   ;;  %v16355_v14 = vld [vmem:[#allocation2 + $0x1680] ss:$12 sps:$4 sm:$0xff]  }
 0x1e3   :  { %11388 = vmatpush1.bf16.msra.mxu1 %v16319_v5  ;;  %v11055_v7 = vpop.f32.mrf.mxu0  ;;  %11348 = vmatprep.subr.bf16.mxu0 %v16324_v16  ;;  %v16346_v5 = vld [vmem:[#allocation2 + $0x1518] ss:$12 sps:$4 sm:$0xff]   ;;  %v16358_v25 = vld [vmem:[#allocation2 + $0x1668] ss:$12 sps:$4 sm:$0xff]   ;;  %v16364_v35 = vld [vmem:[#allocation2 + $0x1650] ss:$12 sps:$4 sm:$0xff]  }
 0x1e4   :  { %v11096_v38 = vpop.f32.mrf.mxu1  ;;  %11389 = vmatprep.subr.bf16.mxu1 %v16327_v19  ;;  %v16360_v16 = vld [vmem:[#allocation2 + $0x166c] ss:$12 sps:$4 sm:$0xff]   ;;  %v16369_v29 = vld [vmem:[#allocation2 + $0x17d4] ss:$12 sps:$4 sm:$0xff]   ;;  %v16367_v7 = vld [vmem:[#allocation2 + $0x17d0] ss:$12 sps:$4 sm:$0xff]  }
 0x1e5   :  { %v16363_v19 = vld [vmem:[#allocation2 + $0x17ec] ss:$12 sps:$4 sm:$0xff]   ;;  %v16372_v38 = vld [vmem:[#allocation2 + $0x163c] ss:$12 sps:$4 sm:$0xff]  }
 0x1e6   :  { %11349 = vmatpush1.bf16.msra.mxu0 %v16322_v4  ;;  %v16361_v4 = vld [vmem:[#allocation2 + $0x17e8] ss:$12 sps:$4 sm:$0xff]  }
 0x1e7   :  { %11390 = vmatpush1.bf16.msra.mxu1 %v16325_v28  ;;  %11350 = vmatprep.subr.bf16.mxu0 %v16330_v39  ;;  %v16366_v28 = vld [vmem:[#allocation2 + $0x1654] ss:$12 sps:$4 sm:$0xff]   ;;  %v16375_v39 = vld [vmem:[#allocation2 + $0x17bc] ss:$12 sps:$4 sm:$0xff]  }
 0x1e8   :  { %11391 = vmatprep.subr.bf16.mxu1 %v16333_v45  ;;  %v16370_v45 = vld [vmem:[#allocation2 + $0x1638] ss:$12 sps:$4 sm:$0xff]  }
 0x1ea   :  { %11351 = vmatpush1.bf16.msra.mxu0 %v16328_v63  ;;  %v16373_v63 = vld [vmem:[#allocation2 + $0x17b8] ss:$12 sps:$4 sm:$0xff]  }
 0x1eb   :  { %11392 = vmatpush1.bf16.msra.mxu1 %v16331_v6  ;;  %11352 = vmatprep.subr.bf16.mxu0 %v16336_v2  ;;  %v16378_v6 = vld [vmem:[#allocation2 + $0x1624] ss:$12 sps:$4 sm:$0xff]  }
 0x1ec   :  { %11393 = vmatprep.subr.bf16.mxu1 %v16339_v51  ;;  %v16381_v2 = vld [vmem:[#allocation2 + $0x17a4] ss:$12 sps:$4 sm:$0xff]   ;;  %v16376_v51 = vld [vmem:[#allocation2 + $0x1620] ss:$12 sps:$4 sm:$0xff]  }
 0x1ee   :  { %11353 = vmatpush1.bf16.msra.mxu0 %v16334_v52  ;;  %v16379_v52 = vld [vmem:[#allocation2 + $0x17a0] ss:$12 sps:$4 sm:$0xff]  }
 0x1ef   :  { %11394 = vmatpush1.bf16.msra.mxu1 %v16337_v47  ;;  %11354 = vmatprep.subr.bf16.mxu0 %v16342_v57  ;;  %v16384_v47 = vld [vmem:[#allocation2 + $0x160c] ss:$12 sps:$4 sm:$0xff]  }
 0x1f0   :  { %11395 = vmatprep.subr.bf16.mxu1 %v16345_v58  ;;  %v16387_v57 = vld [vmem:[#allocation2 + $0x178c] ss:$12 sps:$4 sm:$0xff]   ;;  %v16382_v58 = vld [vmem:[#allocation2 + $0x1608] ss:$12 sps:$4 sm:$0xff]  }
 0x1f2   :  { %11355 = vmatpush1.bf16.msra.mxu0 %v16340_v61  ;;  %v16385_v61 = vld [vmem:[#allocation2 + $0x1788] ss:$12 sps:$4 sm:$0xff]  }
 0x1f3   :  { %11396 = vmatpush1.bf16.msra.mxu1 %v16343_v10  ;;  %11356 = vmatprep.subr.bf16.mxu0 %v16348_v46  ;;  %v16390_v10 = vld [vmem:[#allocation2 + $0x15f4] ss:$12 sps:$4 sm:$0xff]  }
 0x1f4   :  { %11397 = vmatprep.subr.bf16.mxu1 %v16351_v3  ;;  %v16393_v46 = vld [vmem:[#allocation2 + $0x1774] ss:$12 sps:$4 sm:$0xff]  }
 0x1f5   :  { %v18004_v3 = vld [vmem:[%s18405_s0 + $0x20] sm:$0xff] }
 0x1f6   :  { %11357 = vmatpush1.bf16.msra.mxu0 %v16346_v5  ;;  %v16388_v5 = vld [vmem:[#allocation2 + $0x15f0] ss:$12 sps:$4 sm:$0xff]  }
 0x1f7   :  { %11398 = vmatpush1.bf16.msra.mxu1 %v16349_v9  ;;  %11358 = vmatprep.subr.bf16.mxu0 %v16354_v53  ;;  %v16391_v9 = vld [vmem:[#allocation2 + $0x1770] ss:$12 sps:$4 sm:$0xff]  }
 0x1f8   :  { %11399 = vmatprep.subr.bf16.mxu1 %v16357_v11  ;;  %v16396_v53 = vld [vmem:[#allocation2 + $0x15dc] ss:$12 sps:$4 sm:$0xff]  }
 0x1f9   :  { %v16399_v11 = vld [vmem:[#allocation2 + $0x175c] ss:$12 sps:$4 sm:$0xff]  }
 0x1fa   :  { %11359 = vmatpush1.bf16.msra.mxu0 %v16352_v1  ;;  %v18008_v1 = vrot.slane %v18004_v3, %v17771_v49 }
 0x1fb   :  { %11400 = vmatpush1.bf16.msra.mxu1 %v16355_v14  ;;  %11360 = vmatprep.subr.bf16.mxu0 %v16360_v16  ;;  %v16394_v14 = vld [vmem:[#allocation2 + $0x15d8] ss:$12 sps:$4 sm:$0xff]  }
 0x1fc   :  { %11401 = vmatprep.subr.bf16.mxu1 %v16363_v19  ;;  %v16397_v16 = vld [vmem:[#allocation2 + $0x1758] ss:$12 sps:$4 sm:$0xff]  }
 0x1fd   :  { %v16402_v19 = vld [vmem:[#allocation2 + $0x15c4] ss:$12 sps:$4 sm:$0xff]  }
 0x1fe   :  { %11361 = vmatpush2.bf16.msra.mxu0 %v16358_v25  ;;  %v16405_v25 = vld [vmem:[#allocation2 + $0x1744] ss:$12 sps:$4 sm:$0xff]  }
 0x1ff   :  { %11402 = vmatpush2.bf16.msra.mxu1 %v16361_v4  ;;  %11362 = vmatprep.subr.bf16.mxu0 %v16366_v28  ;;  %v2333_v4 = vcombine.high %v18008_v1, %v18008_v1  ;;  %v18014_v28 = vrot.slane %v17972_v37, %v17771_v49  ;;  %v16415_v37 = vld [vmem:[#allocation2 + $0x1894] ss:$12 sps:$4 sm:$0xff]  }
 0x200   :  { %11403 = vmatprep.subr.bf16.mxu1 %v16369_v29  ;;  %v16400_v29 = vld [vmem:[#allocation2 + $0x15c0] ss:$12 sps:$4 sm:$0xff]  }
 0x202   :  { %11363 = vmatpush2.bf16.msra.mxu0 %v16364_v35  ;;  %v16403_v35 = vld [vmem:[#allocation2 + $0x1740] ss:$12 sps:$4 sm:$0xff]  }
 0x203   :  { %11404 = vmatpush2.bf16.msra.mxu1 %v16367_v7  ;;  %11364 = vmatprep.subr.bf16.mxu0 %v16372_v38  ;;  %v16409_v7 = vld [vmem:[#allocation2 + $0x18ac] ss:$12 sps:$4 sm:$0xff]  }
 0x204   :  { %11405 = vmatprep.subr.bf16.mxu1 %v16375_v39  ;;  %v16412_v38 = vld [vmem:[#allocation2 + $0x1a2c] ss:$12 sps:$4 sm:$0xff]   ;;  %v16407_v39 = vld [vmem:[#allocation2 + $0x18a8] ss:$12 sps:$4 sm:$0xff]  }
 0x206   :  { %11365 = vmatpush2.bf16.msra.mxu0 %v16370_v45  ;;  %v16410_v45 = vld [vmem:[#allocation2 + $0x1a28] ss:$12 sps:$4 sm:$0xff]  }
 0x207   :  { %11406 = vmatpush2.bf16.msra.mxu1 %v16373_v63  ;;  %11366 = vmatprep.subr.bf16.mxu0 %v16378_v6  ;;  %v18017_v63 = vrot.slane %v2333_v4, %v17771_v49  ;;  %v18021_v6 = vcombine.high %v18014_v28, %v18014_v28 }
 0x208   :  { %11407 = vmatprep.subr.bf16.mxu1 %v16381_v2  ;;  %v16418_v2 = vld [vmem:[#allocation2 + $0x1a14] ss:$12 sps:$4 sm:$0xff]  }
 0x20a   :  { %11367 = vmatpush2.bf16.msra.mxu0 %v16376_v51  ;;  %v16413_v51 = vld [vmem:[#allocation2 + $0x1890] ss:$12 sps:$4 sm:$0xff]  }
 0x20b   :  { %11408 = vmatpush2.bf16.msra.mxu1 %v16379_v52  ;;  %11368 = vmatprep.subr.bf16.mxu0 %v16384_v47  ;;  %v16416_v52 = vld [vmem:[#allocation2 + $0x1a10] ss:$12 sps:$4 sm:$0xff]   ;;  %v18025_v47 = vcombine.high %v18017_v63, %v18017_v63 }
 0x20c   :  { %11409 = vmatprep.subr.bf16.mxu1 %v16387_v57 }
 0x20e   :  { %11369 = vmatpush2.bf16.msra.mxu0 %v16382_v58 }
 0x20f   :  { %11410 = vmatpush2.bf16.msra.mxu1 %v16385_v61  ;;  %11370 = vmatprep.subr.bf16.mxu0 %v16390_v10 }
 0x210   :  { %11411 = vmatprep.subr.bf16.mxu1 %v16393_v46 }
 0x212   :  { %11371 = vmatpush2.bf16.msra.mxu0 %v16388_v5  ;;  %v16421_v5 = vld [vmem:[#allocation2 + $0x187c] ss:$12 sps:$4 sm:$0xff]  }
 0x213   :  { %11412 = vmatpush2.bf16.msra.mxu1 %v16391_v9  ;;  %11372 = vmatprep.subr.bf16.mxu0 %v16396_v53  ;;  %v16424_v9 = vld [vmem:[#allocation2 + $0x19fc] ss:$12 sps:$4 sm:$0xff]  }
 0x214   :  { %11413 = vmatprep.subr.bf16.mxu1 %v16399_v11 }
 0x216   :  { %11373 = vmatpush2.bf16.msra.mxu0 %v16394_v14  ;;  %v16419_v14 = vld [vmem:[#allocation2 + $0x1878] ss:$12 sps:$4 sm:$0xff]  }
 0x217   :  { %11414 = vmatpush2.bf16.msra.mxu1 %v16397_v16  ;;  %11374 = vmatprep.subr.bf16.mxu0 %v16402_v19  ;;  %v16422_v16 = vld [vmem:[#allocation2 + $0x19f8] ss:$12 sps:$4 sm:$0xff]  }
 0x218   :  { %11415 = vmatprep.subr.bf16.mxu1 %v16405_v25 }
 0x21a   :  { %11375 = vmatpush2.bf16.msra.mxu0 %v16400_v29 }
 0x21b   :  { %11416 = vmatpush2.bf16.msra.mxu1 %v16403_v35  ;;  %11426 = vmatprep.subr.bf16.mxu0 %v16409_v7  ;;  %v16427_v35 = vld [vmem:[#allocation2 + $0x1864] ss:$12 sps:$4 sm:$0xff]  }
 0x21c   :  { %11467 = vmatprep.subr.bf16.mxu1 %v16412_v38  ;;  %v16430_v7 = vld [vmem:[#allocation2 + $0x19e4] ss:$12 sps:$4 sm:$0xff]   ;;  %v16428_v38 = vld [vmem:[#allocation2 + $0x19e0] ss:$12 sps:$4 sm:$0xff]  }
 0x21d   :  { %v11132_v57 = vpop.f32.mrf.mxu0  ;;  %11377 = vmatmul.mubr.bf16.vlgmr.msra.gmra.mxu0 %v18014_v28 }
 0x21e   :  { %v11173_v58 = vpop.f32.mrf.mxu1  ;;  %11418 = vmatmul.mubr.bf16.vlgmr.msra.gmra.mxu1 %v18021_v6  ;;  %v11133_v61 = vadd.f32 %v11132_v57, %v17994_v21  ;;  %11427 = vmatpush1.bf16.msra.mxu0 %v16407_v39  ;;  %v16433_v39 = vld [vmem:[#allocation2 + $0x184c] ss:$12 sps:$4 sm:$0xff]   ;;  %v16437_v57 = vld [vmem:[#allocation2 + $0x1830] ss:$12 sps:$4 sm:$0xff]  }
 0x21f   :  { %11468 = vmatpush1.bf16.msra.mxu1 %v16410_v45  ;;  %v11134_v10 = vpop.f32.mrf.mxu0  ;;  %11428 = vmatprep.subr.bf16.mxu0 %v16415_v37  ;;  %v16436_v45 = vld [vmem:[#allocation2 + $0x19cc] ss:$12 sps:$4 sm:$0xff]   ;;  %v16431_v37 = vld [vmem:[#allocation2 + $0x1848] ss:$12 sps:$4 sm:$0xff]  }
 0x220   :  { %v11175_v46 = vpop.f32.mrf.mxu1  ;;  %11469 = vmatprep.subr.bf16.mxu1 %v16418_v2  ;;  %v18030_v53 = vadd.f32 %v11173_v58, %v11133_v61  ;;  %v11135_v11 = vadd.f32 %v11134_v10, %v17999_v31  ;;  %11458 = vmatprep.mubr.bf16.mxu0 %v18017_v63  ;;  %v16425_v31 = vld [vmem:[#allocation2 + $0x1860] ss:$12 sps:$4 sm:$0xff]   ;;  %v16434_v2 = vld [vmem:[#allocation2 + $0x19c8] ss:$12 sps:$4 sm:$0xff]   ;;  %v16440_v58 = vld [vmem:[#allocation2 + $0x19b0] ss:$12 sps:$4 sm:$0xff]  }
 0x221   :  { %11499 = vmatprep.mubr.bf16.mxu1 %v18025_v47  ;;  %v11136_v19 = vpop.f32.mrf.mxu0  ;;  %v16445_v61 = vld [vmem:[#allocation2 + $0x181c] ss:$12 sps:$4 sm:$0xff]  }
 0x222   :  { %v11177_v21 = vpop.f32.mrf.mxu1  ;;  %v18035_v25 = vadd.f32 %v11175_v46, %v11135_v11  ;;  %11429 = vmatpush1.bf16.msra.mxu0 %v16413_v51  ;;  %v16439_v51 = vld [vmem:[#allocation2 + $0x1834] ss:$12 sps:$4 sm:$0xff]   ;;  %v16448_v10 = vld [vmem:[#allocation2 + $0x199c] ss:$12 sps:$4 sm:$0xff]   ;;  %v16443_v46 = vld [vmem:[#allocation2 + $0x1818] ss:$12 sps:$4 sm:$0xff]  }
 0x223   :  { %11470 = vmatpush1.bf16.msra.mxu1 %v16416_v52  ;;  %v11137_v4 = vpop.f32.mrf.mxu0  ;;  %11430 = vmatprep.subr.bf16.mxu0 %v16421_v5  ;;  %v16442_v52 = vld [vmem:[#allocation2 + $0x19b4] ss:$12 sps:$4 sm:$0xff]   ;;  %v16446_v5 = vld [vmem:[#allocation2 + $0x1998] ss:$12 sps:$4 sm:$0xff]  }
 0x224   :  { %v11178_v29 = vpop.f32.mrf.mxu1  ;;  %11471 = vmatprep.subr.bf16.mxu1 %v16424_v9  ;;  %v16451_v9 = vld [vmem:[#allocation2 + $0x1804] ss:$12 sps:$4 sm:$0xff]   ;;  %v16457_v19 = vld [vmem:[#allocation2 + $0x196c] ss:$12 sps:$4 sm:$0xff]   ;;  %v16455_v4 = vld [vmem:[#allocation2 + $0x1968] ss:$12 sps:$4 sm:$0xff]  }
 0x225   :  { %v16454_v11 = vld [vmem:[#allocation2 + $0x1984] ss:$12 sps:$4 sm:$0xff]   ;;  %v16460_v21 = vld [vmem:[#allocation2 + $0x1aec] ss:$12 sps:$4 sm:$0xff]   ;;  %v16458_v29 = vld [vmem:[#allocation2 + $0x1ae8] ss:$12 sps:$4 sm:$0xff]  }
 0x226   :  { %11431 = vmatpush1.bf16.msra.mxu0 %v16419_v14  ;;  %v16449_v14 = vld [vmem:[#allocation2 + $0x1800] ss:$12 sps:$4 sm:$0xff]  }
 0x227   :  { %11472 = vmatpush1.bf16.msra.mxu1 %v16422_v16  ;;  %11432 = vmatprep.subr.bf16.mxu0 %v16427_v35  ;;  %v16452_v16 = vld [vmem:[#allocation2 + $0x1980] ss:$12 sps:$4 sm:$0xff]  }
 0x228   :  { %11473 = vmatprep.subr.bf16.mxu1 %v16430_v7  ;;  %v16463_v35 = vld [vmem:[#allocation2 + $0x1954] ss:$12 sps:$4 sm:$0xff]  }
 0x229   :  { %v16466_v7 = vld [vmem:[#allocation2 + $0x1ad4] ss:$12 sps:$4 sm:$0xff]  }
 0x22a   :  { %11433 = vmatpush1.bf16.msra.mxu0 %v16425_v31  ;;  %v16461_v31 = vld [vmem:[#allocation2 + $0x1950] ss:$12 sps:$4 sm:$0xff]  }
 0x22b   :  { %11474 = vmatpush1.bf16.msra.mxu1 %v16428_v38  ;;  %11434 = vmatprep.subr.bf16.mxu0 %v16433_v39  ;;  %v16464_v38 = vld [vmem:[#allocation2 + $0x1ad0] ss:$12 sps:$4 sm:$0xff]  }
 0x22c   :  { %11475 = vmatprep.subr.bf16.mxu1 %v16436_v45  ;;  %v16469_v39 = vld [vmem:[#allocation2 + $0x193c] ss:$12 sps:$4 sm:$0xff]  }
 0x22d   :  { %v16472_v45 = vld [vmem:[#allocation2 + $0x1abc] ss:$12 sps:$4 sm:$0xff]  }
 0x22e   :  { %11435 = vmatpush1.bf16.msra.mxu0 %v16431_v37  ;;  %v16467_v37 = vld [vmem:[#allocation2 + $0x1938] ss:$12 sps:$4 sm:$0xff]  }
 0x22f   :  { %11476 = vmatpush1.bf16.msra.mxu1 %v16434_v2  ;;  %11436 = vmatprep.subr.bf16.mxu0 %v16439_v51  ;;  %v16470_v2 = vld [vmem:[#allocation2 + $0x1ab8] ss:$12 sps:$4 sm:$0xff]  }
 0x230   :  { %11477 = vmatprep.subr.bf16.mxu1 %v16442_v52  ;;  %v16475_v51 = vld [vmem:[#allocation2 + $0x1924] ss:$12 sps:$4 sm:$0xff]  }
 0x231   :  { %v16478_v52 = vld [vmem:[#allocation2 + $0x1aa4] ss:$12 sps:$4 sm:$0xff]  }
 0x232   :  { %11437 = vmatpush1.bf16.msra.mxu0 %v16437_v57  ;;  %v16473_v57 = vld [vmem:[#allocation2 + $0x1920] ss:$12 sps:$4 sm:$0xff]  }
 0x233   :  { %11478 = vmatpush1.bf16.msra.mxu1 %v16440_v58  ;;  %11438 = vmatprep.subr.bf16.mxu0 %v16445_v61  ;;  %v16476_v58 = vld [vmem:[#allocation2 + $0x1aa0] ss:$12 sps:$4 sm:$0xff]  }
 0x234   :  { %11479 = vmatprep.subr.bf16.mxu1 %v16448_v10  ;;  %v16481_v61 = vld [vmem:[#allocation2 + $0x190c] ss:$12 sps:$4 sm:$0xff]  }
 0x235   :  { %v16484_v10 = vld [vmem:[#allocation2 + $0x1a8c] ss:$12 sps:$4 sm:$0xff]  }
 0x236   :  { %11439 = vmatpush1.bf16.msra.mxu0 %v16443_v46  ;;  %v16479_v46 = vld [vmem:[#allocation2 + $0x1908] ss:$12 sps:$4 sm:$0xff]  }
 0x237   :  { %11480 = vmatpush1.bf16.msra.mxu1 %v16446_v5  ;;  %11440 = vmatprep.subr.bf16.mxu0 %v16451_v9  ;;  %v16482_v5 = vld [vmem:[#allocation2 + $0x1a88] ss:$12 sps:$4 sm:$0xff]  }
 0x238   :  { %11481 = vmatprep.subr.bf16.mxu1 %v16454_v11  ;;  %v16487_v9 = vld [vmem:[#allocation2 + $0x18f4] ss:$12 sps:$4 sm:$0xff]  }
 0x239   :  { %v16490_v11 = vld [vmem:[#allocation2 + $0x1a74] ss:$12 sps:$4 sm:$0xff]  }
 0x23a   :  { %11441 = vmatpush1.bf16.msra.mxu0 %v16449_v14  ;;  %v2318_v14 = vcombine.high %v18004_v3, %v18004_v3 }
 0x23b   :  { %11482 = vmatpush1.bf16.msra.mxu1 %v16452_v16  ;;  %11442 = vmatprep.subr.bf16.mxu0 %v16457_v19  ;;  %v16485_v16 = vld [vmem:[#allocation2 + $0x18f0] ss:$12 sps:$4 sm:$0xff]  }
 0x23c   :  { %11483 = vmatprep.subr.bf16.mxu1 %v16460_v21  ;;  %v16488_v19 = vld [vmem:[#allocation2 + $0x1a70] ss:$12 sps:$4 sm:$0xff]  }
 0x23d   :  { %v16493_v21 = vld [vmem:[#allocation2 + $0x18dc] ss:$12 sps:$4 sm:$0xff]  }
 0x23e   :  { %11443 = vmatpush2.bf16.msra.mxu0 %v16455_v4  ;;  %v16496_v4 = vld [vmem:[#allocation2 + $0x1a5c] ss:$12 sps:$4 sm:$0xff]  }
 0x23f   :  { %11484 = vmatpush2.bf16.msra.mxu1 %v16458_v29  ;;  %11444 = vmatprep.subr.bf16.mxu0 %v16463_v35  ;;  %v18040_v29 = vrot.slane %v2318_v14, %v17771_v49  ;;  %v16491_v35 = vld [vmem:[#allocation2 + $0x18d8] ss:$12 sps:$4 sm:$0xff]  }
 0x240   :  { %11485 = vmatprep.subr.bf16.mxu1 %v16466_v7  ;;  %v16494_v7 = vld [vmem:[#allocation2 + $0x1a58] ss:$12 sps:$4 sm:$0xff]  }
 0x241   :  { %v2334_v3 = vcombine.high %v18040_v29, %v18040_v29 }
 0x242   :  { %11445 = vmatpush2.bf16.msra.mxu0 %v16461_v31  ;;  %v16499_v31 = vld [vmem:[#allocation2 + $0x18c4] ss:$12 sps:$4 sm:$0xff]  }
 0x243   :  { %11486 = vmatpush2.bf16.msra.mxu1 %v16464_v38  ;;  %11446 = vmatprep.subr.bf16.mxu0 %v16469_v39  ;;  %v16502_v38 = vld [vmem:[#allocation2 + $0x1a44] ss:$12 sps:$4 sm:$0xff]   ;;  %v18046_v39 = vrot.slane %v18008_v1, %v17771_v49  ;;  %v16511_v1 = vld [vmem:[#allocation2 + $0x1b94] ss:$12 sps:$4 sm:$0xff]  }
 0x244   :  { %11487 = vmatprep.subr.bf16.mxu1 %v16472_v45  ;;  %v16497_v45 = vld [vmem:[#allocation2 + $0x18c0] ss:$12 sps:$4 sm:$0xff]  }
 0x246   :  { %11447 = vmatpush2.bf16.msra.mxu0 %v16467_v37  ;;  %v16500_v37 = vld [vmem:[#allocation2 + $0x1a40] ss:$12 sps:$4 sm:$0xff]  }
 0x247   :  { %11488 = vmatpush2.bf16.msra.mxu1 %v16470_v2  ;;  %11448 = vmatprep.subr.bf16.mxu0 %v16475_v51  ;;  %v16505_v2 = vld [vmem:[#allocation2 + $0x1bac] ss:$12 sps:$4 sm:$0xff]  }
 0x248   :  { %11489 = vmatprep.subr.bf16.mxu1 %v16478_v52  ;;  %v16508_v51 = vld [vmem:[#allocation2 + $0x1d2c] ss:$12 sps:$4 sm:$0xff]   ;;  %v16503_v52 = vld [vmem:[#allocation2 + $0x1ba8] ss:$12 sps:$4 sm:$0xff]  }
 0x24a   :  { %11449 = vmatpush2.bf16.msra.mxu0 %v16473_v57  ;;  %v16506_v57 = vld [vmem:[#allocation2 + $0x1d28] ss:$12 sps:$4 sm:$0xff]  }
 0x24b   :  { %11490 = vmatpush2.bf16.msra.mxu1 %v16476_v58  ;;  %11450 = vmatprep.subr.bf16.mxu0 %v16481_v61  ;;  %v18049_v58 = vrot.slane %v2334_v3, %v17771_v49  ;;  %v18053_v61 = vcombine.high %v18046_v39, %v18046_v39  ;;  %v16518_v3 = vld [vmem:[#allocation2 + $0x1cf8] ss:$12 sps:$4 sm:$0xff]  }
 0x24c   :  { %11491 = vmatprep.subr.bf16.mxu1 %v16484_v10  ;;  %v16514_v10 = vld [vmem:[#allocation2 + $0x1d14] ss:$12 sps:$4 sm:$0xff]  }
 0x24e   :  { %11451 = vmatpush2.bf16.msra.mxu0 %v16479_v46  ;;  %v16509_v46 = vld [vmem:[#allocation2 + $0x1b90] ss:$12 sps:$4 sm:$0xff]  }
 0x24f   :  { %11492 = vmatpush2.bf16.msra.mxu1 %v16482_v5  ;;  %11452 = vmatprep.subr.bf16.mxu0 %v16487_v9  ;;  %v16512_v5 = vld [vmem:[#allocation2 + $0x1d10] ss:$12 sps:$4 sm:$0xff]   ;;  %v18057_v9 = vcombine.high %v18049_v58, %v18049_v58 }
 0x250   :  { %11493 = vmatprep.subr.bf16.mxu1 %v16490_v11 }
 0x251   :  { %18430 = vst [vmem:[#allocation8_spill] sm:$0xff] %v18057_v9 }
 0x252   :  { %11453 = vmatpush2.bf16.msra.mxu0 %v16485_v16 }
 0x253   :  { %11494 = vmatpush2.bf16.msra.mxu1 %v16488_v19  ;;  %11454 = vmatprep.subr.bf16.mxu0 %v16493_v21 }
 0x254   :  { %11495 = vmatprep.subr.bf16.mxu1 %v16496_v4  ;;  %v16517_v4 = vld [vmem:[#allocation2 + $0x1b7c] ss:$12 sps:$4 sm:$0xff]  }
 0x256   :  { %11455 = vmatpush2.bf16.msra.mxu0 %v16491_v35  ;;  %v16520_v35 = vld [vmem:[#allocation2 + $0x1cfc] ss:$12 sps:$4 sm:$0xff]  }
 0x257   :  { %11496 = vmatpush2.bf16.msra.mxu1 %v16494_v7  ;;  %11456 = vmatprep.subr.bf16.mxu0 %v16499_v31 }
 0x258   :  { %11497 = vmatprep.subr.bf16.mxu1 %v16502_v38  ;;  %v16515_v38 = vld [vmem:[#allocation2 + $0x1b78] ss:$12 sps:$4 sm:$0xff]  }
 0x25a   :  { %11457 = vmatpush2.bf16.msra.mxu0 %v16497_v45 }
 0x25b   :  { %11498 = vmatpush2.bf16.msra.mxu1 %v16500_v37  ;;  %11508 = vmatprep.subr.bf16.mxu0 %v16505_v2 }
 0x25c   :  { %11549 = vmatprep.subr.bf16.mxu1 %v16508_v51 }
 0x25d   :  { %v11214_v11 = vpop.f32.mrf.mxu0  ;;  %11459 = vmatmul.mubr.bf16.vlgmr.msra.gmra.mxu0 %v18046_v39 }
 0x25e   :  { %v11255_v14 = vpop.f32.mrf.mxu1  ;;  %11500 = vmatmul.mubr.bf16.vlgmr.msra.gmra.mxu1 %v18053_v61  ;;  %v11215_v16 = vadd.f32 %v11214_v11, %v18030_v53  ;;  %11509 = vmatpush1.bf16.msra.mxu0 %v16503_v52  ;;  %v16523_v52 = vld [vmem:[#allocation2 + $0x1b64] ss:$12 sps:$4 sm:$0xff]   ;;  %v16532_v11 = vld [vmem:[#allocation2 + $0x1ccc] ss:$12 sps:$4 sm:$0xff]  }
 0x25f   :  { %11550 = vmatpush1.bf16.msra.mxu1 %v16506_v57  ;;  %v11216_v19 = vpop.f32.mrf.mxu0  ;;  %11510 = vmatprep.subr.bf16.mxu0 %v16511_v1  ;;  %v16526_v57 = vld [vmem:[#allocation2 + $0x1ce4] ss:$12 sps:$4 sm:$0xff]   ;;  %v16524_v1 = vld [vmem:[#allocation2 + $0x1ce0] ss:$12 sps:$4 sm:$0xff]  }
 0x260   :  { %v11257_v21 = vpop.f32.mrf.mxu1  ;;  %11551 = vmatprep.subr.bf16.mxu1 %v16514_v10  ;;  %v18062_v7 = vadd.f32 %v11255_v14, %v11215_v16  ;;  %v11217_v31 = vadd.f32 %v11216_v19, %v18035_v25  ;;  %11540 = vmatprep.mubr.bf16.mxu0 %v18049_v58  ;;  %v16521_v25 = vld [vmem:[#allocation2 + $0x1b60] ss:$12 sps:$4 sm:$0xff]   ;;  %v16527_v14 = vld [vmem:[#allocation2 + $0x1b48] ss:$12 sps:$4 sm:$0xff]   ;;  %v16533_v19 = vld [vmem:[#allocation2 + $0x1b30] ss:$12 sps:$4 sm:$0xff]  }
 0x261   :  { %11581 = vmatprep.mubr.bf16.mxu1 %v18057_v9  ;;  %v11218_v45 = vpop.f32.mrf.mxu0  ;;  %v16529_v10 = vld [vmem:[#allocation2 + $0x1b4c] ss:$12 sps:$4 sm:$0xff]   ;;  %v16530_v16 = vld [vmem:[#allocation2 + $0x1cc8] ss:$12 sps:$4 sm:$0xff]  }
 0x262   :  { %v11259_v53 = vpop.f32.mrf.mxu1  ;;  %v18067_v37 = vadd.f32 %v11257_v21, %v11217_v31  ;;  %11511 = vmatpush1.bf16.msra.mxu0 %v16509_v46  ;;  %v16535_v46 = vld [vmem:[#allocation2 + $0x1b34] ss:$12 sps:$4 sm:$0xff]   ;;  %v16536_v21 = vld [vmem:[#allocation2 + $0x1cb0] ss:$12 sps:$4 sm:$0xff]   ;;  %v16539_v31 = vld [vmem:[#allocation2 + $0x1b18] ss:$12 sps:$4 sm:$0xff]  }
 0x263   :  { %11552 = vmatpush1.bf16.msra.mxu1 %v16512_v5  ;;  %v11219_v2 = vpop.f32.mrf.mxu0  ;;  %11512 = vmatprep.subr.bf16.mxu0 %v16517_v4  ;;  %v16538_v5 = vld [vmem:[#allocation2 + $0x1cb4] ss:$12 sps:$4 sm:$0xff]   ;;  %v16541_v4 = vld [vmem:[#allocation2 + $0x1b1c] ss:$12 sps:$4 sm:$0xff]   ;;  %v16550_v45 = vld [vmem:[#allocation2 + $0x1c84] ss:$12 sps:$4 sm:$0xff]  }
 0x264   :  { %v11260_v51 = vpop.f32.mrf.mxu1  ;;  %11553 = vmatprep.subr.bf16.mxu1 %v16520_v35  ;;  %v16544_v35 = vld [vmem:[#allocation2 + $0x1c9c] ss:$12 sps:$4 sm:$0xff]   ;;  %v16545_v53 = vld [vmem:[#allocation2 + $0x1b00] ss:$12 sps:$4 sm:$0xff]   ;;  %v16615_v9 = vld [vmem:[#allocation2 + $0x1ff8] ss:$12 sps:$4 sm:$0xff]  }
 0x265   :  { %v16548_v2 = vld [vmem:[#allocation2 + $0x1c80] ss:$12 sps:$4 sm:$0xff]  }
 0x266   :  { %11513 = vmatpush1.bf16.msra.mxu0 %v16515_v38  ;;  %v16542_v38 = vld [vmem:[#allocation2 + $0x1c98] ss:$12 sps:$4 sm:$0xff]  }
 0x267   :  { %11554 = vmatpush1.bf16.msra.mxu1 %v16518_v3  ;;  %11514 = vmatprep.subr.bf16.mxu0 %v16523_v52  ;;  %v16547_v3 = vld [vmem:[#allocation2 + $0x1b04] ss:$12 sps:$4 sm:$0xff]   ;;  %v16553_v51 = vld [vmem:[#allocation2 + $0x1c6c] ss:$12 sps:$4 sm:$0xff]  }
 0x268   :  { %11555 = vmatprep.subr.bf16.mxu1 %v16526_v57  ;;  %v16556_v52 = vld [vmem:[#allocation2 + $0x1dec] ss:$12 sps:$4 sm:$0xff]   ;;  %v16551_v57 = vld [vmem:[#allocation2 + $0x1c68] ss:$12 sps:$4 sm:$0xff]  }
 0x26a   :  { %11515 = vmatpush1.bf16.msra.mxu0 %v16521_v25  ;;  %v16554_v25 = vld [vmem:[#allocation2 + $0x1de8] ss:$12 sps:$4 sm:$0xff]  }
 0x26b   :  { %11556 = vmatpush1.bf16.msra.mxu1 %v16524_v1  ;;  %11516 = vmatprep.subr.bf16.mxu0 %v16529_v10  ;;  %v16559_v1 = vld [vmem:[#allocation2 + $0x1c54] ss:$12 sps:$4 sm:$0xff]  }
 0x26c   :  { %11557 = vmatprep.subr.bf16.mxu1 %v16532_v11  ;;  %v16562_v10 = vld [vmem:[#allocation2 + $0x1dd4] ss:$12 sps:$4 sm:$0xff]   ;;  %v16557_v11 = vld [vmem:[#allocation2 + $0x1c50] ss:$12 sps:$4 sm:$0xff]  }
 0x26e   :  { %11517 = vmatpush1.bf16.msra.mxu0 %v16527_v14  ;;  %v16560_v14 = vld [vmem:[#allocation2 + $0x1dd0] ss:$12 sps:$4 sm:$0xff]  }
 0x26f   :  { %11558 = vmatpush1.bf16.msra.mxu1 %v16530_v16  ;;  %11518 = vmatprep.subr.bf16.mxu0 %v16535_v46  ;;  %v16565_v16 = vld [vmem:[#allocation2 + $0x1c3c] ss:$12 sps:$4 sm:$0xff]  }
 0x270   :  { %11559 = vmatprep.subr.bf16.mxu1 %v16538_v5  ;;  %v16568_v46 = vld [vmem:[#allocation2 + $0x1dbc] ss:$12 sps:$4 sm:$0xff]   ;;  %v16563_v5 = vld [vmem:[#allocation2 + $0x1c38] ss:$12 sps:$4 sm:$0xff]  }
 0x272   :  { %11519 = vmatpush1.bf16.msra.mxu0 %v16533_v19  ;;  %v16566_v19 = vld [vmem:[#allocation2 + $0x1db8] ss:$12 sps:$4 sm:$0xff]  }
 0x273   :  { %11560 = vmatpush1.bf16.msra.mxu1 %v16536_v21  ;;  %11520 = vmatprep.subr.bf16.mxu0 %v16541_v4  ;;  %v16571_v21 = vld [vmem:[#allocation2 + $0x1c24] ss:$12 sps:$4 sm:$0xff]  }
 0x274   :  { %11561 = vmatprep.subr.bf16.mxu1 %v16544_v35  ;;  %v16574_v4 = vld [vmem:[#allocation2 + $0x1da4] ss:$12 sps:$4 sm:$0xff]   ;;  %v16569_v35 = vld [vmem:[#allocation2 + $0x1c20] ss:$12 sps:$4 sm:$0xff]  }
 0x276   :  { %11521 = vmatpush1.bf16.msra.mxu0 %v16539_v31  ;;  %v16572_v31 = vld [vmem:[#allocation2 + $0x1da0] ss:$12 sps:$4 sm:$0xff]  }
 0x277   :  { %11562 = vmatpush1.bf16.msra.mxu1 %v16542_v38  ;;  %11522 = vmatprep.subr.bf16.mxu0 %v16547_v3  ;;  %v16577_v38 = vld [vmem:[#allocation2 + $0x1c0c] ss:$12 sps:$4 sm:$0xff]  }
 0x278   :  { %11563 = vmatprep.subr.bf16.mxu1 %v16550_v45  ;;  %v16580_v3 = vld [vmem:[#allocation2 + $0x1d8c] ss:$12 sps:$4 sm:$0xff]   ;;  %v16575_v45 = vld [vmem:[#allocation2 + $0x1c08] ss:$12 sps:$4 sm:$0xff]  }
 0x27a   :  { %11523 = vmatpush1.bf16.msra.mxu0 %v16545_v53  ;;  %v16578_v53 = vld [vmem:[#allocation2 + $0x1d88] ss:$12 sps:$4 sm:$0xff]  }
 0x27b   :  { %11564 = vmatpush1.bf16.msra.mxu1 %v16548_v2  ;;  %11524 = vmatprep.subr.bf16.mxu0 %v16553_v51  ;;  %v16583_v2 = vld [vmem:[#allocation2 + $0x1bf4] ss:$12 sps:$4 sm:$0xff]  }
 0x27c   :  { %11565 = vmatprep.subr.bf16.mxu1 %v16556_v52  ;;  %v16586_v51 = vld [vmem:[#allocation2 + $0x1d74] ss:$12 sps:$4 sm:$0xff]   ;;  %v18072_v52 = vld [vmem:[%s18405_s0 + $0x28] sm:$0xff] }
 0x27e   :  { %11525 = vmatpush2.bf16.msra.mxu0 %v16551_v57  ;;  %v16581_v57 = vld [vmem:[#allocation2 + $0x1bf0] ss:$12 sps:$4 sm:$0xff]  }
 0x27f   :  { %11566 = vmatpush2.bf16.msra.mxu1 %v16554_v25  ;;  %11526 = vmatprep.subr.bf16.mxu0 %v16559_v1  ;;  %v16584_v25 = vld [vmem:[#allocation2 + $0x1d70] ss:$12 sps:$4 sm:$0xff]  }
 0x280   :  { %11567 = vmatprep.subr.bf16.mxu1 %v16562_v10  ;;  %v16589_v1 = vld [vmem:[#allocation2 + $0x1bdc] ss:$12 sps:$4 sm:$0xff]  }
 0x281   :  { %v16592_v10 = vld [vmem:[#allocation2 + $0x1d5c] ss:$12 sps:$4 sm:$0xff]  }
 0x282   :  { %11527 = vmatpush2.bf16.msra.mxu0 %v16557_v11  ;;  %v18076_v11 = vrot.slane %v18072_v52, %v17771_v49 }
 0x283   :  { %11568 = vmatpush2.bf16.msra.mxu1 %v16560_v14  ;;  %11528 = vmatprep.subr.bf16.mxu0 %v16565_v16  ;;  %v16587_v14 = vld [vmem:[#allocation2 + $0x1bd8] ss:$12 sps:$4 sm:$0xff]  }
 0x284   :  { %11569 = vmatprep.subr.bf16.mxu1 %v16568_v46  ;;  %v16590_v16 = vld [vmem:[#allocation2 + $0x1d58] ss:$12 sps:$4 sm:$0xff]  }
 0x285   :  { %v16595_v46 = vld [vmem:[#allocation2 + $0x1bc4] ss:$12 sps:$4 sm:$0xff]  }
 0x286   :  { %11529 = vmatpush2.bf16.msra.mxu0 %v16563_v5  ;;  %v16598_v5 = vld [vmem:[#allocation2 + $0x1d44] ss:$12 sps:$4 sm:$0xff]  }
 0x287   :  { %11570 = vmatpush2.bf16.msra.mxu1 %v16566_v19  ;;  %11530 = vmatprep.subr.bf16.mxu0 %v16571_v21  ;;  %v2382_v19 = vcombine.high %v18076_v11, %v18076_v11  ;;  %v18082_v21 = vrot.slane %v18040_v29, %v17771_v49  ;;  %v16608_v29 = vld [vmem:[#allocation2 + $0x1e94] ss:$12 sps:$4 sm:$0xff]  }
 0x288   :  { %11571 = vmatprep.subr.bf16.mxu1 %v16574_v4  ;;  %v16593_v4 = vld [vmem:[#allocation2 + $0x1bc0] ss:$12 sps:$4 sm:$0xff]  }
 0x289   :  { %18431 = vst [vmem:[#allocation9_spill] sm:$0xff] %v18082_v21 }
 0x28a   :  { %11531 = vmatpush2.bf16.msra.mxu0 %v16569_v35  ;;  %v16596_v35 = vld [vmem:[#allocation2 + $0x1d40] ss:$12 sps:$4 sm:$0xff]  }
 0x28b   :  { %11572 = vmatpush2.bf16.msra.mxu1 %v16572_v31  ;;  %11532 = vmatprep.subr.bf16.mxu0 %v16577_v38  ;;  %v16602_v31 = vld [vmem:[#allocation2 + $0x1eac] ss:$12 sps:$4 sm:$0xff]  }
 0x28c   :  { %11573 = vmatprep.subr.bf16.mxu1 %v16580_v3  ;;  %v16605_v38 = vld [vmem:[#allocation2 + $0x202c] ss:$12 sps:$4 sm:$0xff]   ;;  %v16600_v3 = vld [vmem:[#allocation2 + $0x1ea8] ss:$12 sps:$4 sm:$0xff]  }
 0x28e   :  { %11533 = vmatpush2.bf16.msra.mxu0 %v16575_v45  ;;  %v16603_v45 = vld [vmem:[#allocation2 + $0x2028] ss:$12 sps:$4 sm:$0xff]  }
 0x28f   :  { %11574 = vmatpush2.bf16.msra.mxu1 %v16578_v53  ;;  %11534 = vmatprep.subr.bf16.mxu0 %v16583_v2  ;;  %v18085_v53 = vrot.slane %v2382_v19, %v17771_v49  ;;  %v18089_v2 = vcombine.high %v18082_v21, %v18082_v21  ;;  %v16614_v19 = vld [vmem:[#allocation2 + $0x1e7c] ss:$12 sps:$4 sm:$0xff]  }
 0x290   :  { %11575 = vmatprep.subr.bf16.mxu1 %v16586_v51  ;;  %v16611_v51 = vld [vmem:[#allocation2 + $0x2014] ss:$12 sps:$4 sm:$0xff]  }
 0x291   :  { %18432 = vst [vmem:[#allocation10_spill] sm:$0xff] %v18085_v53  ;;  %18433 = vst [vmem:[#allocation11_spill] sm:$0xff] %v18089_v2 }
 0x292   :  { %11535 = vmatpush2.bf16.msra.mxu0 %v16581_v57  ;;  %v16606_v57 = vld [vmem:[#allocation2 + $0x1e90] ss:$12 sps:$4 sm:$0xff]  }
 0x293   :  { %11576 = vmatpush2.bf16.msra.mxu1 %v16584_v25  ;;  %11536 = vmatprep.subr.bf16.mxu0 %v16589_v1  ;;  %v16609_v25 = vld [vmem:[#allocation2 + $0x2010] ss:$12 sps:$4 sm:$0xff]   ;;  %v18093_v1 = vcombine.high %v18085_v53, %v18085_v53 }
 0x294   :  { %11577 = vmatprep.subr.bf16.mxu1 %v16592_v10 }
 0x295   :  { %18434 = vst [vmem:[#allocation12_spill] sm:$0xff] %v18093_v1 }
 0x296   :  { %11537 = vmatpush2.bf16.msra.mxu0 %v16587_v14 }
 0x297   :  { %11578 = vmatpush2.bf16.msra.mxu1 %v16590_v16  ;;  %11538 = vmatprep.subr.bf16.mxu0 %v16595_v46 }
 0x298   :  { %11579 = vmatprep.subr.bf16.mxu1 %v16598_v5 }
 0x29a   :  { %11539 = vmatpush2.bf16.msra.mxu0 %v16593_v4  ;;  %v16617_v4 = vld [vmem:[#allocation2 + $0x1ffc] ss:$12 sps:$4 sm:$0xff]  }
 0x29b   :  { %11580 = vmatpush2.bf16.msra.mxu1 %v16596_v35  ;;  %11590 = vmatprep.subr.bf16.mxu0 %v16602_v31 }
 0x29c   :  { %11631 = vmatprep.subr.bf16.mxu1 %v16605_v38  ;;  %v16612_v38 = vld [vmem:[#allocation2 + $0x1e78] ss:$12 sps:$4 sm:$0xff]  }
 0x29d   :  { %v11296_v10 = vpop.f32.mrf.mxu0  ;;  %11541 = vmatmul.mubr.bf16.vlgmr.msra.gmra.mxu0 %v18082_v21  ;;  %v16808_v21 = vld [vmem:[#allocation2 + $0x25f8] ss:$12 sps:$4 sm:$0xff]  }
 0x29e   :  { %v11337_v14 = vpop.f32.mrf.mxu1  ;;  %11582 = vmatmul.mubr.bf16.vlgmr.msra.gmra.mxu1 %v18089_v2  ;;  %v11297_v16 = vadd.f32 %v11296_v10, %v18062_v7  ;;  %11591 = vmatpush1.bf16.msra.mxu0 %v16600_v3  ;;  %v16623_v10 = vld [vmem:[#allocation2 + $0x1fe4] ss:$12 sps:$4 sm:$0xff]  }
 0x29f   :  { %11632 = vmatpush1.bf16.msra.mxu1 %v16603_v45  ;;  %v11298_v46 = vpop.f32.mrf.mxu0  ;;  %11592 = vmatprep.subr.bf16.mxu0 %v16608_v29 }
 0x2a0   :  { %v11339_v5 = vpop.f32.mrf.mxu1  ;;  %11633 = vmatprep.subr.bf16.mxu1 %v16611_v51  ;;  %v18098_v35 = vadd.f32 %v11337_v14, %v11297_v16  ;;  %v11299_v31 = vadd.f32 %v11298_v46, %v18067_v37  ;;  %11622 = vmatprep.mubr.bf16.mxu0 %v18085_v53  ;;  %v16620_v51 = vld [vmem:[#allocation2 + $0x1e64] ss:$12 sps:$4 sm:$0xff]   ;;  %v16618_v37 = vld [vmem:[#allocation2 + $0x1e60] ss:$12 sps:$4 sm:$0xff]  }
 0x2a1   :  { %11663 = vmatprep.mubr.bf16.mxu1 %v18093_v1  ;;  %v11300_v2 = vpop.f32.mrf.mxu0  ;;  %v16621_v14 = vld [vmem:[#allocation2 + $0x1fe0] ss:$12 sps:$4 sm:$0xff]   ;;  %v16708_v1 = vld [vmem:[#allocation2 + $0x2178] ss:$12 sps:$4 sm:$0xff]  }
 0x2a2   :  { %v11341_v7 = vpop.f32.mrf.mxu1  ;;  %v18103_v3 = vadd.f32 %v11339_v5, %v11299_v31  ;;  %11593 = vmatpush1.bf16.msra.mxu0 %v16606_v57  ;;  %v16626_v16 = vld [vmem:[#allocation2 + $0x1e4c] ss:$12 sps:$4 sm:$0xff]   ;;  %v16624_v2 = vld [vmem:[#allocation2 + $0x1e48] ss:$12 sps:$4 sm:$0xff]  }
 0x2a3   :  { %11634 = vmatpush1.bf16.msra.mxu1 %v16609_v25  ;;  %v11301_v45 = vpop.f32.mrf.mxu0  ;;  %11594 = vmatprep.subr.bf16.mxu0 %v16614_v19  ;;  %v16629_v46 = vld [vmem:[#allocation2 + $0x1fcc] ss:$12 sps:$4 sm:$0xff]   ;;  %v16627_v5 = vld [vmem:[#allocation2 + $0x1fc8] ss:$12 sps:$4 sm:$0xff]   ;;  %v16630_v19 = vld [vmem:[#allocation2 + $0x1e30] ss:$12 sps:$4 sm:$0xff]  }
 0x2a4   :  { %v11342_v29 = vpop.f32.mrf.mxu1  ;;  %11635 = vmatprep.subr.bf16.mxu1 %v16617_v4  ;;  %v16632_v57 = vld [vmem:[#allocation2 + $0x1e34] ss:$12 sps:$4 sm:$0xff]   ;;  %v16633_v4 = vld [vmem:[#allocation2 + $0x1fb0] ss:$12 sps:$4 sm:$0xff]   ;;  %v16639_v7 = vld [vmem:[#allocation2 + $0x1f98] ss:$12 sps:$4 sm:$0xff]  }
 0x2a5   :  { %v16635_v25 = vld [vmem:[#allocation2 + $0x1fb4] ss:$12 sps:$4 sm:$0xff]   ;;  %v16641_v31 = vld [vmem:[#allocation2 + $0x1f9c] ss:$12 sps:$4 sm:$0xff]   ;;  %v16644_v45 = vld [vmem:[#allocation2 + $0x1e04] ss:$12 sps:$4 sm:$0xff]  }
 0x2a6   :  { %11595 = vmatpush1.bf16.msra.mxu0 %v16612_v38  ;;  %v16636_v38 = vld [vmem:[#allocation2 + $0x1e18] ss:$12 sps:$4 sm:$0xff]  }
 0x2a7   :  { %11636 = vmatpush1.bf16.msra.mxu1 %v16615_v9  ;;  %11596 = vmatprep.subr.bf16.mxu0 %v16620_v51  ;;  %v16638_v9 = vld [vmem:[#allocation2 + $0x1e1c] ss:$12 sps:$4 sm:$0xff]   ;;  %v16647_v29 = vld [vmem:[#allocation2 + $0x1f84] ss:$12 sps:$4 sm:$0xff]   ;;  %v16642_v51 = vld [vmem:[#allocation2 + $0x1e00] ss:$12 sps:$4 sm:$0xff]  }
 0x2a8   :  { %11637 = vmatprep.subr.bf16.mxu1 %v16623_v10  ;;  %v16645_v10 = vld [vmem:[#allocation2 + $0x1f80] ss:$12 sps:$4 sm:$0xff]   ;;  %v16711_v53 = vld [vmem:[#allocation2 + $0x22f8] ss:$12 sps:$4 sm:$0xff]  }
 0x2aa   :  { %11597 = vmatpush1.bf16.msra.mxu0 %v16618_v37  ;;  %v16650_v37 = vld [vmem:[#allocation2 + $0x1f6c] ss:$12 sps:$4 sm:$0xff]  }
 0x2ab   :  { %11638 = vmatpush1.bf16.msra.mxu1 %v16621_v14  ;;  %11598 = vmatprep.subr.bf16.mxu0 %v16626_v16  ;;  %v16653_v14 = vld [vmem:[#allocation2 + $0x20ec] ss:$12 sps:$4 sm:$0xff]   ;;  %v16648_v16 = vld [vmem:[#allocation2 + $0x1f68] ss:$12 sps:$4 sm:$0xff]  }
 0x2ac   :  { %11639 = vmatprep.subr.bf16.mxu1 %v16629_v46  ;;  %v16651_v46 = vld [vmem:[#allocation2 + $0x20e8] ss:$12 sps:$4 sm:$0xff]  }
 0x2ae   :  { %11599 = vmatpush1.bf16.msra.mxu0 %v16624_v2  ;;  %v16656_v2 = vld [vmem:[#allocation2 + $0x1f54] ss:$12 sps:$4 sm:$0xff]  }
 0x2af   :  { %11640 = vmatpush1.bf16.msra.mxu1 %v16627_v5  ;;  %11600 = vmatprep.subr.bf16.mxu0 %v16632_v57  ;;  %v16659_v5 = vld [vmem:[#allocation2 + $0x20d4] ss:$12 sps:$4 sm:$0xff]   ;;  %v16654_v57 = vld [vmem:[#allocation2 + $0x1f50] ss:$12 sps:$4 sm:$0xff]  }
 0x2b0   :  { %11641 = vmatprep.subr.bf16.mxu1 %v16635_v25  ;;  %v16657_v25 = vld [vmem:[#allocation2 + $0x20d0] ss:$12 sps:$4 sm:$0xff]  }
 0x2b2   :  { %11601 = vmatpush1.bf16.msra.mxu0 %v16630_v19  ;;  %v16662_v19 = vld [vmem:[#allocation2 + $0x1f3c] ss:$12 sps:$4 sm:$0xff]  }
 0x2b3   :  { %11642 = vmatpush1.bf16.msra.mxu1 %v16633_v4  ;;  %11602 = vmatprep.subr.bf16.mxu0 %v16638_v9  ;;  %v16665_v4 = vld [vmem:[#allocation2 + $0x20bc] ss:$12 sps:$4 sm:$0xff]   ;;  %v16660_v9 = vld [vmem:[#allocation2 + $0x1f38] ss:$12 sps:$4 sm:$0xff]  }
 0x2b4   :  { %11643 = vmatprep.subr.bf16.mxu1 %v16641_v31  ;;  %v16663_v31 = vld [vmem:[#allocation2 + $0x20b8] ss:$12 sps:$4 sm:$0xff]  }
 0x2b6   :  { %11603 = vmatpush1.bf16.msra.mxu0 %v16636_v38  ;;  %v16668_v38 = vld [vmem:[#allocation2 + $0x1f24] ss:$12 sps:$4 sm:$0xff]  }
 0x2b7   :  { %11644 = vmatpush1.bf16.msra.mxu1 %v16639_v7  ;;  %11604 = vmatprep.subr.bf16.mxu0 %v16644_v45  ;;  %v16671_v7 = vld [vmem:[#allocation2 + $0x20a4] ss:$12 sps:$4 sm:$0xff]   ;;  %v16666_v45 = vld [vmem:[#allocation2 + $0x1f20] ss:$12 sps:$4 sm:$0xff]  }
 0x2b8   :  { %11645 = vmatprep.subr.bf16.mxu1 %v16647_v29  ;;  %v16669_v29 = vld [vmem:[#allocation2 + $0x20a0] ss:$12 sps:$4 sm:$0xff]  }
 0x2ba   :  { %11605 = vmatpush1.bf16.msra.mxu0 %v16642_v51  ;;  %v16674_v51 = vld [vmem:[#allocation2 + $0x1f0c] ss:$12 sps:$4 sm:$0xff]  }
 0x2bb   :  { %11646 = vmatpush1.bf16.msra.mxu1 %v16645_v10  ;;  %11606 = vmatprep.subr.bf16.mxu0 %v16650_v37  ;;  %v16677_v10 = vld [vmem:[#allocation2 + $0x208c] ss:$12 sps:$4 sm:$0xff]   ;;  %v16672_v37 = vld [vmem:[#allocation2 + $0x1f08] ss:$12 sps:$4 sm:$0xff]  }
 0x2bc   :  { %11647 = vmatprep.subr.bf16.mxu1 %v16653_v14  ;;  %v16675_v14 = vld [vmem:[#allocation2 + $0x2088] ss:$12 sps:$4 sm:$0xff]  }
 0x2be   :  { %11607 = vmatpush2.bf16.msra.mxu0 %v16648_v16  ;;  %v16680_v16 = vld [vmem:[#allocation2 + $0x1ef4] ss:$12 sps:$4 sm:$0xff]  }
 0x2bf   :  { %11648 = vmatpush2.bf16.msra.mxu1 %v16651_v46  ;;  %11608 = vmatprep.subr.bf16.mxu0 %v16656_v2  ;;  %v16683_v46 = vld [vmem:[#allocation2 + $0x2074] ss:$12 sps:$4 sm:$0xff]   ;;  %v2367_v2 = vcombine.high %v18072_v52, %v18072_v52 }
 0x2c0   :  { %11649 = vmatprep.subr.bf16.mxu1 %v16659_v5  ;;  %v16678_v5 = vld [vmem:[#allocation2 + $0x1ef0] ss:$12 sps:$4 sm:$0xff]  }
 0x2c2   :  { %11609 = vmatpush2.bf16.msra.mxu0 %v16654_v57  ;;  %v16681_v57 = vld [vmem:[#allocation2 + $0x2070] ss:$12 sps:$4 sm:$0xff]  }
 0x2c3   :  { %11650 = vmatpush2.bf16.msra.mxu1 %v16657_v25  ;;  %11610 = vmatprep.subr.bf16.mxu0 %v16662_v19  ;;  %v16686_v25 = vld [vmem:[#allocation2 + $0x1edc] ss:$12 sps:$4 sm:$0xff]  }
 0x2c4   :  { %11651 = vmatprep.subr.bf16.mxu1 %v16665_v4  ;;  %v16689_v19 = vld [vmem:[#allocation2 + $0x205c] ss:$12 sps:$4 sm:$0xff]   ;;  %v18108_v4 = vrot.slane %v2367_v2, %v17771_v49 }
 0x2c6   :  { %11611 = vmatpush2.bf16.msra.mxu0 %v16660_v9  ;;  %v16684_v9 = vld [vmem:[#allocation2 + $0x1ed8] ss:$12 sps:$4 sm:$0xff]   ;;  %v2383_v52 = vcombine.high %v18108_v4, %v18108_v4 }
 0x2c7   :  { %11652 = vmatpush2.bf16.msra.mxu1 %v16663_v31  ;;  %11612 = vmatprep.subr.bf16.mxu0 %v16668_v38  ;;  %v16687_v31 = vld [vmem:[#allocation2 + $0x2058] ss:$12 sps:$4 sm:$0xff]  }
 0x2c8   :  { %11653 = vmatprep.subr.bf16.mxu1 %v16671_v7  ;;  %v16692_v38 = vld [vmem:[#allocation2 + $0x1ec4] ss:$12 sps:$4 sm:$0xff]  }
 0x2c9   :  { %v16695_v7 = vld [vmem:[#allocation2 + $0x2044] ss:$12 sps:$4 sm:$0xff]  }
 0x2ca   :  { %11613 = vmatpush2.bf16.msra.mxu0 %v16666_v45  ;;  %v18114_v45 = vrot.slane %v18076_v11, %v17771_v49  ;;  %v16704_v11 = vld [vmem:[#allocation2 + $0x2194] ss:$12 sps:$4 sm:$0xff]  }
 0x2cb   :  { %11654 = vmatpush2.bf16.msra.mxu1 %v16669_v29  ;;  %11614 = vmatprep.subr.bf16.mxu0 %v16674_v51  ;;  %v16690_v29 = vld [vmem:[#allocation2 + $0x1ec0] ss:$12 sps:$4 sm:$0xff]  }
 0x2cc   :  { %11655 = vmatprep.subr.bf16.mxu1 %v16677_v10  ;;  %18435 = vst [vmem:[#allocation13_spill] sm:$0xff] %v18114_v45  ;;  %v16693_v51 = vld [vmem:[#allocation2 + $0x2040] ss:$12 sps:$4 sm:$0xff]   ;;  %v18121_v2 = vcombine.high %v18114_v45, %v18114_v45 }
 0x2cd   :  { %v16698_v10 = vld [vmem:[#allocation2 + $0x21ac] ss:$12 sps:$4 sm:$0xff]  }
 0x2ce   :  { %11615 = vmatpush2.bf16.msra.mxu0 %v16672_v37  ;;  %v16701_v37 = vld [vmem:[#allocation2 + $0x232c] ss:$12 sps:$4 sm:$0xff]   ;;  %18437 = vst [vmem:[#allocation15_spill] sm:$0xff] %v18121_v2 }
 0x2cf   :  { %11656 = vmatpush2.bf16.msra.mxu1 %v16675_v14  ;;  %11616 = vmatprep.subr.bf16.mxu0 %v16680_v16  ;;  %v16696_v14 = vld [vmem:[#allocation2 + $0x21a8] ss:$12 sps:$4 sm:$0xff]  }
 0x2d0   :  { %11657 = vmatprep.subr.bf16.mxu1 %v16683_v46  ;;  %v16699_v16 = vld [vmem:[#allocation2 + $0x2328] ss:$12 sps:$4 sm:$0xff]   ;;  %v18117_v46 = vrot.slane %v2383_v52, %v17771_v49 }
 0x2d2   :  { %11617 = vmatpush2.bf16.msra.mxu0 %v16678_v5  ;;  %18436 = vst [vmem:[#allocation14_spill] sm:$0xff] %v18117_v46  ;;  %v16707_v5 = vld [vmem:[#allocation2 + $0x2314] ss:$12 sps:$4 sm:$0xff]  }
 0x2d3   :  { %11658 = vmatpush2.bf16.msra.mxu1 %v16681_v57  ;;  %11618 = vmatprep.subr.bf16.mxu0 %v16686_v25  ;;  %v16702_v57 = vld [vmem:[#allocation2 + $0x2190] ss:$12 sps:$4 sm:$0xff]  }
 0x2d4   :  { %11659 = vmatprep.subr.bf16.mxu1 %v16689_v19  ;;  %v16705_v25 = vld [vmem:[#allocation2 + $0x2310] ss:$12 sps:$4 sm:$0xff]   ;;  %v18125_v19 = vcombine.high %v18117_v46, %v18117_v46 }
 0x2d6   :  { %11619 = vmatpush2.bf16.msra.mxu0 %v16684_v9  ;;  %18438 = vst [vmem:[#allocation16_spill] sm:$0xff] %v18125_v19 }
 0x2d7   :  { %11660 = vmatpush2.bf16.msra.mxu1 %v16687_v31  ;;  %11620 = vmatprep.subr.bf16.mxu0 %v16692_v38 }
 0x2d8   :  { %11661 = vmatprep.subr.bf16.mxu1 %v16695_v7 }
 0x2da   :  { %11621 = vmatpush2.bf16.msra.mxu0 %v16690_v29  ;;  %v16710_v29 = vld [vmem:[#allocation2 + $0x217c] ss:$12 sps:$4 sm:$0xff]  }
 0x2db   :  { %11662 = vmatpush2.bf16.msra.mxu1 %v16693_v51  ;;  %11672 = vmatprep.subr.bf16.mxu0 %v16698_v10  ;;  %v16713_v51 = vld [vmem:[#allocation2 + $0x22fc] ss:$12 sps:$4 sm:$0xff]  }
 0x2dc   :  { %11713 = vmatprep.subr.bf16.mxu1 %v16701_v37 }
 0x2dd   :  { %v11378_v9 = vpop.f32.mrf.mxu0  ;;  %11623 = vmatmul.mubr.bf16.vlgmr.msra.gmra.mxu0 %v18114_v45  ;;  %v16805_v45 = vld [vmem:[#allocation2 + $0x2478] ss:$12 sps:$4 sm:$0xff]  }
 0x2de   :  { %v11419_v31 = vpop.f32.mrf.mxu1  ;;  %11664 = vmatmul.mubr.bf16.vlgmr.msra.gmra.mxu1 %v18121_v2  ;;  %v11379_v38 = vadd.f32 %v11378_v9, %v18098_v35  ;;  %11673 = vmatpush1.bf16.msra.mxu0 %v16696_v14  ;;  %v16719_v9 = vld [vmem:[#allocation2 + $0x22e4] ss:$12 sps:$4 sm:$0xff]  }
 0x2df   :  { %11714 = vmatpush1.bf16.msra.mxu1 %v16699_v16  ;;  %v11380_v7 = vpop.f32.mrf.mxu0  ;;  %11674 = vmatprep.subr.bf16.mxu0 %v16704_v11 }
 0x2e0   :  { %v11421_v52 = vpop.f32.mrf.mxu1  ;;  %11715 = vmatprep.subr.bf16.mxu1 %v16707_v5  ;;  %v18130_v10 = vadd.f32 %v11419_v31, %v11379_v38  ;;  %v11381_v37 = vadd.f32 %v11380_v7, %v18103_v3  ;;  %11704 = vmatprep.mubr.bf16.mxu0 %v18117_v46  ;;  %v16716_v5 = vld [vmem:[#allocation2 + $0x2164] ss:$12 sps:$4 sm:$0xff]   ;;  %v16714_v3 = vld [vmem:[#allocation2 + $0x2160] ss:$12 sps:$4 sm:$0xff]  }
 0x2e1   :  { %11745 = vmatprep.mubr.bf16.mxu1 %v18125_v19  ;;  %v11382_v2 = vpop.f32.mrf.mxu0  ;;  %v16717_v31 = vld [vmem:[#allocation2 + $0x22e0] ss:$12 sps:$4 sm:$0xff]  }
 0x2e2   :  { %v11423_v35 = vpop.f32.mrf.mxu1  ;;  %v18135_v14 = vadd.f32 %v11421_v52, %v11381_v37  ;;  %11675 = vmatpush1.bf16.msra.mxu0 %v16702_v57  ;;  %v16722_v38 = vld [vmem:[#allocation2 + $0x214c] ss:$12 sps:$4 sm:$0xff]   ;;  %v16720_v2 = vld [vmem:[#allocation2 + $0x2148] ss:$12 sps:$4 sm:$0xff]  }
 0x2e3   :  { %11716 = vmatpush1.bf16.msra.mxu1 %v16705_v25  ;;  %v11383_v16 = vpop.f32.mrf.mxu0  ;;  %11676 = vmatprep.subr.bf16.mxu0 %v16710_v29  ;;  %v16725_v7 = vld [vmem:[#allocation2 + $0x22cc] ss:$12 sps:$4 sm:$0xff]   ;;  %v16723_v52 = vld [vmem:[#allocation2 + $0x22c8] ss:$12 sps:$4 sm:$0xff]   ;;  %v16726_v29 = vld [vmem:[#allocation2 + $0x2130] ss:$12 sps:$4 sm:$0xff]  }
 0x2e4   :  { %v11424_v11 = vpop.f32.mrf.mxu1  ;;  %11717 = vmatprep.subr.bf16.mxu1 %v16713_v51  ;;  %v16728_v57 = vld [vmem:[#allocation2 + $0x2134] ss:$12 sps:$4 sm:$0xff]   ;;  %v16729_v51 = vld [vmem:[#allocation2 + $0x22b0] ss:$12 sps:$4 sm:$0xff]   ;;  %v16732_v37 = vld [vmem:[#allocation2 + $0x2118] ss:$12 sps:$4 sm:$0xff]  }
 0x2e5   :  { %v16731_v25 = vld [vmem:[#allocation2 + $0x22b4] ss:$12 sps:$4 sm:$0xff]   ;;  %v16735_v35 = vld [vmem:[#allocation2 + $0x2298] ss:$12 sps:$4 sm:$0xff]  }
 0x2e6   :  { %11677 = vmatpush1.bf16.msra.mxu0 %v16708_v1  ;;  %v16737_v1 = vld [vmem:[#allocation2 + $0x229c] ss:$12 sps:$4 sm:$0xff]   ;;  %v16740_v16 = vld [vmem:[#allocation2 + $0x2104] ss:$12 sps:$4 sm:$0xff]  }
 0x2e7   :  { %11718 = vmatpush1.bf16.msra.mxu1 %v16711_v53  ;;  %11678 = vmatprep.subr.bf16.mxu0 %v16716_v5  ;;  %v16734_v53 = vld [vmem:[#allocation2 + $0x211c] ss:$12 sps:$4 sm:$0xff]   ;;  %v16743_v11 = vld [vmem:[#allocation2 + $0x2284] ss:$12 sps:$4 sm:$0xff]   ;;  %v16738_v5 = vld [vmem:[#allocation2 + $0x2100] ss:$12 sps:$4 sm:$0xff]  }
 0x2e8   :  { %11719 = vmatprep.subr.bf16.mxu1 %v16719_v9  ;;  %v16741_v9 = vld [vmem:[#allocation2 + $0x2280] ss:$12 sps:$4 sm:$0xff]  }
 0x2ea   :  { %11679 = vmatpush1.bf16.msra.mxu0 %v16714_v3  ;;  %v16746_v3 = vld [vmem:[#allocation2 + $0x226c] ss:$12 sps:$4 sm:$0xff]  }
 0x2eb   :  { %11720 = vmatpush1.bf16.msra.mxu1 %v16717_v31  ;;  %11680 = vmatprep.subr.bf16.mxu0 %v16722_v38  ;;  %v16749_v31 = vld [vmem:[#allocation2 + $0x23ec] ss:$12 sps:$4 sm:$0xff]   ;;  %v16744_v38 = vld [vmem:[#allocation2 + $0x2268] ss:$12 sps:$4 sm:$0xff]  }
 0x2ec   :  { %11721 = vmatprep.subr.bf16.mxu1 %v16725_v7  ;;  %v16747_v7 = vld [vmem:[#allocation2 + $0x23e8] ss:$12 sps:$4 sm:$0xff]  }
 0x2ee   :  { %11681 = vmatpush1.bf16.msra.mxu0 %v16720_v2  ;;  %v16752_v2 = vld [vmem:[#allocation2 + $0x2254] ss:$12 sps:$4 sm:$0xff]  }
 0x2ef   :  { %11722 = vmatpush1.bf16.msra.mxu1 %v16723_v52  ;;  %11682 = vmatprep.subr.bf16.mxu0 %v16728_v57  ;;  %v16755_v52 = vld [vmem:[#allocation2 + $0x23d4] ss:$12 sps:$4 sm:$0xff]   ;;  %v16750_v57 = vld [vmem:[#allocation2 + $0x2250] ss:$12 sps:$4 sm:$0xff]  }
 0x2f0   :  { %11723 = vmatprep.subr.bf16.mxu1 %v16731_v25  ;;  %v16753_v25 = vld [vmem:[#allocation2 + $0x23d0] ss:$12 sps:$4 sm:$0xff]  }
 0x2f2   :  { %11683 = vmatpush1.bf16.msra.mxu0 %v16726_v29  ;;  %v16758_v29 = vld [vmem:[#allocation2 + $0x223c] ss:$12 sps:$4 sm:$0xff]  }
 0x2f3   :  { %11724 = vmatpush1.bf16.msra.mxu1 %v16729_v51  ;;  %11684 = vmatprep.subr.bf16.mxu0 %v16734_v53  ;;  %v16761_v51 = vld [vmem:[#allocation2 + $0x23bc] ss:$12 sps:$4 sm:$0xff]   ;;  %v16756_v53 = vld [vmem:[#allocation2 + $0x2238] ss:$12 sps:$4 sm:$0xff]  }
 0x2f4   :  { %11725 = vmatprep.subr.bf16.mxu1 %v16737_v1  ;;  %v16759_v1 = vld [vmem:[#allocation2 + $0x23b8] ss:$12 sps:$4 sm:$0xff]  }
 0x2f6   :  { %11685 = vmatpush1.bf16.msra.mxu0 %v16732_v37  ;;  %v16764_v37 = vld [vmem:[#allocation2 + $0x2224] ss:$12 sps:$4 sm:$0xff]  }
 0x2f7   :  { %11726 = vmatpush1.bf16.msra.mxu1 %v16735_v35  ;;  %11686 = vmatprep.subr.bf16.mxu0 %v16740_v16  ;;  %v16767_v35 = vld [vmem:[#allocation2 + $0x23a4] ss:$12 sps:$4 sm:$0xff]   ;;  %v16762_v16 = vld [vmem:[#allocation2 + $0x2220] ss:$12 sps:$4 sm:$0xff]  }
 0x2f8   :  { %11727 = vmatprep.subr.bf16.mxu1 %v16743_v11  ;;  %v16765_v11 = vld [vmem:[#allocation2 + $0x23a0] ss:$12 sps:$4 sm:$0xff]  }
 0x2fa   :  { %11687 = vmatpush1.bf16.msra.mxu0 %v16738_v5  ;;  %v16770_v5 = vld [vmem:[#allocation2 + $0x220c] ss:$12 sps:$4 sm:$0xff]  }
 0x2fb   :  { %11728 = vmatpush1.bf16.msra.mxu1 %v16741_v9  ;;  %11688 = vmatprep.subr.bf16.mxu0 %v16746_v3  ;;  %v16773_v9 = vld [vmem:[#allocation2 + $0x238c] ss:$12 sps:$4 sm:$0xff]   ;;  %v16768_v3 = vld [vmem:[#allocation2 + $0x2208] ss:$12 sps:$4 sm:$0xff]  }
 0x2fc   :  { %11729 = vmatprep.subr.bf16.mxu1 %v16749_v31  ;;  %v16771_v31 = vld [vmem:[#allocation2 + $0x2388] ss:$12 sps:$4 sm:$0xff]  }
 0x2fe   :  { %11689 = vmatpush2.bf16.msra.mxu0 %v16744_v38  ;;  %v16776_v38 = vld [vmem:[#allocation2 + $0x21f4] ss:$12 sps:$4 sm:$0xff]  }
 0x2ff   :  { %11730 = vmatpush2.bf16.msra.mxu1 %v16747_v7  ;;  %11690 = vmatprep.subr.bf16.mxu0 %v16752_v2  ;;  %v16779_v7 = vld [vmem:[#allocation2 + $0x2374] ss:$12 sps:$4 sm:$0xff]  }
 0x300   :  { %11731 = vmatprep.subr.bf16.mxu1 %v16755_v52  ;;  %v18140_v2 = vld [vmem:[%s18405_s0 + $0x30] sm:$0xff] }
 0x301   :  { %v16774_v52 = vld [vmem:[#allocation2 + $0x21f0] ss:$12 sps:$4 sm:$0xff]  }
 0x302   :  { %11691 = vmatpush2.bf16.msra.mxu0 %v16750_v57  ;;  %v16777_v57 = vld [vmem:[#allocation2 + $0x2370] ss:$12 sps:$4 sm:$0xff]  }
 0x303   :  { %11732 = vmatpush2.bf16.msra.mxu1 %v16753_v25  ;;  %11692 = vmatprep.subr.bf16.mxu0 %v16758_v29  ;;  %v16782_v25 = vld [vmem:[#allocation2 + $0x21dc] ss:$12 sps:$4 sm:$0xff]  }
 0x304   :  { %11733 = vmatprep.subr.bf16.mxu1 %v16761_v51  ;;  %v16785_v29 = vld [vmem:[#allocation2 + $0x235c] ss:$12 sps:$4 sm:$0xff]   ;;  %v18144_v51 = vrot.slane %v18140_v2, %v17771_v49 }
 0x306   :  { %11693 = vmatpush2.bf16.msra.mxu0 %v16756_v53  ;;  %v16780_v53 = vld [vmem:[#allocation2 + $0x21d8] ss:$12 sps:$4 sm:$0xff]  }
 0x307   :  { %11734 = vmatpush2.bf16.msra.mxu1 %v16759_v1  ;;  %11694 = vmatprep.subr.bf16.mxu0 %v16764_v37  ;;  %v16783_v1 = vld [vmem:[#allocation2 + $0x2358] ss:$12 sps:$4 sm:$0xff]  }
 0x308   :  { %11735 = vmatprep.subr.bf16.mxu1 %v16767_v35  ;;  %v16788_v37 = vld [vmem:[#allocation2 + $0x21c4] ss:$12 sps:$4 sm:$0xff]  }
 0x309   :  { %v16791_v35 = vld [vmem:[#allocation2 + $0x2344] ss:$12 sps:$4 sm:$0xff]  }
 0x30a   :  { %11695 = vmatpush2.bf16.msra.mxu0 %v16762_v16  ;;  %v2431_v16 = vcombine.high %v18144_v51, %v18144_v51 }
 0x30b   :  { %11736 = vmatpush2.bf16.msra.mxu1 %v16765_v11  ;;  %11696 = vmatprep.subr.bf16.mxu0 %v16770_v5  ;;  %v18150_v11 = vrot.slane %v18108_v4, %v17771_v49  ;;  %v16786_v5 = vld [vmem:[#allocation2 + $0x21c0] ss:$12 sps:$4 sm:$0xff]  }
 0x30c   :  { %11737 = vmatprep.subr.bf16.mxu1 %v16773_v9  ;;  %v16789_v9 = vld [vmem:[#allocation2 + $0x2340] ss:$12 sps:$4 sm:$0xff]  }
 0x30d   :  { %18439 = vst [vmem:[#allocation17_spill] sm:$0xff] %v18150_v11  ;;  %v16801_v4 = vld [vmem:[#allocation2 + $0x2494] ss:$12 sps:$4 sm:$0xff]  }
 0x30e   :  { %11697 = vmatpush2.bf16.msra.mxu0 %v16768_v3  ;;  %v16795_v3 = vld [vmem:[#allocation2 + $0x24ac] ss:$12 sps:$4 sm:$0xff]  }
 0x30f   :  { %11738 = vmatpush2.bf16.msra.mxu1 %v16771_v31  ;;  %11698 = vmatprep.subr.bf16.mxu0 %v16776_v38  ;;  %v16798_v31 = vld [vmem:[#allocation2 + $0x262c] ss:$12 sps:$4 sm:$0xff]   ;;  %v16793_v38 = vld [vmem:[#allocation2 + $0x24a8] ss:$12 sps:$4 sm:$0xff]  }
 0x310   :  { %11739 = vmatprep.subr.bf16.mxu1 %v16779_v7  ;;  %v16796_v7 = vld [vmem:[#allocation2 + $0x2628] ss:$12 sps:$4 sm:$0xff]  }
 0x312   :  { %11699 = vmatpush2.bf16.msra.mxu0 %v16774_v52  ;;  %v18153_v52 = vrot.slane %v2431_v16, %v17771_v49 }
 0x313   :  { %11740 = vmatpush2.bf16.msra.mxu1 %v16777_v57  ;;  %11700 = vmatprep.subr.bf16.mxu0 %v16782_v25  ;;  %v18157_v57 = vcombine.high %v18150_v11, %v18150_v11  ;;  %v16804_v25 = vld [vmem:[#allocation2 + $0x2614] ss:$12 sps:$4 sm:$0xff]  }
 0x314   :  { %11741 = vmatprep.subr.bf16.mxu1 %v16785_v29  ;;  %18440 = vst [vmem:[#allocation18_spill] sm:$0xff] %v18153_v52  ;;  %v16799_v29 = vld [vmem:[#allocation2 + $0x2490] ss:$12 sps:$4 sm:$0xff]  }
 0x315   :  { %18441 = vst [vmem:[#allocation19_spill] sm:$0xff] %v18157_v57 }
 0x316   :  { %11701 = vmatpush2.bf16.msra.mxu0 %v16780_v53  ;;  %v16802_v53 = vld [vmem:[#allocation2 + $0x2610] ss:$12 sps:$4 sm:$0xff]  }
 0x317   :  { %11742 = vmatpush2.bf16.msra.mxu1 %v16783_v1  ;;  %11702 = vmatprep.subr.bf16.mxu0 %v16788_v37  ;;  %v18161_v1 = vcombine.high %v18153_v52, %v18153_v52 }
 0x318   :  { %11743 = vmatprep.subr.bf16.mxu1 %v16791_v35 }
 0x319   :  { %18442 = vst [vmem:[#allocation20_spill] sm:$0xff] %v18161_v1 }
 0x31a   :  { %11703 = vmatpush2.bf16.msra.mxu0 %v16786_v5 }
 0x31b   :  { %11744 = vmatpush2.bf16.msra.mxu1 %v16789_v9  ;;  %11754 = vmatprep.subr.bf16.mxu0 %v16795_v3  ;;  %v16807_v3 = vld [vmem:[#allocation2 + $0x247c] ss:$12 sps:$4 sm:$0xff]  }
 0x31c   :  { %11795 = vmatprep.subr.bf16.mxu1 %v16798_v31  ;;  %v16810_v31 = vld [vmem:[#allocation2 + $0x25fc] ss:$12 sps:$4 sm:$0xff]  }
 0x31d   :  { %v11460_v37 = vpop.f32.mrf.mxu0  ;;  %11705 = vmatmul.mubr.bf16.vlgmr.msra.gmra.mxu0 %v18150_v11  ;;  %v17001_v11 = vld [vmem:[#allocation2 + $0x2bf8] ss:$12 sps:$4 sm:$0xff]  }
 0x31e   :  { %v11501_v35 = vpop.f32.mrf.mxu1  ;;  %11746 = vmatmul.mubr.bf16.vlgmr.msra.gmra.mxu1 %v18157_v57  ;;  %v11461_v16 = vadd.f32 %v11460_v37, %v18130_v10  ;;  %11755 = vmatpush1.bf16.msra.mxu0 %v16793_v38  ;;  %v16816_v37 = vld [vmem:[#allocation2 + $0x25e4] ss:$12 sps:$4 sm:$0xff]  }
 0x31f   :  { %11796 = vmatpush1.bf16.msra.mxu1 %v16796_v7  ;;  %v11462_v5 = vpop.f32.mrf.mxu0  ;;  %11756 = vmatprep.subr.bf16.mxu0 %v16801_v4 }
 0x320   :  { %v11503_v9 = vpop.f32.mrf.mxu1  ;;  %11797 = vmatprep.subr.bf16.mxu1 %v16804_v25  ;;  %v18166_v19 = vadd.f32 %v11501_v35, %v11461_v16  ;;  %v11463_v46 = vadd.f32 %v11462_v5, %v18135_v14  ;;  %11786 = vmatprep.mubr.bf16.mxu0 %v18153_v52  ;;  %v16813_v25 = vld [vmem:[#allocation2 + $0x2464] ss:$12 sps:$4 sm:$0xff]   ;;  %v16811_v14 = vld [vmem:[#allocation2 + $0x2460] ss:$12 sps:$4 sm:$0xff]  }
 0x321   :  { %11827 = vmatprep.mubr.bf16.mxu1 %v18161_v1  ;;  %v11464_v57 = vpop.f32.mrf.mxu0  ;;  %v16814_v35 = vld [vmem:[#allocation2 + $0x25e0] ss:$12 sps:$4 sm:$0xff]   ;;  %v16901_v1 = vld [vmem:[#allocation2 + $0x2778] ss:$12 sps:$4 sm:$0xff]  }
 0x322   :  { %v11505_v10 = vpop.f32.mrf.mxu1  ;;  %v18171_v38 = vadd.f32 %v11503_v9, %v11463_v46  ;;  %11757 = vmatpush1.bf16.msra.mxu0 %v16799_v29  ;;  %v16819_v16 = vld [vmem:[#allocation2 + $0x244c] ss:$12 sps:$4 sm:$0xff]   ;;  %v16817_v46 = vld [vmem:[#allocation2 + $0x2448] ss:$12 sps:$4 sm:$0xff]   ;;  %v16823_v9 = vld [vmem:[#allocation2 + $0x2430] ss:$12 sps:$4 sm:$0xff]  }
 0x323   :  { %11798 = vmatpush1.bf16.msra.mxu1 %v16802_v53  ;;  %v11465_v7 = vpop.f32.mrf.mxu0  ;;  %11758 = vmatprep.subr.bf16.mxu0 %v16807_v3  ;;  %v16822_v5 = vld [vmem:[#allocation2 + $0x25cc] ss:$12 sps:$4 sm:$0xff]   ;;  %v16820_v57 = vld [vmem:[#allocation2 + $0x25c8] ss:$12 sps:$4 sm:$0xff]   ;;  %v16826_v3 = vld [vmem:[#allocation2 + $0x25b0] ss:$12 sps:$4 sm:$0xff]  }
 0x324   :  { %v11506_v4 = vpop.f32.mrf.mxu1  ;;  %11799 = vmatprep.subr.bf16.mxu1 %v16810_v31  ;;  %v16825_v29 = vld [vmem:[#allocation2 + $0x2434] ss:$12 sps:$4 sm:$0xff]   ;;  %v16829_v31 = vld [vmem:[#allocation2 + $0x2418] ss:$12 sps:$4 sm:$0xff]  }
 0x325   :  { %v16828_v53 = vld [vmem:[#allocation2 + $0x25b4] ss:$12 sps:$4 sm:$0xff]   ;;  %v16832_v10 = vld [vmem:[#allocation2 + $0x2598] ss:$12 sps:$4 sm:$0xff]  }
 0x326   :  { %11759 = vmatpush1.bf16.msra.mxu0 %v16805_v45  ;;  %v16834_v45 = vld [vmem:[#allocation2 + $0x259c] ss:$12 sps:$4 sm:$0xff]   ;;  %v16837_v7 = vld [vmem:[#allocation2 + $0x2404] ss:$12 sps:$4 sm:$0xff]  }
 0x327   :  { %11800 = vmatpush1.bf16.msra.mxu1 %v16808_v21  ;;  %11760 = vmatprep.subr.bf16.mxu0 %v16813_v25  ;;  %v16831_v21 = vld [vmem:[#allocation2 + $0x241c] ss:$12 sps:$4 sm:$0xff]   ;;  %v16840_v4 = vld [vmem:[#allocation2 + $0x2584] ss:$12 sps:$4 sm:$0xff]   ;;  %v16835_v25 = vld [vmem:[#allocation2 + $0x2400] ss:$12 sps:$4 sm:$0xff]  }
 0x328   :  { %11801 = vmatprep.subr.bf16.mxu1 %v16816_v37  ;;  %v16838_v37 = vld [vmem:[#allocation2 + $0x2580] ss:$12 sps:$4 sm:$0xff]   ;;  %v16904_v52 = vld [vmem:[#allocation2 + $0x28f8] ss:$12 sps:$4 sm:$0xff]  }
 0x32a   :  { %11761 = vmatpush1.bf16.msra.mxu0 %v16811_v14  ;;  %v16843_v14 = vld [vmem:[#allocation2 + $0x256c] ss:$12 sps:$4 sm:$0xff]  }
 0x32b   :  { %11802 = vmatpush1.bf16.msra.mxu1 %v16814_v35  ;;  %11762 = vmatprep.subr.bf16.mxu0 %v16819_v16  ;;  %v16846_v35 = vld [vmem:[#allocation2 + $0x26ec] ss:$12 sps:$4 sm:$0xff]   ;;  %v16841_v16 = vld [vmem:[#allocation2 + $0x2568] ss:$12 sps:$4 sm:$0xff]  }
 0x32c   :  { %11803 = vmatprep.subr.bf16.mxu1 %v16822_v5  ;;  %v16844_v5 = vld [vmem:[#allocation2 + $0x26e8] ss:$12 sps:$4 sm:$0xff]  }
 0x32e   :  { %11763 = vmatpush1.bf16.msra.mxu0 %v16817_v46  ;;  %v16849_v46 = vld [vmem:[#allocation2 + $0x2554] ss:$12 sps:$4 sm:$0xff]  }
 0x32f   :  { %11804 = vmatpush1.bf16.msra.mxu1 %v16820_v57  ;;  %11764 = vmatprep.subr.bf16.mxu0 %v16825_v29  ;;  %v16852_v57 = vld [vmem:[#allocation2 + $0x26d4] ss:$12 sps:$4 sm:$0xff]   ;;  %v16847_v29 = vld [vmem:[#allocation2 + $0x2550] ss:$12 sps:$4 sm:$0xff]  }
 0x330   :  { %11805 = vmatprep.subr.bf16.mxu1 %v16828_v53  ;;  %v16850_v53 = vld [vmem:[#allocation2 + $0x26d0] ss:$12 sps:$4 sm:$0xff]  }
 0x332   :  { %11765 = vmatpush1.bf16.msra.mxu0 %v16823_v9  ;;  %v16855_v9 = vld [vmem:[#allocation2 + $0x253c] ss:$12 sps:$4 sm:$0xff]  }
 0x333   :  { %11806 = vmatpush1.bf16.msra.mxu1 %v16826_v3  ;;  %11766 = vmatprep.subr.bf16.mxu0 %v16831_v21  ;;  %v16858_v3 = vld [vmem:[#allocation2 + $0x26bc] ss:$12 sps:$4 sm:$0xff]   ;;  %v16853_v21 = vld [vmem:[#allocation2 + $0x2538] ss:$12 sps:$4 sm:$0xff]  }
 0x334   :  { %11807 = vmatprep.subr.bf16.mxu1 %v16834_v45  ;;  %v16856_v45 = vld [vmem:[#allocation2 + $0x26b8] ss:$12 sps:$4 sm:$0xff]  }
 0x336   :  { %11767 = vmatpush1.bf16.msra.mxu0 %v16829_v31  ;;  %v16861_v31 = vld [vmem:[#allocation2 + $0x2524] ss:$12 sps:$4 sm:$0xff]  }
 0x337   :  { %11808 = vmatpush1.bf16.msra.mxu1 %v16832_v10  ;;  %11768 = vmatprep.subr.bf16.mxu0 %v16837_v7  ;;  %v16864_v10 = vld [vmem:[#allocation2 + $0x26a4] ss:$12 sps:$4 sm:$0xff]   ;;  %v16859_v7 = vld [vmem:[#allocation2 + $0x2520] ss:$12 sps:$4 sm:$0xff]  }
 0x338   :  { %11809 = vmatprep.subr.bf16.mxu1 %v16840_v4  ;;  %v16862_v4 = vld [vmem:[#allocation2 + $0x26a0] ss:$12 sps:$4 sm:$0xff]  }
 0x33a   :  { %11769 = vmatpush1.bf16.msra.mxu0 %v16835_v25  ;;  %v16867_v25 = vld [vmem:[#allocation2 + $0x250c] ss:$12 sps:$4 sm:$0xff]  }
 0x33b   :  { %11810 = vmatpush1.bf16.msra.mxu1 %v16838_v37  ;;  %11770 = vmatprep.subr.bf16.mxu0 %v16843_v14  ;;  %v16870_v37 = vld [vmem:[#allocation2 + $0x268c] ss:$12 sps:$4 sm:$0xff]   ;;  %v16865_v14 = vld [vmem:[#allocation2 + $0x2508] ss:$12 sps:$4 sm:$0xff]  }
 0x33c   :  { %11811 = vmatprep.subr.bf16.mxu1 %v16846_v35  ;;  %v16868_v35 = vld [vmem:[#allocation2 + $0x2688] ss:$12 sps:$4 sm:$0xff]  }
 0x33e   :  { %11771 = vmatpush2.bf16.msra.mxu0 %v16841_v16  ;;  %v16873_v16 = vld [vmem:[#allocation2 + $0x24f4] ss:$12 sps:$4 sm:$0xff]  }
 0x33f   :  { %11812 = vmatpush2.bf16.msra.mxu1 %v16844_v5  ;;  %11772 = vmatprep.subr.bf16.mxu0 %v16849_v46  ;;  %v16876_v5 = vld [vmem:[#allocation2 + $0x2674] ss:$12 sps:$4 sm:$0xff]   ;;  %v2416_v46 = vcombine.high %v18140_v2, %v18140_v2 }
 0x340   :  { %11813 = vmatprep.subr.bf16.mxu1 %v16852_v57  ;;  %v16871_v57 = vld [vmem:[#allocation2 + $0x24f0] ss:$12 sps:$4 sm:$0xff]  }
 0x342   :  { %11773 = vmatpush2.bf16.msra.mxu0 %v16847_v29  ;;  %v16874_v29 = vld [vmem:[#allocation2 + $0x2670] ss:$12 sps:$4 sm:$0xff]  }
 0x343   :  { %11814 = vmatpush2.bf16.msra.mxu1 %v16850_v53  ;;  %11774 = vmatprep.subr.bf16.mxu0 %v16855_v9  ;;  %v16879_v53 = vld [vmem:[#allocation2 + $0x24dc] ss:$12 sps:$4 sm:$0xff]  }
 0x344   :  { %11815 = vmatprep.subr.bf16.mxu1 %v16858_v3  ;;  %v16882_v9 = vld [vmem:[#allocation2 + $0x265c] ss:$12 sps:$4 sm:$0xff]   ;;  %v18176_v3 = vrot.slane %v2416_v46, %v17771_v49 }
 0x346   :  { %11775 = vmatpush2.bf16.msra.mxu0 %v16853_v21  ;;  %v16877_v21 = vld [vmem:[#allocation2 + $0x24d8] ss:$12 sps:$4 sm:$0xff]   ;;  %v2432_v2 = vcombine.high %v18176_v3, %v18176_v3 }
 0x347   :  { %11816 = vmatpush2.bf16.msra.mxu1 %v16856_v45  ;;  %11776 = vmatprep.subr.bf16.mxu0 %v16861_v31  ;;  %v16880_v45 = vld [vmem:[#allocation2 + $0x2658] ss:$12 sps:$4 sm:$0xff]  }
 0x348   :  { %11817 = vmatprep.subr.bf16.mxu1 %v16864_v10  ;;  %v16885_v31 = vld [vmem:[#allocation2 + $0x24c4] ss:$12 sps:$4 sm:$0xff]  }
 0x349   :  { %v16888_v10 = vld [vmem:[#allocation2 + $0x2644] ss:$12 sps:$4 sm:$0xff]  }
 0x34a   :  { %11777 = vmatpush2.bf16.msra.mxu0 %v16859_v7  ;;  %v18182_v7 = vrot.slane %v18144_v51, %v17771_v49  ;;  %v16897_v51 = vld [vmem:[#allocation2 + $0x2794] ss:$12 sps:$4 sm:$0xff]  }
 0x34b   :  { %11818 = vmatpush2.bf16.msra.mxu1 %v16862_v4  ;;  %11778 = vmatprep.subr.bf16.mxu0 %v16867_v25  ;;  %v16883_v4 = vld [vmem:[#allocation2 + $0x24c0] ss:$12 sps:$4 sm:$0xff]  }
 0x34c   :  { %11819 = vmatprep.subr.bf16.mxu1 %v16870_v37  ;;  %18443 = vst [vmem:[#allocation21_spill] sm:$0xff] %v18182_v7  ;;  %v16886_v25 = vld [vmem:[#allocation2 + $0x2640] ss:$12 sps:$4 sm:$0xff]   ;;  %v18189_v46 = vcombine.high %v18182_v7, %v18182_v7 }
 0x34d   :  { %v16891_v37 = vld [vmem:[#allocation2 + $0x27ac] ss:$12 sps:$4 sm:$0xff]  }
 0x34e   :  { %11779 = vmatpush2.bf16.msra.mxu0 %v16865_v14  ;;  %v16894_v14 = vld [vmem:[#allocation2 + $0x292c] ss:$12 sps:$4 sm:$0xff]   ;;  %18445 = vst [vmem:[#allocation23_spill] sm:$0xff] %v18189_v46 }
 0x34f   :  { %11820 = vmatpush2.bf16.msra.mxu1 %v16868_v35  ;;  %11780 = vmatprep.subr.bf16.mxu0 %v16873_v16  ;;  %v16889_v35 = vld [vmem:[#allocation2 + $0x27a8] ss:$12 sps:$4 sm:$0xff]  }
 0x350   :  { %11821 = vmatprep.subr.bf16.mxu1 %v16876_v5  ;;  %v16892_v16 = vld [vmem:[#allocation2 + $0x2928] ss:$12 sps:$4 sm:$0xff]   ;;  %v18185_v5 = vrot.slane %v2432_v2, %v17771_v49 }
 0x352   :  { %11781 = vmatpush2.bf16.msra.mxu0 %v16871_v57  ;;  %18444 = vst [vmem:[#allocation22_spill] sm:$0xff] %v18185_v5  ;;  %v16900_v57 = vld [vmem:[#allocation2 + $0x2914] ss:$12 sps:$4 sm:$0xff]  }
 0x353   :  { %11822 = vmatpush2.bf16.msra.mxu1 %v16874_v29  ;;  %11782 = vmatprep.subr.bf16.mxu0 %v16879_v53  ;;  %v16895_v29 = vld [vmem:[#allocation2 + $0x2790] ss:$12 sps:$4 sm:$0xff]  }
 0x354   :  { %11823 = vmatprep.subr.bf16.mxu1 %v16882_v9  ;;  %v16898_v53 = vld [vmem:[#allocation2 + $0x2910] ss:$12 sps:$4 sm:$0xff]   ;;  %v18193_v9 = vcombine.high %v18185_v5, %v18185_v5 }
 0x356   :  { %11783 = vmatpush2.bf16.msra.mxu0 %v16877_v21  ;;  %18446 = vst [vmem:[#allocation24_spill] sm:$0xff] %v18193_v9 }
 0x357   :  { %11824 = vmatpush2.bf16.msra.mxu1 %v16880_v45  ;;  %11784 = vmatprep.subr.bf16.mxu0 %v16885_v31 }
 0x358   :  { %11825 = vmatprep.subr.bf16.mxu1 %v16888_v10 }
 0x35a   :  { %11785 = vmatpush2.bf16.msra.mxu0 %v16883_v4  ;;  %v16903_v4 = vld [vmem:[#allocation2 + $0x277c] ss:$12 sps:$4 sm:$0xff]  }
 0x35b   :  { %11826 = vmatpush2.bf16.msra.mxu1 %v16886_v25  ;;  %11836 = vmatprep.subr.bf16.mxu0 %v16891_v37  ;;  %v16906_v25 = vld [vmem:[#allocation2 + $0x28fc] ss:$12 sps:$4 sm:$0xff]  }
 0x35c   :  { %11877 = vmatprep.subr.bf16.mxu1 %v16894_v14 }
 0x35d   :  { %v11542_v21 = vpop.f32.mrf.mxu0  ;;  %11787 = vmatmul.mubr.bf16.vlgmr.msra.gmra.mxu0 %v18182_v7  ;;  %v16998_v7 = vld [vmem:[#allocation2 + $0x2a78] ss:$12 sps:$4 sm:$0xff]  }
 0x35e   :  { %v11583_v45 = vpop.f32.mrf.mxu1  ;;  %11828 = vmatmul.mubr.bf16.vlgmr.msra.gmra.mxu1 %v18189_v46  ;;  %v11543_v31 = vadd.f32 %v11542_v21, %v18166_v19  ;;  %11837 = vmatpush1.bf16.msra.mxu0 %v16889_v35  ;;  %v16912_v21 = vld [vmem:[#allocation2 + $0x28e4] ss:$12 sps:$4 sm:$0xff]  }
 0x35f   :  { %11878 = vmatpush1.bf16.msra.mxu1 %v16892_v16  ;;  %v11544_v10 = vpop.f32.mrf.mxu0  ;;  %11838 = vmatprep.subr.bf16.mxu0 %v16897_v51 }
 0x360   :  { %v11585_v2 = vpop.f32.mrf.mxu1  ;;  %11879 = vmatprep.subr.bf16.mxu1 %v16900_v57  ;;  %v18198_v37 = vadd.f32 %v11583_v45, %v11543_v31  ;;  %v11545_v14 = vadd.f32 %v11544_v10, %v18171_v38  ;;  %11868 = vmatprep.mubr.bf16.mxu0 %v18185_v5  ;;  %v16909_v57 = vld [vmem:[#allocation2 + $0x2764] ss:$12 sps:$4 sm:$0xff]   ;;  %v16907_v38 = vld [vmem:[#allocation2 + $0x2760] ss:$12 sps:$4 sm:$0xff]  }
 0x361   :  { %11909 = vmatprep.mubr.bf16.mxu1 %v18193_v9  ;;  %v11546_v46 = vpop.f32.mrf.mxu0  ;;  %v16910_v45 = vld [vmem:[#allocation2 + $0x28e0] ss:$12 sps:$4 sm:$0xff]  }
 0x362   :  { %v11587_v19 = vpop.f32.mrf.mxu1  ;;  %v18203_v35 = vadd.f32 %v11585_v2, %v11545_v14  ;;  %11839 = vmatpush1.bf16.msra.mxu0 %v16895_v29  ;;  %v16915_v31 = vld [vmem:[#allocation2 + $0x274c] ss:$12 sps:$4 sm:$0xff]   ;;  %v16913_v46 = vld [vmem:[#allocation2 + $0x2748] ss:$12 sps:$4 sm:$0xff]  }
 0x363   :  { %11880 = vmatpush1.bf16.msra.mxu1 %v16898_v53  ;;  %v11547_v16 = vpop.f32.mrf.mxu0  ;;  %11840 = vmatprep.subr.bf16.mxu0 %v16903_v4  ;;  %v16918_v10 = vld [vmem:[#allocation2 + $0x28cc] ss:$12 sps:$4 sm:$0xff]   ;;  %v16916_v2 = vld [vmem:[#allocation2 + $0x28c8] ss:$12 sps:$4 sm:$0xff]   ;;  %v16919_v4 = vld [vmem:[#allocation2 + $0x2730] ss:$12 sps:$4 sm:$0xff]  }
 0x364   :  { %v11588_v51 = vpop.f32.mrf.mxu1  ;;  %11881 = vmatprep.subr.bf16.mxu1 %v16906_v25  ;;  %v16921_v29 = vld [vmem:[#allocation2 + $0x2734] ss:$12 sps:$4 sm:$0xff]   ;;  %v16922_v25 = vld [vmem:[#allocation2 + $0x28b0] ss:$12 sps:$4 sm:$0xff]   ;;  %v16925_v14 = vld [vmem:[#allocation2 + $0x2718] ss:$12 sps:$4 sm:$0xff]  }
 0x365   :  { %v16924_v53 = vld [vmem:[#allocation2 + $0x28b4] ss:$12 sps:$4 sm:$0xff]   ;;  %v16928_v19 = vld [vmem:[#allocation2 + $0x2898] ss:$12 sps:$4 sm:$0xff]  }
 0x366   :  { %11841 = vmatpush1.bf16.msra.mxu0 %v16901_v1  ;;  %v16930_v1 = vld [vmem:[#allocation2 + $0x289c] ss:$12 sps:$4 sm:$0xff]   ;;  %v16933_v16 = vld [vmem:[#allocation2 + $0x2704] ss:$12 sps:$4 sm:$0xff]  }
 0x367   :  { %11882 = vmatpush1.bf16.msra.mxu1 %v16904_v52  ;;  %11842 = vmatprep.subr.bf16.mxu0 %v16909_v57  ;;  %v16927_v52 = vld [vmem:[#allocation2 + $0x271c] ss:$12 sps:$4 sm:$0xff]   ;;  %v16936_v51 = vld [vmem:[#allocation2 + $0x2884] ss:$12 sps:$4 sm:$0xff]   ;;  %v16931_v57 = vld [vmem:[#allocation2 + $0x2700] ss:$12 sps:$4 sm:$0xff]  }
 0x368   :  { %11883 = vmatprep.subr.bf16.mxu1 %v16912_v21  ;;  %v16934_v21 = vld [vmem:[#allocation2 + $0x2880] ss:$12 sps:$4 sm:$0xff]  }
 0x36a   :  { %11843 = vmatpush1.bf16.msra.mxu0 %v16907_v38  ;;  %v16939_v38 = vld [vmem:[#allocation2 + $0x286c] ss:$12 sps:$4 sm:$0xff]  }
 0x36b   :  { %11884 = vmatpush1.bf16.msra.mxu1 %v16910_v45  ;;  %11844 = vmatprep.subr.bf16.mxu0 %v16915_v31  ;;  %v16942_v45 = vld [vmem:[#allocation2 + $0x29ec] ss:$12 sps:$4 sm:$0xff]   ;;  %v16937_v31 = vld [vmem:[#allocation2 + $0x2868] ss:$12 sps:$4 sm:$0xff]  }
 0x36c   :  { %11885 = vmatprep.subr.bf16.mxu1 %v16918_v10  ;;  %v16940_v10 = vld [vmem:[#allocation2 + $0x29e8] ss:$12 sps:$4 sm:$0xff]  }
 0x36e   :  { %11845 = vmatpush1.bf16.msra.mxu0 %v16913_v46  ;;  %v16945_v46 = vld [vmem:[#allocation2 + $0x2854] ss:$12 sps:$4 sm:$0xff]  }
 0x36f   :  { %11886 = vmatpush1.bf16.msra.mxu1 %v16916_v2  ;;  %11846 = vmatprep.subr.bf16.mxu0 %v16921_v29  ;;  %v16948_v2 = vld [vmem:[#allocation2 + $0x29d4] ss:$12 sps:$4 sm:$0xff]   ;;  %v16943_v29 = vld [vmem:[#allocation2 + $0x2850] ss:$12 sps:$4 sm:$0xff]  }
 0x370   :  { %11887 = vmatprep.subr.bf16.mxu1 %v16924_v53  ;;  %v16946_v53 = vld [vmem:[#allocation2 + $0x29d0] ss:$12 sps:$4 sm:$0xff]  }
 0x372   :  { %11847 = vmatpush1.bf16.msra.mxu0 %v16919_v4  ;;  %v16951_v4 = vld [vmem:[#allocation2 + $0x283c] ss:$12 sps:$4 sm:$0xff]  }
 0x373   :  { %11888 = vmatpush1.bf16.msra.mxu1 %v16922_v25  ;;  %11848 = vmatprep.subr.bf16.mxu0 %v16927_v52  ;;  %v16954_v25 = vld [vmem:[#allocation2 + $0x29bc] ss:$12 sps:$4 sm:$0xff]   ;;  %v16949_v52 = vld [vmem:[#allocation2 + $0x2838] ss:$12 sps:$4 sm:$0xff]  }
 0x374   :  { %11889 = vmatprep.subr.bf16.mxu1 %v16930_v1  ;;  %v16952_v1 = vld [vmem:[#allocation2 + $0x29b8] ss:$12 sps:$4 sm:$0xff]  }
 0x376   :  { %11849 = vmatpush1.bf16.msra.mxu0 %v16925_v14  ;;  %v16957_v14 = vld [vmem:[#allocation2 + $0x2824] ss:$12 sps:$4 sm:$0xff]  }
 0x377   :  { %11890 = vmatpush1.bf16.msra.mxu1 %v16928_v19  ;;  %11850 = vmatprep.subr.bf16.mxu0 %v16933_v16  ;;  %v16960_v19 = vld [vmem:[#allocation2 + $0x29a4] ss:$12 sps:$4 sm:$0xff]   ;;  %v16955_v16 = vld [vmem:[#allocation2 + $0x2820] ss:$12 sps:$4 sm:$0xff]  }
 0x378   :  { %11891 = vmatprep.subr.bf16.mxu1 %v16936_v51  ;;  %v16958_v51 = vld [vmem:[#allocation2 + $0x29a0] ss:$12 sps:$4 sm:$0xff]  }
 0x37a   :  { %11851 = vmatpush1.bf16.msra.mxu0 %v16931_v57  ;;  %v16963_v57 = vld [vmem:[#allocation2 + $0x280c] ss:$12 sps:$4 sm:$0xff]  }
 0x37b   :  { %11892 = vmatpush1.bf16.msra.mxu1 %v16934_v21  ;;  %11852 = vmatprep.subr.bf16.mxu0 %v16939_v38  ;;  %v16966_v21 = vld [vmem:[#allocation2 + $0x298c] ss:$12 sps:$4 sm:$0xff]   ;;  %v16961_v38 = vld [vmem:[#allocation2 + $0x2808] ss:$12 sps:$4 sm:$0xff]  }
 0x37c   :  { %11893 = vmatprep.subr.bf16.mxu1 %v16942_v45  ;;  %v16964_v45 = vld [vmem:[#allocation2 + $0x2988] ss:$12 sps:$4 sm:$0xff]  }
 0x37e   :  { %11853 = vmatpush2.bf16.msra.mxu0 %v16937_v31  ;;  %v16969_v31 = vld [vmem:[#allocation2 + $0x27f4] ss:$12 sps:$4 sm:$0xff]  }
 0x37f   :  { %11894 = vmatpush2.bf16.msra.mxu1 %v16940_v10  ;;  %11854 = vmatprep.subr.bf16.mxu0 %v16945_v46  ;;  %v16972_v10 = vld [vmem:[#allocation2 + $0x2974] ss:$12 sps:$4 sm:$0xff]   ;;  %v18208_v46 = vld [vmem:[%s18405_s0 + $0x38] sm:$0xff] }
 0x380   :  { %11895 = vmatprep.subr.bf16.mxu1 %v16948_v2  ;;  %v16967_v2 = vld [vmem:[#allocation2 + $0x27f0] ss:$12 sps:$4 sm:$0xff]  }
 0x382   :  { %11855 = vmatpush2.bf16.msra.mxu0 %v16943_v29  ;;  %v16970_v29 = vld [vmem:[#allocation2 + $0x2970] ss:$12 sps:$4 sm:$0xff]  }
 0x383   :  { %11896 = vmatpush2.bf16.msra.mxu1 %v16946_v53  ;;  %11856 = vmatprep.subr.bf16.mxu0 %v16951_v4  ;;  %v16975_v53 = vld [vmem:[#allocation2 + $0x27dc] ss:$12 sps:$4 sm:$0xff]  }
 0x384   :  { %11897 = vmatprep.subr.bf16.mxu1 %v16954_v25  ;;  %v16978_v4 = vld [vmem:[#allocation2 + $0x295c] ss:$12 sps:$4 sm:$0xff]   ;;  %v18212_v25 = vrot.slane %v18208_v46, %v17771_v49 }
 0x386   :  { %11857 = vmatpush2.bf16.msra.mxu0 %v16949_v52  ;;  %v16973_v52 = vld [vmem:[#allocation2 + $0x27d8] ss:$12 sps:$4 sm:$0xff]  }
 0x387   :  { %11898 = vmatpush2.bf16.msra.mxu1 %v16952_v1  ;;  %11858 = vmatprep.subr.bf16.mxu0 %v16957_v14  ;;  %v16976_v1 = vld [vmem:[#allocation2 + $0x2958] ss:$12 sps:$4 sm:$0xff]  }
 0x388   :  { %11899 = vmatprep.subr.bf16.mxu1 %v16960_v19  ;;  %v16981_v14 = vld [vmem:[#allocation2 + $0x27c4] ss:$12 sps:$4 sm:$0xff]  }
 0x389   :  { %v16984_v19 = vld [vmem:[#allocation2 + $0x2944] ss:$12 sps:$4 sm:$0xff]  }
 0x38a   :  { %11859 = vmatpush2.bf16.msra.mxu0 %v16955_v16  ;;  %v2480_v16 = vcombine.high %v18212_v25, %v18212_v25 }
 0x38b   :  { %11900 = vmatpush2.bf16.msra.mxu1 %v16958_v51  ;;  %11860 = vmatprep.subr.bf16.mxu0 %v16963_v57  ;;  %v18218_v51 = vrot.slane %v18176_v3, %v17771_v49  ;;  %v16979_v57 = vld [vmem:[#allocation2 + $0x27c0] ss:$12 sps:$4 sm:$0xff]  }
 0x38c   :  { %11901 = vmatprep.subr.bf16.mxu1 %v16966_v21  ;;  %v16982_v21 = vld [vmem:[#allocation2 + $0x2940] ss:$12 sps:$4 sm:$0xff]  }
 0x38d   :  { %v16994_v3 = vld [vmem:[#allocation2 + $0x2a94] ss:$12 sps:$4 sm:$0xff]  }
 0x38e   :  { %11861 = vmatpush2.bf16.msra.mxu0 %v16961_v38  ;;  %v16988_v38 = vld [vmem:[#allocation2 + $0x2aac] ss:$12 sps:$4 sm:$0xff]  }
 0x38f   :  { %11902 = vmatpush2.bf16.msra.mxu1 %v16964_v45  ;;  %11862 = vmatprep.subr.bf16.mxu0 %v16969_v31  ;;  %v16991_v45 = vld [vmem:[#allocation2 + $0x2c2c] ss:$12 sps:$4 sm:$0xff]   ;;  %v16986_v31 = vld [vmem:[#allocation2 + $0x2aa8] ss:$12 sps:$4 sm:$0xff]  }
 0x390   :  { %11903 = vmatprep.subr.bf16.mxu1 %v16972_v10  ;;  %v16989_v10 = vld [vmem:[#allocation2 + $0x2c28] ss:$12 sps:$4 sm:$0xff]  }
 0x392   :  { %11863 = vmatpush2.bf16.msra.mxu0 %v16967_v2  ;;  %v18221_v2 = vrot.slane %v2480_v16, %v17771_v49 }
 0x393   :  { %11904 = vmatpush2.bf16.msra.mxu1 %v16970_v29  ;;  %11864 = vmatprep.subr.bf16.mxu0 %v16975_v53  ;;  %v18225_v29 = vcombine.high %v18218_v51, %v18218_v51  ;;  %v16997_v53 = vld [vmem:[#allocation2 + $0x2c14] ss:$12 sps:$4 sm:$0xff]  }
 0x394   :  { %11905 = vmatprep.subr.bf16.mxu1 %v16978_v4  ;;  %18447 = vst [vmem:[#allocation25_spill] sm:$0xff] %v18221_v2  ;;  %v16992_v4 = vld [vmem:[#allocation2 + $0x2a90] ss:$12 sps:$4 sm:$0xff]  }
 0x395   :  { %18448 = vst [vmem:[#allocation26_spill] sm:$0xff] %v18225_v29 }
 0x396   :  { %11865 = vmatpush2.bf16.msra.mxu0 %v16973_v52  ;;  %v16995_v52 = vld [vmem:[#allocation2 + $0x2c10] ss:$12 sps:$4 sm:$0xff]  }
 0x397   :  { %11906 = vmatpush2.bf16.msra.mxu1 %v16976_v1  ;;  %11866 = vmatprep.subr.bf16.mxu0 %v16981_v14  ;;  %v18229_v1 = vcombine.high %v18221_v2, %v18221_v2 }
 0x398   :  { %11907 = vmatprep.subr.bf16.mxu1 %v16984_v19 }
 0x399   :  { %18449 = vst [vmem:[#allocation27_spill] sm:$0xff] %v18229_v1 }
 0x39a   :  { %11867 = vmatpush2.bf16.msra.mxu0 %v16979_v57 }
 0x39b   :  { %11908 = vmatpush2.bf16.msra.mxu1 %v16982_v21  ;;  %11918 = vmatprep.subr.bf16.mxu0 %v16988_v38  ;;  %v17000_v38 = vld [vmem:[#allocation2 + $0x2a7c] ss:$12 sps:$4 sm:$0xff]  }
 0x39c   :  { %11959 = vmatprep.subr.bf16.mxu1 %v16991_v45  ;;  %v17003_v45 = vld [vmem:[#allocation2 + $0x2bfc] ss:$12 sps:$4 sm:$0xff]  }
 0x39d   :  { %v11624_v14 = vpop.f32.mrf.mxu0  ;;  %11869 = vmatmul.mubr.bf16.vlgmr.msra.gmra.mxu0 %v18218_v51 }
 0x39e   :  { %v11665_v19 = vpop.f32.mrf.mxu1  ;;  %11910 = vmatmul.mubr.bf16.vlgmr.msra.gmra.mxu1 %v18225_v29  ;;  %v11625_v16 = vadd.f32 %v11624_v14, %v18198_v37  ;;  %11919 = vmatpush1.bf16.msra.mxu0 %v16986_v31  ;;  %v17009_v14 = vld [vmem:[#allocation2 + $0x2be4] ss:$12 sps:$4 sm:$0xff]  }
 0x39f   :  { %11960 = vmatpush1.bf16.msra.mxu1 %v16989_v10  ;;  %v11626_v57 = vpop.f32.mrf.mxu0  ;;  %11920 = vmatprep.subr.bf16.mxu0 %v16994_v3 }
 0x3a0   :  { %v11667_v21 = vpop.f32.mrf.mxu1  ;;  %11961 = vmatprep.subr.bf16.mxu1 %v16997_v53  ;;  %v18234_v9 = vadd.f32 %v11665_v19, %v11625_v16  ;;  %v11627_v5 = vadd.f32 %v11626_v57, %v18203_v35  ;;  %11950 = vmatprep.mubr.bf16.mxu0 %v18221_v2  ;;  %v17006_v53 = vld [vmem:[#allocation2 + $0x2a64] ss:$12 sps:$4 sm:$0xff]   ;;  %v17004_v19 = vld [vmem:[#allocation2 + $0x2a60] ss:$12 sps:$4 sm:$0xff]  }
 0x3a1   :  { %11991 = vmatprep.mubr.bf16.mxu1 %v18229_v1  ;;  %v11628_v29 = vpop.f32.mrf.mxu0  ;;  %v17007_v35 = vld [vmem:[#allocation2 + $0x2be0] ss:$12 sps:$4 sm:$0xff]   ;;  %v17094_v1 = vld [vmem:[#allocation2 + $0x2d78] ss:$12 sps:$4 sm:$0xff]  }
 0x3a2   :  { %v11669_v37 = vpop.f32.mrf.mxu1  ;;  %v18239_v31 = vadd.f32 %v11667_v21, %v11627_v5  ;;  %11921 = vmatpush1.bf16.msra.mxu0 %v16992_v4  ;;  %v17012_v16 = vld [vmem:[#allocation2 + $0x2a4c] ss:$12 sps:$4 sm:$0xff]   ;;  %v17010_v29 = vld [vmem:[#allocation2 + $0x2a48] ss:$12 sps:$4 sm:$0xff]   ;;  %v17016_v21 = vld [vmem:[#allocation2 + $0x2a30] ss:$12 sps:$4 sm:$0xff]  }
 0x3a3   :  { %11962 = vmatpush1.bf16.msra.mxu1 %v16995_v52  ;;  %v11629_v10 = vpop.f32.mrf.mxu0  ;;  %11922 = vmatprep.subr.bf16.mxu0 %v17000_v38  ;;  %v17015_v57 = vld [vmem:[#allocation2 + $0x2bcc] ss:$12 sps:$4 sm:$0xff]   ;;  %v17013_v5 = vld [vmem:[#allocation2 + $0x2bc8] ss:$12 sps:$4 sm:$0xff]   ;;  %v17019_v38 = vld [vmem:[#allocation2 + $0x2bb0] ss:$12 sps:$4 sm:$0xff]  }
 0x3a4   :  { %v11670_v3 = vpop.f32.mrf.mxu1  ;;  %11963 = vmatprep.subr.bf16.mxu1 %v17003_v45  ;;  %v17018_v4 = vld [vmem:[#allocation2 + $0x2a34] ss:$12 sps:$4 sm:$0xff]   ;;  %v17022_v45 = vld [vmem:[#allocation2 + $0x2a18] ss:$12 sps:$4 sm:$0xff]  }
 0x3a5   :  { %v17021_v52 = vld [vmem:[#allocation2 + $0x2bb4] ss:$12 sps:$4 sm:$0xff]   ;;  %v17025_v37 = vld [vmem:[#allocation2 + $0x2b98] ss:$12 sps:$4 sm:$0xff]  }
 0x3a6   :  { %11923 = vmatpush1.bf16.msra.mxu0 %v16998_v7  ;;  %v17027_v7 = vld [vmem:[#allocation2 + $0x2b9c] ss:$12 sps:$4 sm:$0xff]   ;;  %v17030_v10 = vld [vmem:[#allocation2 + $0x2a04] ss:$12 sps:$4 sm:$0xff]  }
 0x3a7   :  { %11964 = vmatpush1.bf16.msra.mxu1 %v17001_v11  ;;  %11924 = vmatprep.subr.bf16.mxu0 %v17006_v53  ;;  %v17024_v11 = vld [vmem:[#allocation2 + $0x2a1c] ss:$12 sps:$4 sm:$0xff]   ;;  %v17033_v3 = vld [vmem:[#allocation2 + $0x2b84] ss:$12 sps:$4 sm:$0xff]   ;;  %v17028_v53 = vld [vmem:[#allocation2 + $0x2a00] ss:$12 sps:$4 sm:$0xff]  }
 0x3a8   :  { %11965 = vmatprep.subr.bf16.mxu1 %v17009_v14  ;;  %v17031_v14 = vld [vmem:[#allocation2 + $0x2b80] ss:$12 sps:$4 sm:$0xff]   ;;  %v17097_v2 = vld [vmem:[#allocation2 + $0x2ef8] ss:$12 sps:$4 sm:$0xff]  }
 0x3aa   :  { %11925 = vmatpush1.bf16.msra.mxu0 %v17004_v19  ;;  %v17036_v19 = vld [vmem:[#allocation2 + $0x2b6c] ss:$12 sps:$4 sm:$0xff]  }
 0x3ab   :  { %11966 = vmatpush1.bf16.msra.mxu1 %v17007_v35  ;;  %11926 = vmatprep.subr.bf16.mxu0 %v17012_v16  ;;  %v17039_v35 = vld [vmem:[#allocation2 + $0x2cec] ss:$12 sps:$4 sm:$0xff]   ;;  %v17034_v16 = vld [vmem:[#allocation2 + $0x2b68] ss:$12 sps:$4 sm:$0xff]  }
 0x3ac   :  { %11967 = vmatprep.subr.bf16.mxu1 %v17015_v57  ;;  %v17037_v57 = vld [vmem:[#allocation2 + $0x2ce8] ss:$12 sps:$4 sm:$0xff]  }
 0x3ae   :  { %11927 = vmatpush1.bf16.msra.mxu0 %v17010_v29  ;;  %v17042_v29 = vld [vmem:[#allocation2 + $0x2b54] ss:$12 sps:$4 sm:$0xff]  }
 0x3af   :  { %11968 = vmatpush1.bf16.msra.mxu1 %v17013_v5  ;;  %11928 = vmatprep.subr.bf16.mxu0 %v17018_v4  ;;  %v17045_v5 = vld [vmem:[#allocation2 + $0x2cd4] ss:$12 sps:$4 sm:$0xff]   ;;  %v17040_v4 = vld [vmem:[#allocation2 + $0x2b50] ss:$12 sps:$4 sm:$0xff]  }
 0x3b0   :  { %11969 = vmatprep.subr.bf16.mxu1 %v17021_v52  ;;  %v17043_v52 = vld [vmem:[#allocation2 + $0x2cd0] ss:$12 sps:$4 sm:$0xff]  }
 0x3b2   :  { %11929 = vmatpush1.bf16.msra.mxu0 %v17016_v21  ;;  %v17048_v21 = vld [vmem:[#allocation2 + $0x2b3c] ss:$12 sps:$4 sm:$0xff]  }
 0x3b3   :  { %11970 = vmatpush1.bf16.msra.mxu1 %v17019_v38  ;;  %11930 = vmatprep.subr.bf16.mxu0 %v17024_v11  ;;  %v17051_v38 = vld [vmem:[#allocation2 + $0x2cbc] ss:$12 sps:$4 sm:$0xff]   ;;  %v17046_v11 = vld [vmem:[#allocation2 + $0x2b38] ss:$12 sps:$4 sm:$0xff]  }
 0x3b4   :  { %11971 = vmatprep.subr.bf16.mxu1 %v17027_v7  ;;  %v17049_v7 = vld [vmem:[#allocation2 + $0x2cb8] ss:$12 sps:$4 sm:$0xff]  }
 0x3b6   :  { %11931 = vmatpush1.bf16.msra.mxu0 %v17022_v45  ;;  %v17054_v45 = vld [vmem:[#allocation2 + $0x2b24] ss:$12 sps:$4 sm:$0xff]  }
 0x3b7   :  { %11972 = vmatpush1.bf16.msra.mxu1 %v17025_v37  ;;  %11932 = vmatprep.subr.bf16.mxu0 %v17030_v10  ;;  %v17057_v37 = vld [vmem:[#allocation2 + $0x2ca4] ss:$12 sps:$4 sm:$0xff]   ;;  %v17052_v10 = vld [vmem:[#allocation2 + $0x2b20] ss:$12 sps:$4 sm:$0xff]  }
 0x3b8   :  { %11973 = vmatprep.subr.bf16.mxu1 %v17033_v3  ;;  %v17055_v3 = vld [vmem:[#allocation2 + $0x2ca0] ss:$12 sps:$4 sm:$0xff]  }
 0x3ba   :  { %11933 = vmatpush1.bf16.msra.mxu0 %v17028_v53  ;;  %v17060_v53 = vld [vmem:[#allocation2 + $0x2b0c] ss:$12 sps:$4 sm:$0xff]  }
 0x3bb   :  { %11974 = vmatpush1.bf16.msra.mxu1 %v17031_v14  ;;  %11934 = vmatprep.subr.bf16.mxu0 %v17036_v19  ;;  %v17063_v14 = vld [vmem:[#allocation2 + $0x2c8c] ss:$12 sps:$4 sm:$0xff]   ;;  %v17058_v19 = vld [vmem:[#allocation2 + $0x2b08] ss:$12 sps:$4 sm:$0xff]  }
 0x3bc   :  { %11975 = vmatprep.subr.bf16.mxu1 %v17039_v35  ;;  %v17061_v35 = vld [vmem:[#allocation2 + $0x2c88] ss:$12 sps:$4 sm:$0xff]  }
 0x3be   :  { %11935 = vmatpush2.bf16.msra.mxu0 %v17034_v16  ;;  %v17066_v16 = vld [vmem:[#allocation2 + $0x2af4] ss:$12 sps:$4 sm:$0xff]  }
 0x3bf   :  { %11976 = vmatpush2.bf16.msra.mxu1 %v17037_v57  ;;  %11936 = vmatprep.subr.bf16.mxu0 %v17042_v29  ;;  %v17069_v57 = vld [vmem:[#allocation2 + $0x2c74] ss:$12 sps:$4 sm:$0xff]   ;;  %v17064_v29 = vld [vmem:[#allocation2 + $0x2af0] ss:$12 sps:$4 sm:$0xff]  }
 0x3c0   :  { %11977 = vmatprep.subr.bf16.mxu1 %v17045_v5  ;;  %v2465_v5 = vcombine.high %v18208_v46, %v18208_v46 }
 0x3c2   :  { %11937 = vmatpush2.bf16.msra.mxu0 %v17040_v4  ;;  %v17067_v4 = vld [vmem:[#allocation2 + $0x2c70] ss:$12 sps:$4 sm:$0xff]  }
 0x3c3   :  { %11978 = vmatpush2.bf16.msra.mxu1 %v17043_v52  ;;  %11938 = vmatprep.subr.bf16.mxu0 %v17048_v21  ;;  %v17072_v52 = vld [vmem:[#allocation2 + $0x2adc] ss:$12 sps:$4 sm:$0xff]  }
 0x3c4   :  { %11979 = vmatprep.subr.bf16.mxu1 %v17051_v38  ;;  %v17075_v21 = vld [vmem:[#allocation2 + $0x2c5c] ss:$12 sps:$4 sm:$0xff]   ;;  %v17070_v38 = vld [vmem:[#allocation2 + $0x2ad8] ss:$12 sps:$4 sm:$0xff]  }
 0x3c6   :  { %11939 = vmatpush2.bf16.msra.mxu0 %v17046_v11  ;;  %v18244_v11 = vrot.slane %v2465_v5, %v17771_v49  ;;  %v17093_v5 = vld [vmem:[#allocation2 + $0x2f14] ss:$12 sps:$4 sm:$0xff]  }
 0x3c7   :  { %11980 = vmatpush2.bf16.msra.mxu1 %v17049_v7  ;;  %11940 = vmatprep.subr.bf16.mxu0 %v17054_v45  ;;  %v17073_v7 = vld [vmem:[#allocation2 + $0x2c58] ss:$12 sps:$4 sm:$0xff]  }
 0x3c8   :  { %11981 = vmatprep.subr.bf16.mxu1 %v17057_v37  ;;  %v17078_v45 = vld [vmem:[#allocation2 + $0x2ac4] ss:$12 sps:$4 sm:$0xff]   ;;  %v2481_v46 = vcombine.high %v18244_v11, %v18244_v11 }
 0x3c9   :  { %v17081_v37 = vld [vmem:[#allocation2 + $0x2c44] ss:$12 sps:$4 sm:$0xff]  }
 0x3ca   :  { %11941 = vmatpush2.bf16.msra.mxu0 %v17052_v10  ;;  %v17076_v10 = vld [vmem:[#allocation2 + $0x2ac0] ss:$12 sps:$4 sm:$0xff]  }
 0x3cb   :  { %11982 = vmatpush2.bf16.msra.mxu1 %v17055_v3  ;;  %11942 = vmatprep.subr.bf16.mxu0 %v17060_v53  ;;  %v18250_v3 = vrot.slane %v18212_v25, %v17771_v49  ;;  %v17079_v53 = vld [vmem:[#allocation2 + $0x2c40] ss:$12 sps:$4 sm:$0xff]  }
 0x3cc   :  { %11983 = vmatprep.subr.bf16.mxu1 %v17063_v14  ;;  %v17084_v14 = vld [vmem:[#allocation2 + $0x2dac] ss:$12 sps:$4 sm:$0xff]   ;;  %v17090_v25 = vld [vmem:[#allocation2 + $0x2d94] ss:$12 sps:$4 sm:$0xff]  }
 0x3ce   :  { %11943 = vmatpush2.bf16.msra.mxu0 %v17058_v19  ;;  %v17087_v19 = vld [vmem:[#allocation2 + $0x2f2c] ss:$12 sps:$4 sm:$0xff]  }
 0x3cf   :  { %11984 = vmatpush2.bf16.msra.mxu1 %v17061_v35  ;;  %11944 = vmatprep.subr.bf16.mxu0 %v17066_v16  ;;  %v17082_v35 = vld [vmem:[#allocation2 + $0x2da8] ss:$12 sps:$4 sm:$0xff]  }
 0x3d0   :  { %11985 = vmatprep.subr.bf16.mxu1 %v17069_v57  ;;  %v17085_v16 = vld [vmem:[#allocation2 + $0x2f28] ss:$12 sps:$4 sm:$0xff]   ;;  %v18253_v57 = vrot.slane %v2481_v46, %v17771_v49 }
 0x3d1   :  { %v17096_v46 = vld [vmem:[#allocation2 + $0x2d7c] ss:$12 sps:$4 sm:$0xff]  }
 0x3d2   :  { %11945 = vmatpush2.bf16.msra.mxu0 %v17064_v29  ;;  %v18257_v29 = vcombine.high %v18250_v3, %v18250_v3 }
 0x3d3   :  { %11986 = vmatpush2.bf16.msra.mxu1 %v17067_v4  ;;  %11946 = vmatprep.subr.bf16.mxu0 %v17072_v52  ;;  %v17088_v4 = vld [vmem:[#allocation2 + $0x2d90] ss:$12 sps:$4 sm:$0xff]  }
 0x3d4   :  { %11987 = vmatprep.subr.bf16.mxu1 %v17075_v21  ;;  %18450 = vst [vmem:[#allocation28_spill] sm:$0xff] %v18257_v29  ;;  %v17091_v52 = vld [vmem:[#allocation2 + $0x2f10] ss:$12 sps:$4 sm:$0xff]   ;;  %v18261_v21 = vcombine.high %v18253_v57, %v18253_v57 }
 0x3d6   :  { %11947 = vmatpush2.bf16.msra.mxu0 %v17070_v38 }
 0x3d7   :  { %11988 = vmatpush2.bf16.msra.mxu1 %v17073_v7  ;;  %11948 = vmatprep.subr.bf16.mxu0 %v17078_v45 }
 0x3d8   :  { %11989 = vmatprep.subr.bf16.mxu1 %v17081_v37 }
 0x3da   :  { %11949 = vmatpush2.bf16.msra.mxu0 %v17076_v10 }
 0x3db   :  { %11990 = vmatpush2.bf16.msra.mxu1 %v17079_v53  ;;  %12000 = vmatprep.subr.bf16.mxu0 %v17084_v14  ;;  %v17099_v53 = vld [vmem:[#allocation2 + $0x2efc] ss:$12 sps:$4 sm:$0xff]  }
 0x3dc   :  { %12041 = vmatprep.subr.bf16.mxu1 %v17087_v19 }
 0x3dd   :  { %v11706_v38 = vpop.f32.mrf.mxu0  ;;  %11951 = vmatmul.mubr.bf16.vlgmr.msra.gmra.mxu0 %v18250_v3 }
 0x3de   :  { %v11747_v7 = vpop.f32.mrf.mxu1  ;;  %11992 = vmatmul.mubr.bf16.vlgmr.msra.gmra.mxu1 %v18257_v29  ;;  %v11707_v45 = vadd.f32 %v11706_v38, %v18234_v9  ;;  %12001 = vmatpush1.bf16.msra.mxu0 %v17082_v35  ;;  %v17105_v38 = vld [vmem:[#allocation2 + $0x2ee4] ss:$12 sps:$4 sm:$0xff]  }
 0x3df   :  { %12042 = vmatpush1.bf16.msra.mxu1 %v17085_v16  ;;  %v11708_v37 = vpop.f32.mrf.mxu0  ;;  %12002 = vmatprep.subr.bf16.mxu0 %v17090_v25 }
 0x3e0   :  { %v11749_v10 = vpop.f32.mrf.mxu1  ;;  %12043 = vmatprep.subr.bf16.mxu1 %v17093_v5  ;;  %v18266_v14 = vadd.f32 %v11747_v7, %v11707_v45  ;;  %v11709_v19 = vadd.f32 %v11708_v37, %v18239_v31  ;;  %12032 = vmatprep.mubr.bf16.mxu0 %v18253_v57  ;;  %v17102_v5 = vld [vmem:[#allocation2 + $0x2d64] ss:$12 sps:$4 sm:$0xff]   ;;  %v17100_v7 = vld [vmem:[#allocation2 + $0x2d60] ss:$12 sps:$4 sm:$0xff]  }
 0x3e1   :  { %12073 = vmatprep.mubr.bf16.mxu1 %v18261_v21  ;;  %v11710_v29 = vpop.f32.mrf.mxu0  ;;  %v17103_v31 = vld [vmem:[#allocation2 + $0x2ee0] ss:$12 sps:$4 sm:$0xff]  }
 0x3e2   :  { %v11751_v9 = vpop.f32.mrf.mxu1  ;;  %v18271_v35 = vadd.f32 %v11749_v10, %v11709_v19  ;;  %12003 = vmatpush1.bf16.msra.mxu0 %v17088_v4  ;;  %v17108_v45 = vld [vmem:[#allocation2 + $0x2d4c] ss:$12 sps:$4 sm:$0xff]   ;;  %v17106_v29 = vld [vmem:[#allocation2 + $0x2d48] ss:$12 sps:$4 sm:$0xff]  }
 0x3e3   :  { %12044 = vmatpush1.bf16.msra.mxu1 %v17091_v52  ;;  %v11711_v16 = vpop.f32.mrf.mxu0  ;;  %12004 = vmatprep.subr.bf16.mxu0 %v17096_v46  ;;  %v17111_v37 = vld [vmem:[#allocation2 + $0x2ecc] ss:$12 sps:$4 sm:$0xff]   ;;  %v17109_v10 = vld [vmem:[#allocation2 + $0x2ec8] ss:$12 sps:$4 sm:$0xff]   ;;  %v17112_v46 = vld [vmem:[#allocation2 + $0x2d30] ss:$12 sps:$4 sm:$0xff]  }
 0x3e4   :  { %v11752_v25 = vpop.f32.mrf.mxu1  ;;  %12045 = vmatprep.subr.bf16.mxu1 %v17099_v53  ;;  %v17114_v4 = vld [vmem:[#allocation2 + $0x2d34] ss:$12 sps:$4 sm:$0xff]   ;;  %v17115_v53 = vld [vmem:[#allocation2 + $0x2eb0] ss:$12 sps:$4 sm:$0xff]   ;;  %v17118_v19 = vld [vmem:[#allocation2 + $0x2d18] ss:$12 sps:$4 sm:$0xff]  }
 0x3e5   :  { %v17117_v52 = vld [vmem:[#allocation2 + $0x2eb4] ss:$12 sps:$4 sm:$0xff]   ;;  %v17121_v9 = vld [vmem:[#allocation2 + $0x2e98] ss:$12 sps:$4 sm:$0xff]  }
 0x3e6   :  { %12005 = vmatpush1.bf16.msra.mxu0 %v17094_v1  ;;  %v17123_v1 = vld [vmem:[#allocation2 + $0x2e9c] ss:$12 sps:$4 sm:$0xff]   ;;  %v17126_v16 = vld [vmem:[#allocation2 + $0x2d04] ss:$12 sps:$4 sm:$0xff]  }
 0x3e7   :  { %12046 = vmatpush1.bf16.msra.mxu1 %v17097_v2  ;;  %12006 = vmatprep.subr.bf16.mxu0 %v17102_v5  ;;  %v17120_v2 = vld [vmem:[#allocation2 + $0x2d1c] ss:$12 sps:$4 sm:$0xff]   ;;  %v17129_v25 = vld [vmem:[#allocation2 + $0x2e84] ss:$12 sps:$4 sm:$0xff]   ;;  %v17124_v5 = vld [vmem:[#allocation2 + $0x2d00] ss:$12 sps:$4 sm:$0xff]  }
 0x3e8   :  { %12047 = vmatprep.subr.bf16.mxu1 %v17105_v38  ;;  %v17127_v38 = vld [vmem:[#allocation2 + $0x2e80] ss:$12 sps:$4 sm:$0xff]  }
 0x3ea   :  { %12007 = vmatpush1.bf16.msra.mxu0 %v17100_v7  ;;  %v17132_v7 = vld [vmem:[#allocation2 + $0x2e6c] ss:$12 sps:$4 sm:$0xff]  }
 0x3eb   :  { %12048 = vmatpush1.bf16.msra.mxu1 %v17103_v31  ;;  %12008 = vmatprep.subr.bf16.mxu0 %v17108_v45  ;;  %v17135_v31 = vld [vmem:[#allocation2 + $0x2fec] ss:$12 sps:$4 sm:$0xff]   ;;  %v17130_v45 = vld [vmem:[#allocation2 + $0x2e68] ss:$12 sps:$4 sm:$0xff]  }
 0x3ec   :  { %12049 = vmatprep.subr.bf16.mxu1 %v17111_v37  ;;  %v17133_v37 = vld [vmem:[#allocation2 + $0x2fe8] ss:$12 sps:$4 sm:$0xff]  }
 0x3ee   :  { %12009 = vmatpush1.bf16.msra.mxu0 %v17106_v29  ;;  %v17138_v29 = vld [vmem:[#allocation2 + $0x2e54] ss:$12 sps:$4 sm:$0xff]  }
 0x3ef   :  { %12050 = vmatpush1.bf16.msra.mxu1 %v17109_v10  ;;  %12010 = vmatprep.subr.bf16.mxu0 %v17114_v4  ;;  %v17141_v10 = vld [vmem:[#allocation2 + $0x2fd4] ss:$12 sps:$4 sm:$0xff]   ;;  %v17136_v4 = vld [vmem:[#allocation2 + $0x2e50] ss:$12 sps:$4 sm:$0xff]  }
 0x3f0   :  { %12051 = vmatprep.subr.bf16.mxu1 %v17117_v52  ;;  %v17139_v52 = vld [vmem:[#allocation2 + $0x2fd0] ss:$12 sps:$4 sm:$0xff]  }
 0x3f2   :  { %12011 = vmatpush1.bf16.msra.mxu0 %v17112_v46  ;;  %v17144_v46 = vld [vmem:[#allocation2 + $0x2e3c] ss:$12 sps:$4 sm:$0xff]  }
 0x3f3   :  { %12052 = vmatpush1.bf16.msra.mxu1 %v17115_v53  ;;  %12012 = vmatprep.subr.bf16.mxu0 %v17120_v2  ;;  %v17147_v53 = vld [vmem:[#allocation2 + $0x2fbc] ss:$12 sps:$4 sm:$0xff]   ;;  %v17142_v2 = vld [vmem:[#allocation2 + $0x2e38] ss:$12 sps:$4 sm:$0xff]  }
 0x3f4   :  { %12053 = vmatprep.subr.bf16.mxu1 %v17123_v1  ;;  %v17145_v1 = vld [vmem:[#allocation2 + $0x2fb8] ss:$12 sps:$4 sm:$0xff]  }
 0x3f6   :  { %12013 = vmatpush1.bf16.msra.mxu0 %v17118_v19  ;;  %v17150_v19 = vld [vmem:[#allocation2 + $0x2e24] ss:$12 sps:$4 sm:$0xff]  }
 0x3f7   :  { %12054 = vmatpush1.bf16.msra.mxu1 %v17121_v9  ;;  %12014 = vmatprep.subr.bf16.mxu0 %v17126_v16  ;;  %v17153_v9 = vld [vmem:[#allocation2 + $0x2fa4] ss:$12 sps:$4 sm:$0xff]   ;;  %v17148_v16 = vld [vmem:[#allocation2 + $0x2e20] ss:$12 sps:$4 sm:$0xff]  }
 0x3f8   :  { %12055 = vmatprep.subr.bf16.mxu1 %v17129_v25  ;;  %v17151_v25 = vld [vmem:[#allocation2 + $0x2fa0] ss:$12 sps:$4 sm:$0xff]  }
 0x3fa   :  { %12015 = vmatpush1.bf16.msra.mxu0 %v17124_v5  ;;  %v17156_v5 = vld [vmem:[#allocation2 + $0x2e0c] ss:$12 sps:$4 sm:$0xff]  }
 0x3fb   :  { %12056 = vmatpush1.bf16.msra.mxu1 %v17127_v38  ;;  %12016 = vmatprep.subr.bf16.mxu0 %v17132_v7  ;;  %v17159_v38 = vld [vmem:[#allocation2 + $0x2f8c] ss:$12 sps:$4 sm:$0xff]   ;;  %v17154_v7 = vld [vmem:[#allocation2 + $0x2e08] ss:$12 sps:$4 sm:$0xff]  }
 0x3fc   :  { %12057 = vmatprep.subr.bf16.mxu1 %v17135_v31  ;;  %v17157_v31 = vld [vmem:[#allocation2 + $0x2f88] ss:$12 sps:$4 sm:$0xff]  }
 0x3fe   :  { %12017 = vmatpush2.bf16.msra.mxu0 %v17130_v45  ;;  %v17162_v45 = vld [vmem:[#allocation2 + $0x2df4] ss:$12 sps:$4 sm:$0xff]  }
 0x3ff   :  { %12058 = vmatpush2.bf16.msra.mxu1 %v17133_v37  ;;  %12018 = vmatprep.subr.bf16.mxu0 %v17138_v29  ;;  %v17165_v37 = vld [vmem:[#allocation2 + $0x2f74] ss:$12 sps:$4 sm:$0xff]   ;;  %v17160_v29 = vld [vmem:[#allocation2 + $0x2df0] ss:$12 sps:$4 sm:$0xff]  }
 0x400   :  { %12059 = vmatprep.subr.bf16.mxu1 %v17141_v10  ;;  %v17163_v10 = vld [vmem:[#allocation2 + $0x2f70] ss:$12 sps:$4 sm:$0xff]  }
 0x402   :  { %12019 = vmatpush2.bf16.msra.mxu0 %v17136_v4  ;;  %v17168_v4 = vld [vmem:[#allocation2 + $0x2ddc] ss:$12 sps:$4 sm:$0xff]  }
 0x403   :  { %12060 = vmatpush2.bf16.msra.mxu1 %v17139_v52  ;;  %12020 = vmatprep.subr.bf16.mxu0 %v17144_v46  ;;  %v17171_v52 = vld [vmem:[#allocation2 + $0x2f5c] ss:$12 sps:$4 sm:$0xff]   ;;  %v17166_v46 = vld [vmem:[#allocation2 + $0x2dd8] ss:$12 sps:$4 sm:$0xff]  }
 0x404   :  { %12061 = vmatprep.subr.bf16.mxu1 %v17147_v53  ;;  %v17169_v53 = vld [vmem:[#allocation2 + $0x2f58] ss:$12 sps:$4 sm:$0xff]  }
 0x406   :  { %12021 = vmatpush2.bf16.msra.mxu0 %v17142_v2  ;;  %v17174_v2 = vld [vmem:[#allocation2 + $0x2dc4] ss:$12 sps:$4 sm:$0xff]  }
 0x407   :  { %12062 = vmatpush2.bf16.msra.mxu1 %v17145_v1  ;;  %12022 = vmatprep.subr.bf16.mxu0 %v17150_v19  ;;  %v17177_v1 = vld [vmem:[#allocation2 + $0x2f44] ss:$12 sps:$4 sm:$0xff]   ;;  %v17172_v19 = vld [vmem:[#allocation2 + $0x2dc0] ss:$12 sps:$4 sm:$0xff]  }
 0x408   :  { %12063 = vmatprep.subr.bf16.mxu1 %v17153_v9  ;;  %v18275_v9 = vrot.slane %v18244_v11, %v17771_v49  ;;  %v17184_v49 = vld [vmem:[#allocation2 + $0x2d8] ss:$12 sps:$4 sm:$0xff]  }
 0x409   :  { %v17185_v11 = vld [vmem:[#allocation2 + $0x98] ss:$12 sps:$4 sm:$0xff]  }
 0x40a   :  { %12023 = vmatpush2.bf16.msra.mxu0 %v17148_v16  ;;  %v17175_v16 = vld [vmem:[#allocation2 + $0x2f40] ss:$12 sps:$4 sm:$0xff]  }
 0x40b   :  { %12064 = vmatpush2.bf16.msra.mxu1 %v17151_v25  ;;  %12024 = vmatprep.subr.bf16.mxu0 %v17156_v5  ;;  %v17179_v25 = vld [vmem:[#allocation2 + $0x170] ss:$12 sps:$4 sm:$0xff]  }
 0x40c   :  { %12065 = vmatprep.subr.bf16.mxu1 %v17159_v38  ;;  %v17180_v5 = vld [vmem:[#allocation2 + $0x2f0] ss:$12 sps:$4 sm:$0xff]  }
 0x40d   :  { %v17181_v38 = vld [vmem:[#allocation2 + $0xb0] ss:$12 sps:$4 sm:$0xff]  }
 0x40e   :  { %12025 = vmatpush2.bf16.msra.mxu0 %v17154_v7  ;;  %v17182_v7 = vld [vmem:[#allocation2 + $0x230] ss:$12 sps:$4 sm:$0xff]  }
 0x40f   :  { %12066 = vmatpush2.bf16.msra.mxu1 %v17157_v31  ;;  %12026 = vmatprep.subr.bf16.mxu0 %v17162_v45  ;;  %v18279_v31 = vcombine.high %v18275_v9, %v18275_v9  ;;  %v17183_v45 = vld [vmem:[#allocation2 + $0x158] ss:$12 sps:$4 sm:$0xff]  }
 0x410   :  { %12067 = vmatprep.subr.bf16.mxu1 %v17165_v37  ;;  %v17186_v37 = vld [vmem:[#allocation2 + $0x218] ss:$12 sps:$4 sm:$0xff]  }
 0x412   :  { %12027 = vmatpush2.bf16.msra.mxu0 %v17160_v29 }
 0x413   :  { %12068 = vmatpush2.bf16.msra.mxu1 %v17163_v10  ;;  %12028 = vmatprep.subr.bf16.mxu0 %v17168_v4 }
 0x414   :  { %12069 = vmatprep.subr.bf16.mxu1 %v17171_v52 }
 0x416   :  { %12029 = vmatpush2.bf16.msra.mxu0 %v17166_v46 }
 0x417   :  { %12070 = vmatpush2.bf16.msra.mxu1 %v17169_v53  ;;  %12030 = vmatprep.subr.bf16.mxu0 %v17174_v2  ;;  %v17187_v53 = vld [vmem:[#allocation2 + $0x140] ss:$12 sps:$4 sm:$0xff]  }
 0x418   :  { %12071 = vmatprep.subr.bf16.mxu1 %v17177_v1  ;;  %v17188_v2 = vld [vmem:[#allocation2 + $0x2c0] ss:$12 sps:$4 sm:$0xff]  }
 0x41a   :  { %12031 = vmatpush2.bf16.msra.mxu0 %v17172_v19 }
 0x41b   :  { %12072 = vmatpush2.bf16.msra.mxu1 %v17175_v16  ;;  %14925 = vmatprep.subr.bf16.mxu0 %v17179_v25  ;;  %v17189_v16 = vld [vmem:[#allocation2 + $0x80] ss:$12 sps:$4 sm:$0xff]  }
 0x41c   :  { %14947 = vmatprep.subr.bf16.mxu1 %v17180_v5  ;;  %v17190_v25 = vld [vmem:[#allocation2 + $0x200] ss:$12 sps:$4 sm:$0xff]  }
 0x41d   :  { %v11788_v29 = vpop.f32.mrf.mxu0  ;;  %12033 = vmatmul.mubr.bf16.vlgmr.msra.gmra.mxu0 %v18275_v9 }
 0x41e   :  { %v11829_v10 = vpop.f32.mrf.mxu1  ;;  %12074 = vmatmul.mubr.bf16.vlgmr.msra.gmra.mxu1 %v18279_v31  ;;  %v11789_v4 = vadd.f32 %v11788_v29, %v18266_v14  ;;  %14926 = vmatpush3.bf16.msra.mxu0 %v17181_v38  ;;  %v17192_v29 = vld [vmem:[#allocation2 + $0x2a8] ss:$12 sps:$4 sm:$0xff]  }
 0x41f   :  { %14948 = vmatpush3.bf16.msra.mxu1 %v17182_v7  ;;  %v11790_v52 = vpop.f32.mrf.mxu0  ;;  %14927 = vmatprep.subr.bf16.mxu0 %v17183_v45 }
 0x420   :  { %v11831_v46 = vpop.f32.mrf.mxu1  ;;  %14949 = vmatprep.subr.bf16.mxu1 %v17184_v49  ;;  %v18284_v1 = vadd.f32 %v11829_v10, %v11789_v4  ;;  %v11791_v19 = vadd.f32 %v11790_v52, %v18271_v35  ;;  %12114 = vmatprep.mubr.bf16.mxu0 %v17778_v60  ;;  %v17191_v49 = vld [vmem:[#allocation2 + $0x128] ss:$12 sps:$4 sm:$0xff]   ;;  %v17195_v60 = vld [vmem:[#allocation2 + $0x110] ss:$12 sps:$4 sm:$0xff]  }
 0x421   :  { %12154 = vmatprep.mubr.bf16.mxu1 %v17782_v0  ;;  %v11792_v5 = vpop.f32.mrf.mxu0  ;;  %v17193_v10 = vld [vmem:[#allocation2 + $0x68] ss:$12 sps:$4 sm:$0xff]   ;;  %v17196_v0 = vld [vmem:[#allocation2 + $0x290] ss:$12 sps:$4 sm:$0xff]  }
 0x422   :  { %v11833_v14 = vpop.f32.mrf.mxu1  ;;  %v18289_v38 = vadd.f32 %v11831_v46, %v11791_v19  ;;  %14928 = vmatpush3.bf16.msra.mxu0 %v17185_v11  ;;  %v17194_v35 = vld [vmem:[#allocation2 + $0x1e8] ss:$12 sps:$4 sm:$0xff]   ;;  %v17197_v4 = vld [vmem:[#allocation2 + $0x50] ss:$12 sps:$4 sm:$0xff]   ;;  %v17199_v11 = vld [vmem:[#allocation2 + $0xf8] ss:$12 sps:$4 sm:$0xff]  }
 0x423   :  { %14950 = vmatpush3.bf16.msra.mxu1 %v17186_v37  ;;  %v11793_v7 = vpop.f32.mrf.mxu0  ;;  %14929 = vmatprep.subr.bf16.mxu0 %v17187_v53  ;;  %v17198_v52 = vld [vmem:[#allocation2 + $0x1d0] ss:$12 sps:$4 sm:$0xff]   ;;  %v17200_v37 = vld [vmem:[#allocation2 + $0x278] ss:$12 sps:$4 sm:$0xff]   ;;  %v17204_v19 = vld [vmem:[#allocation2 + $0x260] ss:$12 sps:$4 sm:$0xff]  }
 0x424   :  { %v11834_v45 = vpop.f32.mrf.mxu1  ;;  %14951 = vmatprep.subr.bf16.mxu1 %v17188_v2  ;;  %v17201_v46 = vld [vmem:[#allocation2 + $0x38] ss:$12 sps:$4 sm:$0xff]   ;;  %v17203_v2 = vld [vmem:[#allocation2 + $0xe0] ss:$12 sps:$4 sm:$0xff]   ;;  %v17207_v5 = vld [vmem:[#allocation2 + $0xc8] ss:$12 sps:$4 sm:$0xff]  }
 0x425   :  { %v17202_v53 = vld [vmem:[#allocation2 + $0x1b8] ss:$12 sps:$4 sm:$0xff]   ;;  %v17208_v14 = vld [vmem:[#allocation2 + $0x248] ss:$12 sps:$4 sm:$0xff]  }
 0x426   :  { %14930 = vmatpush3.bf16.msra.mxu0 %v17189_v16  ;;  %v17205_v16 = vld [vmem:[#allocation2 + $0x20] ss:$12 sps:$4 sm:$0xff]   ;;  %v17209_v7 = vld [vmem:[#allocation2 + $0x8] ss:$12 sps:$4 sm:$0xff]  }
 0x427   :  { %14952 = vmatpush3.bf16.msra.mxu1 %v17190_v25  ;;  %14931 = vmatprep.subr.bf16.mxu0 %v17191_v49  ;;  %v17206_v25 = vld [vmem:[#allocation2 + $0x1a0] ss:$12 sps:$4 sm:$0xff]   ;;  %v17210_v45 = vld [vmem:[#allocation2 + $0x188] ss:$12 sps:$4 sm:$0xff]   ;;  %v17211_v49 = vld [vmem:[#allocation2 + $0x470] ss:$12 sps:$4 sm:$0xff]  }
 0x428   :  { %14953 = vmatprep.subr.bf16.mxu1 %v17192_v29  ;;  %v17212_v29 = vld [vmem:[#allocation2 + $0x5f0] ss:$12 sps:$4 sm:$0xff]  }
 0x42a   :  { %14932 = vmatpush3.bf16.msra.mxu0 %v17193_v10  ;;  %v17213_v10 = vld [vmem:[#allocation2 + $0x3b0] ss:$12 sps:$4 sm:$0xff]  }
 0x42b   :  { %14954 = vmatpush3.bf16.msra.mxu1 %v17194_v35  ;;  %14933 = vmatprep.subr.bf16.mxu0 %v17195_v60  ;;  %v17214_v35 = vld [vmem:[#allocation2 + $0x530] ss:$12 sps:$4 sm:$0xff]   ;;  %v17215_v60 = vld [vmem:[#allocation2 + $0x458] ss:$12 sps:$4 sm:$0xff]  }
 0x42c   :  { %14955 = vmatprep.subr.bf16.mxu1 %v17196_v0  ;;  %v17216_v0 = vld [vmem:[#allocation2 + $0x5d8] ss:$12 sps:$4 sm:$0xff]  }
 0x42e   :  { %14934 = vmatpush3.bf16.msra.mxu0 %v17197_v4  ;;  %v17217_v4 = vld [vmem:[#allocation2 + $0x398] ss:$12 sps:$4 sm:$0xff]  }
 0x42f   :  { %14956 = vmatpush3.bf16.msra.mxu1 %v17198_v52  ;;  %14935 = vmatprep.subr.bf16.mxu0 %v17199_v11  ;;  %v17218_v52 = vld [vmem:[#allocation2 + $0x518] ss:$12 sps:$4 sm:$0xff]   ;;  %v17219_v11 = vld [vmem:[#allocation2 + $0x440] ss:$12 sps:$4 sm:$0xff]  }
 0x430   :  { %14957 = vmatprep.subr.bf16.mxu1 %v17200_v37  ;;  %v17220_v37 = vld [vmem:[#allocation2 + $0x5c0] ss:$12 sps:$4 sm:$0xff]  }
 0x432   :  { %14936 = vmatpush3.bf16.msra.mxu0 %v17201_v46  ;;  %v17221_v46 = vld [vmem:[#allocation2 + $0x380] ss:$12 sps:$4 sm:$0xff]  }
 0x433   :  { %14958 = vmatpush3.bf16.msra.mxu1 %v17202_v53  ;;  %14937 = vmatprep.subr.bf16.mxu0 %v17203_v2  ;;  %v17222_v53 = vld [vmem:[#allocation2 + $0x500] ss:$12 sps:$4 sm:$0xff]   ;;  %v17224_v2 = vld [vmem:[#allocation2 + $0x5a8] ss:$12 sps:$4 sm:$0xff]  }
 0x434   :  { %14959 = vmatprep.subr.bf16.mxu1 %v17204_v19  ;;  %v17226_v19 = vld [vmem:[#allocation2 + $0x4e8] ss:$12 sps:$4 sm:$0xff]  }
 0x436   :  { %14938 = vmatpush3.bf16.msra.mxu0 %v17205_v16  ;;  %v17227_v16 = vld [vmem:[#allocation2 + $0x410] ss:$12 sps:$4 sm:$0xff]  }
 0x437   :  { %14960 = vmatpush3.bf16.msra.mxu1 %v17206_v25  ;;  %14939 = vmatprep.subr.bf16.mxu0 %v17207_v5  ;;  %v17228_v25 = vld [vmem:[#allocation2 + $0x590] ss:$12 sps:$4 sm:$0xff]  }
 0x438   :  { %14961 = vmatprep.subr.bf16.mxu1 %v17208_v14  ;;  %v17229_v5 = vld [vmem:[#allocation2 + $0x350] ss:$12 sps:$4 sm:$0xff]   ;;  %v17232_v14 = vld [vmem:[#allocation2 + $0x578] ss:$12 sps:$4 sm:$0xff]  }
 0x43a   :  { %14940 = vmatpush3.bf16.msra.mxu0 %v17209_v7  ;;  %v17233_v7 = vld [vmem:[#allocation2 + $0x338] ss:$12 sps:$4 sm:$0xff]  }
 0x43b   :  { %14962 = vmatpush3.bf16.msra.mxu1 %v17210_v45  ;;  %14969 = vmatprep.subr.bf16.mxu0 %v17211_v49  ;;  %v17234_v45 = vld [vmem:[#allocation2 + $0x4b8] ss:$12 sps:$4 sm:$0xff]   ;;  %v17235_v49 = vld [vmem:[#allocation2 + $0x3e0] ss:$12 sps:$4 sm:$0xff]  }
 0x43c   :  { %14991 = vmatprep.subr.bf16.mxu1 %v17212_v29  ;;  %v17236_v29 = vld [vmem:[#allocation2 + $0x560] ss:$12 sps:$4 sm:$0xff]  }
 0x43d   :  { %12115 = vmatmul.mubr.bf16.vlgmr.msra.gmra.mxu0 %v17792_v13  ;;  %v17223_v13 = vld [vmem:[#allocation2 + $0x428] ss:$12 sps:$4 sm:$0xff]  }
 0x43e   :  { %12155 = vmatmul.mubr.bf16.vlgmr.msra.gmra.mxu1 %v17799_v18  ;;  %14970 = vmatpush3.bf16.msra.mxu0 %v17213_v10  ;;  %v17225_v18 = vld [vmem:[#allocation2 + $0x368] ss:$12 sps:$4 sm:$0xff]   ;;  %v17237_v10 = vld [vmem:[#allocation2 + $0x320] ss:$12 sps:$4 sm:$0xff]  }
 0x43f   :  { %14992 = vmatpush3.bf16.msra.mxu1 %v17214_v35  ;;  %14971 = vmatprep.subr.bf16.mxu0 %v17215_v60  ;;  %v17238_v35 = vld [vmem:[#allocation2 + $0x4a0] ss:$12 sps:$4 sm:$0xff]   ;;  %v17239_v60 = vld [vmem:[#allocation2 + $0x3c8] ss:$12 sps:$4 sm:$0xff]  }
 0x440   :  { %14993 = vmatprep.subr.bf16.mxu1 %v17216_v0  ;;  %12194 = vmatprep.mubr.bf16.mxu0 %v17795_v17  ;;  %v17230_v17 = vld [vmem:[#allocation2 + $0x4d0] ss:$12 sps:$4 sm:$0xff]   ;;  %v17240_v0 = vld [vmem:[#allocation2 + $0x548] ss:$12 sps:$4 sm:$0xff]  }
 0x441   :  { %12234 = vmatprep.mubr.bf16.mxu1 %v17803_v23  ;;  %v17231_v23 = vld [vmem:[#allocation2 + $0x3f8] ss:$12 sps:$4 sm:$0xff]  }
 0x442   :  { %14972 = vmatpush3.bf16.msra.mxu0 %v17217_v4  ;;  %v17241_v4 = vld [vmem:[#allocation2 + $0x308] ss:$12 sps:$4 sm:$0xff]  }
 0x443   :  { %14994 = vmatpush3.bf16.msra.mxu1 %v17218_v52  ;;  %14973 = vmatprep.subr.bf16.mxu0 %v17219_v11  ;;  %v17242_v52 = vld [vmem:[#allocation2 + $0x488] ss:$12 sps:$4 sm:$0xff]   ;;  %v17243_v11 = vld [vmem:[#allocation2 + $0x770] ss:$12 sps:$4 sm:$0xff]  }
 0x444   :  { %14995 = vmatprep.subr.bf16.mxu1 %v17220_v37  ;;  %v17244_v37 = vld [vmem:[#allocation2 + $0x8f0] ss:$12 sps:$4 sm:$0xff]  }
 0x446   :  { %14974 = vmatpush3.bf16.msra.mxu0 %v17221_v46  ;;  %v17245_v46 = vld [vmem:[#allocation2 + $0x6b0] ss:$12 sps:$4 sm:$0xff]  }
 0x447   :  { %14996 = vmatpush3.bf16.msra.mxu1 %v17222_v53  ;;  %14975 = vmatprep.subr.bf16.mxu0 %v17223_v13  ;;  %v17246_v53 = vld [vmem:[#allocation2 + $0x830] ss:$12 sps:$4 sm:$0xff]   ;;  %v17247_v13 = vld [vmem:[#allocation2 + $0x758] ss:$12 sps:$4 sm:$0xff]  }
 0x448   :  { %14997 = vmatprep.subr.bf16.mxu1 %v17224_v2  ;;  %v17248_v2 = vld [vmem:[#allocation2 + $0x8d8] ss:$12 sps:$4 sm:$0xff]  }
 0x44a   :  { %14976 = vmatpush3.bf16.msra.mxu0 %v17225_v18 }
 0x44b   :  { %14998 = vmatpush3.bf16.msra.mxu1 %v17226_v19  ;;  %14977 = vmatprep.subr.bf16.mxu0 %v17227_v16 }
 0x44c   :  { %14999 = vmatprep.subr.bf16.mxu1 %v17228_v25  ;;  %v17249_v25 = vld [vmem:[#allocation2 + $0x698] ss:$12 sps:$4 sm:$0xff]  }
 0x44e   :  { %14978 = vmatpush3.bf16.msra.mxu0 %v17229_v5  ;;  %v17250_v5 = vld [vmem:[#allocation2 + $0x818] ss:$12 sps:$4 sm:$0xff]  }
 0x44f   :  { %15000 = vmatpush3.bf16.msra.mxu1 %v17230_v17  ;;  %14979 = vmatprep.subr.bf16.mxu0 %v17231_v23 }
 0x450   :  { %15001 = vmatprep.subr.bf16.mxu1 %v17232_v14  ;;  %v17251_v14 = vld [vmem:[#allocation2 + $0x740] ss:$12 sps:$4 sm:$0xff]  }
 0x452   :  { %14980 = vmatpush3.bf16.msra.mxu0 %v17233_v7  ;;  %v17252_v7 = vld [vmem:[#allocation2 + $0x8c0] ss:$12 sps:$4 sm:$0xff]  }
 0x453   :  { %15002 = vmatpush3.bf16.msra.mxu1 %v17234_v45  ;;  %14981 = vmatprep.subr.bf16.mxu0 %v17235_v49 }
 0x454   :  { %15003 = vmatprep.subr.bf16.mxu1 %v17236_v29  ;;  %v17253_v29 = vld [vmem:[#allocation2 + $0x680] ss:$12 sps:$4 sm:$0xff]  }
 0x456   :  { %14982 = vmatpush3.bf16.msra.mxu0 %v17237_v10  ;;  %v17254_v10 = vld [vmem:[#allocation2 + $0x800] ss:$12 sps:$4 sm:$0xff]  }
 0x457   :  { %15004 = vmatpush3.bf16.msra.mxu1 %v17238_v35  ;;  %14983 = vmatprep.subr.bf16.mxu0 %v17239_v60 }
 0x458   :  { %15005 = vmatprep.subr.bf16.mxu1 %v17240_v0  ;;  %v17255_v0 = vld [vmem:[#allocation2 + $0x728] ss:$12 sps:$4 sm:$0xff]  }
 0x45a   :  { %14984 = vmatpush3.bf16.msra.mxu0 %v17241_v4  ;;  %v17256_v4 = vld [vmem:[#allocation2 + $0x8a8] ss:$12 sps:$4 sm:$0xff]  }
 0x45b   :  { %15006 = vmatpush3.bf16.msra.mxu1 %v17242_v52  ;;  %15013 = vmatprep.subr.bf16.mxu0 %v17243_v11  ;;  %v17260_v52 = vld [vmem:[#allocation2 + $0x890] ss:$12 sps:$4 sm:$0xff]  }
 0x45c   :  { %15035 = vmatprep.subr.bf16.mxu1 %v17244_v37  ;;  %v17261_v11 = vld [vmem:[#allocation2 + $0x650] ss:$12 sps:$4 sm:$0xff]  }
 0x45d   :  { %v11870_v18 = vpop.f32.mrf.mxu0  ;;  %12195 = vmatmul.mubr.bf16.vlgmr.msra.gmra.mxu0 %v17811_v26  ;;  %v17262_v37 = vld [vmem:[#allocation2 + $0x7d0] ss:$12 sps:$4 sm:$0xff]  }
 0x45e   :  { %v11911_v19 = vpop.f32.mrf.mxu1  ;;  %12235 = vmatmul.mubr.bf16.vlgmr.msra.gmra.mxu1 %v17815_v30  ;;  %v11871_v16 = vadd.f32 %v11870_v18, %v18284_v1  ;;  %15014 = vmatpush3.bf16.msra.mxu0 %v17245_v46  ;;  %v17263_v46 = vld [vmem:[#allocation2 + $0x6f8] ss:$12 sps:$4 sm:$0xff]   ;;  %v17267_v18 = vld [vmem:[#allocation2 + $0x6e0] ss:$12 sps:$4 sm:$0xff]  }
 0x45f   :  { %15036 = vmatpush3.bf16.msra.mxu1 %v17246_v53  ;;  %v11872_v17 = vpop.f32.mrf.mxu0  ;;  %15015 = vmatprep.subr.bf16.mxu0 %v17247_v13  ;;  %v17264_v53 = vld [vmem:[#allocation2 + $0x878] ss:$12 sps:$4 sm:$0xff]  }
 0x460   :  { %v11913_v23 = vpop.f32.mrf.mxu1  ;;  %15037 = vmatprep.subr.bf16.mxu1 %v17248_v2  ;;  %v18298_v45 = vadd.f32 %v11911_v19, %v11871_v16  ;;  %v11873_v49 = vadd.f32 %v11872_v17, %v18289_v38  ;;  %12274 = vmatprep.mubr.bf16.mxu0 %v17831_v41  ;;  %v17257_v38 = vld [vmem:[#allocation2 + $0x668] ss:$12 sps:$4 sm:$0xff]   ;;  %v17265_v13 = vld [vmem:[#allocation2 + $0x638] ss:$12 sps:$4 sm:$0xff]   ;;  %v17268_v19 = vld [vmem:[#allocation2 + $0x860] ss:$12 sps:$4 sm:$0xff]  }
 0x461   :  { %12314 = vmatprep.mubr.bf16.mxu1 %v17836_v43  ;;  %v11874_v26 = vpop.f32.mrf.mxu0  ;;  %v17258_v41 = vld [vmem:[#allocation2 + $0x7e8] ss:$12 sps:$4 sm:$0xff]   ;;  %v17259_v43 = vld [vmem:[#allocation2 + $0x710] ss:$12 sps:$4 sm:$0xff]   ;;  %v17266_v2 = vld [vmem:[#allocation2 + $0x7b8] ss:$12 sps:$4 sm:$0xff]  }
 0x462   :  { %v11915_v30 = vpop.f32.mrf.mxu1  ;;  %v18303_v1 = vadd.f32 %v11913_v23, %v11873_v49  ;;  %15016 = vmatpush3.bf16.msra.mxu0 %v17249_v25  ;;  %v17269_v16 = vld [vmem:[#allocation2 + $0x620] ss:$12 sps:$4 sm:$0xff]   ;;  %v17272_v17 = vld [vmem:[#allocation2 + $0x848] ss:$12 sps:$4 sm:$0xff]   ;;  %v17276_v49 = vld [vmem:[#allocation2 + $0xbf0] ss:$12 sps:$4 sm:$0xff]  }
 0x463   :  { %15038 = vmatpush3.bf16.msra.mxu1 %v17250_v5  ;;  %v11875_v35 = vpop.f32.mrf.mxu0  ;;  %15017 = vmatprep.subr.bf16.mxu0 %v17251_v14  ;;  %v17270_v25 = vld [vmem:[#allocation2 + $0x7a0] ss:$12 sps:$4 sm:$0xff]   ;;  %v17271_v5 = vld [vmem:[#allocation2 + $0x6c8] ss:$12 sps:$4 sm:$0xff]   ;;  %v17277_v26 = vld [vmem:[#allocation2 + $0x9b0] ss:$12 sps:$4 sm:$0xff]  }
 0x464   :  { %v11916_v60 = vpop.f32.mrf.mxu1  ;;  %15039 = vmatprep.subr.bf16.mxu1 %v17252_v7  ;;  %v17273_v23 = vld [vmem:[#allocation2 + $0x608] ss:$12 sps:$4 sm:$0xff]   ;;  %v17275_v7 = vld [vmem:[#allocation2 + $0xa70] ss:$12 sps:$4 sm:$0xff]   ;;  %v17281_v35 = vld [vmem:[#allocation2 + $0x998] ss:$12 sps:$4 sm:$0xff]  }
 0x465   :  { %v17274_v14 = vld [vmem:[#allocation2 + $0x788] ss:$12 sps:$4 sm:$0xff]   ;;  %v17278_v30 = vld [vmem:[#allocation2 + $0xb30] ss:$12 sps:$4 sm:$0xff]   ;;  %v17282_v60 = vld [vmem:[#allocation2 + $0xb18] ss:$12 sps:$4 sm:$0xff]  }
 0x466   :  { %15018 = vmatpush3.bf16.msra.mxu0 %v17253_v29  ;;  %v17279_v29 = vld [vmem:[#allocation2 + $0xa58] ss:$12 sps:$4 sm:$0xff]  }
 0x467   :  { %15040 = vmatpush3.bf16.msra.mxu1 %v17254_v10  ;;  %15019 = vmatprep.subr.bf16.mxu0 %v17255_v0  ;;  %v17280_v10 = vld [vmem:[#allocation2 + $0xbd8] ss:$12 sps:$4 sm:$0xff]   ;;  %v17283_v0 = vld [vmem:[#allocation2 + $0xa40] ss:$12 sps:$4 sm:$0xff]  }
 0x468   :  { %15041 = vmatprep.subr.bf16.mxu1 %v17256_v4  ;;  %v17284_v4 = vld [vmem:[#allocation2 + $0xbc0] ss:$12 sps:$4 sm:$0xff]  }
 0x46a   :  { %15020 = vmatpush3.bf16.msra.mxu0 %v17257_v38  ;;  %v17285_v38 = vld [vmem:[#allocation2 + $0x980] ss:$12 sps:$4 sm:$0xff]  }
 0x46b   :  { %15042 = vmatpush3.bf16.msra.mxu1 %v17258_v41  ;;  %15021 = vmatprep.subr.bf16.mxu0 %v17259_v43  ;;  %v17286_v41 = vld [vmem:[#allocation2 + $0xb00] ss:$12 sps:$4 sm:$0xff]   ;;  %v17289_v43 = vld [vmem:[#allocation2 + $0x968] ss:$12 sps:$4 sm:$0xff]  }
 0x46c   :  { %15043 = vmatprep.subr.bf16.mxu1 %v17260_v52  ;;  %v17290_v52 = vld [vmem:[#allocation2 + $0xae8] ss:$12 sps:$4 sm:$0xff]  }
 0x46e   :  { %15022 = vmatpush3.bf16.msra.mxu0 %v17261_v11  ;;  %v17291_v11 = vld [vmem:[#allocation2 + $0xa10] ss:$12 sps:$4 sm:$0xff]  }
 0x46f   :  { %15044 = vmatpush3.bf16.msra.mxu1 %v17262_v37  ;;  %15023 = vmatprep.subr.bf16.mxu0 %v17263_v46  ;;  %v17292_v37 = vld [vmem:[#allocation2 + $0xb90] ss:$12 sps:$4 sm:$0xff]   ;;  %v17295_v46 = vld [vmem:[#allocation2 + $0x9f8] ss:$12 sps:$4 sm:$0xff]  }
 0x470   :  { %15045 = vmatprep.subr.bf16.mxu1 %v17264_v53  ;;  %v17296_v53 = vld [vmem:[#allocation2 + $0xb78] ss:$12 sps:$4 sm:$0xff]  }
 0x472   :  { %15024 = vmatpush3.bf16.msra.mxu0 %v17265_v13  ;;  %v17297_v13 = vld [vmem:[#allocation2 + $0x938] ss:$12 sps:$4 sm:$0xff]  }
 0x473   :  { %15046 = vmatpush3.bf16.msra.mxu1 %v17266_v2  ;;  %15025 = vmatprep.subr.bf16.mxu0 %v17267_v18  ;;  %v17298_v2 = vld [vmem:[#allocation2 + $0xab8] ss:$12 sps:$4 sm:$0xff]   ;;  %v17299_v18 = vld [vmem:[#allocation2 + $0x9e0] ss:$12 sps:$4 sm:$0xff]  }
 0x474   :  { %15047 = vmatprep.subr.bf16.mxu1 %v17268_v19  ;;  %v17300_v19 = vld [vmem:[#allocation2 + $0xb60] ss:$12 sps:$4 sm:$0xff]  }
 0x476   :  { %15026 = vmatpush3.bf16.msra.mxu0 %v17269_v16  ;;  %v17301_v16 = vld [vmem:[#allocation2 + $0x920] ss:$12 sps:$4 sm:$0xff]  }
 0x477   :  { %15048 = vmatpush3.bf16.msra.mxu1 %v17270_v25  ;;  %15027 = vmatprep.subr.bf16.mxu0 %v17271_v5  ;;  %v17302_v25 = vld [vmem:[#allocation2 + $0xaa0] ss:$12 sps:$4 sm:$0xff]   ;;  %v17303_v5 = vld [vmem:[#allocation2 + $0x9c8] ss:$12 sps:$4 sm:$0xff]  }
 0x478   :  { %15049 = vmatprep.subr.bf16.mxu1 %v17272_v17  ;;  %v17304_v17 = vld [vmem:[#allocation2 + $0xb48] ss:$12 sps:$4 sm:$0xff]  }
 0x47a   :  { %15028 = vmatpush3.bf16.msra.mxu0 %v17273_v23  ;;  %v17305_v23 = vld [vmem:[#allocation2 + $0x908] ss:$12 sps:$4 sm:$0xff]  }
 0x47b   :  { %15050 = vmatpush3.bf16.msra.mxu1 %v17274_v14  ;;  %15057 = vmatprep.subr.bf16.mxu0 %v17275_v7  ;;  %v17306_v14 = vld [vmem:[#allocation2 + $0xa88] ss:$12 sps:$4 sm:$0xff]   ;;  %v17307_v7 = vld [vmem:[#allocation2 + $0xd70] ss:$12 sps:$4 sm:$0xff]  }
 0x47c   :  { %15079 = vmatprep.subr.bf16.mxu1 %v17276_v49  ;;  %v17308_v49 = vld [vmem:[#allocation2 + $0xef0] ss:$12 sps:$4 sm:$0xff]  }
 0x47d   :  { %12275 = vmatmul.mubr.bf16.vlgmr.msra.gmra.mxu0 %v17848_v50  ;;  %v17287_v50 = vld [vmem:[#allocation2 + $0xa28] ss:$12 sps:$4 sm:$0xff]  }
 0x47e   :  { %12315 = vmatmul.mubr.bf16.vlgmr.msra.gmra.mxu1 %v17855_v55  ;;  %15058 = vmatpush3.bf16.msra.mxu0 %v17277_v26  ;;  %v17288_v55 = vld [vmem:[#allocation2 + $0xba8] ss:$12 sps:$4 sm:$0xff]   ;;  %v17309_v26 = vld [vmem:[#allocation2 + $0xcb0] ss:$12 sps:$4 sm:$0xff]  }
 0x47f   :  { %15080 = vmatpush3.bf16.msra.mxu1 %v17278_v30  ;;  %15059 = vmatprep.subr.bf16.mxu0 %v17279_v29  ;;  %v17310_v30 = vld [vmem:[#allocation2 + $0xe30] ss:$12 sps:$4 sm:$0xff]   ;;  %v17311_v29 = vld [vmem:[#allocation2 + $0xd58] ss:$12 sps:$4 sm:$0xff]  }
 0x480   :  { %15081 = vmatprep.subr.bf16.mxu1 %v17280_v10  ;;  %12354 = vmatprep.mubr.bf16.mxu0 %v17851_v54  ;;  %v17293_v54 = vld [vmem:[#allocation2 + $0x950] ss:$12 sps:$4 sm:$0xff]   ;;  %v17312_v10 = vld [vmem:[#allocation2 + $0xed8] ss:$12 sps:$4 sm:$0xff]  }
 0x481   :  { %12394 = vmatprep.mubr.bf16.mxu1 %v17859_v59  ;;  %v17294_v59 = vld [vmem:[#allocation2 + $0xad0] ss:$12 sps:$4 sm:$0xff]  }
 0x482   :  { %15060 = vmatpush3.bf16.msra.mxu0 %v17281_v35 }
 0x483   :  { %15082 = vmatpush3.bf16.msra.mxu1 %v17282_v60  ;;  %15061 = vmatprep.subr.bf16.mxu0 %v17283_v0 }
 0x484   :  { %15083 = vmatprep.subr.bf16.mxu1 %v17284_v4  ;;  %v17313_v4 = vld [vmem:[#allocation2 + $0xc98] ss:$12 sps:$4 sm:$0xff]  }
 0x486   :  { %15062 = vmatpush3.bf16.msra.mxu0 %v17285_v38  ;;  %v17314_v38 = vld [vmem:[#allocation2 + $0xe18] ss:$12 sps:$4 sm:$0xff]  }
 0x487   :  { %15084 = vmatpush3.bf16.msra.mxu1 %v17286_v41  ;;  %15063 = vmatprep.subr.bf16.mxu0 %v17287_v50 }
 0x488   :  { %15085 = vmatprep.subr.bf16.mxu1 %v17288_v55  ;;  %v17315_v55 = vld [vmem:[#allocation2 + $0xd40] ss:$12 sps:$4 sm:$0xff]  }
 0x48a   :  { %15064 = vmatpush3.bf16.msra.mxu0 %v17289_v43  ;;  %v17316_v43 = vld [vmem:[#allocation2 + $0xec0] ss:$12 sps:$4 sm:$0xff]  }
 0x48b   :  { %15086 = vmatpush3.bf16.msra.mxu1 %v17290_v52  ;;  %15065 = vmatprep.subr.bf16.mxu0 %v17291_v11 }
 0x48c   :  { %15087 = vmatprep.subr.bf16.mxu1 %v17292_v37  ;;  %v17317_v37 = vld [vmem:[#allocation2 + $0xc80] ss:$12 sps:$4 sm:$0xff]  }
 0x48e   :  { %15066 = vmatpush3.bf16.msra.mxu0 %v17293_v54  ;;  %v17318_v54 = vld [vmem:[#allocation2 + $0xe00] ss:$12 sps:$4 sm:$0xff]  }
 0x48f   :  { %15088 = vmatpush3.bf16.msra.mxu1 %v17294_v59  ;;  %15067 = vmatprep.subr.bf16.mxu0 %v17295_v46 }
 0x490   :  { %15089 = vmatprep.subr.bf16.mxu1 %v17296_v53  ;;  %v17319_v53 = vld [vmem:[#allocation2 + $0xd28] ss:$12 sps:$4 sm:$0xff]  }
 0x492   :  { %15068 = vmatpush3.bf16.msra.mxu0 %v17297_v13  ;;  %v17320_v13 = vld [vmem:[#allocation2 + $0xea8] ss:$12 sps:$4 sm:$0xff]  }
 0x493   :  { %15090 = vmatpush3.bf16.msra.mxu1 %v17298_v2  ;;  %15069 = vmatprep.subr.bf16.mxu0 %v17299_v18  ;;  %v17324_v2 = vld [vmem:[#allocation2 + $0xe90] ss:$12 sps:$4 sm:$0xff]  }
 0x494   :  { %15091 = vmatprep.subr.bf16.mxu1 %v17300_v19  ;;  %v17325_v18 = vld [vmem:[#allocation2 + $0xc50] ss:$12 sps:$4 sm:$0xff]  }
 0x495   :  { %v17326_v19 = vld [vmem:[#allocation2 + $0xdd0] ss:$12 sps:$4 sm:$0xff]  }
 0x496   :  { %15070 = vmatpush3.bf16.msra.mxu0 %v17301_v16  ;;  %v17327_v16 = vld [vmem:[#allocation2 + $0xcf8] ss:$12 sps:$4 sm:$0xff]  }
 0x497   :  { %15092 = vmatpush3.bf16.msra.mxu1 %v17302_v25  ;;  %15071 = vmatprep.subr.bf16.mxu0 %v17303_v5  ;;  %v17328_v25 = vld [vmem:[#allocation2 + $0xe78] ss:$12 sps:$4 sm:$0xff]  }
 0x498   :  { %15093 = vmatprep.subr.bf16.mxu1 %v17304_v17  ;;  %v17329_v5 = vld [vmem:[#allocation2 + $0xc38] ss:$12 sps:$4 sm:$0xff]  }
 0x499   :  { %v17330_v17 = vld [vmem:[#allocation2 + $0xdb8] ss:$12 sps:$4 sm:$0xff]  }
 0x49a   :  { %15072 = vmatpush3.bf16.msra.mxu0 %v17305_v23  ;;  %v17331_v23 = vld [vmem:[#allocation2 + $0xce0] ss:$12 sps:$4 sm:$0xff]  }
 0x49b   :  { %15094 = vmatpush3.bf16.msra.mxu1 %v17306_v14  ;;  %15101 = vmatprep.subr.bf16.mxu0 %v17307_v7  ;;  %v17332_v14 = vld [vmem:[#allocation2 + $0xe60] ss:$12 sps:$4 sm:$0xff]  }
 0x49c   :  { %15123 = vmatprep.subr.bf16.mxu1 %v17308_v49  ;;  %v17333_v7 = vld [vmem:[#allocation2 + $0xc20] ss:$12 sps:$4 sm:$0xff]  }
 0x49d   :  { %v11952_v35 = vpop.f32.mrf.mxu0  ;;  %12355 = vmatmul.mubr.bf16.vlgmr.msra.gmra.mxu0 %v17878_v15  ;;  %v17334_v49 = vld [vmem:[#allocation2 + $0xda0] ss:$12 sps:$4 sm:$0xff]  }
 0x49e   :  { %v11993_v60 = vpop.f32.mrf.mxu1  ;;  %12395 = vmatmul.mubr.bf16.vlgmr.msra.gmra.mxu1 %v17887_v24  ;;  %v11953_v0 = vadd.f32 %v11952_v35, %v18298_v45  ;;  %15102 = vmatpush3.bf16.msra.mxu0 %v17309_v26  ;;  %v17335_v26 = vld [vmem:[#allocation2 + $0xcc8] ss:$12 sps:$4 sm:$0xff]   ;;  %v17339_v35 = vld [vmem:[#allocation2 + $0x1070] ss:$12 sps:$4 sm:$0xff]  }
 0x49f   :  { %15124 = vmatpush3.bf16.msra.mxu1 %v17310_v30  ;;  %v11954_v41 = vpop.f32.mrf.mxu0  ;;  %15103 = vmatprep.subr.bf16.mxu0 %v17311_v29  ;;  %v17336_v30 = vld [vmem:[#allocation2 + $0xe48] ss:$12 sps:$4 sm:$0xff]  }
 0x4a0   :  { %v11995_v50 = vpop.f32.mrf.mxu1  ;;  %15125 = vmatprep.subr.bf16.mxu1 %v17312_v10  ;;  %v18312_v52 = vadd.f32 %v11993_v60, %v11953_v0  ;;  %v11955_v11 = vadd.f32 %v11954_v41, %v18303_v1  ;;  %12434 = vmatprep.mubr.bf16.mxu0 %v17883_v22  ;;  %v17321_v1 = vld [vmem:[#allocation2 + $0xc68] ss:$12 sps:$4 sm:$0xff]   ;;  %v17340_v60 = vld [vmem:[#allocation2 + $0x11f0] ss:$12 sps:$4 sm:$0xff]   ;;  %v17344_v41 = vld [vmem:[#allocation2 + $0x11d8] ss:$12 sps:$4 sm:$0xff]  }
 0x4a1   :  { %12474 = vmatprep.mubr.bf16.mxu1 %v17891_v32  ;;  %v11956_v15 = vpop.f32.mrf.mxu0  ;;  %v17322_v22 = vld [vmem:[#allocation2 + $0xde8] ss:$12 sps:$4 sm:$0xff]   ;;  %v17323_v32 = vld [vmem:[#allocation2 + $0xd10] ss:$12 sps:$4 sm:$0xff]  }
 0x4a2   :  { %v11997_v24 = vpop.f32.mrf.mxu1  ;;  %v18317_v45 = vadd.f32 %v11995_v50, %v11955_v11  ;;  %15104 = vmatpush3.bf16.msra.mxu0 %v17313_v4  ;;  %v17337_v29 = vld [vmem:[#allocation2 + $0xc08] ss:$12 sps:$4 sm:$0xff]   ;;  %v17341_v0 = vld [vmem:[#allocation2 + $0xfb0] ss:$12 sps:$4 sm:$0xff]   ;;  %v17345_v50 = vld [vmem:[#allocation2 + $0xf98] ss:$12 sps:$4 sm:$0xff]  }
 0x4a3   :  { %15126 = vmatpush3.bf16.msra.mxu1 %v17314_v38  ;;  %v11957_v59 = vpop.f32.mrf.mxu0  ;;  %15105 = vmatprep.subr.bf16.mxu0 %v17315_v55  ;;  %v17338_v10 = vld [vmem:[#allocation2 + $0xd88] ss:$12 sps:$4 sm:$0xff]   ;;  %v17342_v4 = vld [vmem:[#allocation2 + $0x1130] ss:$12 sps:$4 sm:$0xff]   ;;  %v17343_v38 = vld [vmem:[#allocation2 + $0x1058] ss:$12 sps:$4 sm:$0xff]  }
 0x4a4   :  { %v11998_v46 = vpop.f32.mrf.mxu1  ;;  %15127 = vmatprep.subr.bf16.mxu1 %v17316_v43  ;;  %v17346_v55 = vld [vmem:[#allocation2 + $0x1118] ss:$12 sps:$4 sm:$0xff]   ;;  %v17347_v43 = vld [vmem:[#allocation2 + $0x1040] ss:$12 sps:$4 sm:$0xff]   ;;  %v17355_v59 = vld [vmem:[#allocation2 + $0x1010] ss:$12 sps:$4 sm:$0xff]  }
 0x4a5   :  { %v17348_v11 = vld [vmem:[#allocation2 + $0x11c0] ss:$12 sps:$4 sm:$0xff]   ;;  %v17356_v46 = vld [vmem:[#allocation2 + $0x1190] ss:$12 sps:$4 sm:$0xff]  }
 0x4a6   :  { %15106 = vmatpush3.bf16.msra.mxu0 %v17317_v37  ;;  %v17349_v15 = vld [vmem:[#allocation2 + $0xf80] ss:$12 sps:$4 sm:$0xff]   ;;  %v17353_v37 = vld [vmem:[#allocation2 + $0xf68] ss:$12 sps:$4 sm:$0xff]  }
 0x4a7   :  { %15128 = vmatpush3.bf16.msra.mxu1 %v17318_v54  ;;  %15107 = vmatprep.subr.bf16.mxu0 %v17319_v53  ;;  %v17350_v24 = vld [vmem:[#allocation2 + $0x1100] ss:$12 sps:$4 sm:$0xff]   ;;  %v17354_v54 = vld [vmem:[#allocation2 + $0x10e8] ss:$12 sps:$4 sm:$0xff]   ;;  %v17359_v53 = vld [vmem:[#allocation2 + $0xff8] ss:$12 sps:$4 sm:$0xff]  }
 0x4a8   :  { %15129 = vmatprep.subr.bf16.mxu1 %v17320_v13  ;;  %v17360_v13 = vld [vmem:[#allocation2 + $0x1178] ss:$12 sps:$4 sm:$0xff]  }
 0x4aa   :  { %15108 = vmatpush3.bf16.msra.mxu0 %v17321_v1  ;;  %v17361_v1 = vld [vmem:[#allocation2 + $0xf38] ss:$12 sps:$4 sm:$0xff]  }
 0x4ab   :  { %15130 = vmatpush3.bf16.msra.mxu1 %v17322_v22  ;;  %15109 = vmatprep.subr.bf16.mxu0 %v17323_v32  ;;  %v17362_v22 = vld [vmem:[#allocation2 + $0x10b8] ss:$12 sps:$4 sm:$0xff]   ;;  %v17363_v32 = vld [vmem:[#allocation2 + $0xfe0] ss:$12 sps:$4 sm:$0xff]  }
 0x4ac   :  { %15131 = vmatprep.subr.bf16.mxu1 %v17324_v2  ;;  %v17364_v2 = vld [vmem:[#allocation2 + $0x1160] ss:$12 sps:$4 sm:$0xff]  }
 0x4ae   :  { %15110 = vmatpush3.bf16.msra.mxu0 %v17325_v18  ;;  %v17365_v18 = vld [vmem:[#allocation2 + $0xf20] ss:$12 sps:$4 sm:$0xff]  }
 0x4af   :  { %15132 = vmatpush3.bf16.msra.mxu1 %v17326_v19  ;;  %15111 = vmatprep.subr.bf16.mxu0 %v17327_v16  ;;  %v17366_v19 = vld [vmem:[#allocation2 + $0x10a0] ss:$12 sps:$4 sm:$0xff]   ;;  %v17367_v16 = vld [vmem:[#allocation2 + $0xfc8] ss:$12 sps:$4 sm:$0xff]  }
 0x4b0   :  { %15133 = vmatprep.subr.bf16.mxu1 %v17328_v25  ;;  %v17368_v25 = vld [vmem:[#allocation2 + $0x1148] ss:$12 sps:$4 sm:$0xff]  }
 0x4b2   :  { %15112 = vmatpush3.bf16.msra.mxu0 %v17329_v5  ;;  %v17369_v5 = vld [vmem:[#allocation2 + $0xf08] ss:$12 sps:$4 sm:$0xff]  }
 0x4b3   :  { %15134 = vmatpush3.bf16.msra.mxu1 %v17330_v17  ;;  %15113 = vmatprep.subr.bf16.mxu0 %v17331_v23  ;;  %v17370_v17 = vld [vmem:[#allocation2 + $0x1088] ss:$12 sps:$4 sm:$0xff]   ;;  %v17371_v23 = vld [vmem:[#allocation2 + $0x1370] ss:$12 sps:$4 sm:$0xff]  }
 0x4b4   :  { %15135 = vmatprep.subr.bf16.mxu1 %v17332_v14  ;;  %v17372_v14 = vld [vmem:[#allocation2 + $0x14f0] ss:$12 sps:$4 sm:$0xff]  }
 0x4b6   :  { %15114 = vmatpush3.bf16.msra.mxu0 %v17333_v7  ;;  %v17373_v7 = vld [vmem:[#allocation2 + $0x12b0] ss:$12 sps:$4 sm:$0xff]  }
 0x4b7   :  { %15136 = vmatpush3.bf16.msra.mxu1 %v17334_v49  ;;  %15115 = vmatprep.subr.bf16.mxu0 %v17335_v26  ;;  %v17374_v49 = vld [vmem:[#allocation2 + $0x1430] ss:$12 sps:$4 sm:$0xff]   ;;  %v17375_v26 = vld [vmem:[#allocation2 + $0x1358] ss:$12 sps:$4 sm:$0xff]  }
 0x4b8   :  { %15137 = vmatprep.subr.bf16.mxu1 %v17336_v30  ;;  %v17376_v30 = vld [vmem:[#allocation2 + $0x14d8] ss:$12 sps:$4 sm:$0xff]  }
 0x4ba   :  { %15116 = vmatpush3.bf16.msra.mxu0 %v17337_v29 }
 0x4bb   :  { %15138 = vmatpush3.bf16.msra.mxu1 %v17338_v10  ;;  %15145 = vmatprep.subr.bf16.mxu0 %v17339_v35 }
 0x4bc   :  { %15167 = vmatprep.subr.bf16.mxu1 %v17340_v60  ;;  %v17377_v60 = vld [vmem:[#allocation2 + $0x1298] ss:$12 sps:$4 sm:$0xff]  }
 0x4bd   :  { %12435 = vmatmul.mubr.bf16.vlgmr.msra.gmra.mxu0 %v17910_v12  ;;  %v17351_v12 = vld [vmem:[#allocation2 + $0x1028] ss:$12 sps:$4 sm:$0xff]  }
 0x4be   :  { %12475 = vmatmul.mubr.bf16.vlgmr.msra.gmra.mxu1 %v17917_v27  ;;  %15146 = vmatpush3.bf16.msra.mxu0 %v17341_v0  ;;  %v17352_v27 = vld [vmem:[#allocation2 + $0x11a8] ss:$12 sps:$4 sm:$0xff]   ;;  %v17378_v0 = vld [vmem:[#allocation2 + $0x1418] ss:$12 sps:$4 sm:$0xff]  }
 0x4bf   :  { %15168 = vmatpush3.bf16.msra.mxu1 %v17342_v4  ;;  %15147 = vmatprep.subr.bf16.mxu0 %v17343_v38 }
 0x4c0   :  { %15169 = vmatprep.subr.bf16.mxu1 %v17344_v41  ;;  %12514 = vmatprep.mubr.bf16.mxu0 %v17913_v40  ;;  %v17357_v40 = vld [vmem:[#allocation2 + $0xf50] ss:$12 sps:$4 sm:$0xff]   ;;  %v17379_v41 = vld [vmem:[#allocation2 + $0x1340] ss:$12 sps:$4 sm:$0xff]  }
 0x4c1   :  { %12554 = vmatprep.mubr.bf16.mxu1 %v17921_v33  ;;  %v17358_v33 = vld [vmem:[#allocation2 + $0x10d0] ss:$12 sps:$4 sm:$0xff]  }
 0x4c2   :  { %15148 = vmatpush3.bf16.msra.mxu0 %v17345_v50  ;;  %v17380_v50 = vld [vmem:[#allocation2 + $0x14c0] ss:$12 sps:$4 sm:$0xff]  }
 0x4c3   :  { %15170 = vmatpush3.bf16.msra.mxu1 %v17346_v55  ;;  %15149 = vmatprep.subr.bf16.mxu0 %v17347_v43 }
 0x4c4   :  { %15171 = vmatprep.subr.bf16.mxu1 %v17348_v11  ;;  %v17381_v11 = vld [vmem:[#allocation2 + $0x1280] ss:$12 sps:$4 sm:$0xff]  }
 0x4c6   :  { %15150 = vmatpush3.bf16.msra.mxu0 %v17349_v15  ;;  %v17382_v15 = vld [vmem:[#allocation2 + $0x1400] ss:$12 sps:$4 sm:$0xff]  }
 0x4c7   :  { %15172 = vmatpush3.bf16.msra.mxu1 %v17350_v24  ;;  %15151 = vmatprep.subr.bf16.mxu0 %v17351_v12 }
 0x4c8   :  { %15173 = vmatprep.subr.bf16.mxu1 %v17352_v27  ;;  %v17383_v27 = vld [vmem:[#allocation2 + $0x1328] ss:$12 sps:$4 sm:$0xff]  }
 0x4ca   :  { %15152 = vmatpush3.bf16.msra.mxu0 %v17353_v37  ;;  %v17384_v37 = vld [vmem:[#allocation2 + $0x14a8] ss:$12 sps:$4 sm:$0xff]  }
 0x4cb   :  { %15174 = vmatpush3.bf16.msra.mxu1 %v17354_v54  ;;  %15153 = vmatprep.subr.bf16.mxu0 %v17355_v59  ;;  %v17387_v54 = vld [vmem:[#allocation2 + $0x1310] ss:$12 sps:$4 sm:$0xff]  }
 0x4cc   :  { %15175 = vmatprep.subr.bf16.mxu1 %v17356_v46  ;;  %v17388_v59 = vld [vmem:[#allocation2 + $0x1490] ss:$12 sps:$4 sm:$0xff]  }
 0x4cd   :  { %v17389_v46 = vld [vmem:[#allocation2 + $0x1250] ss:$12 sps:$4 sm:$0xff]  }
 0x4ce   :  { %15154 = vmatpush3.bf16.msra.mxu0 %v17357_v40  ;;  %v17390_v40 = vld [vmem:[#allocation2 + $0x13d0] ss:$12 sps:$4 sm:$0xff]  }
 0x4cf   :  { %15176 = vmatpush3.bf16.msra.mxu1 %v17358_v33  ;;  %15155 = vmatprep.subr.bf16.mxu0 %v17359_v53  ;;  %v17391_v33 = vld [vmem:[#allocation2 + $0x12f8] ss:$12 sps:$4 sm:$0xff]  }
 0x4d0   :  { %15177 = vmatprep.subr.bf16.mxu1 %v17360_v13  ;;  %v17392_v53 = vld [vmem:[#allocation2 + $0x1478] ss:$12 sps:$4 sm:$0xff]  }
 0x4d1   :  { %v17393_v13 = vld [vmem:[#allocation2 + $0x1238] ss:$12 sps:$4 sm:$0xff]  }
 0x4d2   :  { %15156 = vmatpush3.bf16.msra.mxu0 %v17361_v1  ;;  %v17394_v1 = vld [vmem:[#allocation2 + $0x13b8] ss:$12 sps:$4 sm:$0xff]  }
 0x4d3   :  { %15178 = vmatpush3.bf16.msra.mxu1 %v17362_v22  ;;  %15157 = vmatprep.subr.bf16.mxu0 %v17363_v32  ;;  %v17395_v22 = vld [vmem:[#allocation2 + $0x12e0] ss:$12 sps:$4 sm:$0xff]  }
 0x4d4   :  { %15179 = vmatprep.subr.bf16.mxu1 %v17364_v2  ;;  %v17396_v32 = vld [vmem:[#allocation2 + $0x1460] ss:$12 sps:$4 sm:$0xff]  }
 0x4d5   :  { %v17397_v2 = vld [vmem:[#allocation2 + $0x1220] ss:$12 sps:$4 sm:$0xff]  }
 0x4d6   :  { %15158 = vmatpush3.bf16.msra.mxu0 %v17365_v18  ;;  %v17398_v18 = vld [vmem:[#allocation2 + $0x13a0] ss:$12 sps:$4 sm:$0xff]  }
 0x4d7   :  { %15180 = vmatpush3.bf16.msra.mxu1 %v17366_v19  ;;  %15159 = vmatprep.subr.bf16.mxu0 %v17367_v16  ;;  %v17399_v19 = vld [vmem:[#allocation2 + $0x12c8] ss:$12 sps:$4 sm:$0xff]  }
 0x4d8   :  { %15181 = vmatprep.subr.bf16.mxu1 %v17368_v25  ;;  %v17400_v16 = vld [vmem:[#allocation2 + $0x1448] ss:$12 sps:$4 sm:$0xff]  }
 0x4d9   :  { %v17401_v25 = vld [vmem:[#allocation2 + $0x1208] ss:$12 sps:$4 sm:$0xff]  }
 0x4da   :  { %15160 = vmatpush3.bf16.msra.mxu0 %v17369_v5  ;;  %v17402_v5 = vld [vmem:[#allocation2 + $0x1388] ss:$12 sps:$4 sm:$0xff]  }
 0x4db   :  { %15182 = vmatpush3.bf16.msra.mxu1 %v17370_v17  ;;  %15189 = vmatprep.subr.bf16.mxu0 %v17371_v23  ;;  %v17403_v17 = vld [vmem:[#allocation2 + $0x1670] ss:$12 sps:$4 sm:$0xff]  }
 0x4dc   :  { %15211 = vmatprep.subr.bf16.mxu1 %v17372_v14  ;;  %v17404_v23 = vld [vmem:[#allocation2 + $0x17f0] ss:$12 sps:$4 sm:$0xff]  }
 0x4dd   :  { %v12034_v29 = vpop.f32.mrf.mxu0  ;;  %12515 = vmatmul.mubr.bf16.vlgmr.msra.gmra.mxu0 %v17946_v20  ;;  %v17405_v14 = vld [vmem:[#allocation2 + $0x15b0] ss:$12 sps:$4 sm:$0xff]  }
 0x4de   :  { %v12075_v10 = vpop.f32.mrf.mxu1  ;;  %12555 = vmatmul.mubr.bf16.vlgmr.msra.gmra.mxu1 %v17953_v36  ;;  %v12035_v35 = vadd.f32 %v12034_v29, %v18312_v52  ;;  %15190 = vmatpush3.bf16.msra.mxu0 %v17373_v7  ;;  %v17406_v7 = vld [vmem:[#allocation2 + $0x1730] ss:$12 sps:$4 sm:$0xff]  }
 0x4df   :  { %15212 = vmatpush3.bf16.msra.mxu1 %v17374_v49  ;;  %v12036_v4 = vpop.f32.mrf.mxu0  ;;  %15191 = vmatprep.subr.bf16.mxu0 %v17375_v26  ;;  %v2109_v49 = vsub.s32 2, %v17768_v42  ;;  %v17407_v26 = vld [vmem:[#allocation2 + $0x1658] ss:$12 sps:$4 sm:$0xff]  }
 0x4e0   :  { %v12077_v38 = vpop.f32.mrf.mxu1  ;;  %15213 = vmatprep.subr.bf16.mxu1 %v17376_v30  ;;  %v18326_v55 = vadd.f32 %v12075_v10, %v12035_v35  ;;  %v12037_v43 = vadd.f32 %v12036_v4, %v18317_v45  ;;  %12594 = vmatprep.mubr.bf16.mxu0 %v17949_v34  ;;  %v17385_v34 = vld [vmem:[#allocation2 + $0x1268] ss:$12 sps:$4 sm:$0xff]   ;;  %v17408_v30 = vld [vmem:[#allocation2 + $0x17d8] ss:$12 sps:$4 sm:$0xff]   ;;  %v17691_v35 = vld [vmem:[#allocation4] sm:$0x7] }
 0x4e1   :  { %12634 = vmatprep.mubr.bf16.mxu1 %v17957_v44  ;;  %v12038_v20 = vpop.f32.mrf.mxu0  ;;  %v17386_v44 = vld [vmem:[#allocation2 + $0x13e8] ss:$12 sps:$4 sm:$0xff]   ;;  %v17410_v4 = vld [vmem:[#allocation2 + $0x1718] ss:$12 sps:$4 sm:$0xff]  }
 0x4e2   :  { %v12079_v36 = vpop.f32.mrf.mxu1  ;;  %v18331_v52 = vadd.f32 %v12077_v38, %v12037_v43  ;;  %15192 = vmatpush3.bf16.msra.mxu0 %v17377_v60  ;;  %v2110_v60 = vrot.slane %v17691_v35, %v2109_v49  ;;  %v17412_v43 = vld [vmem:[#allocation2 + $0x17c0] ss:$12 sps:$4 sm:$0xff]   ;;  %v17439_v49 = vld [vmem:[#allocation2 + $0x1958] ss:$12 sps:$4 sm:$0xff]  }
 0x4e3   :  { %15214 = vmatpush3.bf16.msra.mxu1 %v17378_v0  ;;  %v12039_v24 = vpop.f32.mrf.mxu0  ;;  %15193 = vmatprep.subr.bf16.mxu0 %v17379_v41  ;;  %v17409_v0 = vld [vmem:[#allocation2 + $0x1598] ss:$12 sps:$4 sm:$0xff]  }
 0x4e4   :  { %v12080_v12 = vpop.f32.mrf.mxu1  ;;  %15215 = vmatprep.subr.bf16.mxu1 %v17380_v50  ;;  %v13365_v45 = vcombine.low %v18326_v55, %v18331_v52  ;;  %v17411_v50 = vld [vmem:[#allocation2 + $0x1640] ss:$12 sps:$4 sm:$0xff]   ;;  %v17442_v35 = vld [vmem:[#allocation2 + $0x1a18] ss:$12 sps:$4 sm:$0xff]  }
 0x4e5   :  { %v17414_v24 = vld [vmem:[#allocation2 + $0x1700] ss:$12 sps:$4 sm:$0xff]  }
 0x4e6   :  { %15194 = vmatpush3.bf16.msra.mxu0 %v17381_v11 }
 0x4e7   :  { %15216 = vmatpush3.bf16.msra.mxu1 %v17382_v15  ;;  %15195 = vmatprep.subr.bf16.mxu0 %v17383_v27  ;;  %v17413_v15 = vld [vmem:[#allocation2 + $0x1580] ss:$12 sps:$4 sm:$0xff]  }
 0x4e8   :  { %15217 = vmatprep.subr.bf16.mxu1 %v17384_v37  ;;  %v17415_v37 = vld [vmem:[#allocation2 + $0x1628] ss:$12 sps:$4 sm:$0xff]  }
 0x4ea   :  { %15196 = vmatpush3.bf16.msra.mxu0 %v17385_v34  ;;  %v17416_v34 = vld [vmem:[#allocation2 + $0x17a8] ss:$12 sps:$4 sm:$0xff]  }
 0x4eb   :  { %15218 = vmatpush3.bf16.msra.mxu1 %v17386_v44  ;;  %15197 = vmatprep.subr.bf16.mxu0 %v17387_v54  ;;  %v17418_v54 = vld [vmem:[#allocation2 + $0x16e8] ss:$12 sps:$4 sm:$0xff]  }
 0x4ec   :  { %15219 = vmatprep.subr.bf16.mxu1 %v17388_v59  ;;  %v17420_v59 = vld [vmem:[#allocation2 + $0x1790] ss:$12 sps:$4 sm:$0xff]  }
 0x4ee   :  { %15198 = vmatpush3.bf16.msra.mxu0 %v17389_v46  ;;  %v17421_v46 = vld [vmem:[#allocation2 + $0x1550] ss:$12 sps:$4 sm:$0xff]  }
 0x4ef   :  { %15220 = vmatpush3.bf16.msra.mxu1 %v17390_v40  ;;  %15199 = vmatprep.subr.bf16.mxu0 %v17391_v33  ;;  %v17422_v40 = vld [vmem:[#allocation2 + $0x16d0] ss:$12 sps:$4 sm:$0xff]   ;;  %v17423_v33 = vld [vmem:[#allocation2 + $0x15f8] ss:$12 sps:$4 sm:$0xff]  }
 0x4f0   :  { %15221 = vmatprep.subr.bf16.mxu1 %v17392_v53  ;;  %v17424_v53 = vld [vmem:[#allocation2 + $0x1778] ss:$12 sps:$4 sm:$0xff]  }
 0x4f2   :  { %15200 = vmatpush3.bf16.msra.mxu0 %v17393_v13  ;;  %v17425_v13 = vld [vmem:[#allocation2 + $0x1538] ss:$12 sps:$4 sm:$0xff]  }
 0x4f3   :  { %15222 = vmatpush3.bf16.msra.mxu1 %v17394_v1  ;;  %15201 = vmatprep.subr.bf16.mxu0 %v17395_v22  ;;  %v17426_v1 = vld [vmem:[#allocation2 + $0x16b8] ss:$12 sps:$4 sm:$0xff]   ;;  %v17427_v22 = vld [vmem:[#allocation2 + $0x15e0] ss:$12 sps:$4 sm:$0xff]  }
 0x4f4   :  { %15223 = vmatprep.subr.bf16.mxu1 %v17396_v32  ;;  %v17428_v32 = vld [vmem:[#allocation2 + $0x1760] ss:$12 sps:$4 sm:$0xff]  }
 0x4f6   :  { %15202 = vmatpush3.bf16.msra.mxu0 %v17397_v2  ;;  %v17429_v2 = vld [vmem:[#allocation2 + $0x1520] ss:$12 sps:$4 sm:$0xff]  }
 0x4f7   :  { %15224 = vmatpush3.bf16.msra.mxu1 %v17398_v18  ;;  %15203 = vmatprep.subr.bf16.mxu0 %v17399_v19  ;;  %v17430_v18 = vld [vmem:[#allocation2 + $0x16a0] ss:$12 sps:$4 sm:$0xff]   ;;  %v17431_v19 = vld [vmem:[#allocation2 + $0x15c8] ss:$12 sps:$4 sm:$0xff]  }
 0x4f8   :  { %15225 = vmatprep.subr.bf16.mxu1 %v17400_v16  ;;  %v17432_v16 = vld [vmem:[#allocation2 + $0x1748] ss:$12 sps:$4 sm:$0xff]  }
 0x4fa   :  { %15204 = vmatpush3.bf16.msra.mxu0 %v17401_v25  ;;  %v17433_v25 = vld [vmem:[#allocation2 + $0x1508] ss:$12 sps:$4 sm:$0xff]  }
 0x4fb   :  { %15226 = vmatpush3.bf16.msra.mxu1 %v17402_v5  ;;  %15233 = vmatprep.subr.bf16.mxu0 %v17403_v17  ;;  %v17434_v5 = vld [vmem:[#allocation2 + $0x1688] ss:$12 sps:$4 sm:$0xff]   ;;  %v17435_v17 = vld [vmem:[#allocation2 + $0x1970] ss:$12 sps:$4 sm:$0xff]  }
 0x4fc   :  { %15255 = vmatprep.subr.bf16.mxu1 %v17404_v23  ;;  %v17436_v23 = vld [vmem:[#allocation2 + $0x1af0] ss:$12 sps:$4 sm:$0xff]  }
 0x4fd   :  { %v14941_v29 = vpop.f32.mrf.mxu0  ;;  %12595 = vmatmul.mubr.bf16.vlgmr.msra.gmra.mxu0 %v17978_v48 }
 0x4fe   :  { %v14963_v10 = vpop.f32.mrf.mxu1  ;;  %12635 = vmatmul.mubr.bf16.vlgmr.msra.gmra.mxu1 %v17985_v62  ;;  %15234 = vmatpush3.bf16.msra.mxu0 %v17405_v14  ;;  %v17437_v14 = vld [vmem:[#allocation2 + $0x18b0] ss:$12 sps:$4 sm:$0xff]  }
 0x4ff   :  { %15256 = vmatpush3.bf16.msra.mxu1 %v17406_v7  ;;  %v14942_v38 = vpop.f32.mrf.mxu0  ;;  %15235 = vmatprep.subr.bf16.mxu0 %v17407_v26  ;;  %v17438_v7 = vld [vmem:[#allocation2 + $0x1a30] ss:$12 sps:$4 sm:$0xff]   ;;  %v17440_v26 = vld [vmem:[#allocation2 + $0x1ad8] ss:$12 sps:$4 sm:$0xff]  }
 0x500   :  { %v14964_v41 = vpop.f32.mrf.mxu1  ;;  %15257 = vmatprep.subr.bf16.mxu1 %v17408_v30  ;;  %v14943_v20 = vadd.f32 %v14942_v38, %v14941_v29  ;;  %12674 = vmatprep.mubr.bf16.mxu0 %v17981_v56  ;;  %v17417_v56 = vld [vmem:[#allocation2 + $0x1568] ss:$12 sps:$4 sm:$0xff]   ;;  %v17444_v38 = vld [vmem:[#allocation2 + $0x1ac0] ss:$12 sps:$4 sm:$0xff]  }
 0x501   :  { %v14965_v36 = vadd.f32 %v14964_v41, %v14963_v10  ;;  %12714 = vmatprep.mubr.bf16.mxu1 %v17989_v8  ;;  %v14944_v48 = vpop.f32.mrf.mxu0  ;;  %v17419_v8 = vld [vmem:[#allocation2 + $0x1610] ss:$12 sps:$4 sm:$0xff]   ;;  %v17441_v10 = vld [vmem:[#allocation2 + $0x1898] ss:$12 sps:$4 sm:$0xff]  }
 0x502   :  { %v14966_v62 = vpop.f32.mrf.mxu1  ;;  %v12117_v11 = vadd.f32 %v14943_v20, %v2110_v60  ;;  %15236 = vmatpush3.bf16.msra.mxu0 %v17409_v0  ;;  %v17445_v20 = vld [vmem:[#allocation2 + $0x1880] ss:$12 sps:$4 sm:$0xff]  }
 0x503   :  { %15258 = vmatpush3.bf16.msra.mxu1 %v17410_v4  ;;  %v14945_v12 = vpop.f32.mrf.mxu0  ;;  %15237 = vmatprep.subr.bf16.mxu0 %v17411_v50  ;;  %v17443_v4 = vld [vmem:[#allocation2 + $0x1940] ss:$12 sps:$4 sm:$0xff]  }
 0x504   :  { %v14967_v27 = vpop.f32.mrf.mxu1  ;;  %15259 = vmatprep.subr.bf16.mxu1 %v17412_v43  ;;  %v18340_v44 = vadd.f32 %v14965_v36, %v12117_v11  ;;  %v17446_v36 = vld [vmem:[#allocation2 + $0x1a00] ss:$12 sps:$4 sm:$0xff]   ;;  %v17447_v11 = vld [vmem:[#allocation2 + $0x1928] ss:$12 sps:$4 sm:$0xff]   ;;  %v17451_v12 = vld [vmem:[#allocation2 + $0x1910] ss:$12 sps:$4 sm:$0xff]  }
 0x505   :  { %v17452_v27 = vld [vmem:[#allocation2 + $0x1a90] ss:$12 sps:$4 sm:$0xff]  }
 0x506   :  { %15238 = vmatpush3.bf16.msra.mxu0 %v17413_v15  ;;  %v17448_v15 = vld [vmem:[#allocation2 + $0x1aa8] ss:$12 sps:$4 sm:$0xff]  }
 0x507   :  { %15260 = vmatpush3.bf16.msra.mxu1 %v17414_v24  ;;  %15239 = vmatprep.subr.bf16.mxu0 %v17415_v37  ;;  %v17453_v37 = vld [vmem:[#allocation2 + $0x1850] ss:$12 sps:$4 sm:$0xff]  }
 0x508   :  { %15261 = vmatprep.subr.bf16.mxu1 %v17416_v34  ;;  %v17454_v34 = vld [vmem:[#allocation2 + $0x19d0] ss:$12 sps:$4 sm:$0xff]  }
 0x50a   :  { %15240 = vmatpush3.bf16.msra.mxu0 %v17417_v56  ;;  %v17456_v56 = vld [vmem:[#allocation2 + $0x1a78] ss:$12 sps:$4 sm:$0xff]  }
 0x50b   :  { %15262 = vmatpush3.bf16.msra.mxu1 %v17418_v54  ;;  %15241 = vmatprep.subr.bf16.mxu0 %v17419_v8  ;;  %v17457_v54 = vld [vmem:[#allocation2 + $0x1838] ss:$12 sps:$4 sm:$0xff]  }
 0x50c   :  { %15263 = vmatprep.subr.bf16.mxu1 %v17420_v59  ;;  %v17458_v8 = vld [vmem:[#allocation2 + $0x19b8] ss:$12 sps:$4 sm:$0xff]   ;;  %v17459_v59 = vld [vmem:[#allocation2 + $0x18e0] ss:$12 sps:$4 sm:$0xff]  }
 0x50e   :  { %15242 = vmatpush3.bf16.msra.mxu0 %v17421_v46  ;;  %v17460_v46 = vld [vmem:[#allocation2 + $0x1a60] ss:$12 sps:$4 sm:$0xff]  }
 0x50f   :  { %15264 = vmatpush3.bf16.msra.mxu1 %v17422_v40  ;;  %15243 = vmatprep.subr.bf16.mxu0 %v17423_v33  ;;  %v17461_v40 = vld [vmem:[#allocation2 + $0x1820] ss:$12 sps:$4 sm:$0xff]  }
 0x510   :  { %15265 = vmatprep.subr.bf16.mxu1 %v17424_v53  ;;  %v17462_v33 = vld [vmem:[#allocation2 + $0x19a0] ss:$12 sps:$4 sm:$0xff]   ;;  %v17463_v53 = vld [vmem:[#allocation2 + $0x18c8] ss:$12 sps:$4 sm:$0xff]  }
 0x512   :  { %15244 = vmatpush3.bf16.msra.mxu0 %v17425_v13  ;;  %v17464_v13 = vld [vmem:[#allocation2 + $0x1a48] ss:$12 sps:$4 sm:$0xff]  }
 0x513   :  { %15266 = vmatpush3.bf16.msra.mxu1 %v17426_v1  ;;  %15245 = vmatprep.subr.bf16.mxu0 %v17427_v22  ;;  %v17465_v1 = vld [vmem:[#allocation2 + $0x1808] ss:$12 sps:$4 sm:$0xff]  }
 0x514   :  { %15267 = vmatprep.subr.bf16.mxu1 %v17428_v32  ;;  %v17466_v22 = vld [vmem:[#allocation2 + $0x1988] ss:$12 sps:$4 sm:$0xff]   ;;  %v17467_v32 = vld [vmem:[#allocation2 + $0x1c70] ss:$12 sps:$4 sm:$0xff]  }
 0x516   :  { %15246 = vmatpush3.bf16.msra.mxu0 %v17429_v2  ;;  %v17468_v2 = vld [vmem:[#allocation2 + $0x1df0] ss:$12 sps:$4 sm:$0xff]  }
 0x517   :  { %15268 = vmatpush3.bf16.msra.mxu1 %v17430_v18  ;;  %15247 = vmatprep.subr.bf16.mxu0 %v17431_v19  ;;  %v17469_v18 = vld [vmem:[#allocation2 + $0x1bb0] ss:$12 sps:$4 sm:$0xff]  }
 0x518   :  { %15269 = vmatprep.subr.bf16.mxu1 %v17432_v16  ;;  %v17470_v19 = vld [vmem:[#allocation2 + $0x1d30] ss:$12 sps:$4 sm:$0xff]   ;;  %v17471_v16 = vld [vmem:[#allocation2 + $0x1c58] ss:$12 sps:$4 sm:$0xff]  }
 0x51a   :  { %15248 = vmatpush3.bf16.msra.mxu0 %v17433_v25  ;;  %v17472_v25 = vld [vmem:[#allocation2 + $0x1dd8] ss:$12 sps:$4 sm:$0xff]  }
 0x51b   :  { %15270 = vmatpush3.bf16.msra.mxu1 %v17434_v5  ;;  %15277 = vmatprep.subr.bf16.mxu0 %v17435_v17 }
 0x51c   :  { %15299 = vmatprep.subr.bf16.mxu1 %v17436_v23  ;;  %v17473_v23 = vld [vmem:[#allocation2 + $0x1b98] ss:$12 sps:$4 sm:$0xff]  }
 0x51d   :  { %v14985_v30 = vpop.f32.mrf.mxu0  ;;  %12675 = vmatmul.mubr.bf16.vlgmr.msra.gmra.mxu0 %v18014_v28 }
 0x51e   :  { %v15007_v29 = vpop.f32.mrf.mxu1  ;;  %12715 = vmatmul.mubr.bf16.vlgmr.msra.gmra.mxu1 %v18021_v6  ;;  %15278 = vmatpush3.bf16.msra.mxu0 %v17437_v14  ;;  %v17474_v14 = vld [vmem:[#allocation2 + $0x1d18] ss:$12 sps:$4 sm:$0xff]  }
 0x51f   :  { %15300 = vmatpush3.bf16.msra.mxu1 %v17438_v7  ;;  %v14986_v60 = vpop.f32.mrf.mxu0  ;;  %15279 = vmatprep.subr.bf16.mxu0 %v17439_v49 }
 0x520   :  { %v15008_v0 = vpop.f32.mrf.mxu1  ;;  %15301 = vmatprep.subr.bf16.mxu1 %v17440_v26  ;;  %v14987_v41 = vadd.f32 %v14986_v60, %v14985_v30  ;;  %12754 = vmatprep.mubr.bf16.mxu0 %v18017_v63  ;;  %v17449_v63 = vld [vmem:[#allocation2 + $0x1868] ss:$12 sps:$4 sm:$0xff]   ;;  %v17475_v26 = vld [vmem:[#allocation2 + $0x1c40] ss:$12 sps:$4 sm:$0xff]  }
 0x521   :  { %v15009_v50 = vadd.f32 %v15008_v0, %v15007_v29  ;;  %12794 = vmatprep.mubr.bf16.mxu1 %v18025_v47  ;;  %v14988_v43 = vpop.f32.mrf.mxu0  ;;  %v17450_v47 = vld [vmem:[#allocation2 + $0x19e8] ss:$12 sps:$4 sm:$0xff]   ;;  %v17476_v30 = vld [vmem:[#allocation2 + $0x1dc0] ss:$12 sps:$4 sm:$0xff]  }
 0x522   :  { %v15010_v28 = vpop.f32.mrf.mxu1  ;;  %v12197_v6 = vadd.f32 %v14987_v41, %v18340_v44  ;;  %15280 = vmatpush3.bf16.msra.mxu0 %v17441_v10  ;;  %v17455_v44 = vld [vmem:[#allocation2 + $0x18f8] ss:$12 sps:$4 sm:$0xff]   ;;  %v17477_v0 = vld [vmem:[#allocation2 + $0x1b80] ss:$12 sps:$4 sm:$0xff]   ;;  %v17480_v43 = vld [vmem:[#allocation2 + $0x1da8] ss:$12 sps:$4 sm:$0xff]  }
 0x523   :  { %15302 = vmatpush3.bf16.msra.mxu1 %v17442_v35  ;;  %v14989_v48 = vpop.f32.mrf.mxu0  ;;  %15281 = vmatprep.subr.bf16.mxu0 %v17443_v4  ;;  %v18451_v35 = vld [vmem:[#allocation8_spill] sm:$0xff]  ;;  %v17478_v4 = vld [vmem:[#allocation2 + $0x1d00] ss:$12 sps:$4 sm:$0xff]  }
 0x524   :  { %v15011_v62 = vpop.f32.mrf.mxu1  ;;  %15303 = vmatprep.subr.bf16.mxu1 %v17444_v38  ;;  %v18347_v24 = vadd.f32 %v15009_v50, %v12197_v6  ;;  %v17479_v50 = vld [vmem:[#allocation2 + $0x1c28] ss:$12 sps:$4 sm:$0xff]   ;;  %v17485_v48 = vld [vmem:[#allocation2 + $0x1b50] ss:$12 sps:$4 sm:$0xff]  }
 0x525   :  { %v17482_v6 = vld [vmem:[#allocation2 + $0x1ce8] ss:$12 sps:$4 sm:$0xff]   ;;  %v17486_v62 = vld [vmem:[#allocation2 + $0x1cd0] ss:$12 sps:$4 sm:$0xff]  }
 0x526   :  { %15282 = vmatpush3.bf16.msra.mxu0 %v17445_v20  ;;  %v17483_v20 = vld [vmem:[#allocation2 + $0x1c10] ss:$12 sps:$4 sm:$0xff]  }
 0x527   :  { %15304 = vmatpush3.bf16.msra.mxu1 %v17446_v36  ;;  %15283 = vmatprep.subr.bf16.mxu0 %v17447_v11  ;;  %v17484_v36 = vld [vmem:[#allocation2 + $0x1d90] ss:$12 sps:$4 sm:$0xff]   ;;  %v17487_v11 = vld [vmem:[#allocation2 + $0x1bf8] ss:$12 sps:$4 sm:$0xff]  }
 0x528   :  { %15305 = vmatprep.subr.bf16.mxu1 %v17448_v15  ;;  %v17488_v15 = vld [vmem:[#allocation2 + $0x1d78] ss:$12 sps:$4 sm:$0xff]  }
 0x52a   :  { %15284 = vmatpush3.bf16.msra.mxu0 %v17449_v63  ;;  %v17490_v63 = vld [vmem:[#allocation2 + $0x1cb8] ss:$12 sps:$4 sm:$0xff]  }
 0x52b   :  { %15306 = vmatpush3.bf16.msra.mxu1 %v17450_v47  ;;  %15285 = vmatprep.subr.bf16.mxu0 %v17451_v12  ;;  %v17491_v47 = vld [vmem:[#allocation2 + $0x1be0] ss:$12 sps:$4 sm:$0xff]  }
 0x52c   :  { %15307 = vmatprep.subr.bf16.mxu1 %v17452_v27  ;;  %v17492_v12 = vld [vmem:[#allocation2 + $0x1d60] ss:$12 sps:$4 sm:$0xff]  }
 0x52d   :  { %v17493_v27 = vld [vmem:[#allocation2 + $0x1b20] ss:$12 sps:$4 sm:$0xff]  }
 0x52e   :  { %15286 = vmatpush3.bf16.msra.mxu0 %v17453_v37  ;;  %v17494_v37 = vld [vmem:[#allocation2 + $0x1ca0] ss:$12 sps:$4 sm:$0xff]  }
 0x52f   :  { %15308 = vmatpush3.bf16.msra.mxu1 %v17454_v34  ;;  %15287 = vmatprep.subr.bf16.mxu0 %v17455_v44  ;;  %v17495_v34 = vld [vmem:[#allocation2 + $0x1bc8] ss:$12 sps:$4 sm:$0xff]  }
 0x530   :  { %15309 = vmatprep.subr.bf16.mxu1 %v17456_v56  ;;  %v17496_v44 = vld [vmem:[#allocation2 + $0x1d48] ss:$12 sps:$4 sm:$0xff]  }
 0x531   :  { %v17497_v56 = vld [vmem:[#allocation2 + $0x1b08] ss:$12 sps:$4 sm:$0xff]  }
 0x532   :  { %15288 = vmatpush3.bf16.msra.mxu0 %v17457_v54  ;;  %v17498_v54 = vld [vmem:[#allocation2 + $0x1c88] ss:$12 sps:$4 sm:$0xff]  }
 0x533   :  { %15310 = vmatpush3.bf16.msra.mxu1 %v17458_v8  ;;  %15289 = vmatprep.subr.bf16.mxu0 %v17459_v59  ;;  %v17499_v8 = vld [vmem:[#allocation2 + $0x1f70] ss:$12 sps:$4 sm:$0xff]  }
 0x534   :  { %15311 = vmatprep.subr.bf16.mxu1 %v17460_v46  ;;  %v17500_v59 = vld [vmem:[#allocation2 + $0x20f0] ss:$12 sps:$4 sm:$0xff]  }
 0x535   :  { %v17501_v46 = vld [vmem:[#allocation2 + $0x1eb0] ss:$12 sps:$4 sm:$0xff]  }
 0x536   :  { %15290 = vmatpush3.bf16.msra.mxu0 %v17461_v40  ;;  %v17502_v40 = vld [vmem:[#allocation2 + $0x2030] ss:$12 sps:$4 sm:$0xff]  }
 0x537   :  { %15312 = vmatpush3.bf16.msra.mxu1 %v17462_v33  ;;  %15291 = vmatprep.subr.bf16.mxu0 %v17463_v53  ;;  %v17503_v33 = vld [vmem:[#allocation2 + $0x1f58] ss:$12 sps:$4 sm:$0xff]  }
 0x538   :  { %15313 = vmatprep.subr.bf16.mxu1 %v17464_v13  ;;  %v17504_v53 = vld [vmem:[#allocation2 + $0x20d8] ss:$12 sps:$4 sm:$0xff]  }
 0x53a   :  { %15292 = vmatpush3.bf16.msra.mxu0 %v17465_v1 }
 0x53b   :  { %15314 = vmatpush3.bf16.msra.mxu1 %v17466_v22  ;;  %15321 = vmatprep.subr.bf16.mxu0 %v17467_v32  ;;  %v18452_v22 = vld [vmem:[#allocation9_spill] sm:$0xff]  ;;  %v18453_v32 = vld [vmem:[#allocation11_spill] sm:$0xff] }
 0x53c   :  { %15343 = vmatprep.subr.bf16.mxu1 %v17468_v2  ;;  %v17505_v2 = vld [vmem:[#allocation2 + $0x1e98] ss:$12 sps:$4 sm:$0xff]  }
 0x53d   :  { %v15029_v5 = vpop.f32.mrf.mxu0  ;;  %12755 = vmatmul.mubr.bf16.vlgmr.msra.gmra.mxu0 %v18046_v39 }
 0x53e   :  { %v15051_v17 = vpop.f32.mrf.mxu1  ;;  %12795 = vmatmul.mubr.bf16.vlgmr.msra.gmra.mxu1 %v18053_v61  ;;  %15322 = vmatpush3.bf16.msra.mxu0 %v17469_v18  ;;  %v17506_v18 = vld [vmem:[#allocation2 + $0x2018] ss:$12 sps:$4 sm:$0xff]  }
 0x53f   :  { %15344 = vmatpush3.bf16.msra.mxu1 %v17470_v19  ;;  %v15030_v7 = vpop.f32.mrf.mxu0  ;;  %15323 = vmatprep.subr.bf16.mxu0 %v17471_v16 }
 0x540   :  { %v15052_v49 = vpop.f32.mrf.mxu1  ;;  %15345 = vmatprep.subr.bf16.mxu1 %v17472_v25  ;;  %v15031_v29 = vadd.f32 %v15030_v7, %v15029_v5  ;;  %12834 = vmatprep.mubr.bf16.mxu0 %v18049_v58  ;;  %v17481_v58 = vld [vmem:[#allocation2 + $0x1b68] ss:$12 sps:$4 sm:$0xff]   ;;  %v17507_v25 = vld [vmem:[#allocation2 + $0x1f40] ss:$12 sps:$4 sm:$0xff]  }
 0x541   :  { %v15053_v10 = vadd.f32 %v15052_v49, %v15051_v17  ;;  %12874 = vmatprep.mubr.bf16.mxu1 %v18451_v35  ;;  %v15032_v60 = vpop.f32.mrf.mxu0  ;;  %v17508_v5 = vld [vmem:[#allocation2 + $0x20c0] ss:$12 sps:$4 sm:$0xff]   ;;  %v18455_v7 = vld [vmem:[#allocation12_spill] sm:$0xff] }
 0x542   :  { %v15054_v39 = vpop.f32.mrf.mxu1  ;;  %v12277_v61 = vadd.f32 %v15031_v29, %v18347_v24  ;;  %15324 = vmatpush3.bf16.msra.mxu0 %v17473_v23  ;;  %v17489_v24 = vld [vmem:[#allocation2 + $0x1b38] ss:$12 sps:$4 sm:$0xff]   ;;  %v17509_v29 = vld [vmem:[#allocation2 + $0x1e80] ss:$12 sps:$4 sm:$0xff]  }
 0x543   :  { %15346 = vmatpush3.bf16.msra.mxu1 %v17474_v14  ;;  %v15033_v38 = vpop.f32.mrf.mxu0  ;;  %15325 = vmatprep.subr.bf16.mxu0 %v17475_v26  ;;  %v18454_v14 = vld [vmem:[#allocation10_spill] sm:$0xff] }
 0x544   :  { %v15055_v41 = vpop.f32.mrf.mxu1  ;;  %15347 = vmatprep.subr.bf16.mxu1 %v17476_v30  ;;  %v18354_v28 = vadd.f32 %v15053_v10, %v12277_v61  ;;  %v17510_v10 = vld [vmem:[#allocation2 + $0x2000] ss:$12 sps:$4 sm:$0xff]   ;;  %v17511_v39 = vld [vmem:[#allocation2 + $0x1f28] ss:$12 sps:$4 sm:$0xff]  }
 0x545   :  { %v17512_v61 = vld [vmem:[#allocation2 + $0x20a8] ss:$12 sps:$4 sm:$0xff]   ;;  %v17515_v41 = vld [vmem:[#allocation2 + $0x1f10] ss:$12 sps:$4 sm:$0xff]  }
 0x546   :  { %15326 = vmatpush3.bf16.msra.mxu0 %v17477_v0  ;;  %v17514_v38 = vld [vmem:[#allocation2 + $0x1fe8] ss:$12 sps:$4 sm:$0xff]  }
 0x547   :  { %15348 = vmatpush3.bf16.msra.mxu1 %v17478_v4  ;;  %15327 = vmatprep.subr.bf16.mxu0 %v17479_v50  ;;  %v17513_v4 = vld [vmem:[#allocation2 + $0x1e68] ss:$12 sps:$4 sm:$0xff]   ;;  %v17516_v50 = vld [vmem:[#allocation2 + $0x2090] ss:$12 sps:$4 sm:$0xff]  }
 0x548   :  { %15349 = vmatprep.subr.bf16.mxu1 %v17480_v43  ;;  %v17517_v43 = vld [vmem:[#allocation2 + $0x1e50] ss:$12 sps:$4 sm:$0xff]  }
 0x54a   :  { %15328 = vmatpush3.bf16.msra.mxu0 %v17481_v58  ;;  %v17519_v58 = vld [vmem:[#allocation2 + $0x1ef8] ss:$12 sps:$4 sm:$0xff]  }
 0x54b   :  { %15350 = vmatpush3.bf16.msra.mxu1 %v17482_v6  ;;  %15329 = vmatprep.subr.bf16.mxu0 %v17483_v20  ;;  %v17520_v6 = vld [vmem:[#allocation2 + $0x2078] ss:$12 sps:$4 sm:$0xff]  }
 0x54c   :  { %15351 = vmatprep.subr.bf16.mxu1 %v17484_v36  ;;  %v17521_v20 = vld [vmem:[#allocation2 + $0x1e38] ss:$12 sps:$4 sm:$0xff]  }
 0x54d   :  { %v17522_v36 = vld [vmem:[#allocation2 + $0x1fb8] ss:$12 sps:$4 sm:$0xff]  }
 0x54e   :  { %15330 = vmatpush3.bf16.msra.mxu0 %v17485_v48  ;;  %v17523_v48 = vld [vmem:[#allocation2 + $0x1ee0] ss:$12 sps:$4 sm:$0xff]  }
 0x54f   :  { %15352 = vmatpush3.bf16.msra.mxu1 %v17486_v62  ;;  %15331 = vmatprep.subr.bf16.mxu0 %v17487_v11  ;;  %v17524_v62 = vld [vmem:[#allocation2 + $0x2060] ss:$12 sps:$4 sm:$0xff]  }
 0x550   :  { %15353 = vmatprep.subr.bf16.mxu1 %v17488_v15  ;;  %v17525_v11 = vld [vmem:[#allocation2 + $0x1e20] ss:$12 sps:$4 sm:$0xff]  }
 0x551   :  { %v17526_v15 = vld [vmem:[#allocation2 + $0x1fa0] ss:$12 sps:$4 sm:$0xff]  }
 0x552   :  { %15332 = vmatpush3.bf16.msra.mxu0 %v17489_v24  ;;  %v17527_v24 = vld [vmem:[#allocation2 + $0x1ec8] ss:$12 sps:$4 sm:$0xff]  }
 0x553   :  { %15354 = vmatpush3.bf16.msra.mxu1 %v17490_v63  ;;  %15333 = vmatprep.subr.bf16.mxu0 %v17491_v47  ;;  %v17528_v63 = vld [vmem:[#allocation2 + $0x2048] ss:$12 sps:$4 sm:$0xff]  }
 0x554   :  { %15355 = vmatprep.subr.bf16.mxu1 %v17492_v12  ;;  %v17529_v47 = vld [vmem:[#allocation2 + $0x1e08] ss:$12 sps:$4 sm:$0xff]  }
 0x555   :  { %v17530_v12 = vld [vmem:[#allocation2 + $0x1f88] ss:$12 sps:$4 sm:$0xff]  }
 0x556   :  { %15334 = vmatpush3.bf16.msra.mxu0 %v17493_v27  ;;  %v17531_v27 = vld [vmem:[#allocation2 + $0x2270] ss:$12 sps:$4 sm:$0xff]  }
 0x557   :  { %15356 = vmatpush3.bf16.msra.mxu1 %v17494_v37  ;;  %15335 = vmatprep.subr.bf16.mxu0 %v17495_v34  ;;  %v17532_v37 = vld [vmem:[#allocation2 + $0x23f0] ss:$12 sps:$4 sm:$0xff]  }
 0x558   :  { %15357 = vmatprep.subr.bf16.mxu1 %v17496_v44  ;;  %v17533_v34 = vld [vmem:[#allocation2 + $0x21b0] ss:$12 sps:$4 sm:$0xff]  }
 0x559   :  { %v17534_v44 = vld [vmem:[#allocation2 + $0x2330] ss:$12 sps:$4 sm:$0xff]  }
 0x55a   :  { %15336 = vmatpush3.bf16.msra.mxu0 %v17497_v56  ;;  %v17535_v56 = vld [vmem:[#allocation2 + $0x2258] ss:$12 sps:$4 sm:$0xff]  }
 0x55b   :  { %15358 = vmatpush3.bf16.msra.mxu1 %v17498_v54  ;;  %15365 = vmatprep.subr.bf16.mxu0 %v17499_v8  ;;  %v17536_v54 = vld [vmem:[#allocation2 + $0x23d8] ss:$12 sps:$4 sm:$0xff]  }
 0x55c   :  { %15387 = vmatprep.subr.bf16.mxu1 %v17500_v59 }
 0x55d   :  { %v15073_v13 = vpop.f32.mrf.mxu0  ;;  %12835 = vmatmul.mubr.bf16.vlgmr.msra.gmra.mxu0 %v18452_v22  ;;  %v17539_v22 = vld [vmem:[#allocation2 + $0x2240] ss:$12 sps:$4 sm:$0xff]  }
 0x55e   :  { %v15095_v1 = vpop.f32.mrf.mxu1  ;;  %12875 = vmatmul.mubr.bf16.vlgmr.msra.gmra.mxu1 %v18453_v32  ;;  %15366 = vmatpush3.bf16.msra.mxu0 %v17501_v46  ;;  %v18456_v46 = vld [vmem:[#allocation13_spill] sm:$0xff] }
 0x55f   :  { %15388 = vmatpush3.bf16.msra.mxu1 %v17502_v40  ;;  %v15074_v19 = vpop.f32.mrf.mxu0  ;;  %15367 = vmatprep.subr.bf16.mxu0 %v17503_v33  ;;  %v18457_v40 = vld [vmem:[#allocation15_spill] sm:$0xff]  ;;  %v17537_v33 = vld [vmem:[#allocation2 + $0x2198] ss:$12 sps:$4 sm:$0xff]  }
 0x560   :  { %v15096_v16 = vpop.f32.mrf.mxu1  ;;  %15389 = vmatprep.subr.bf16.mxu1 %v17504_v53  ;;  %v15075_v17 = vadd.f32 %v15074_v19, %v15073_v13  ;;  %12914 = vmatprep.mubr.bf16.mxu0 %v18454_v14  ;;  %v17538_v53 = vld [vmem:[#allocation2 + $0x2318] ss:$12 sps:$4 sm:$0xff]   ;;  %v17540_v32 = vld [vmem:[#allocation2 + $0x23c0] ss:$12 sps:$4 sm:$0xff]  }
 0x561   :  { %v15097_v23 = vadd.f32 %v15096_v16, %v15095_v1  ;;  %12954 = vmatprep.mubr.bf16.mxu1 %v18455_v7  ;;  %v15076_v49 = vpop.f32.mrf.mxu0  ;;  %v18458_v19 = vld [vmem:[#allocation14_spill] sm:$0xff]  ;;  %v18459_v16 = vld [vmem:[#allocation16_spill] sm:$0xff]  ;;  %v17542_v14 = vld [vmem:[#allocation2 + $0x2300] ss:$12 sps:$4 sm:$0xff]  }
 0x562   :  { %v15098_v26 = vpop.f32.mrf.mxu1  ;;  %v12357_v30 = vadd.f32 %v15075_v17, %v18354_v28  ;;  %15368 = vmatpush3.bf16.msra.mxu0 %v17505_v2  ;;  %v17518_v28 = vld [vmem:[#allocation2 + $0x1fd0] ss:$12 sps:$4 sm:$0xff]  }
 0x563   :  { %15390 = vmatpush3.bf16.msra.mxu1 %v17506_v18  ;;  %v15077_v35 = vpop.f32.mrf.mxu0  ;;  %15369 = vmatprep.subr.bf16.mxu0 %v17507_v25  ;;  %v17543_v26 = vld [vmem:[#allocation2 + $0x2228] ss:$12 sps:$4 sm:$0xff]  }
 0x564   :  { %v15099_v60 = vpop.f32.mrf.mxu1  ;;  %15391 = vmatprep.subr.bf16.mxu1 %v17508_v5  ;;  %v18361_v0 = vadd.f32 %v15097_v23, %v12357_v30  ;;  %v17541_v23 = vld [vmem:[#allocation2 + $0x2180] ss:$12 sps:$4 sm:$0xff]   ;;  %v17544_v30 = vld [vmem:[#allocation2 + $0x23a8] ss:$12 sps:$4 sm:$0xff]  }
 0x565   :  { %v17546_v35 = vld [vmem:[#allocation2 + $0x22e8] ss:$12 sps:$4 sm:$0xff]   ;;  %v17547_v60 = vld [vmem:[#allocation2 + $0x2210] ss:$12 sps:$4 sm:$0xff]  }
 0x566   :  { %15370 = vmatpush3.bf16.msra.mxu0 %v17509_v29 }
 0x567   :  { %15392 = vmatpush3.bf16.msra.mxu1 %v17510_v10  ;;  %15371 = vmatprep.subr.bf16.mxu0 %v17511_v39  ;;  %v17545_v10 = vld [vmem:[#allocation2 + $0x2168] ss:$12 sps:$4 sm:$0xff]   ;;  %v17548_v39 = vld [vmem:[#allocation2 + $0x2390] ss:$12 sps:$4 sm:$0xff]  }
 0x568   :  { %15393 = vmatprep.subr.bf16.mxu1 %v17512_v61  ;;  %v17549_v61 = vld [vmem:[#allocation2 + $0x2150] ss:$12 sps:$4 sm:$0xff]  }
 0x56a   :  { %15372 = vmatpush3.bf16.msra.mxu0 %v17513_v4  ;;  %v17551_v4 = vld [vmem:[#allocation2 + $0x21f8] ss:$12 sps:$4 sm:$0xff]  }
 0x56b   :  { %15394 = vmatpush3.bf16.msra.mxu1 %v17514_v38  ;;  %15373 = vmatprep.subr.bf16.mxu0 %v17515_v41  ;;  %v17552_v38 = vld [vmem:[#allocation2 + $0x2378] ss:$12 sps:$4 sm:$0xff]  }
 0x56c   :  { %15395 = vmatprep.subr.bf16.mxu1 %v17516_v50  ;;  %v17553_v41 = vld [vmem:[#allocation2 + $0x2138] ss:$12 sps:$4 sm:$0xff]  }
 0x56d   :  { %v17554_v50 = vld [vmem:[#allocation2 + $0x22b8] ss:$12 sps:$4 sm:$0xff]  }
 0x56e   :  { %15374 = vmatpush3.bf16.msra.mxu0 %v17517_v43  ;;  %v17555_v43 = vld [vmem:[#allocation2 + $0x21e0] ss:$12 sps:$4 sm:$0xff]  }
 0x56f   :  { %15396 = vmatpush3.bf16.msra.mxu1 %v17518_v28  ;;  %15375 = vmatprep.subr.bf16.mxu0 %v17519_v58  ;;  %v17556_v28 = vld [vmem:[#allocation2 + $0x2360] ss:$12 sps:$4 sm:$0xff]  }
 0x570   :  { %15397 = vmatprep.subr.bf16.mxu1 %v17520_v6  ;;  %v17557_v58 = vld [vmem:[#allocation2 + $0x2120] ss:$12 sps:$4 sm:$0xff]  }
 0x571   :  { %v17558_v6 = vld [vmem:[#allocation2 + $0x22a0] ss:$12 sps:$4 sm:$0xff]  }
 0x572   :  { %15376 = vmatpush3.bf16.msra.mxu0 %v17521_v20  ;;  %v17559_v20 = vld [vmem:[#allocation2 + $0x21c8] ss:$12 sps:$4 sm:$0xff]  }
 0x573   :  { %15398 = vmatpush3.bf16.msra.mxu1 %v17522_v36  ;;  %15377 = vmatprep.subr.bf16.mxu0 %v17523_v48  ;;  %v17560_v36 = vld [vmem:[#allocation2 + $0x2348] ss:$12 sps:$4 sm:$0xff]  }
 0x574   :  { %15399 = vmatprep.subr.bf16.mxu1 %v17524_v62  ;;  %v17561_v48 = vld [vmem:[#allocation2 + $0x2108] ss:$12 sps:$4 sm:$0xff]  }
 0x575   :  { %v17562_v62 = vld [vmem:[#allocation2 + $0x2288] ss:$12 sps:$4 sm:$0xff]  }
 0x576   :  { %15378 = vmatpush3.bf16.msra.mxu0 %v17525_v11  ;;  %v17563_v11 = vld [vmem:[#allocation2 + $0x2570] ss:$12 sps:$4 sm:$0xff]  }
 0x577   :  { %15400 = vmatpush3.bf16.msra.mxu1 %v17526_v15  ;;  %15379 = vmatprep.subr.bf16.mxu0 %v17527_v24  ;;  %v17564_v15 = vld [vmem:[#allocation2 + $0x26f0] ss:$12 sps:$4 sm:$0xff]  }
 0x578   :  { %15401 = vmatprep.subr.bf16.mxu1 %v17528_v63  ;;  %v17565_v24 = vld [vmem:[#allocation2 + $0x24b0] ss:$12 sps:$4 sm:$0xff]  }
 0x579   :  { %v17566_v63 = vld [vmem:[#allocation2 + $0x2630] ss:$12 sps:$4 sm:$0xff]  }
 0x57a   :  { %15380 = vmatpush3.bf16.msra.mxu0 %v17529_v47  ;;  %v17567_v47 = vld [vmem:[#allocation2 + $0x2558] ss:$12 sps:$4 sm:$0xff]  }
 0x57b   :  { %15402 = vmatpush3.bf16.msra.mxu1 %v17530_v12  ;;  %15409 = vmatprep.subr.bf16.mxu0 %v17531_v27  ;;  %v17568_v12 = vld [vmem:[#allocation2 + $0x26d8] ss:$12 sps:$4 sm:$0xff]  }
 0x57c   :  { %15431 = vmatprep.subr.bf16.mxu1 %v17532_v37 }
 0x57d   :  { %v15117_v8 = vpop.f32.mrf.mxu0  ;;  %12915 = vmatmul.mubr.bf16.vlgmr.msra.gmra.mxu0 %v18456_v46  ;;  %v17571_v46 = vld [vmem:[#allocation2 + $0x2540] ss:$12 sps:$4 sm:$0xff]  }
 0x57e   :  { %v15139_v59 = vpop.f32.mrf.mxu1  ;;  %12955 = vmatmul.mubr.bf16.vlgmr.msra.gmra.mxu1 %v18457_v40  ;;  %15410 = vmatpush3.bf16.msra.mxu0 %v17533_v34  ;;  %v18460_v34 = vld [vmem:[#allocation17_spill] sm:$0xff] }
 0x57f   :  { %15432 = vmatpush3.bf16.msra.mxu1 %v17534_v44  ;;  %v15118_v13 = vpop.f32.mrf.mxu0  ;;  %15411 = vmatprep.subr.bf16.mxu0 %v17535_v56  ;;  %v18461_v44 = vld [vmem:[#allocation19_spill] sm:$0xff]  ;;  %v17569_v56 = vld [vmem:[#allocation2 + $0x2498] ss:$12 sps:$4 sm:$0xff]  }
 0x580   :  { %v15140_v1 = vpop.f32.mrf.mxu1  ;;  %15433 = vmatprep.subr.bf16.mxu1 %v17536_v54  ;;  %v15119_v2 = vadd.f32 %v15118_v13, %v15117_v8  ;;  %12994 = vmatprep.mubr.bf16.mxu0 %v18458_v19  ;;  %v17570_v54 = vld [vmem:[#allocation2 + $0x2618] ss:$12 sps:$4 sm:$0xff]   ;;  %v17572_v40 = vld [vmem:[#allocation2 + $0x26c0] ss:$12 sps:$4 sm:$0xff]  }
 0x581   :  { %v15141_v18 = vadd.f32 %v15140_v1, %v15139_v59  ;;  %13034 = vmatprep.mubr.bf16.mxu1 %v18459_v16  ;;  %v15120_v25 = vpop.f32.mrf.mxu0  ;;  %v18462_v13 = vld [vmem:[#allocation18_spill] sm:$0xff]  ;;  %v18463_v1 = vld [vmem:[#allocation20_spill] sm:$0xff]  ;;  %v17574_v19 = vld [vmem:[#allocation2 + $0x2600] ss:$12 sps:$4 sm:$0xff]  }
 0x582   :  { %v15142_v5 = vpop.f32.mrf.mxu1  ;;  %v12437_v17 = vadd.f32 %v15119_v2, %v18361_v0  ;;  %15412 = vmatpush3.bf16.msra.mxu0 %v17537_v33  ;;  %v17550_v0 = vld [vmem:[#allocation2 + $0x22d0] ss:$12 sps:$4 sm:$0xff]  }
 0x583   :  { %15434 = vmatpush3.bf16.msra.mxu1 %v17538_v53  ;;  %v15121_v7 = vpop.f32.mrf.mxu0  ;;  %15413 = vmatprep.subr.bf16.mxu0 %v17539_v22  ;;  %v17575_v5 = vld [vmem:[#allocation2 + $0x2528] ss:$12 sps:$4 sm:$0xff]  }
 0x584   :  { %v15143_v49 = vpop.f32.mrf.mxu1  ;;  %15435 = vmatprep.subr.bf16.mxu1 %v17540_v32  ;;  %v18368_v29 = vadd.f32 %v15141_v18, %v12437_v17  ;;  %v17573_v18 = vld [vmem:[#allocation2 + $0x2480] ss:$12 sps:$4 sm:$0xff]   ;;  %v17576_v17 = vld [vmem:[#allocation2 + $0x26a8] ss:$12 sps:$4 sm:$0xff]  }
 0x585   :  { %v17578_v7 = vld [vmem:[#allocation2 + $0x25e8] ss:$12 sps:$4 sm:$0xff]   ;;  %v17579_v49 = vld [vmem:[#allocation2 + $0x2510] ss:$12 sps:$4 sm:$0xff]  }
 0x586   :  { %15414 = vmatpush3.bf16.msra.mxu0 %v17541_v23 }
 0x587   :  { %15436 = vmatpush3.bf16.msra.mxu1 %v17542_v14  ;;  %15415 = vmatprep.subr.bf16.mxu0 %v17543_v26  ;;  %v17577_v14 = vld [vmem:[#allocation2 + $0x2468] ss:$12 sps:$4 sm:$0xff]   ;;  %v17580_v26 = vld [vmem:[#allocation2 + $0x2690] ss:$12 sps:$4 sm:$0xff]  }
 0x588   :  { %15437 = vmatprep.subr.bf16.mxu1 %v17544_v30  ;;  %v17581_v30 = vld [vmem:[#allocation2 + $0x2450] ss:$12 sps:$4 sm:$0xff]  }
 0x58a   :  { %15416 = vmatpush3.bf16.msra.mxu0 %v17545_v10  ;;  %v17583_v10 = vld [vmem:[#allocation2 + $0x24f8] ss:$12 sps:$4 sm:$0xff]  }
 0x58b   :  { %15438 = vmatpush3.bf16.msra.mxu1 %v17546_v35  ;;  %15417 = vmatprep.subr.bf16.mxu0 %v17547_v60  ;;  %v17584_v35 = vld [vmem:[#allocation2 + $0x2678] ss:$12 sps:$4 sm:$0xff]  }
 0x58c   :  { %15439 = vmatprep.subr.bf16.mxu1 %v17548_v39  ;;  %v17585_v60 = vld [vmem:[#allocation2 + $0x2438] ss:$12 sps:$4 sm:$0xff]  }
 0x58d   :  { %v17586_v39 = vld [vmem:[#allocation2 + $0x25b8] ss:$12 sps:$4 sm:$0xff]  }
 0x58e   :  { %15418 = vmatpush3.bf16.msra.mxu0 %v17549_v61  ;;  %v17587_v61 = vld [vmem:[#allocation2 + $0x24e0] ss:$12 sps:$4 sm:$0xff]  }
 0x58f   :  { %15440 = vmatpush3.bf16.msra.mxu1 %v17550_v0  ;;  %15419 = vmatprep.subr.bf16.mxu0 %v17551_v4  ;;  %v17588_v0 = vld [vmem:[#allocation2 + $0x2660] ss:$12 sps:$4 sm:$0xff]  }
 0x590   :  { %15441 = vmatprep.subr.bf16.mxu1 %v17552_v38  ;;  %v17589_v4 = vld [vmem:[#allocation2 + $0x2420] ss:$12 sps:$4 sm:$0xff]  }
 0x591   :  { %v17590_v38 = vld [vmem:[#allocation2 + $0x25a0] ss:$12 sps:$4 sm:$0xff]  }
 0x592   :  { %15420 = vmatpush3.bf16.msra.mxu0 %v17553_v41  ;;  %v17591_v41 = vld [vmem:[#allocation2 + $0x24c8] ss:$12 sps:$4 sm:$0xff]  }
 0x593   :  { %15442 = vmatpush3.bf16.msra.mxu1 %v17554_v50  ;;  %15421 = vmatprep.subr.bf16.mxu0 %v17555_v43  ;;  %v17592_v50 = vld [vmem:[#allocation2 + $0x2648] ss:$12 sps:$4 sm:$0xff]  }
 0x594   :  { %15443 = vmatprep.subr.bf16.mxu1 %v17556_v28  ;;  %v17593_v43 = vld [vmem:[#allocation2 + $0x2408] ss:$12 sps:$4 sm:$0xff]  }
 0x595   :  { %v17594_v28 = vld [vmem:[#allocation2 + $0x2588] ss:$12 sps:$4 sm:$0xff]  }
 0x596   :  { %15422 = vmatpush3.bf16.msra.mxu0 %v17557_v58  ;;  %v17595_v58 = vld [vmem:[#allocation2 + $0x2870] ss:$12 sps:$4 sm:$0xff]  }
 0x597   :  { %15444 = vmatpush3.bf16.msra.mxu1 %v17558_v6  ;;  %15423 = vmatprep.subr.bf16.mxu0 %v17559_v20  ;;  %v17596_v6 = vld [vmem:[#allocation2 + $0x29f0] ss:$12 sps:$4 sm:$0xff]  }
 0x598   :  { %15445 = vmatprep.subr.bf16.mxu1 %v17560_v36  ;;  %v17597_v20 = vld [vmem:[#allocation2 + $0x27b0] ss:$12 sps:$4 sm:$0xff]  }
 0x599   :  { %v17598_v36 = vld [vmem:[#allocation2 + $0x2930] ss:$12 sps:$4 sm:$0xff]  }
 0x59a   :  { %15424 = vmatpush3.bf16.msra.mxu0 %v17561_v48  ;;  %v17599_v48 = vld [vmem:[#allocation2 + $0x2858] ss:$12 sps:$4 sm:$0xff]  }
 0x59b   :  { %15446 = vmatpush3.bf16.msra.mxu1 %v17562_v62  ;;  %15453 = vmatprep.subr.bf16.mxu0 %v17563_v11  ;;  %v17600_v62 = vld [vmem:[#allocation2 + $0x29d8] ss:$12 sps:$4 sm:$0xff]  }
 0x59c   :  { %15475 = vmatprep.subr.bf16.mxu1 %v17564_v15 }
 0x59d   :  { %v15161_v27 = vpop.f32.mrf.mxu0  ;;  %12995 = vmatmul.mubr.bf16.vlgmr.msra.gmra.mxu0 %v18460_v34  ;;  %v17603_v34 = vld [vmem:[#allocation2 + $0x2840] ss:$12 sps:$4 sm:$0xff]  }
 0x59e   :  { %v15183_v37 = vpop.f32.mrf.mxu1  ;;  %13035 = vmatmul.mubr.bf16.vlgmr.msra.gmra.mxu1 %v18461_v44  ;;  %15454 = vmatpush3.bf16.msra.mxu0 %v17565_v24  ;;  %v18464_v24 = vld [vmem:[#allocation21_spill] sm:$0xff] }
 0x59f   :  { %15476 = vmatpush3.bf16.msra.mxu1 %v17566_v63  ;;  %v15162_v8 = vpop.f32.mrf.mxu0  ;;  %15455 = vmatprep.subr.bf16.mxu0 %v17567_v47  ;;  %v18465_v63 = vld [vmem:[#allocation23_spill] sm:$0xff]  ;;  %v17601_v47 = vld [vmem:[#allocation2 + $0x2798] ss:$12 sps:$4 sm:$0xff]  }
 0x5a0   :  { %v15184_v59 = vpop.f32.mrf.mxu1  ;;  %15477 = vmatprep.subr.bf16.mxu1 %v17568_v12  ;;  %v15163_v33 = vadd.f32 %v15162_v8, %v15161_v27  ;;  %13074 = vmatprep.mubr.bf16.mxu0 %v18462_v13  ;;  %v17602_v12 = vld [vmem:[#allocation2 + $0x2918] ss:$12 sps:$4 sm:$0xff]   ;;  %v17604_v44 = vld [vmem:[#allocation2 + $0x29c0] ss:$12 sps:$4 sm:$0xff]  }
 0x5a1   :  { %v15185_v53 = vadd.f32 %v15184_v59, %v15183_v37  ;;  %13114 = vmatprep.mubr.bf16.mxu1 %v18463_v1  ;;  %v15164_v22 = vpop.f32.mrf.mxu0  ;;  %v18466_v8 = vld [vmem:[#allocation22_spill] sm:$0xff]  ;;  %v18467_v59 = vld [vmem:[#allocation24_spill] sm:$0xff]  ;;  %v17606_v13 = vld [vmem:[#allocation2 + $0x2900] ss:$12 sps:$4 sm:$0xff]  }
 0x5a2   :  { %v15186_v32 = vpop.f32.mrf.mxu1  ;;  %v12517_v2 = vadd.f32 %v15163_v33, %v18368_v29  ;;  %15456 = vmatpush3.bf16.msra.mxu0 %v17569_v56  ;;  %v17582_v29 = vld [vmem:[#allocation2 + $0x25d0] ss:$12 sps:$4 sm:$0xff]  }
 0x5a3   :  { %15478 = vmatpush3.bf16.msra.mxu1 %v17570_v54  ;;  %v15165_v16 = vpop.f32.mrf.mxu0  ;;  %15457 = vmatprep.subr.bf16.mxu0 %v17571_v46  ;;  %v17607_v32 = vld [vmem:[#allocation2 + $0x2828] ss:$12 sps:$4 sm:$0xff]  }
 0x5a4   :  { %v15187_v25 = vpop.f32.mrf.mxu1  ;;  %15479 = vmatprep.subr.bf16.mxu1 %v17572_v40  ;;  %v18375_v23 = vadd.f32 %v15185_v53, %v12517_v2  ;;  %v17605_v53 = vld [vmem:[#allocation2 + $0x2780] ss:$12 sps:$4 sm:$0xff]   ;;  %v17608_v2 = vld [vmem:[#allocation2 + $0x29a8] ss:$12 sps:$4 sm:$0xff]  }
 0x5a5   :  { %v17610_v16 = vld [vmem:[#allocation2 + $0x28e8] ss:$12 sps:$4 sm:$0xff]   ;;  %v17611_v25 = vld [vmem:[#allocation2 + $0x2810] ss:$12 sps:$4 sm:$0xff]  }
 0x5a6   :  { %15458 = vmatpush3.bf16.msra.mxu0 %v17573_v18 }
 0x5a7   :  { %15480 = vmatpush3.bf16.msra.mxu1 %v17574_v19  ;;  %15459 = vmatprep.subr.bf16.mxu0 %v17575_v5  ;;  %v17609_v19 = vld [vmem:[#allocation2 + $0x2768] ss:$12 sps:$4 sm:$0xff]   ;;  %v17612_v5 = vld [vmem:[#allocation2 + $0x2990] ss:$12 sps:$4 sm:$0xff]  }
 0x5a8   :  { %15481 = vmatprep.subr.bf16.mxu1 %v17576_v17  ;;  %v17613_v17 = vld [vmem:[#allocation2 + $0x2750] ss:$12 sps:$4 sm:$0xff]  }
 0x5aa   :  { %15460 = vmatpush3.bf16.msra.mxu0 %v17577_v14  ;;  %v17615_v14 = vld [vmem:[#allocation2 + $0x27f8] ss:$12 sps:$4 sm:$0xff]  }
 0x5ab   :  { %15482 = vmatpush3.bf16.msra.mxu1 %v17578_v7  ;;  %15461 = vmatprep.subr.bf16.mxu0 %v17579_v49  ;;  %v17616_v7 = vld [vmem:[#allocation2 + $0x2978] ss:$12 sps:$4 sm:$0xff]  }
 0x5ac   :  { %15483 = vmatprep.subr.bf16.mxu1 %v17580_v26  ;;  %v17617_v49 = vld [vmem:[#allocation2 + $0x2738] ss:$12 sps:$4 sm:$0xff]  }
 0x5ad   :  { %v17618_v26 = vld [vmem:[#allocation2 + $0x28b8] ss:$12 sps:$4 sm:$0xff]  }
 0x5ae   :  { %15462 = vmatpush3.bf16.msra.mxu0 %v17581_v30  ;;  %v17619_v30 = vld [vmem:[#allocation2 + $0x27e0] ss:$12 sps:$4 sm:$0xff]  }
 0x5af   :  { %15484 = vmatpush3.bf16.msra.mxu1 %v17582_v29  ;;  %15463 = vmatprep.subr.bf16.mxu0 %v17583_v10  ;;  %v17620_v29 = vld [vmem:[#allocation2 + $0x2960] ss:$12 sps:$4 sm:$0xff]  }
 0x5b0   :  { %15485 = vmatprep.subr.bf16.mxu1 %v17584_v35  ;;  %v17621_v10 = vld [vmem:[#allocation2 + $0x2720] ss:$12 sps:$4 sm:$0xff]  }
 0x5b1   :  { %v17622_v35 = vld [vmem:[#allocation2 + $0x28a0] ss:$12 sps:$4 sm:$0xff]  }
 0x5b2   :  { %15464 = vmatpush3.bf16.msra.mxu0 %v17585_v60  ;;  %v17623_v60 = vld [vmem:[#allocation2 + $0x27c8] ss:$12 sps:$4 sm:$0xff]  }
 0x5b3   :  { %15486 = vmatpush3.bf16.msra.mxu1 %v17586_v39  ;;  %15465 = vmatprep.subr.bf16.mxu0 %v17587_v61  ;;  %v17624_v39 = vld [vmem:[#allocation2 + $0x2948] ss:$12 sps:$4 sm:$0xff]  }
 0x5b4   :  { %15487 = vmatprep.subr.bf16.mxu1 %v17588_v0  ;;  %v17625_v61 = vld [vmem:[#allocation2 + $0x2708] ss:$12 sps:$4 sm:$0xff]  }
 0x5b5   :  { %v17626_v0 = vld [vmem:[#allocation2 + $0x2888] ss:$12 sps:$4 sm:$0xff]  }
 0x5b6   :  { %15466 = vmatpush3.bf16.msra.mxu0 %v17589_v4  ;;  %v17627_v4 = vld [vmem:[#allocation2 + $0x2b70] ss:$12 sps:$4 sm:$0xff]  }
 0x5b7   :  { %15488 = vmatpush3.bf16.msra.mxu1 %v17590_v38  ;;  %15467 = vmatprep.subr.bf16.mxu0 %v17591_v41  ;;  %v17628_v38 = vld [vmem:[#allocation2 + $0x2cf0] ss:$12 sps:$4 sm:$0xff]  }
 0x5b8   :  { %15489 = vmatprep.subr.bf16.mxu1 %v17592_v50  ;;  %v17629_v41 = vld [vmem:[#allocation2 + $0x2ab0] ss:$12 sps:$4 sm:$0xff]  }
 0x5b9   :  { %v17630_v50 = vld [vmem:[#allocation2 + $0x2c30] ss:$12 sps:$4 sm:$0xff]  }
 0x5ba   :  { %15468 = vmatpush3.bf16.msra.mxu0 %v17593_v43  ;;  %v17631_v43 = vld [vmem:[#allocation2 + $0x2b58] ss:$12 sps:$4 sm:$0xff]  }
 0x5bb   :  { %15490 = vmatpush3.bf16.msra.mxu1 %v17594_v28  ;;  %15497 = vmatprep.subr.bf16.mxu0 %v17595_v58  ;;  %v17632_v28 = vld [vmem:[#allocation2 + $0x2cd8] ss:$12 sps:$4 sm:$0xff]  }
 0x5bc   :  { %15519 = vmatprep.subr.bf16.mxu1 %v17596_v6 }
 0x5bd   :  { %v15205_v11 = vpop.f32.mrf.mxu0  ;;  %13075 = vmatmul.mubr.bf16.vlgmr.msra.gmra.mxu0 %v18464_v24  ;;  %v17636_v24 = vld [vmem:[#allocation2 + $0x2cc0] ss:$12 sps:$4 sm:$0xff]  }
 0x5be   :  { %v15227_v15 = vpop.f32.mrf.mxu1  ;;  %13115 = vmatmul.mubr.bf16.vlgmr.msra.gmra.mxu1 %v18465_v63  ;;  %15498 = vmatpush3.bf16.msra.mxu0 %v17597_v20  ;;  %v18468_v20 = vld [vmem:[#allocation26_spill] sm:$0xff] }
 0x5bf   :  { %15520 = vmatpush3.bf16.msra.mxu1 %v17598_v36  ;;  %v15206_v27 = vpop.f32.mrf.mxu0  ;;  %15499 = vmatprep.subr.bf16.mxu0 %v17599_v48  ;;  %v17633_v36 = vld [vmem:[#allocation2 + $0x2a98] ss:$12 sps:$4 sm:$0xff]  }
 0x5c0   :  { %v15228_v37 = vpop.f32.mrf.mxu1  ;;  %15521 = vmatprep.subr.bf16.mxu1 %v17600_v62  ;;  %v15207_v56 = vadd.f32 %v15206_v27, %v15205_v11  ;;  %13154 = vmatprep.mubr.bf16.mxu0 %v18466_v8  ;;  %v17634_v48 = vld [vmem:[#allocation2 + $0x2c18] ss:$12 sps:$4 sm:$0xff]   ;;  %v18470_v27 = vld [vmem:[#allocation27_spill] sm:$0xff] }
 0x5c1   :  { %v15229_v54 = vadd.f32 %v15228_v37, %v15227_v15  ;;  %13194 = vmatprep.mubr.bf16.mxu1 %v18467_v59  ;;  %v15208_v46 = vpop.f32.mrf.mxu0  ;;  %v17635_v15 = vld [vmem:[#allocation2 + $0x2b40] ss:$12 sps:$4 sm:$0xff]   ;;  %v17639_v59 = vld [vmem:[#allocation2 + $0x2b28] ss:$12 sps:$4 sm:$0xff]  }
 0x5c2   :  { %v15230_v40 = vpop.f32.mrf.mxu1  ;;  %v12597_v33 = vadd.f32 %v15207_v56, %v18375_v23  ;;  %15500 = vmatpush3.bf16.msra.mxu0 %v17601_v47  ;;  %v17614_v23 = vld [vmem:[#allocation2 + $0x28d0] ss:$12 sps:$4 sm:$0xff]   ;;  %v17638_v56 = vld [vmem:[#allocation2 + $0x2c00] ss:$12 sps:$4 sm:$0xff]   ;;  %v17640_v46 = vld [vmem:[#allocation2 + $0x2ca8] ss:$12 sps:$4 sm:$0xff]  }
 0x5c3   :  { %15522 = vmatpush3.bf16.msra.mxu1 %v17602_v12  ;;  %v15209_v1 = vpop.f32.mrf.mxu0  ;;  %15501 = vmatprep.subr.bf16.mxu0 %v17603_v34  ;;  %v18469_v12 = vld [vmem:[#allocation25_spill] sm:$0xff] }
 0x5c4   :  { %v15231_v22 = vpop.f32.mrf.mxu1  ;;  %15523 = vmatprep.subr.bf16.mxu1 %v17604_v44  ;;  %v18382_v18 = vadd.f32 %v15229_v54, %v12597_v33  ;;  %v17637_v44 = vld [vmem:[#allocation2 + $0x2a80] ss:$12 sps:$4 sm:$0xff]   ;;  %v17641_v33 = vld [vmem:[#allocation2 + $0x2a68] ss:$12 sps:$4 sm:$0xff]   ;;  %v17644_v1 = vld [vmem:[#allocation2 + $0x2c90] ss:$12 sps:$4 sm:$0xff]  }
 0x5c5   :  { %v17645_v22 = vld [vmem:[#allocation2 + $0x2a50] ss:$12 sps:$4 sm:$0xff]  }
 0x5c6   :  { %15502 = vmatpush3.bf16.msra.mxu0 %v17605_v53  ;;  %v17642_v53 = vld [vmem:[#allocation2 + $0x2be8] ss:$12 sps:$4 sm:$0xff]  }
 0x5c7   :  { %15524 = vmatpush3.bf16.msra.mxu1 %v17606_v13  ;;  %15503 = vmatprep.subr.bf16.mxu0 %v17607_v32  ;;  %v17643_v13 = vld [vmem:[#allocation2 + $0x2b10] ss:$12 sps:$4 sm:$0xff]  }
 0x5c8   :  { %15525 = vmatprep.subr.bf16.mxu1 %v17608_v2  ;;  %v17646_v32 = vld [vmem:[#allocation2 + $0x2bd0] ss:$12 sps:$4 sm:$0xff]   ;;  %v17647_v2 = vld [vmem:[#allocation2 + $0x2af8] ss:$12 sps:$4 sm:$0xff]  }
 0x5ca   :  { %15504 = vmatpush3.bf16.msra.mxu0 %v17609_v19  ;;  %v17649_v19 = vld [vmem:[#allocation2 + $0x2a38] ss:$12 sps:$4 sm:$0xff]  }
 0x5cb   :  { %15526 = vmatpush3.bf16.msra.mxu1 %v17610_v16  ;;  %15505 = vmatprep.subr.bf16.mxu0 %v17611_v25  ;;  %v17650_v16 = vld [vmem:[#allocation2 + $0x2bb8] ss:$12 sps:$4 sm:$0xff]   ;;  %v17651_v25 = vld [vmem:[#allocation2 + $0x2ae0] ss:$12 sps:$4 sm:$0xff]  }
 0x5cc   :  { %15527 = vmatprep.subr.bf16.mxu1 %v17612_v5  ;;  %v17652_v5 = vld [vmem:[#allocation2 + $0x2c60] ss:$12 sps:$4 sm:$0xff]  }
 0x5ce   :  { %15506 = vmatpush3.bf16.msra.mxu0 %v17613_v17  ;;  %v17653_v17 = vld [vmem:[#allocation2 + $0x2a20] ss:$12 sps:$4 sm:$0xff]  }
 0x5cf   :  { %15528 = vmatpush3.bf16.msra.mxu1 %v17614_v23  ;;  %15507 = vmatprep.subr.bf16.mxu0 %v17615_v14  ;;  %v17654_v23 = vld [vmem:[#allocation2 + $0x2ba0] ss:$12 sps:$4 sm:$0xff]   ;;  %v17655_v14 = vld [vmem:[#allocation2 + $0x2ac8] ss:$12 sps:$4 sm:$0xff]  }
 0x5d0   :  { %15529 = vmatprep.subr.bf16.mxu1 %v17616_v7  ;;  %v17656_v7 = vld [vmem:[#allocation2 + $0x2c48] ss:$12 sps:$4 sm:$0xff]  }
 0x5d2   :  { %15508 = vmatpush3.bf16.msra.mxu0 %v17617_v49  ;;  %v17657_v49 = vld [vmem:[#allocation2 + $0x2a08] ss:$12 sps:$4 sm:$0xff]  }
 0x5d3   :  { %15530 = vmatpush3.bf16.msra.mxu1 %v17618_v26  ;;  %15509 = vmatprep.subr.bf16.mxu0 %v17619_v30  ;;  %v17658_v26 = vld [vmem:[#allocation2 + $0x2b88] ss:$12 sps:$4 sm:$0xff]   ;;  %v17659_v30 = vld [vmem:[#allocation2 + $0x2e70] ss:$12 sps:$4 sm:$0xff]  }
 0x5d4   :  { %15531 = vmatprep.subr.bf16.mxu1 %v17620_v29  ;;  %v17660_v29 = vld [vmem:[#allocation2 + $0x2ff0] ss:$12 sps:$4 sm:$0xff]  }
 0x5d6   :  { %15510 = vmatpush3.bf16.msra.mxu0 %v17621_v10  ;;  %v17661_v10 = vld [vmem:[#allocation2 + $0x2db0] ss:$12 sps:$4 sm:$0xff]  }
 0x5d7   :  { %15532 = vmatpush3.bf16.msra.mxu1 %v17622_v35  ;;  %15511 = vmatprep.subr.bf16.mxu0 %v17623_v60  ;;  %v17662_v35 = vld [vmem:[#allocation2 + $0x2f30] ss:$12 sps:$4 sm:$0xff]   ;;  %v17663_v60 = vld [vmem:[#allocation2 + $0x2e58] ss:$12 sps:$4 sm:$0xff]  }
 0x5d8   :  { %15533 = vmatprep.subr.bf16.mxu1 %v17624_v39  ;;  %v17664_v39 = vld [vmem:[#allocation2 + $0x2fd8] ss:$12 sps:$4 sm:$0xff]  }
 0x5da   :  { %15512 = vmatpush3.bf16.msra.mxu0 %v17625_v61 }
 0x5db   :  { %15534 = vmatpush3.bf16.msra.mxu1 %v17626_v0  ;;  %15541 = vmatprep.subr.bf16.mxu0 %v17627_v4  ;;  %v18471_v4 = vld [vmem:[#allocation28_spill] sm:$0xff] }
 0x5dc   :  { %15563 = vmatprep.subr.bf16.mxu1 %v17628_v38  ;;  %v17665_v38 = vld [vmem:[#allocation2 + $0x2d98] ss:$12 sps:$4 sm:$0xff]  }
 0x5dd   :  { %v15249_v58 = vpop.f32.mrf.mxu0  ;;  %13155 = vmatmul.mubr.bf16.vlgmr.msra.gmra.mxu0 %v18218_v51 }
 0x5de   :  { %v15271_v6 = vpop.f32.mrf.mxu1  ;;  %13195 = vmatmul.mubr.bf16.vlgmr.msra.gmra.mxu1 %v18468_v20  ;;  %15542 = vmatpush3.bf16.msra.mxu0 %v17629_v41  ;;  %v17666_v41 = vld [vmem:[#allocation2 + $0x2f18] ss:$12 sps:$4 sm:$0xff]  }
 0x5df   :  { %15564 = vmatpush3.bf16.msra.mxu1 %v17630_v50  ;;  %v15250_v62 = vpop.f32.mrf.mxu0  ;;  %15543 = vmatprep.subr.bf16.mxu0 %v17631_v43 }
 0x5e0   :  { %v15272_v11 = vpop.f32.mrf.mxu1  ;;  %15565 = vmatprep.subr.bf16.mxu1 %v17632_v28  ;;  %v15251_v63 = vadd.f32 %v15250_v62, %v15249_v58  ;;  %13234 = vmatprep.mubr.bf16.mxu0 %v18469_v12  ;;  %v17667_v28 = vld [vmem:[#allocation2 + $0x2e40] ss:$12 sps:$4 sm:$0xff]  }
 0x5e1   :  { %v15273_v47 = vadd.f32 %v15272_v11, %v15271_v6  ;;  %13274 = vmatprep.mubr.bf16.mxu1 %v18470_v27  ;;  %v15252_v37 = vpop.f32.mrf.mxu0  ;;  %v17668_v58 = vld [vmem:[#allocation2 + $0x2fc0] ss:$12 sps:$4 sm:$0xff]   ;;  %v17674_v27 = vld [vmem:[#allocation2 + $0x2ee8] ss:$12 sps:$4 sm:$0xff]  }
 0x5e2   :  { %v15274_v51 = vpop.f32.mrf.mxu1  ;;  %v12677_v34 = vadd.f32 %v15251_v63, %v18382_v18  ;;  %15544 = vmatpush3.bf16.msra.mxu0 %v17633_v36  ;;  %v17648_v18 = vld [vmem:[#allocation2 + $0x2c78] ss:$12 sps:$4 sm:$0xff]   ;;  %v17669_v62 = vld [vmem:[#allocation2 + $0x2d80] ss:$12 sps:$4 sm:$0xff]   ;;  %v17671_v63 = vld [vmem:[#allocation2 + $0x2e28] ss:$12 sps:$4 sm:$0xff]  }
 0x5e3   :  { %15566 = vmatpush3.bf16.msra.mxu1 %v17634_v48  ;;  %v15253_v54 = vpop.f32.mrf.mxu0  ;;  %15545 = vmatprep.subr.bf16.mxu0 %v17635_v15  ;;  %v17670_v11 = vld [vmem:[#allocation2 + $0x2f00] ss:$12 sps:$4 sm:$0xff]   ;;  %v17676_v37 = vld [vmem:[#allocation2 + $0x2f90] ss:$12 sps:$4 sm:$0xff]  }
 0x5e4   :  { %v15275_v8 = vpop.f32.mrf.mxu1  ;;  %15567 = vmatprep.subr.bf16.mxu1 %v17636_v24  ;;  %v18389_v40 = vadd.f32 %v15273_v47, %v12677_v34  ;;  %v17672_v47 = vld [vmem:[#allocation2 + $0x2fa8] ss:$12 sps:$4 sm:$0xff]   ;;  %v17677_v51 = vld [vmem:[#allocation2 + $0x2d50] ss:$12 sps:$4 sm:$0xff]   ;;  %v17681_v54 = vld [vmem:[#allocation2 + $0x2d38] ss:$12 sps:$4 sm:$0xff]  }
 0x5e5   :  { %v17678_v34 = vld [vmem:[#allocation2 + $0x2ed0] ss:$12 sps:$4 sm:$0xff]   ;;  %v17682_v8 = vld [vmem:[#allocation2 + $0x2eb8] ss:$12 sps:$4 sm:$0xff]  }
 0x5e6   :  { %15546 = vmatpush3.bf16.msra.mxu0 %v17637_v44  ;;  %v17679_v44 = vld [vmem:[#allocation2 + $0x2df8] ss:$12 sps:$4 sm:$0xff]  }
 0x5e7   :  { %15568 = vmatpush3.bf16.msra.mxu1 %v17638_v56  ;;  %15547 = vmatprep.subr.bf16.mxu0 %v17639_v59  ;;  %v17680_v56 = vld [vmem:[#allocation2 + $0x2f78] ss:$12 sps:$4 sm:$0xff]   ;;  %v17683_v59 = vld [vmem:[#allocation2 + $0x2de0] ss:$12 sps:$4 sm:$0xff]  }
 0x5e8   :  { %15569 = vmatprep.subr.bf16.mxu1 %v17640_v46  ;;  %v17684_v46 = vld [vmem:[#allocation2 + $0x2f60] ss:$12 sps:$4 sm:$0xff]  }
 0x5ea   :  { %15548 = vmatpush3.bf16.msra.mxu0 %v17641_v33  ;;  %v17686_v33 = vld [vmem:[#allocation2 + $0x2ea0] ss:$12 sps:$4 sm:$0xff]  }
 0x5eb   :  { %15570 = vmatpush3.bf16.msra.mxu1 %v17642_v53  ;;  %15549 = vmatprep.subr.bf16.mxu0 %v17643_v13  ;;  %v17687_v53 = vld [vmem:[#allocation2 + $0x2dc8] ss:$12 sps:$4 sm:$0xff]  }
 0x5ec   :  { %15571 = vmatprep.subr.bf16.mxu1 %v17644_v1  ;;  %v17688_v13 = vld [vmem:[#allocation2 + $0x2f48] ss:$12 sps:$4 sm:$0xff]  }
 0x5ed   :  { %v17689_v1 = vld [vmem:[#allocation2 + $0x2d08] ss:$12 sps:$4 sm:$0xff]  }
 0x5ee   :  { %15550 = vmatpush3.bf16.msra.mxu0 %v17645_v22  ;;  %v17690_v22 = vld [vmem:[#allocation2 + $0x2e88] ss:$12 sps:$4 sm:$0xff]  }
 0x5ef   :  { %15572 = vmatpush3.bf16.msra.mxu1 %v17646_v32  ;;  %15551 = vmatprep.subr.bf16.mxu0 %v17647_v2 }
 0x5f0   :  { %15573 = vmatprep.subr.bf16.mxu1 %v17648_v18 }
 0x5f2   :  { %15552 = vmatpush3.bf16.msra.mxu0 %v17649_v19 }
 0x5f3   :  { %15574 = vmatpush3.bf16.msra.mxu1 %v17650_v16  ;;  %15553 = vmatprep.subr.bf16.mxu0 %v17651_v25 }
 0x5f4   :  { %15575 = vmatprep.subr.bf16.mxu1 %v17652_v5 }
 0x5f6   :  { %15554 = vmatpush3.bf16.msra.mxu0 %v17653_v17 }
 0x5f7   :  { %15576 = vmatpush3.bf16.msra.mxu1 %v17654_v23  ;;  %15555 = vmatprep.subr.bf16.mxu0 %v17655_v14 }
 0x5f8   :  { %15577 = vmatprep.subr.bf16.mxu1 %v17656_v7 }
 0x5fa   :  { %15556 = vmatpush3.bf16.msra.mxu0 %v17657_v49 }
 0x5fb   :  { %15578 = vmatpush3.bf16.msra.mxu1 %v17658_v26  ;;  %15585 = vmatprep.subr.bf16.mxu0 %v17659_v30 }
 0x5fc   :  { %15607 = vmatprep.subr.bf16.mxu1 %v17660_v29 }
 0x5fd   :  { %v15293_v61 = vpop.f32.mrf.mxu0  ;;  %13235 = vmatmul.mubr.bf16.vlgmr.msra.gmra.mxu0 %v18250_v3 }
 0x5fe   :  { %v15315_v0 = vpop.f32.mrf.mxu1  ;;  %13275 = vmatmul.mubr.bf16.vlgmr.msra.gmra.mxu1 %v18471_v4  ;;  %15586 = vmatpush3.bf16.msra.mxu0 %v17661_v10 }
 0x5ff   :  { %15608 = vmatpush3.bf16.msra.mxu1 %v17662_v35  ;;  %v15294_v50 = vpop.f32.mrf.mxu0  ;;  %15587 = vmatprep.subr.bf16.mxu0 %v17663_v60 }
 0x600   :  { %v15316_v43 = vpop.f32.mrf.mxu1  ;;  %15609 = vmatprep.subr.bf16.mxu1 %v17664_v39  ;;  %v15295_v6 = vadd.f32 %v15294_v50, %v15293_v61  ;;  %13314 = vmatprep.mubr.bf16.mxu0 %v18253_v57  ;;  %v17673_v57 = vld [vmem:[#allocation2 + $0x2d68] ss:$12 sps:$4 sm:$0xff]  }
 0x601   :  { %v15317_v20 = vadd.f32 %v15316_v43, %v15315_v0  ;;  %13354 = vmatprep.mubr.bf16.mxu1 %v18261_v21  ;;  %v15296_v36 = vpop.f32.mrf.mxu0  ;;  %v17675_v21 = vld [vmem:[#allocation2 + $0x2e10] ss:$12 sps:$4 sm:$0xff]  }
 0x602   :  { %v15318_v3 = vpop.f32.mrf.mxu1  ;;  %v12757_v48 = vadd.f32 %v15295_v6, %v18389_v40  ;;  %15588 = vmatpush3.bf16.msra.mxu0 %v17665_v38  ;;  %v17685_v40 = vld [vmem:[#allocation2 + $0x2d20] ss:$12 sps:$4 sm:$0xff]  }
 0x603   :  { %15610 = vmatpush3.bf16.msra.mxu1 %v17666_v41  ;;  %v15297_v15 = vpop.f32.mrf.mxu0  ;;  %15589 = vmatprep.subr.bf16.mxu0 %v17667_v28 }
 0x604   :  { %v15319_v24 = vpop.f32.mrf.mxu1  ;;  %15611 = vmatprep.subr.bf16.mxu1 %v17668_v58  ;;  %v12797_v12 = vadd.f32 %v15317_v20, %v12757_v48 }
 0x606   :  { %15590 = vmatpush3.bf16.msra.mxu0 %v17669_v62 }
 0x607   :  { %15612 = vmatpush3.bf16.msra.mxu1 %v17670_v11  ;;  %15591 = vmatprep.subr.bf16.mxu0 %v17671_v63 }
 0x608   :  { %15613 = vmatprep.subr.bf16.mxu1 %v17672_v47 }
 0x60a   :  { %15592 = vmatpush3.bf16.msra.mxu0 %v17673_v57 }
 0x60b   :  { %15614 = vmatpush3.bf16.msra.mxu1 %v17674_v27  ;;  %15593 = vmatprep.subr.bf16.mxu0 %v17675_v21 }
 0x60c   :  { %15615 = vmatprep.subr.bf16.mxu1 %v17676_v37 }
 0x60e   :  { %15594 = vmatpush3.bf16.msra.mxu0 %v17677_v51 }
 0x60f   :  { %15616 = vmatpush3.bf16.msra.mxu1 %v17678_v34  ;;  %15595 = vmatprep.subr.bf16.mxu0 %v17679_v44 }
 0x610   :  { %15617 = vmatprep.subr.bf16.mxu1 %v17680_v56 }
 0x612   :  { %15596 = vmatpush3.bf16.msra.mxu0 %v17681_v54 }
 0x613   :  { %15618 = vmatpush3.bf16.msra.mxu1 %v17682_v8  ;;  %15597 = vmatprep.subr.bf16.mxu0 %v17683_v59 }
 0x614   :  { %15619 = vmatprep.subr.bf16.mxu1 %v17684_v46 }
 0x616   :  { %15598 = vmatpush3.bf16.msra.mxu0 %v17685_v40 }
 0x617   :  { %15620 = vmatpush3.bf16.msra.mxu1 %v17686_v33  ;;  %15599 = vmatprep.subr.bf16.mxu0 %v17687_v53 }
 0x618   :  { %15621 = vmatprep.subr.bf16.mxu1 %v17688_v13 }
 0x61a   :  { %15600 = vmatpush3.bf16.msra.mxu0 %v17689_v1 }
 0x61b   :  { %15622 = vmatpush3.bf16.msra.mxu1 %v17690_v22 }
 0x61d   :  { %v15337_v32 = vpop.f32.mrf.mxu0  ;;  %13315 = vmatmul.mubr.bf16.vlgmr.msra.gmra.mxu0 %v18275_v9 }
 0x61e   :  { %v15359_v2 = vpop.f32.mrf.mxu1  ;;  %13355 = vmatmul.mubr.bf16.vlgmr.msra.gmra.mxu1 %v18279_v31 }
 0x61f   :  { %v15338_v18 = vpop.f32.mrf.mxu0 }
 0x620   :  { %v15360_v19 = vpop.f32.mrf.mxu1  ;;  %v15339_v16 = vadd.f32 %v15338_v18, %v15337_v32 }
 0x621   :  { %v15361_v25 = vadd.f32 %v15360_v19, %v15359_v2  ;;  %v15340_v5 = vpop.f32.mrf.mxu0 }
 0x622   :  { %v15362_v17 = vpop.f32.mrf.mxu1  ;;  %v12837_v23 = vadd.f32 %v15339_v16, %v12797_v12 }
 0x623   :  { %v15341_v14 = vpop.f32.mrf.mxu0 }
 0x624   :  { %v15363_v7 = vpop.f32.mrf.mxu1  ;;  %v12877_v49 = vadd.f32 %v15361_v25, %v12837_v23  ;;  %v17741_v23 = vmov 1983009808  }
 0x625   :  { %v13367_v14 = vunpack.c.l.s4 %v17741_v23 }
 0x63d   :  { %v15381_v26 = vpop.f32.mrf.mxu0 }
 0x63e   :  { %v15403_v30 = vpop.f32.mrf.mxu1 }
 0x63f   :  { %v15382_v29 = vpop.f32.mrf.mxu0 }
 0x640   :  { %v15404_v10 = vpop.f32.mrf.mxu1  ;;  %v15383_v35 = vadd.f32 %v15382_v29, %v15381_v26 }
 0x641   :  { %v15405_v60 = vadd.f32 %v15404_v10, %v15403_v30  ;;  %v15384_v39 = vpop.f32.mrf.mxu0  ;;  %v13368_v10 = vunpack.c.0.s8 %v13367_v14 }
 0x642   :  { %v15406_v9 = vpop.f32.mrf.mxu1  ;;  %v12917_v61 = vadd.f32 %v15383_v35, %v12877_v49 }
 0x643   :  { %v15385_v31 = vpop.f32.mrf.mxu0 }
 0x644   :  { %v15407_v0 = vpop.f32.mrf.mxu1  ;;  %v12957_v4 = vadd.f32 %v15405_v60, %v12917_v61 }
 0x645   :  { %v13371_v0 = vsub.s32 %v13368_v10, %v17768_v42 }
 0x65d   :  { %v15425_v38 = vpop.f32.mrf.mxu0 }
 0x65e   :  { %v15447_v41 = vpop.f32.mrf.mxu1 }
 0x65f   :  { %v15426_v50 = vpop.f32.mrf.mxu0 }
 0x660   :  { %v15448_v43 = vpop.f32.mrf.mxu1  ;;  %v15427_v28 = vadd.f32 %v15426_v50, %v15425_v38 }
 0x661   :  { %v15449_v58 = vadd.f32 %v15448_v43, %v15447_v41  ;;  %v15428_v6 = vpop.f32.mrf.mxu0 }
 0x662   :  { %v15450_v20 = vpop.f32.mrf.mxu1  ;;  %v12997_v36 = vadd.f32 %v15427_v28, %v12957_v4  ;;  %v13372_v28 = vrot.slane %v13365_v45, %v13371_v0 }
 0x663   :  { %v15429_v3 = vpop.f32.mrf.mxu0 }
 0x664   :  { %v15451_v48 = vpop.f32.mrf.mxu1  ;;  %v13037_v62 = vadd.f32 %v15449_v58, %v12997_v36 }
 0x67d   :  { %v15469_v11 = vpop.f32.mrf.mxu0 }
 0x67e   :  { %v15491_v15 = vpop.f32.mrf.mxu1 }
 0x67f   :  { %v15470_v24 = vpop.f32.mrf.mxu0 }
 0x680   :  { %v15492_v63 = vpop.f32.mrf.mxu1  ;;  %v15471_v47 = vadd.f32 %v15470_v24, %v15469_v11 }
 0x681   :  { %v15493_v12 = vadd.f32 %v15492_v63, %v15491_v15  ;;  %v15472_v57 = vpop.f32.mrf.mxu0 }
 0x682   :  { %v15494_v27 = vpop.f32.mrf.mxu1  ;;  %v13077_v21 = vadd.f32 %v15471_v47, %v13037_v62 }
 0x683   :  { %v15473_v37 = vpop.f32.mrf.mxu0 }
 0x684   :  { %v15495_v51 = vpop.f32.mrf.mxu1  ;;  %v13117_v34 = vadd.f32 %v15493_v12, %v13077_v21 }
 0x69d   :  { %v15513_v44 = vpop.f32.mrf.mxu0 }
 0x69e   :  { %v15535_v56 = vpop.f32.mrf.mxu1 }
 0x69f   :  { %v15514_v54 = vpop.f32.mrf.mxu0 }
 0x6a0   :  { %v15536_v8 = vpop.f32.mrf.mxu1  ;;  %v15515_v16 = vadd.f32 %v15514_v54, %v15513_v44 }
 0x6a1   :  { %v15516_v59 = vpop.f32.mrf.mxu0  ;;  %v15537_v5 = vadd.f32 %v15536_v8, %v15535_v56 }
 0x6a2   :  { %v15538_v46 = vpop.f32.mrf.mxu1  ;;  %v13157_v25 = vadd.f32 %v15515_v16, %v13117_v34 }
 0x6a3   :  { %v15517_v40 = vpop.f32.mrf.mxu0 }
 0x6a4   :  { %v15539_v33 = vpop.f32.mrf.mxu1  ;;  %v13197_v7 = vadd.f32 %v15537_v5, %v13157_v25 }
 0x6bd   :  { %v15557_v53 = vpop.f32.mrf.mxu0 }
 0x6be   :  { %v15579_v13 = vpop.f32.mrf.mxu1 }
 0x6bf   :  { %v15558_v1 = vpop.f32.mrf.mxu0 }
 0x6c0   :  { %v15580_v22 = vpop.f32.mrf.mxu1  ;;  %v15559_v17 = vadd.f32 %v15558_v1, %v15557_v53 }
 0x6c1   :  { %v15560_v32 = vpop.f32.mrf.mxu0  ;;  %v15581_v26 = vadd.f32 %v15580_v22, %v15579_v13 }
 0x6c2   :  { %v15582_v2 = vpop.f32.mrf.mxu1  ;;  %v13237_v49 = vadd.f32 %v15559_v17, %v13197_v7 }
 0x6c3   :  { %v15561_v18 = vpop.f32.mrf.mxu0 }
 0x6c4   :  { %v15583_v19 = vpop.f32.mrf.mxu1  ;;  %v13277_v39 = vadd.f32 %v15581_v26, %v13237_v49 }
 0x6dd   :  { %v15601_v30 = vpop.f32.mrf.mxu0 }
 0x6de   :  { %v15623_v29 = vpop.f32.mrf.mxu1 }
 0x6df   :  { %v15602_v35 = vpop.f32.mrf.mxu0 }
 0x6e0   :  { %v15624_v60 = vpop.f32.mrf.mxu1  ;;  %v15603_v9 = vadd.f32 %v15602_v35, %v15601_v30 }
 0x6e1   :  { %v15604_v61 = vpop.f32.mrf.mxu0  ;;  %v15625_v38 = vadd.f32 %v15624_v60, %v15623_v29 }
 0x6e2   :  { %v15626_v31 = vpop.f32.mrf.mxu1  ;;  %v13317_v4 = vadd.f32 %v15603_v9, %v13277_v39 }
 0x6e3   :  { %v15605_v41 = vpop.f32.mrf.mxu0 }
 0x6e4   :  { %v15627_v50 = vpop.f32.mrf.mxu1  ;;  %v13357_v43 = vadd.f32 %v15625_v38, %v13317_v4 }
 0x6e6   :  { %v13379_v58 = vrot.slane %v13357_v43, %v13371_v0 }
 0x6e8   :  { %v13380_v6 = vcombine.low %v13372_v28, %v13379_v58 }
 0x6ea   :  { %13382 = vst [vmem:[%s18408_s3] sm:$0x3f] %v13380_v6 }
 0x6eb   :  { %13387 = vsyncpa [#allocation3], 1 }
 0x6ec   :  { %13388 = vsyncpa [#allocation5], 1 }

</bundles_post_ra>
